<compile_context>
chip_gen: v6e
topology: v6e:2x2x1
jax: 0.10.0
libtpu: 0.0.40
codegen_flags: <defaults>
</compile_context>

<pallas_src>
import functools
import math

import jax
import jax.numpy as jnp
from jax import lax
from jax.experimental import pallas as pl
from jax.experimental.pallas import tpu as pltpu

F32 = jnp.float32


# ----------------------------- in-kernel helpers ---------------------------

def _causal_mask(n):
    i = lax.broadcasted_iota(jnp.int32, (n, n), 0)
    j = lax.broadcasted_iota(jnp.int32, (n, n), 1)
    return jnp.where(j <= i, 0.0, -1e9).astype(jnp.float32)


def _layer_norm(x, g, b, eps=1e-5):
    mu = jnp.mean(x, axis=-1, keepdims=True)
    var = jnp.mean(jnp.square(x - mu), axis=-1, keepdims=True)
    return (x - mu) * lax.rsqrt(var + eps) * g + b


def _softmax_rows(s):
    s = s - jnp.max(s, axis=-1, keepdims=True)
    p = jnp.exp(s)
    return p * pl.reciprocal(jnp.sum(p, axis=-1, keepdims=True), approx=True)


def _mha(q, k, v, wo, bo, mask, nhead):
    """q: [Sq, H], k/v: [Sk, H] (already projected). Unrolled over heads."""
    _, H = q.shape
    hd = H // nhead
    scale = 1.0 / math.sqrt(hd)
    outs = []
    for n in range(nhead):
        sl = slice(n * hd, (n + 1) * hd)
        qh, kh, vh = q[:, sl], k[:, sl], v[:, sl]
        s = lax.dot_general(qh, kh, (((1,), (1,)), ((), ())),
                            preferred_element_type=jnp.float32) * scale
        if mask is not None:
            s = s + mask
        p = _softmax_rows(s)
        outs.append(jnp.dot(p, vh, preferred_element_type=jnp.float32))
    o = jnp.concatenate(outs, axis=-1)                         # [Sq, H]
    return jnp.dot(o, wo, preferred_element_type=jnp.float32) + bo


def _ffn(x, lp):
    h = jnp.dot(x, lp["ff1_w"][...], preferred_element_type=jnp.float32) + lp["ff1_b"][...]
    h = jnp.maximum(h, 0.0)
    return jnp.dot(h, lp["ff2_w"][...], preferred_element_type=jnp.float32) + lp["ff2_b"][...]


def _encoder_layer(h, lp, mask, nhead):
    H = h.shape[-1]
    qkv = jnp.dot(h, lp["qkv_w"][...], preferred_element_type=jnp.float32) + lp["qkv_b"][...]
    q, k, v = qkv[:, :H], qkv[:, H:2 * H], qkv[:, 2 * H:]
    a = _mha(q, k, v, lp["o_w"][...], lp["o_b"][...], mask, nhead)
    h = _layer_norm(h + a, lp["ln1_g"][...], lp["ln1_b"][...])
    f = _ffn(h, lp)
    h = _layer_norm(h + f, lp["ln2_g"][...], lp["ln2_b"][...])
    return h


def _decoder_layer(h, mem, lp, mask, nhead):
    H = h.shape[-1]
    # self attention (causal)
    qkv = jnp.dot(h, lp["sqkv_w"][...], preferred_element_type=jnp.float32) + lp["sqkv_b"][...]
    q, k, v = qkv[:, :H], qkv[:, H:2 * H], qkv[:, 2 * H:]
    a = _mha(q, k, v, lp["so_w"][...], lp["so_b"][...], mask, nhead)
    h = _layer_norm(h + a, lp["ln1_g"][...], lp["ln1_b"][...])
    # cross attention to memory (no mask)
    q = jnp.dot(h, lp["cq_w"][...], preferred_element_type=jnp.float32) + lp["cq_b"][...]
    kv = jnp.dot(mem, lp["ckv_w"][...], preferred_element_type=jnp.float32) + lp["ckv_b"][...]
    k, v = kv[:, :H], kv[:, H:]
    a = _mha(q, k, v, lp["co_w"][...], lp["co_b"][...], None, nhead)
    h = _layer_norm(h + a, lp["ln2_g"][...], lp["ln2_b"][...])
    # feed-forward
    f = _ffn(h, lp)
    h = _layer_norm(h + f, lp["ln3_g"][...], lp["ln3_b"][...])
    return h


# ------------------------------- fused kernel ------------------------------

def _fused_forward_kernel(px_ref, py_ref, fx_ref, *rest,
                          treedef, n_params, nhead, min_std):
    param_refs = rest[:n_params]
    mean_ref, sigma_ref = rest[n_params], rest[n_params + 1]
    P = jax.tree_util.tree_unflatten(treedef, list(param_refs))
    enc, dec = P["enc"], P["dec"]

    px = px_ref[...]            # [S, x_size]
    py = py_ref[...]            # [S, y_size]
    fx = fx_ref[...]            # [T, x_size]
    S = px.shape[0]
    T = fx.shape[0]

    # ------------------ latent encoder on the past window -------------------
    h = (jnp.dot(px, enc["emb_wx"][...], preferred_element_type=jnp.float32)
         + jnp.dot(py, enc["emb_wy"][...], preferred_element_type=jnp.float32)
         + enc["emb_b"][...])                                  # [S, H]

    enc_mask = _causal_mask(S)
    for lp in enc["layers"]:
        h = _encoder_layer(h, lp, enc_mask, nhead)
    h = _layer_norm(h, enc["norm_g"][...], enc["norm_b"][...])

    r_mean = jnp.mean(h, axis=0, keepdims=True)                # [1, H]
    r_last = h[S - 1:S, :]                                     # [1, H]
    r_max = jnp.max(h, axis=0, keepdims=True)                  # [1, H]
    # prior mean == z (eval mode), head weight pre-split over the 3 pooled parts
    z = (jnp.dot(r_mean, enc["mean_w_mean"][...], preferred_element_type=jnp.float32)
         + jnp.dot(r_last, enc["mean_w_last"][...], preferred_element_type=jnp.float32)
         + jnp.dot(r_max, enc["mean_w_max"][...], preferred_element_type=jnp.float32)
         + enc["mean_b"][...])                                 # [1, latent]

    # -------------------------- transformer decoder -------------------------
    xe = jnp.dot(fx, dec["emb_w"][...], preferred_element_type=jnp.float32) + dec["emb_b"][...]
    ze = jnp.dot(z, dec["z_w"][...], preferred_element_type=jnp.float32) + dec["z_b"][...]
    mem = jnp.broadcast_to(ze, (T, ze.shape[1]))               # z repeated over time

    dec_mask = _causal_mask(T)
    g = xe
    for lp in dec["layers"]:
        g = _decoder_layer(g, mem, lp, dec_mask, nhead)
    g = _layer_norm(g, dec["norm_g"][...], dec["norm_b"][...])

    mean = jnp.dot(g, dec["mean_w"][...], preferred_element_type=jnp.float32) + dec["mean_b"][...]
    log_sigma = jnp.dot(g, dec["std_w"][...], preferred_element_type=jnp.float32) + dec["std_b"][...]
    # softplus (beta=1, threshold=20), then min_std + (1 - min_std) * softplus
    sp = jnp.where(log_sigma > 20.0, log_sigma,
                   jnp.log1p(jnp.exp(jnp.minimum(log_sigma, 20.0))))
    sigma = min_std + (1.0 - min_std) * sp

    mean_ref[...] = mean
    sigma_ref[...] = sigma


# --------------------------------- wrapper ----------------------------------

def transformer_process_forward(params, past_x, past_y, future_x,
                                nhead=8, min_std=0.01):
    B, S, xs = past_x.shape
    ysz = past_y.shape[-1]
    T = future_x.shape[1]
    y_out = params["dec"]["mean_w"].shape[1]

    leaves, treedef = jax.tree_util.tree_flatten(params)
    n_params = len(leaves)

    def const_spec(shape):
        nd = len(shape)
        return pl.BlockSpec(shape, lambda b, nd=nd: (0,) * nd)

    in_specs = (
        [pl.BlockSpec((None, S, xs), lambda b: (b, 0, 0)),
         pl.BlockSpec((None, S, ysz), lambda b: (b, 0, 0)),
         pl.BlockSpec((None, T, xs), lambda b: (b, 0, 0))]
        + [const_spec(leaf.shape) for leaf in leaves]
    )
    out_specs = (pl.BlockSpec((None, T, y_out), lambda b: (b, 0, 0)),
                 pl.BlockSpec((None, T, y_out), lambda b: (b, 0, 0)))
    out_shape = (jax.ShapeDtypeStruct((B, T, y_out), F32),
                 jax.ShapeDtypeStruct((B, T, y_out), F32))

    kernel = functools.partial(_fused_forward_kernel, treedef=treedef,
                               n_params=n_params, nhead=nhead,
                               min_std=float(min_std))
    mean, sigma = pl.pallas_call(
        kernel,
        grid=(B,),
        out_shape=out_shape,
        in_specs=in_specs,
        out_specs=out_specs,
        compiler_params=pltpu.CompilerParams(
            dimension_semantics=("parallel",)),
    )(past_x, past_y, future_x, *leaves)
    return (mean, sigma), {"loss": None}


# --------------------------- parameter construction ------------------------

def _uniform(key, shape, lim):
    return jax.random.uniform(key, shape, F32, -lim, lim)


def init_params(key, x_size, y_size, hidden_size, latent_dim, nlayers):
    H, FF, L = hidden_size, hidden_size * 8, latent_dim
    keys = iter(jax.random.split(key, 128))

    def nk():
        return next(keys)

    def lin(din, dout):
        lim = 1.0 / math.sqrt(din)
        return _uniform(nk(), (din, dout), lim), _uniform(nk(), (1, dout), lim)

    def ln():
        return jnp.ones((1, H), F32), jnp.zeros((1, H), F32)

    def enc_layer():
        qkv_w, qkv_b = lin(H, 3 * H)
        o_w, o_b = lin(H, H)
        ff1_w, ff1_b = lin(H, FF)
        ff2_w, ff2_b = lin(FF, H)
        ln1_g, ln1_b = ln()
        ln2_g, ln2_b = ln()
        return dict(qkv_w=qkv_w, qkv_b=qkv_b, o_w=o_w, o_b=o_b,
                    ff1_w=ff1_w, ff1_b=ff1_b, ff2_w=ff2_w, ff2_b=ff2_b,
                    ln1_g=ln1_g, ln1_b=ln1_b, ln2_g=ln2_g, ln2_b=ln2_b)

    def dec_layer():
        sqkv_w, sqkv_b = lin(H, 3 * H)
        so_w, so_b = lin(H, H)
        cq_w, cq_b = lin(H, H)
        ckv_w, ckv_b = lin(H, 2 * H)
        co_w, co_b = lin(H, H)
        ff1_w, ff1_b = lin(H, FF)
        ff2_w, ff2_b = lin(FF, H)
        ln1_g, ln1_b = ln()
        ln2_g, ln2_b = ln()
        ln3_g, ln3_b = ln()
        return dict(sqkv_w=sqkv_w, sqkv_b=sqkv_b, so_w=so_w, so_b=so_b,
                    cq_w=cq_w, cq_b=cq_b, ckv_w=ckv_w, ckv_b=ckv_b,
                    co_w=co_w, co_b=co_b,
                    ff1_w=ff1_w, ff1_b=ff1_b, ff2_w=ff2_w, ff2_b=ff2_b,
                    ln1_g=ln1_g, ln1_b=ln1_b, ln2_g=ln2_g, ln2_b=ln2_b,
                    ln3_g=ln3_g, ln3_b=ln3_b)

    # latent encoder: embedding weight split over [x | y] so no in-kernel concat
    lim_e = 1.0 / math.sqrt(x_size + y_size)
    lim3 = 1.0 / math.sqrt(3 * H)
    enc = dict(
        emb_wx=_uniform(nk(), (x_size, H), lim_e),
        emb_wy=_uniform(nk(), (y_size, H), lim_e),
        emb_b=_uniform(nk(), (1, H), lim_e),
        layers=[enc_layer() for _ in range(nlayers)],
        norm_g=jnp.ones((1, H), F32), norm_b=jnp.zeros((1, H), F32),
        # mean head split over the [mean | last | max] pooled features
        mean_w_mean=_uniform(nk(), (H, L), lim3),
        mean_w_last=_uniform(nk(), (H, L), lim3),
        mean_w_max=_uniform(nk(), (H, L), lim3),
        mean_b=_uniform(nk(), (1, L), lim3),
    )

    emb_w, emb_b = lin(x_size, H)
    z_w, z_b = lin(L, H)
    mean_w, mean_b = lin(H, y_size)
    std_w, std_b = lin(H, y_size)
    dec = dict(
        emb_w=emb_w, emb_b=emb_b, z_w=z_w, z_b=z_b,
        layers=[dec_layer() for _ in range(nlayers)],
        norm_g=jnp.ones((1, H), F32), norm_b=jnp.zeros((1, H), F32),
        mean_w=mean_w, mean_b=mean_b, std_w=std_w, std_b=std_b,
    )
    return {"enc": enc, "dec": dec}


# --------------------------------- driver ----------------------------------

if __name__ == "__main__":
    key = jax.random.PRNGKey(0)
    B, S_past, S_future = 2, 8, 8
    x_size, y_size = 3, 2
    hidden_size, latent_dim, nhead, nlayers = 32, 32, 8, 2

    kp, k1, k2, k3 = jax.random.split(key, 4)
    params = init_params(kp, x_size, y_size, hidden_size, latent_dim, nlayers)
    past_x = jax.random.normal(k1, (B, S_past, x_size), F32)
    past_y = jax.random.normal(k2, (B, S_past, y_size), F32)
    future_x = jax.random.normal(k3, (B, S_future, x_size), F32)

    (mean, sigma), aux = transformer_process_forward(
        params, past_x, past_y, future_x, nhead=nhead, min_std=0.01)
    jax.block_until_ready((mean, sigma))

    assert mean.shape == (B, S_future, y_size)
    assert sigma.shape == (B, S_future, y_size)
    assert bool(jnp.all(sigma > 0.0)) and bool(jnp.all(jnp.isfinite(mean)))
    print("KERNEL_OK")
</pallas_src>

<mosaic_0001>
module attributes {stable_mosaic.version = 11 : i64} {
  func.func @_fused_forward_kernel(%arg0: i32, %arg1: memref<1x8x3xf32, #tpu.memory_space<vmem>>, %arg2: memref<1x8x2xf32, #tpu.memory_space<vmem>>, %arg3: memref<1x8x3xf32, #tpu.memory_space<vmem>>, %arg4: memref<1x32xf32, #tpu.memory_space<vmem>>, %arg5: memref<3x32xf32, #tpu.memory_space<vmem>>, %arg6: memref<1x64xf32, #tpu.memory_space<vmem>>, %arg7: memref<32x64xf32, #tpu.memory_space<vmem>>, %arg8: memref<1x32xf32, #tpu.memory_space<vmem>>, %arg9: memref<32x32xf32, #tpu.memory_space<vmem>>, %arg10: memref<1x32xf32, #tpu.memory_space<vmem>>, %arg11: memref<32x32xf32, #tpu.memory_space<vmem>>, %arg12: memref<1x256xf32, #tpu.memory_space<vmem>>, %arg13: memref<32x256xf32, #tpu.memory_space<vmem>>, %arg14: memref<1x32xf32, #tpu.memory_space<vmem>>, %arg15: memref<256x32xf32, #tpu.memory_space<vmem>>, %arg16: memref<1x32xf32, #tpu.memory_space<vmem>>, %arg17: memref<1x32xf32, #tpu.memory_space<vmem>>, %arg18: memref<1x32xf32, #tpu.memory_space<vmem>>, %arg19: memref<1x32xf32, #tpu.memory_space<vmem>>, %arg20: memref<1x32xf32, #tpu.memory_space<vmem>>, %arg21: memref<1x32xf32, #tpu.memory_space<vmem>>, %arg22: memref<1x32xf32, #tpu.memory_space<vmem>>, %arg23: memref<32x32xf32, #tpu.memory_space<vmem>>, %arg24: memref<1x96xf32, #tpu.memory_space<vmem>>, %arg25: memref<32x96xf32, #tpu.memory_space<vmem>>, %arg26: memref<1x64xf32, #tpu.memory_space<vmem>>, %arg27: memref<32x64xf32, #tpu.memory_space<vmem>>, %arg28: memref<1x32xf32, #tpu.memory_space<vmem>>, %arg29: memref<32x32xf32, #tpu.memory_space<vmem>>, %arg30: memref<1x32xf32, #tpu.memory_space<vmem>>, %arg31: memref<32x32xf32, #tpu.memory_space<vmem>>, %arg32: memref<1x256xf32, #tpu.memory_space<vmem>>, %arg33: memref<32x256xf32, #tpu.memory_space<vmem>>, %arg34: memref<1x32xf32, #tpu.memory_space<vmem>>, %arg35: memref<256x32xf32, #tpu.memory_space<vmem>>, %arg36: memref<1x32xf32, #tpu.memory_space<vmem>>, %arg37: memref<1x32xf32, #tpu.memory_space<vmem>>, %arg38: memref<1x32xf32, #tpu.memory_space<vmem>>, %arg39: memref<1x32xf32, #tpu.memory_space<vmem>>, %arg40: memref<1x32xf32, #tpu.memory_space<vmem>>, %arg41: memref<1x32xf32, #tpu.memory_space<vmem>>, %arg42: memref<1x32xf32, #tpu.memory_space<vmem>>, %arg43: memref<32x32xf32, #tpu.memory_space<vmem>>, %arg44: memref<1x96xf32, #tpu.memory_space<vmem>>, %arg45: memref<32x96xf32, #tpu.memory_space<vmem>>, %arg46: memref<1x2xf32, #tpu.memory_space<vmem>>, %arg47: memref<32x2xf32, #tpu.memory_space<vmem>>, %arg48: memref<1x32xf32, #tpu.memory_space<vmem>>, %arg49: memref<1x32xf32, #tpu.memory_space<vmem>>, %arg50: memref<1x2xf32, #tpu.memory_space<vmem>>, %arg51: memref<32x2xf32, #tpu.memory_space<vmem>>, %arg52: memref<1x32xf32, #tpu.memory_space<vmem>>, %arg53: memref<32x32xf32, #tpu.memory_space<vmem>>, %arg54: memref<1x32xf32, #tpu.memory_space<vmem>>, %arg55: memref<3x32xf32, #tpu.memory_space<vmem>>, %arg56: memref<2x32xf32, #tpu.memory_space<vmem>>, %arg57: memref<1x256xf32, #tpu.memory_space<vmem>>, %arg58: memref<32x256xf32, #tpu.memory_space<vmem>>, %arg59: memref<1x32xf32, #tpu.memory_space<vmem>>, %arg60: memref<256x32xf32, #tpu.memory_space<vmem>>, %arg61: memref<1x32xf32, #tpu.memory_space<vmem>>, %arg62: memref<1x32xf32, #tpu.memory_space<vmem>>, %arg63: memref<1x32xf32, #tpu.memory_space<vmem>>, %arg64: memref<1x32xf32, #tpu.memory_space<vmem>>, %arg65: memref<1x32xf32, #tpu.memory_space<vmem>>, %arg66: memref<32x32xf32, #tpu.memory_space<vmem>>, %arg67: memref<1x96xf32, #tpu.memory_space<vmem>>, %arg68: memref<32x96xf32, #tpu.memory_space<vmem>>, %arg69: memref<1x256xf32, #tpu.memory_space<vmem>>, %arg70: memref<32x256xf32, #tpu.memory_space<vmem>>, %arg71: memref<1x32xf32, #tpu.memory_space<vmem>>, %arg72: memref<256x32xf32, #tpu.memory_space<vmem>>, %arg73: memref<1x32xf32, #tpu.memory_space<vmem>>, %arg74: memref<1x32xf32, #tpu.memory_space<vmem>>, %arg75: memref<1x32xf32, #tpu.memory_space<vmem>>, %arg76: memref<1x32xf32, #tpu.memory_space<vmem>>, %arg77: memref<1x32xf32, #tpu.memory_space<vmem>>, %arg78: memref<32x32xf32, #tpu.memory_space<vmem>>, %arg79: memref<1x96xf32, #tpu.memory_space<vmem>>, %arg80: memref<32x96xf32, #tpu.memory_space<vmem>>, %arg81: memref<1x32xf32, #tpu.memory_space<vmem>>, %arg82: memref<32x32xf32, #tpu.memory_space<vmem>>, %arg83: memref<32x32xf32, #tpu.memory_space<vmem>>, %arg84: memref<32x32xf32, #tpu.memory_space<vmem>>, %arg85: memref<1x32xf32, #tpu.memory_space<vmem>>, %arg86: memref<1x32xf32, #tpu.memory_space<vmem>>, %arg87: memref<1x8x2xf32, #tpu.memory_space<vmem>>, %arg88: memref<1x8x2xf32, #tpu.memory_space<vmem>>) attributes {dimension_semantics = [#tpu.dimension_semantics<parallel>], iteration_bounds = array<i64: 2>, scalar_prefetch = 0 : i64, scratch_operands = 0 : i64, tpu.core_type = #tpu.core_type<tc>, window_params = [{transform_indices = @transform_0, window_bounds = array<i64: 1, 8, 3>}, {transform_indices = @transform_1, window_bounds = array<i64: 1, 8, 2>}, {transform_indices = @transform_2, window_bounds = array<i64: 1, 8, 3>}, {pipeline_mode = #tpu.pipeline_mode<synchronous>, transform_indices = @transform_3, window_bounds = array<i64: 1, 32>}, {pipeline_mode = #tpu.pipeline_mode<synchronous>, transform_indices = @transform_4, window_bounds = array<i64: 3, 32>}, {pipeline_mode = #tpu.pipeline_mode<synchronous>, transform_indices = @transform_5, window_bounds = array<i64: 1, 64>}, {pipeline_mode = #tpu.pipeline_mode<synchronous>, transform_indices = @transform_6, window_bounds = array<i64: 32, 64>}, {pipeline_mode = #tpu.pipeline_mode<synchronous>, transform_indices = @transform_7, window_bounds = array<i64: 1, 32>}, {pipeline_mode = #tpu.pipeline_mode<synchronous>, transform_indices = @transform_8, window_bounds = array<i64: 32, 32>}, {pipeline_mode = #tpu.pipeline_mode<synchronous>, transform_indices = @transform_9, window_bounds = array<i64: 1, 32>}, {pipeline_mode = #tpu.pipeline_mode<synchronous>, transform_indices = @transform_10, window_bounds = array<i64: 32, 32>}, {pipeline_mode = #tpu.pipeline_mode<synchronous>, transform_indices = @transform_11, window_bounds = array<i64: 1, 256>}, {pipeline_mode = #tpu.pipeline_mode<synchronous>, transform_indices = @transform_12, window_bounds = array<i64: 32, 256>}, {pipeline_mode = #tpu.pipeline_mode<synchronous>, transform_indices = @transform_13, window_bounds = array<i64: 1, 32>}, {pipeline_mode = #tpu.pipeline_mode<synchronous>, transform_indices = @transform_14, window_bounds = array<i64: 256, 32>}, {pipeline_mode = #tpu.pipeline_mode<synchronous>, transform_indices = @transform_15, window_bounds = array<i64: 1, 32>}, {pipeline_mode = #tpu.pipeline_mode<synchronous>, transform_indices = @transform_16, window_bounds = array<i64: 1, 32>}, {pipeline_mode = #tpu.pipeline_mode<synchronous>, transform_indices = @transform_17, window_bounds = array<i64: 1, 32>}, {pipeline_mode = #tpu.pipeline_mode<synchronous>, transform_indices = @transform_18, window_bounds = array<i64: 1, 32>}, {pipeline_mode = #tpu.pipeline_mode<synchronous>, transform_indices = @transform_19, window_bounds = array<i64: 1, 32>}, {pipeline_mode = #tpu.pipeline_mode<synchronous>, transform_indices = @transform_20, window_bounds = array<i64: 1, 32>}, {pipeline_mode = #tpu.pipeline_mode<synchronous>, transform_indices = @transform_21, window_bounds = array<i64: 1, 32>}, {pipeline_mode = #tpu.pipeline_mode<synchronous>, transform_indices = @transform_22, window_bounds = array<i64: 32, 32>}, {pipeline_mode = #tpu.pipeline_mode<synchronous>, transform_indices = @transform_23, window_bounds = array<i64: 1, 96>}, {pipeline_mode = #tpu.pipeline_mode<synchronous>, transform_indices = @transform_24, window_bounds = array<i64: 32, 96>}, {pipeline_mode = #tpu.pipeline_mode<synchronous>, transform_indices = @transform_25, window_bounds = array<i64: 1, 64>}, {pipeline_mode = #tpu.pipeline_mode<synchronous>, transform_indices = @transform_26, window_bounds = array<i64: 32, 64>}, {pipeline_mode = #tpu.pipeline_mode<synchronous>, transform_indices = @transform_27, window_bounds = array<i64: 1, 32>}, {pipeline_mode = #tpu.pipeline_mode<synchronous>, transform_indices = @transform_28, window_bounds = array<i64: 32, 32>}, {pipeline_mode = #tpu.pipeline_mode<synchronous>, transform_indices = @transform_29, window_bounds = array<i64: 1, 32>}, {pipeline_mode = #tpu.pipeline_mode<synchronous>, transform_indices = @transform_30, window_bounds = array<i64: 32, 32>}, {pipeline_mode = #tpu.pipeline_mode<synchronous>, transform_indices = @transform_31, window_bounds = array<i64: 1, 256>}, {pipeline_mode = #tpu.pipeline_mode<synchronous>, transform_indices = @transform_32, window_bounds = array<i64: 32, 256>}, {pipeline_mode = #tpu.pipeline_mode<synchronous>, transform_indices = @transform_33, window_bounds = array<i64: 1, 32>}, {pipeline_mode = #tpu.pipeline_mode<synchronous>, transform_indices = @transform_34, window_bounds = array<i64: 256, 32>}, {pipeline_mode = #tpu.pipeline_mode<synchronous>, transform_indices = @transform_35, window_bounds = array<i64: 1, 32>}, {pipeline_mode = #tpu.pipeline_mode<synchronous>, transform_indices = @transform_36, window_bounds = array<i64: 1, 32>}, {pipeline_mode = #tpu.pipeline_mode<synchronous>, transform_indices = @transform_37, window_bounds = array<i64: 1, 32>}, {pipeline_mode = #tpu.pipeline_mode<synchronous>, transform_indices = @transform_38, window_bounds = array<i64: 1, 32>}, {pipeline_mode = #tpu.pipeline_mode<synchronous>, transform_indices = @transform_39, window_bounds = array<i64: 1, 32>}, {pipeline_mode = #tpu.pipeline_mode<synchronous>, transform_indices = @transform_40, window_bounds = array<i64: 1, 32>}, {pipeline_mode = #tpu.pipeline_mode<synchronous>, transform_indices = @transform_41, window_bounds = array<i64: 1, 32>}, {pipeline_mode = #tpu.pipeline_mode<synchronous>, transform_indices = @transform_42, window_bounds = array<i64: 32, 32>}, {pipeline_mode = #tpu.pipeline_mode<synchronous>, transform_indices = @transform_43, window_bounds = array<i64: 1, 96>}, {pipeline_mode = #tpu.pipeline_mode<synchronous>, transform_indices = @transform_44, window_bounds = array<i64: 32, 96>}, {pipeline_mode = #tpu.pipeline_mode<synchronous>, transform_indices = @transform_45, window_bounds = array<i64: 1, 2>}, {pipeline_mode = #tpu.pipeline_mode<synchronous>, transform_indices = @transform_46, window_bounds = array<i64: 32, 2>}, {pipeline_mode = #tpu.pipeline_mode<synchronous>, transform_indices = @transform_47, window_bounds = array<i64: 1, 32>}, {pipeline_mode = #tpu.pipeline_mode<synchronous>, transform_indices = @transform_48, window_bounds = array<i64: 1, 32>}, {pipeline_mode = #tpu.pipeline_mode<synchronous>, transform_indices = @transform_49, window_bounds = array<i64: 1, 2>}, {pipeline_mode = #tpu.pipeline_mode<synchronous>, transform_indices = @transform_50, window_bounds = array<i64: 32, 2>}, {pipeline_mode = #tpu.pipeline_mode<synchronous>, transform_indices = @transform_51, window_bounds = array<i64: 1, 32>}, {pipeline_mode = #tpu.pipeline_mode<synchronous>, transform_indices = @transform_52, window_bounds = array<i64: 32, 32>}, {pipeline_mode = #tpu.pipeline_mode<synchronous>, transform_indices = @transform_53, window_bounds = array<i64: 1, 32>}, {pipeline_mode = #tpu.pipeline_mode<synchronous>, transform_indices = @transform_54, window_bounds = array<i64: 3, 32>}, {pipeline_mode = #tpu.pipeline_mode<synchronous>, transform_indices = @transform_55, window_bounds = array<i64: 2, 32>}, {pipeline_mode = #tpu.pipeline_mode<synchronous>, transform_indices = @transform_56, window_bounds = array<i64: 1, 256>}, {pipeline_mode = #tpu.pipeline_mode<synchronous>, transform_indices = @transform_57, window_bounds = array<i64: 32, 256>}, {pipeline_mode = #tpu.pipeline_mode<synchronous>, transform_indices = @transform_58, window_bounds = array<i64: 1, 32>}, {pipeline_mode = #tpu.pipeline_mode<synchronous>, transform_indices = @transform_59, window_bounds = array<i64: 256, 32>}, {pipeline_mode = #tpu.pipeline_mode<synchronous>, transform_indices = @transform_60, window_bounds = array<i64: 1, 32>}, {pipeline_mode = #tpu.pipeline_mode<synchronous>, transform_indices = @transform_61, window_bounds = array<i64: 1, 32>}, {pipeline_mode = #tpu.pipeline_mode<synchronous>, transform_indices = @transform_62, window_bounds = array<i64: 1, 32>}, {pipeline_mode = #tpu.pipeline_mode<synchronous>, transform_indices = @transform_63, window_bounds = array<i64: 1, 32>}, {pipeline_mode = #tpu.pipeline_mode<synchronous>, transform_indices = @transform_64, window_bounds = array<i64: 1, 32>}, {pipeline_mode = #tpu.pipeline_mode<synchronous>, transform_indices = @transform_65, window_bounds = array<i64: 32, 32>}, {pipeline_mode = #tpu.pipeline_mode<synchronous>, transform_indices = @transform_66, window_bounds = array<i64: 1, 96>}, {pipeline_mode = #tpu.pipeline_mode<synchronous>, transform_indices = @transform_67, window_bounds = array<i64: 32, 96>}, {pipeline_mode = #tpu.pipeline_mode<synchronous>, transform_indices = @transform_68, window_bounds = array<i64: 1, 256>}, {pipeline_mode = #tpu.pipeline_mode<synchronous>, transform_indices = @transform_69, window_bounds = array<i64: 32, 256>}, {pipeline_mode = #tpu.pipeline_mode<synchronous>, transform_indices = @transform_70, window_bounds = array<i64: 1, 32>}, {pipeline_mode = #tpu.pipeline_mode<synchronous>, transform_indices = @transform_71, window_bounds = array<i64: 256, 32>}, {pipeline_mode = #tpu.pipeline_mode<synchronous>, transform_indices = @transform_72, window_bounds = array<i64: 1, 32>}, {pipeline_mode = #tpu.pipeline_mode<synchronous>, transform_indices = @transform_73, window_bounds = array<i64: 1, 32>}, {pipeline_mode = #tpu.pipeline_mode<synchronous>, transform_indices = @transform_74, window_bounds = array<i64: 1, 32>}, {pipeline_mode = #tpu.pipeline_mode<synchronous>, transform_indices = @transform_75, window_bounds = array<i64: 1, 32>}, {pipeline_mode = #tpu.pipeline_mode<synchronous>, transform_indices = @transform_76, window_bounds = array<i64: 1, 32>}, {pipeline_mode = #tpu.pipeline_mode<synchronous>, transform_indices = @transform_77, window_bounds = array<i64: 32, 32>}, {pipeline_mode = #tpu.pipeline_mode<synchronous>, transform_indices = @transform_78, window_bounds = array<i64: 1, 96>}, {pipeline_mode = #tpu.pipeline_mode<synchronous>, transform_indices = @transform_79, window_bounds = array<i64: 32, 96>}, {pipeline_mode = #tpu.pipeline_mode<synchronous>, transform_indices = @transform_80, window_bounds = array<i64: 1, 32>}, {pipeline_mode = #tpu.pipeline_mode<synchronous>, transform_indices = @transform_81, window_bounds = array<i64: 32, 32>}, {pipeline_mode = #tpu.pipeline_mode<synchronous>, transform_indices = @transform_82, window_bounds = array<i64: 32, 32>}, {pipeline_mode = #tpu.pipeline_mode<synchronous>, transform_indices = @transform_83, window_bounds = array<i64: 32, 32>}, {pipeline_mode = #tpu.pipeline_mode<synchronous>, transform_indices = @transform_84, window_bounds = array<i64: 1, 32>}, {pipeline_mode = #tpu.pipeline_mode<synchronous>, transform_indices = @transform_85, window_bounds = array<i64: 1, 32>}, {transform_indices = @transform_86, window_bounds = array<i64: 1, 8, 2>}, {transform_indices = @transform_87, window_bounds = array<i64: 1, 8, 2>}]} {
    %c0 = arith.constant 0 : index
    %c0_0 = arith.constant 0 : index
    %c0_1 = arith.constant 0 : index
    %0 = vector.load %arg1[%c0, %c0_0, %c0_1] : memref<1x8x3xf32, #tpu.memory_space<vmem>>, vector<1x8x3xf32>
    %1 = vector.shape_cast %0 : vector<1x8x3xf32> to vector<8x3xf32>
    %c0_2 = arith.constant 0 : index
    %c0_3 = arith.constant 0 : index
    %c0_4 = arith.constant 0 : index
    %2 = vector.load %arg2[%c0_2, %c0_3, %c0_4] : memref<1x8x2xf32, #tpu.memory_space<vmem>>, vector<1x8x2xf32>
    %3 = vector.shape_cast %2 : vector<1x8x2xf32> to vector<8x2xf32>
    %c0_5 = arith.constant 0 : index
    %c0_6 = arith.constant 0 : index
    %c0_7 = arith.constant 0 : index
    %4 = vector.load %arg3[%c0_5, %c0_6, %c0_7] : memref<1x8x3xf32, #tpu.memory_space<vmem>>, vector<1x8x3xf32>
    %5 = vector.shape_cast %4 : vector<1x8x3xf32> to vector<8x3xf32>
    %c0_8 = arith.constant 0 : index
    %c0_9 = arith.constant 0 : index
    %6 = vector.load %arg55[%c0_8, %c0_9] : memref<3x32xf32, #tpu.memory_space<vmem>>, vector<3x32xf32>
    %cst = arith.constant dense<0.000000e+00> : vector<8x32xf32>
    %7 = tpu.matmul %1, %6, %cst {dimension_numbers = #tpu.dot_dimension_numbers<[1], [0], [0], [1], [0, 0, 1, 1], [], []>} : vector<8x3xf32>, vector<3x32xf32>, vector<8x32xf32> -> vector<8x32xf32>
    %c0_10 = arith.constant 0 : index
    %c0_11 = arith.constant 0 : index
    %8 = vector.load %arg56[%c0_10, %c0_11] : memref<2x32xf32, #tpu.memory_space<vmem>>, vector<2x32xf32>
    %cst_12 = arith.constant dense<0.000000e+00> : vector<8x32xf32>
    %9 = tpu.matmul %3, %8, %cst_12 {dimension_numbers = #tpu.dot_dimension_numbers<[1], [0], [0], [1], [0, 0, 1, 1], [], []>} : vector<8x2xf32>, vector<2x32xf32>, vector<8x32xf32> -> vector<8x32xf32>
    %10 = arith.addf %7, %9 : vector<8x32xf32>
    %c0_13 = arith.constant 0 : index
    %c0_14 = arith.constant 0 : index
    %11 = vector.load %arg54[%c0_13, %c0_14] : memref<1x32xf32, #tpu.memory_space<vmem>>, vector<1x32xf32>
    %12 = vector.broadcast %11 : vector<1x32xf32> to vector<8x32xf32>
    %13 = arith.addf %10, %12 : vector<8x32xf32>
    %14 = tpu.iota {dimensions = array<i32: 0>} : vector<8x8xi32>
    %15 = tpu.iota {dimensions = array<i32: 1>} : vector<8x8xi32>
    %16 = arith.cmpi sle, %15, %14 : vector<8x8xi32>
    %cst_15 = arith.constant 0.000000e+00 : f32
    %cst_16 = arith.constant -1.000000e+09 : f32
    %17 = vector.broadcast %cst_15 : f32 to vector<8x8xf32>
    %18 = vector.broadcast %cst_16 : f32 to vector<8x8xf32>
    %19 = arith.select %16, %17, %18 : vector<8x8xi1>, vector<8x8xf32>
    %c0_17 = arith.constant 0 : index
    %c0_18 = arith.constant 0 : index
    %20 = vector.load %arg68[%c0_17, %c0_18] : memref<32x96xf32, #tpu.memory_space<vmem>>, vector<32x96xf32>
    %cst_19 = arith.constant dense<0.000000e+00> : vector<8x96xf32>
    %21 = tpu.matmul %13, %20, %cst_19 {dimension_numbers = #tpu.dot_dimension_numbers<[1], [0], [0], [1], [0, 0, 1, 1], [], []>} : vector<8x32xf32>, vector<32x96xf32>, vector<8x96xf32> -> vector<8x96xf32>
    %c0_20 = arith.constant 0 : index
    %c0_21 = arith.constant 0 : index
    %22 = vector.load %arg67[%c0_20, %c0_21] : memref<1x96xf32, #tpu.memory_space<vmem>>, vector<1x96xf32>
    %23 = vector.broadcast %22 : vector<1x96xf32> to vector<8x96xf32>
    %24 = arith.addf %21, %23 : vector<8x96xf32>
    %25 = vector.extract_strided_slice %24 {offsets = [0, 0], sizes = [8, 32], strides = [1, 1]} : vector<8x96xf32> to vector<8x32xf32>
    %26 = vector.extract_strided_slice %24 {offsets = [0, 32], sizes = [8, 32], strides = [1, 1]} : vector<8x96xf32> to vector<8x32xf32>
    %27 = vector.extract_strided_slice %24 {offsets = [0, 64], sizes = [8, 32], strides = [1, 1]} : vector<8x96xf32> to vector<8x32xf32>
    %c0_22 = arith.constant 0 : index
    %c0_23 = arith.constant 0 : index
    %28 = vector.load %arg66[%c0_22, %c0_23] : memref<32x32xf32, #tpu.memory_space<vmem>>, vector<32x32xf32>
    %c0_24 = arith.constant 0 : index
    %c0_25 = arith.constant 0 : index
    %29 = vector.load %arg65[%c0_24, %c0_25] : memref<1x32xf32, #tpu.memory_space<vmem>>, vector<1x32xf32>
    %30 = vector.extract_strided_slice %25 {offsets = [0, 0], sizes = [8, 4], strides = [1, 1]} : vector<8x32xf32> to vector<8x4xf32>
    %31 = vector.extract_strided_slice %26 {offsets = [0, 0], sizes = [8, 4], strides = [1, 1]} : vector<8x32xf32> to vector<8x4xf32>
    %32 = vector.extract_strided_slice %27 {offsets = [0, 0], sizes = [8, 4], strides = [1, 1]} : vector<8x32xf32> to vector<8x4xf32>
    %cst_26 = arith.constant dense<0.000000e+00> : vector<8x8xf32>
    %33 = tpu.matmul %30, %31, %cst_26 {dimension_numbers = #tpu.dot_dimension_numbers<[1], [1], [0], [0], [0, 0, 1, 0], [], []>} : vector<8x4xf32>, vector<8x4xf32>, vector<8x8xf32> -> vector<8x8xf32>
    %cst_27 = arith.constant 5.000000e-01 : f32
    %34 = vector.broadcast %cst_27 : f32 to vector<8x8xf32>
    %35 = arith.mulf %33, %34 : vector<8x8xf32>
    %36 = arith.addf %35, %19 : vector<8x8xf32>
    %cst_28 = arith.constant dense<0xFF800000> : vector<8xf32>
    %37 = vector.multi_reduction <maximumf>, %36, %cst_28 [1] : vector<8x8xf32> to vector<8xf32>
    %38 = vector.shape_cast %37 : vector<8xf32> to vector<8x1xf32>
    %39 = vector.broadcast %38 : vector<8x1xf32> to vector<8x8xf32>
    %40 = arith.subf %36, %39 : vector<8x8xf32>
    %41 = math.exp %40 : vector<8x8xf32>
    %cst_29 = arith.constant dense<0.000000e+00> : vector<8xf32>
    %42 = vector.multi_reduction <add>, %41, %cst_29 [1] : vector<8x8xf32> to vector<8xf32>
    %43 = vector.shape_cast %42 : vector<8xf32> to vector<8x1xf32>
    %44 = tpu.reciprocal %43 {approx = true} : vector<8x1xf32> -> vector<8x1xf32>
    %45 = vector.broadcast %44 : vector<8x1xf32> to vector<8x8xf32>
    %46 = arith.mulf %41, %45 : vector<8x8xf32>
    %cst_30 = arith.constant dense<0.000000e+00> : vector<8x4xf32>
    %47 = tpu.matmul %46, %32, %cst_30 {dimension_numbers = #tpu.dot_dimension_numbers<[1], [0], [0], [1], [0, 0, 1, 1], [], []>} : vector<8x8xf32>, vector<8x4xf32>, vector<8x4xf32> -> vector<8x4xf32>
    %48 = vector.extract_strided_slice %25 {offsets = [0, 4], sizes = [8, 4], strides = [1, 1]} : vector<8x32xf32> to vector<8x4xf32>
    %49 = vector.extract_strided_slice %26 {offsets = [0, 4], sizes = [8, 4], strides = [1, 1]} : vector<8x32xf32> to vector<8x4xf32>
    %50 = vector.extract_strided_slice %27 {offsets = [0, 4], sizes = [8, 4], strides = [1, 1]} : vector<8x32xf32> to vector<8x4xf32>
    %cst_31 = arith.constant dense<0.000000e+00> : vector<8x8xf32>
    %51 = tpu.matmul %48, %49, %cst_31 {dimension_numbers = #tpu.dot_dimension_numbers<[1], [1], [0], [0], [0, 0, 1, 0], [], []>} : vector<8x4xf32>, vector<8x4xf32>, vector<8x8xf32> -> vector<8x8xf32>
    %cst_32 = arith.constant 5.000000e-01 : f32
    %52 = vector.broadcast %cst_32 : f32 to vector<8x8xf32>
    %53 = arith.mulf %51, %52 : vector<8x8xf32>
    %54 = arith.addf %53, %19 : vector<8x8xf32>
    %cst_33 = arith.constant dense<0xFF800000> : vector<8xf32>
    %55 = vector.multi_reduction <maximumf>, %54, %cst_33 [1] : vector<8x8xf32> to vector<8xf32>
    %56 = vector.shape_cast %55 : vector<8xf32> to vector<8x1xf32>
    %57 = vector.broadcast %56 : vector<8x1xf32> to vector<8x8xf32>
    %58 = arith.subf %54, %57 : vector<8x8xf32>
    %59 = math.exp %58 : vector<8x8xf32>
    %cst_34 = arith.constant dense<0.000000e+00> : vector<8xf32>
    %60 = vector.multi_reduction <add>, %59, %cst_34 [1] : vector<8x8xf32> to vector<8xf32>
    %61 = vector.shape_cast %60 : vector<8xf32> to vector<8x1xf32>
    %62 = tpu.reciprocal %61 {approx = true} : vector<8x1xf32> -> vector<8x1xf32>
    %63 = vector.broadcast %62 : vector<8x1xf32> to vector<8x8xf32>
    %64 = arith.mulf %59, %63 : vector<8x8xf32>
    %cst_35 = arith.constant dense<0.000000e+00> : vector<8x4xf32>
    %65 = tpu.matmul %64, %50, %cst_35 {dimension_numbers = #tpu.dot_dimension_numbers<[1], [0], [0], [1], [0, 0, 1, 1], [], []>} : vector<8x8xf32>, vector<8x4xf32>, vector<8x4xf32> -> vector<8x4xf32>
    %66 = vector.extract_strided_slice %25 {offsets = [0, 8], sizes = [8, 4], strides = [1, 1]} : vector<8x32xf32> to vector<8x4xf32>
    %67 = vector.extract_strided_slice %26 {offsets = [0, 8], sizes = [8, 4], strides = [1, 1]} : vector<8x32xf32> to vector<8x4xf32>
    %68 = vector.extract_strided_slice %27 {offsets = [0, 8], sizes = [8, 4], strides = [1, 1]} : vector<8x32xf32> to vector<8x4xf32>
    %cst_36 = arith.constant dense<0.000000e+00> : vector<8x8xf32>
    %69 = tpu.matmul %66, %67, %cst_36 {dimension_numbers = #tpu.dot_dimension_numbers<[1], [1], [0], [0], [0, 0, 1, 0], [], []>} : vector<8x4xf32>, vector<8x4xf32>, vector<8x8xf32> -> vector<8x8xf32>
    %cst_37 = arith.constant 5.000000e-01 : f32
    %70 = vector.broadcast %cst_37 : f32 to vector<8x8xf32>
    %71 = arith.mulf %69, %70 : vector<8x8xf32>
    %72 = arith.addf %71, %19 : vector<8x8xf32>
    %cst_38 = arith.constant dense<0xFF800000> : vector<8xf32>
    %73 = vector.multi_reduction <maximumf>, %72, %cst_38 [1] : vector<8x8xf32> to vector<8xf32>
    %74 = vector.shape_cast %73 : vector<8xf32> to vector<8x1xf32>
    %75 = vector.broadcast %74 : vector<8x1xf32> to vector<8x8xf32>
    %76 = arith.subf %72, %75 : vector<8x8xf32>
    %77 = math.exp %76 : vector<8x8xf32>
    %cst_39 = arith.constant dense<0.000000e+00> : vector<8xf32>
    %78 = vector.multi_reduction <add>, %77, %cst_39 [1] : vector<8x8xf32> to vector<8xf32>
    %79 = vector.shape_cast %78 : vector<8xf32> to vector<8x1xf32>
    %80 = tpu.reciprocal %79 {approx = true} : vector<8x1xf32> -> vector<8x1xf32>
    %81 = vector.broadcast %80 : vector<8x1xf32> to vector<8x8xf32>
    %82 = arith.mulf %77, %81 : vector<8x8xf32>
    %cst_40 = arith.constant dense<0.000000e+00> : vector<8x4xf32>
    %83 = tpu.matmul %82, %68, %cst_40 {dimension_numbers = #tpu.dot_dimension_numbers<[1], [0], [0], [1], [0, 0, 1, 1], [], []>} : vector<8x8xf32>, vector<8x4xf32>, vector<8x4xf32> -> vector<8x4xf32>
    %84 = vector.extract_strided_slice %25 {offsets = [0, 12], sizes = [8, 4], strides = [1, 1]} : vector<8x32xf32> to vector<8x4xf32>
    %85 = vector.extract_strided_slice %26 {offsets = [0, 12], sizes = [8, 4], strides = [1, 1]} : vector<8x32xf32> to vector<8x4xf32>
    %86 = vector.extract_strided_slice %27 {offsets = [0, 12], sizes = [8, 4], strides = [1, 1]} : vector<8x32xf32> to vector<8x4xf32>
    %cst_41 = arith.constant dense<0.000000e+00> : vector<8x8xf32>
    %87 = tpu.matmul %84, %85, %cst_41 {dimension_numbers = #tpu.dot_dimension_numbers<[1], [1], [0], [0], [0, 0, 1, 0], [], []>} : vector<8x4xf32>, vector<8x4xf32>, vector<8x8xf32> -> vector<8x8xf32>
    %cst_42 = arith.constant 5.000000e-01 : f32
    %88 = vector.broadcast %cst_42 : f32 to vector<8x8xf32>
    %89 = arith.mulf %87, %88 : vector<8x8xf32>
    %90 = arith.addf %89, %19 : vector<8x8xf32>
    %cst_43 = arith.constant dense<0xFF800000> : vector<8xf32>
    %91 = vector.multi_reduction <maximumf>, %90, %cst_43 [1] : vector<8x8xf32> to vector<8xf32>
    %92 = vector.shape_cast %91 : vector<8xf32> to vector<8x1xf32>
    %93 = vector.broadcast %92 : vector<8x1xf32> to vector<8x8xf32>
    %94 = arith.subf %90, %93 : vector<8x8xf32>
    %95 = math.exp %94 : vector<8x8xf32>
    %cst_44 = arith.constant dense<0.000000e+00> : vector<8xf32>
    %96 = vector.multi_reduction <add>, %95, %cst_44 [1] : vector<8x8xf32> to vector<8xf32>
    %97 = vector.shape_cast %96 : vector<8xf32> to vector<8x1xf32>
    %98 = tpu.reciprocal %97 {approx = true} : vector<8x1xf32> -> vector<8x1xf32>
    %99 = vector.broadcast %98 : vector<8x1xf32> to vector<8x8xf32>
    %100 = arith.mulf %95, %99 : vector<8x8xf32>
    %cst_45 = arith.constant dense<0.000000e+00> : vector<8x4xf32>
    %101 = tpu.matmul %100, %86, %cst_45 {dimension_numbers = #tpu.dot_dimension_numbers<[1], [0], [0], [1], [0, 0, 1, 1], [], []>} : vector<8x8xf32>, vector<8x4xf32>, vector<8x4xf32> -> vector<8x4xf32>
    %102 = vector.extract_strided_slice %25 {offsets = [0, 16], sizes = [8, 4], strides = [1, 1]} : vector<8x32xf32> to vector<8x4xf32>
    %103 = vector.extract_strided_slice %26 {offsets = [0, 16], sizes = [8, 4], strides = [1, 1]} : vector<8x32xf32> to vector<8x4xf32>
    %104 = vector.extract_strided_slice %27 {offsets = [0, 16], sizes = [8, 4], strides = [1, 1]} : vector<8x32xf32> to vector<8x4xf32>
    %cst_46 = arith.constant dense<0.000000e+00> : vector<8x8xf32>
    %105 = tpu.matmul %102, %103, %cst_46 {dimension_numbers = #tpu.dot_dimension_numbers<[1], [1], [0], [0], [0, 0, 1, 0], [], []>} : vector<8x4xf32>, vector<8x4xf32>, vector<8x8xf32> -> vector<8x8xf32>
    %cst_47 = arith.constant 5.000000e-01 : f32
    %106 = vector.broadcast %cst_47 : f32 to vector<8x8xf32>
    %107 = arith.mulf %105, %106 : vector<8x8xf32>
    %108 = arith.addf %107, %19 : vector<8x8xf32>
    %cst_48 = arith.constant dense<0xFF800000> : vector<8xf32>
    %109 = vector.multi_reduction <maximumf>, %108, %cst_48 [1] : vector<8x8xf32> to vector<8xf32>
    %110 = vector.shape_cast %109 : vector<8xf32> to vector<8x1xf32>
    %111 = vector.broadcast %110 : vector<8x1xf32> to vector<8x8xf32>
    %112 = arith.subf %108, %111 : vector<8x8xf32>
    %113 = math.exp %112 : vector<8x8xf32>
    %cst_49 = arith.constant dense<0.000000e+00> : vector<8xf32>
    %114 = vector.multi_reduction <add>, %113, %cst_49 [1] : vector<8x8xf32> to vector<8xf32>
    %115 = vector.shape_cast %114 : vector<8xf32> to vector<8x1xf32>
    %116 = tpu.reciprocal %115 {approx = true} : vector<8x1xf32> -> vector<8x1xf32>
    %117 = vector.broadcast %116 : vector<8x1xf32> to vector<8x8xf32>
    %118 = arith.mulf %113, %117 : vector<8x8xf32>
    %cst_50 = arith.constant dense<0.000000e+00> : vector<8x4xf32>
    %119 = tpu.matmul %118, %104, %cst_50 {dimension_numbers = #tpu.dot_dimension_numbers<[1], [0], [0], [1], [0, 0, 1, 1], [], []>} : vector<8x8xf32>, vector<8x4xf32>, vector<8x4xf32> -> vector<8x4xf32>
    %120 = vector.extract_strided_slice %25 {offsets = [0, 20], sizes = [8, 4], strides = [1, 1]} : vector<8x32xf32> to vector<8x4xf32>
    %121 = vector.extract_strided_slice %26 {offsets = [0, 20], sizes = [8, 4], strides = [1, 1]} : vector<8x32xf32> to vector<8x4xf32>
    %122 = vector.extract_strided_slice %27 {offsets = [0, 20], sizes = [8, 4], strides = [1, 1]} : vector<8x32xf32> to vector<8x4xf32>
    %cst_51 = arith.constant dense<0.000000e+00> : vector<8x8xf32>
    %123 = tpu.matmul %120, %121, %cst_51 {dimension_numbers = #tpu.dot_dimension_numbers<[1], [1], [0], [0], [0, 0, 1, 0], [], []>} : vector<8x4xf32>, vector<8x4xf32>, vector<8x8xf32> -> vector<8x8xf32>
    %cst_52 = arith.constant 5.000000e-01 : f32
    %124 = vector.broadcast %cst_52 : f32 to vector<8x8xf32>
    %125 = arith.mulf %123, %124 : vector<8x8xf32>
    %126 = arith.addf %125, %19 : vector<8x8xf32>
    %cst_53 = arith.constant dense<0xFF800000> : vector<8xf32>
    %127 = vector.multi_reduction <maximumf>, %126, %cst_53 [1] : vector<8x8xf32> to vector<8xf32>
    %128 = vector.shape_cast %127 : vector<8xf32> to vector<8x1xf32>
    %129 = vector.broadcast %128 : vector<8x1xf32> to vector<8x8xf32>
    %130 = arith.subf %126, %129 : vector<8x8xf32>
    %131 = math.exp %130 : vector<8x8xf32>
    %cst_54 = arith.constant dense<0.000000e+00> : vector<8xf32>
    %132 = vector.multi_reduction <add>, %131, %cst_54 [1] : vector<8x8xf32> to vector<8xf32>
    %133 = vector.shape_cast %132 : vector<8xf32> to vector<8x1xf32>
    %134 = tpu.reciprocal %133 {approx = true} : vector<8x1xf32> -> vector<8x1xf32>
    %135 = vector.broadcast %134 : vector<8x1xf32> to vector<8x8xf32>
    %136 = arith.mulf %131, %135 : vector<8x8xf32>
    %cst_55 = arith.constant dense<0.000000e+00> : vector<8x4xf32>
    %137 = tpu.matmul %136, %122, %cst_55 {dimension_numbers = #tpu.dot_dimension_numbers<[1], [0], [0], [1], [0, 0, 1, 1], [], []>} : vector<8x8xf32>, vector<8x4xf32>, vector<8x4xf32> -> vector<8x4xf32>
    %138 = vector.extract_strided_slice %25 {offsets = [0, 24], sizes = [8, 4], strides = [1, 1]} : vector<8x32xf32> to vector<8x4xf32>
    %139 = vector.extract_strided_slice %26 {offsets = [0, 24], sizes = [8, 4], strides = [1, 1]} : vector<8x32xf32> to vector<8x4xf32>
    %140 = vector.extract_strided_slice %27 {offsets = [0, 24], sizes = [8, 4], strides = [1, 1]} : vector<8x32xf32> to vector<8x4xf32>
    %cst_56 = arith.constant dense<0.000000e+00> : vector<8x8xf32>
    %141 = tpu.matmul %138, %139, %cst_56 {dimension_numbers = #tpu.dot_dimension_numbers<[1], [1], [0], [0], [0, 0, 1, 0], [], []>} : vector<8x4xf32>, vector<8x4xf32>, vector<8x8xf32> -> vector<8x8xf32>
    %cst_57 = arith.constant 5.000000e-01 : f32
    %142 = vector.broadcast %cst_57 : f32 to vector<8x8xf32>
    %143 = arith.mulf %141, %142 : vector<8x8xf32>
    %144 = arith.addf %143, %19 : vector<8x8xf32>
    %cst_58 = arith.constant dense<0xFF800000> : vector<8xf32>
    %145 = vector.multi_reduction <maximumf>, %144, %cst_58 [1] : vector<8x8xf32> to vector<8xf32>
    %146 = vector.shape_cast %145 : vector<8xf32> to vector<8x1xf32>
    %147 = vector.broadcast %146 : vector<8x1xf32> to vector<8x8xf32>
    %148 = arith.subf %144, %147 : vector<8x8xf32>
    %149 = math.exp %148 : vector<8x8xf32>
    %cst_59 = arith.constant dense<0.000000e+00> : vector<8xf32>
    %150 = vector.multi_reduction <add>, %149, %cst_59 [1] : vector<8x8xf32> to vector<8xf32>
    %151 = vector.shape_cast %150 : vector<8xf32> to vector<8x1xf32>
    %152 = tpu.reciprocal %151 {approx = true} : vector<8x1xf32> -> vector<8x1xf32>
    %153 = vector.broadcast %152 : vector<8x1xf32> to vector<8x8xf32>
    %154 = arith.mulf %149, %153 : vector<8x8xf32>
    %cst_60 = arith.constant dense<0.000000e+00> : vector<8x4xf32>
    %155 = tpu.matmul %154, %140, %cst_60 {dimension_numbers = #tpu.dot_dimension_numbers<[1], [0], [0], [1], [0, 0, 1, 1], [], []>} : vector<8x8xf32>, vector<8x4xf32>, vector<8x4xf32> -> vector<8x4xf32>
    %156 = vector.extract_strided_slice %25 {offsets = [0, 28], sizes = [8, 4], strides = [1, 1]} : vector<8x32xf32> to vector<8x4xf32>
    %157 = vector.extract_strided_slice %26 {offsets = [0, 28], sizes = [8, 4], strides = [1, 1]} : vector<8x32xf32> to vector<8x4xf32>
    %158 = vector.extract_strided_slice %27 {offsets = [0, 28], sizes = [8, 4], strides = [1, 1]} : vector<8x32xf32> to vector<8x4xf32>
    %cst_61 = arith.constant dense<0.000000e+00> : vector<8x8xf32>
    %159 = tpu.matmul %156, %157, %cst_61 {dimension_numbers = #tpu.dot_dimension_numbers<[1], [1], [0], [0], [0, 0, 1, 0], [], []>} : vector<8x4xf32>, vector<8x4xf32>, vector<8x8xf32> -> vector<8x8xf32>
    %cst_62 = arith.constant 5.000000e-01 : f32
    %160 = vector.broadcast %cst_62 : f32 to vector<8x8xf32>
    %161 = arith.mulf %159, %160 : vector<8x8xf32>
    %162 = arith.addf %161, %19 : vector<8x8xf32>
    %cst_63 = arith.constant dense<0xFF800000> : vector<8xf32>
    %163 = vector.multi_reduction <maximumf>, %162, %cst_63 [1] : vector<8x8xf32> to vector<8xf32>
    %164 = vector.shape_cast %163 : vector<8xf32> to vector<8x1xf32>
    %165 = vector.broadcast %164 : vector<8x1xf32> to vector<8x8xf32>
    %166 = arith.subf %162, %165 : vector<8x8xf32>
    %167 = math.exp %166 : vector<8x8xf32>
    %cst_64 = arith.constant dense<0.000000e+00> : vector<8xf32>
    %168 = vector.multi_reduction <add>, %167, %cst_64 [1] : vector<8x8xf32> to vector<8xf32>
    %169 = vector.shape_cast %168 : vector<8xf32> to vector<8x1xf32>
    %170 = tpu.reciprocal %169 {approx = true} : vector<8x1xf32> -> vector<8x1xf32>
    %171 = vector.broadcast %170 : vector<8x1xf32> to vector<8x8xf32>
    %172 = arith.mulf %167, %171 : vector<8x8xf32>
    %cst_65 = arith.constant dense<0.000000e+00> : vector<8x4xf32>
    %173 = tpu.matmul %172, %158, %cst_65 {dimension_numbers = #tpu.dot_dimension_numbers<[1], [0], [0], [1], [0, 0, 1, 1], [], []>} : vector<8x8xf32>, vector<8x4xf32>, vector<8x4xf32> -> vector<8x4xf32>
    %174 = tpu.concatenate %47, %65, %83, %101, %119, %137, %155, %173 in 1 : vector<8x4xf32>, vector<8x4xf32>, vector<8x4xf32>, vector<8x4xf32>, vector<8x4xf32>, vector<8x4xf32>, vector<8x4xf32>, vector<8x4xf32> -> vector<8x32xf32>
    %cst_66 = arith.constant dense<0.000000e+00> : vector<8x32xf32>
    %175 = tpu.matmul %174, %28, %cst_66 {dimension_numbers = #tpu.dot_dimension_numbers<[1], [0], [0], [1], [0, 0, 1, 1], [], []>} : vector<8x32xf32>, vector<32x32xf32>, vector<8x32xf32> -> vector<8x32xf32>
    %176 = vector.broadcast %29 : vector<1x32xf32> to vector<8x32xf32>
    %177 = arith.addf %175, %176 : vector<8x32xf32>
    %178 = arith.addf %13, %177 : vector<8x32xf32>
    %c0_67 = arith.constant 0 : index
    %c0_68 = arith.constant 0 : index
    %179 = vector.load %arg62[%c0_67, %c0_68] : memref<1x32xf32, #tpu.memory_space<vmem>>, vector<1x32xf32>
    %c0_69 = arith.constant 0 : index
    %c0_70 = arith.constant 0 : index
    %180 = vector.load %arg61[%c0_69, %c0_70] : memref<1x32xf32, #tpu.memory_space<vmem>>, vector<1x32xf32>
    %cst_71 = arith.constant dense<0.000000e+00> : vector<8xf32>
    %181 = vector.multi_reduction <add>, %178, %cst_71 [1] : vector<8x32xf32> to vector<8xf32>
    %182 = vector.shape_cast %181 : vector<8xf32> to vector<8x1xf32>
    %cst_72 = arith.constant 3.200000e+01 : f32
    %183 = vector.broadcast %cst_72 : f32 to vector<8x1xf32>
    %184 = arith.divf %182, %183 : vector<8x1xf32>
    %185 = vector.broadcast %184 : vector<8x1xf32> to vector<8x32xf32>
    %186 = arith.subf %178, %185 : vector<8x32xf32>
    %187 = arith.mulf %186, %186 : vector<8x32xf32>
    %cst_73 = arith.constant dense<0.000000e+00> : vector<8xf32>
    %188 = vector.multi_reduction <add>, %187, %cst_73 [1] : vector<8x32xf32> to vector<8xf32>
    %189 = vector.shape_cast %188 : vector<8xf32> to vector<8x1xf32>
    %cst_74 = arith.constant 3.200000e+01 : f32
    %190 = vector.broadcast %cst_74 : f32 to vector<8x1xf32>
    %191 = arith.divf %189, %190 : vector<8x1xf32>
    %192 = vector.broadcast %184 : vector<8x1xf32> to vector<8x32xf32>
    %193 = arith.subf %178, %192 : vector<8x32xf32>
    %cst_75 = arith.constant 9.99999974E-6 : f32
    %194 = vector.broadcast %cst_75 : f32 to vector<8x1xf32>
    %195 = arith.addf %191, %194 : vector<8x1xf32>
    %196 = math.rsqrt %195 : vector<8x1xf32>
    %197 = vector.broadcast %196 : vector<8x1xf32> to vector<8x32xf32>
    %198 = arith.mulf %193, %197 : vector<8x32xf32>
    %199 = vector.broadcast %179 : vector<1x32xf32> to vector<8x32xf32>
    %200 = arith.mulf %198, %199 : vector<8x32xf32>
    %201 = vector.broadcast %180 : vector<1x32xf32> to vector<8x32xf32>
    %202 = arith.addf %200, %201 : vector<8x32xf32>
    %c0_76 = arith.constant 0 : index
    %c0_77 = arith.constant 0 : index
    %203 = vector.load %arg58[%c0_76, %c0_77] : memref<32x256xf32, #tpu.memory_space<vmem>>, vector<32x256xf32>
    %cst_78 = arith.constant dense<0.000000e+00> : vector<8x256xf32>
    %204 = tpu.matmul %202, %203, %cst_78 {dimension_numbers = #tpu.dot_dimension_numbers<[1], [0], [0], [1], [0, 0, 1, 1], [], []>} : vector<8x32xf32>, vector<32x256xf32>, vector<8x256xf32> -> vector<8x256xf32>
    %c0_79 = arith.constant 0 : index
    %c0_80 = arith.constant 0 : index
    %205 = vector.load %arg57[%c0_79, %c0_80] : memref<1x256xf32, #tpu.memory_space<vmem>>, vector<1x256xf32>
    %206 = vector.broadcast %205 : vector<1x256xf32> to vector<8x256xf32>
    %207 = arith.addf %204, %206 : vector<8x256xf32>
    %cst_81 = arith.constant 0.000000e+00 : f32
    %208 = vector.broadcast %cst_81 : f32 to vector<8x256xf32>
    %209 = arith.maximumf %207, %208 : vector<8x256xf32>
    %c0_82 = arith.constant 0 : index
    %c0_83 = arith.constant 0 : index
    %210 = vector.load %arg60[%c0_82, %c0_83] : memref<256x32xf32, #tpu.memory_space<vmem>>, vector<256x32xf32>
    %cst_84 = arith.constant dense<0.000000e+00> : vector<8x32xf32>
    %211 = tpu.matmul %209, %210, %cst_84 {dimension_numbers = #tpu.dot_dimension_numbers<[1], [0], [0], [1], [0, 0, 1, 1], [], []>} : vector<8x256xf32>, vector<256x32xf32>, vector<8x32xf32> -> vector<8x32xf32>
    %c0_85 = arith.constant 0 : index
    %c0_86 = arith.constant 0 : index
    %212 = vector.load %arg59[%c0_85, %c0_86] : memref<1x32xf32, #tpu.memory_space<vmem>>, vector<1x32xf32>
    %213 = vector.broadcast %212 : vector<1x32xf32> to vector<8x32xf32>
    %214 = arith.addf %211, %213 : vector<8x32xf32>
    %215 = arith.addf %202, %214 : vector<8x32xf32>
    %c0_87 = arith.constant 0 : index
    %c0_88 = arith.constant 0 : index
    %216 = vector.load %arg64[%c0_87, %c0_88] : memref<1x32xf32, #tpu.memory_space<vmem>>, vector<1x32xf32>
    %c0_89 = arith.constant 0 : index
    %c0_90 = arith.constant 0 : index
    %217 = vector.load %arg63[%c0_89, %c0_90] : memref<1x32xf32, #tpu.memory_space<vmem>>, vector<1x32xf32>
    %cst_91 = arith.constant dense<0.000000e+00> : vector<8xf32>
    %218 = vector.multi_reduction <add>, %215, %cst_91 [1] : vector<8x32xf32> to vector<8xf32>
    %219 = vector.shape_cast %218 : vector<8xf32> to vector<8x1xf32>
    %cst_92 = arith.constant 3.200000e+01 : f32
    %220 = vector.broadcast %cst_92 : f32 to vector<8x1xf32>
    %221 = arith.divf %219, %220 : vector<8x1xf32>
    %222 = vector.broadcast %221 : vector<8x1xf32> to vector<8x32xf32>
    %223 = arith.subf %215, %222 : vector<8x32xf32>
    %224 = arith.mulf %223, %223 : vector<8x32xf32>
    %cst_93 = arith.constant dense<0.000000e+00> : vector<8xf32>
    %225 = vector.multi_reduction <add>, %224, %cst_93 [1] : vector<8x32xf32> to vector<8xf32>
    %226 = vector.shape_cast %225 : vector<8xf32> to vector<8x1xf32>
    %cst_94 = arith.constant 3.200000e+01 : f32
    %227 = vector.broadcast %cst_94 : f32 to vector<8x1xf32>
    %228 = arith.divf %226, %227 : vector<8x1xf32>
    %229 = vector.broadcast %221 : vector<8x1xf32> to vector<8x32xf32>
    %230 = arith.subf %215, %229 : vector<8x32xf32>
    %cst_95 = arith.constant 9.99999974E-6 : f32
    %231 = vector.broadcast %cst_95 : f32 to vector<8x1xf32>
    %232 = arith.addf %228, %231 : vector<8x1xf32>
    %233 = math.rsqrt %232 : vector<8x1xf32>
    %234 = vector.broadcast %233 : vector<8x1xf32> to vector<8x32xf32>
    %235 = arith.mulf %230, %234 : vector<8x32xf32>
    %236 = vector.broadcast %216 : vector<1x32xf32> to vector<8x32xf32>
    %237 = arith.mulf %235, %236 : vector<8x32xf32>
    %238 = vector.broadcast %217 : vector<1x32xf32> to vector<8x32xf32>
    %239 = arith.addf %237, %238 : vector<8x32xf32>
    %c0_96 = arith.constant 0 : index
    %c0_97 = arith.constant 0 : index
    %240 = vector.load %arg80[%c0_96, %c0_97] : memref<32x96xf32, #tpu.memory_space<vmem>>, vector<32x96xf32>
    %cst_98 = arith.constant dense<0.000000e+00> : vector<8x96xf32>
    %241 = tpu.matmul %239, %240, %cst_98 {dimension_numbers = #tpu.dot_dimension_numbers<[1], [0], [0], [1], [0, 0, 1, 1], [], []>} : vector<8x32xf32>, vector<32x96xf32>, vector<8x96xf32> -> vector<8x96xf32>
    %c0_99 = arith.constant 0 : index
    %c0_100 = arith.constant 0 : index
    %242 = vector.load %arg79[%c0_99, %c0_100] : memref<1x96xf32, #tpu.memory_space<vmem>>, vector<1x96xf32>
    %243 = vector.broadcast %242 : vector<1x96xf32> to vector<8x96xf32>
    %244 = arith.addf %241, %243 : vector<8x96xf32>
    %245 = vector.extract_strided_slice %244 {offsets = [0, 0], sizes = [8, 32], strides = [1, 1]} : vector<8x96xf32> to vector<8x32xf32>
    %246 = vector.extract_strided_slice %244 {offsets = [0, 32], sizes = [8, 32], strides = [1, 1]} : vector<8x96xf32> to vector<8x32xf32>
    %247 = vector.extract_strided_slice %244 {offsets = [0, 64], sizes = [8, 32], strides = [1, 1]} : vector<8x96xf32> to vector<8x32xf32>
    %c0_101 = arith.constant 0 : index
    %c0_102 = arith.constant 0 : index
    %248 = vector.load %arg78[%c0_101, %c0_102] : memref<32x32xf32, #tpu.memory_space<vmem>>, vector<32x32xf32>
    %c0_103 = arith.constant 0 : index
    %c0_104 = arith.constant 0 : index
    %249 = vector.load %arg77[%c0_103, %c0_104] : memref<1x32xf32, #tpu.memory_space<vmem>>, vector<1x32xf32>
    %250 = vector.extract_strided_slice %245 {offsets = [0, 0], sizes = [8, 4], strides = [1, 1]} : vector<8x32xf32> to vector<8x4xf32>
    %251 = vector.extract_strided_slice %246 {offsets = [0, 0], sizes = [8, 4], strides = [1, 1]} : vector<8x32xf32> to vector<8x4xf32>
    %252 = vector.extract_strided_slice %247 {offsets = [0, 0], sizes = [8, 4], strides = [1, 1]} : vector<8x32xf32> to vector<8x4xf32>
    %cst_105 = arith.constant dense<0.000000e+00> : vector<8x8xf32>
    %253 = tpu.matmul %250, %251, %cst_105 {dimension_numbers = #tpu.dot_dimension_numbers<[1], [1], [0], [0], [0, 0, 1, 0], [], []>} : vector<8x4xf32>, vector<8x4xf32>, vector<8x8xf32> -> vector<8x8xf32>
    %cst_106 = arith.constant 5.000000e-01 : f32
    %254 = vector.broadcast %cst_106 : f32 to vector<8x8xf32>
    %255 = arith.mulf %253, %254 : vector<8x8xf32>
    %256 = arith.addf %255, %19 : vector<8x8xf32>
    %cst_107 = arith.constant dense<0xFF800000> : vector<8xf32>
    %257 = vector.multi_reduction <maximumf>, %256, %cst_107 [1] : vector<8x8xf32> to vector<8xf32>
    %258 = vector.shape_cast %257 : vector<8xf32> to vector<8x1xf32>
    %259 = vector.broadcast %258 : vector<8x1xf32> to vector<8x8xf32>
    %260 = arith.subf %256, %259 : vector<8x8xf32>
    %261 = math.exp %260 : vector<8x8xf32>
    %cst_108 = arith.constant dense<0.000000e+00> : vector<8xf32>
    %262 = vector.multi_reduction <add>, %261, %cst_108 [1] : vector<8x8xf32> to vector<8xf32>
    %263 = vector.shape_cast %262 : vector<8xf32> to vector<8x1xf32>
    %264 = tpu.reciprocal %263 {approx = true} : vector<8x1xf32> -> vector<8x1xf32>
    %265 = vector.broadcast %264 : vector<8x1xf32> to vector<8x8xf32>
    %266 = arith.mulf %261, %265 : vector<8x8xf32>
    %cst_109 = arith.constant dense<0.000000e+00> : vector<8x4xf32>
    %267 = tpu.matmul %266, %252, %cst_109 {dimension_numbers = #tpu.dot_dimension_numbers<[1], [0], [0], [1], [0, 0, 1, 1], [], []>} : vector<8x8xf32>, vector<8x4xf32>, vector<8x4xf32> -> vector<8x4xf32>
    %268 = vector.extract_strided_slice %245 {offsets = [0, 4], sizes = [8, 4], strides = [1, 1]} : vector<8x32xf32> to vector<8x4xf32>
    %269 = vector.extract_strided_slice %246 {offsets = [0, 4], sizes = [8, 4], strides = [1, 1]} : vector<8x32xf32> to vector<8x4xf32>
    %270 = vector.extract_strided_slice %247 {offsets = [0, 4], sizes = [8, 4], strides = [1, 1]} : vector<8x32xf32> to vector<8x4xf32>
    %cst_110 = arith.constant dense<0.000000e+00> : vector<8x8xf32>
    %271 = tpu.matmul %268, %269, %cst_110 {dimension_numbers = #tpu.dot_dimension_numbers<[1], [1], [0], [0], [0, 0, 1, 0], [], []>} : vector<8x4xf32>, vector<8x4xf32>, vector<8x8xf32> -> vector<8x8xf32>
    %cst_111 = arith.constant 5.000000e-01 : f32
    %272 = vector.broadcast %cst_111 : f32 to vector<8x8xf32>
    %273 = arith.mulf %271, %272 : vector<8x8xf32>
    %274 = arith.addf %273, %19 : vector<8x8xf32>
    %cst_112 = arith.constant dense<0xFF800000> : vector<8xf32>
    %275 = vector.multi_reduction <maximumf>, %274, %cst_112 [1] : vector<8x8xf32> to vector<8xf32>
    %276 = vector.shape_cast %275 : vector<8xf32> to vector<8x1xf32>
    %277 = vector.broadcast %276 : vector<8x1xf32> to vector<8x8xf32>
    %278 = arith.subf %274, %277 : vector<8x8xf32>
    %279 = math.exp %278 : vector<8x8xf32>
    %cst_113 = arith.constant dense<0.000000e+00> : vector<8xf32>
    %280 = vector.multi_reduction <add>, %279, %cst_113 [1] : vector<8x8xf32> to vector<8xf32>
    %281 = vector.shape_cast %280 : vector<8xf32> to vector<8x1xf32>
    %282 = tpu.reciprocal %281 {approx = true} : vector<8x1xf32> -> vector<8x1xf32>
    %283 = vector.broadcast %282 : vector<8x1xf32> to vector<8x8xf32>
    %284 = arith.mulf %279, %283 : vector<8x8xf32>
    %cst_114 = arith.constant dense<0.000000e+00> : vector<8x4xf32>
    %285 = tpu.matmul %284, %270, %cst_114 {dimension_numbers = #tpu.dot_dimension_numbers<[1], [0], [0], [1], [0, 0, 1, 1], [], []>} : vector<8x8xf32>, vector<8x4xf32>, vector<8x4xf32> -> vector<8x4xf32>
    %286 = vector.extract_strided_slice %245 {offsets = [0, 8], sizes = [8, 4], strides = [1, 1]} : vector<8x32xf32> to vector<8x4xf32>
    %287 = vector.extract_strided_slice %246 {offsets = [0, 8], sizes = [8, 4], strides = [1, 1]} : vector<8x32xf32> to vector<8x4xf32>
    %288 = vector.extract_strided_slice %247 {offsets = [0, 8], sizes = [8, 4], strides = [1, 1]} : vector<8x32xf32> to vector<8x4xf32>
    %cst_115 = arith.constant dense<0.000000e+00> : vector<8x8xf32>
    %289 = tpu.matmul %286, %287, %cst_115 {dimension_numbers = #tpu.dot_dimension_numbers<[1], [1], [0], [0], [0, 0, 1, 0], [], []>} : vector<8x4xf32>, vector<8x4xf32>, vector<8x8xf32> -> vector<8x8xf32>
    %cst_116 = arith.constant 5.000000e-01 : f32
    %290 = vector.broadcast %cst_116 : f32 to vector<8x8xf32>
    %291 = arith.mulf %289, %290 : vector<8x8xf32>
    %292 = arith.addf %291, %19 : vector<8x8xf32>
    %cst_117 = arith.constant dense<0xFF800000> : vector<8xf32>
    %293 = vector.multi_reduction <maximumf>, %292, %cst_117 [1] : vector<8x8xf32> to vector<8xf32>
    %294 = vector.shape_cast %293 : vector<8xf32> to vector<8x1xf32>
    %295 = vector.broadcast %294 : vector<8x1xf32> to vector<8x8xf32>
    %296 = arith.subf %292, %295 : vector<8x8xf32>
    %297 = math.exp %296 : vector<8x8xf32>
    %cst_118 = arith.constant dense<0.000000e+00> : vector<8xf32>
    %298 = vector.multi_reduction <add>, %297, %cst_118 [1] : vector<8x8xf32> to vector<8xf32>
    %299 = vector.shape_cast %298 : vector<8xf32> to vector<8x1xf32>
    %300 = tpu.reciprocal %299 {approx = true} : vector<8x1xf32> -> vector<8x1xf32>
    %301 = vector.broadcast %300 : vector<8x1xf32> to vector<8x8xf32>
    %302 = arith.mulf %297, %301 : vector<8x8xf32>
    %cst_119 = arith.constant dense<0.000000e+00> : vector<8x4xf32>
    %303 = tpu.matmul %302, %288, %cst_119 {dimension_numbers = #tpu.dot_dimension_numbers<[1], [0], [0], [1], [0, 0, 1, 1], [], []>} : vector<8x8xf32>, vector<8x4xf32>, vector<8x4xf32> -> vector<8x4xf32>
    %304 = vector.extract_strided_slice %245 {offsets = [0, 12], sizes = [8, 4], strides = [1, 1]} : vector<8x32xf32> to vector<8x4xf32>
    %305 = vector.extract_strided_slice %246 {offsets = [0, 12], sizes = [8, 4], strides = [1, 1]} : vector<8x32xf32> to vector<8x4xf32>
    %306 = vector.extract_strided_slice %247 {offsets = [0, 12], sizes = [8, 4], strides = [1, 1]} : vector<8x32xf32> to vector<8x4xf32>
    %cst_120 = arith.constant dense<0.000000e+00> : vector<8x8xf32>
    %307 = tpu.matmul %304, %305, %cst_120 {dimension_numbers = #tpu.dot_dimension_numbers<[1], [1], [0], [0], [0, 0, 1, 0], [], []>} : vector<8x4xf32>, vector<8x4xf32>, vector<8x8xf32> -> vector<8x8xf32>
    %cst_121 = arith.constant 5.000000e-01 : f32
    %308 = vector.broadcast %cst_121 : f32 to vector<8x8xf32>
    %309 = arith.mulf %307, %308 : vector<8x8xf32>
    %310 = arith.addf %309, %19 : vector<8x8xf32>
    %cst_122 = arith.constant dense<0xFF800000> : vector<8xf32>
    %311 = vector.multi_reduction <maximumf>, %310, %cst_122 [1] : vector<8x8xf32> to vector<8xf32>
    %312 = vector.shape_cast %311 : vector<8xf32> to vector<8x1xf32>
    %313 = vector.broadcast %312 : vector<8x1xf32> to vector<8x8xf32>
    %314 = arith.subf %310, %313 : vector<8x8xf32>
    %315 = math.exp %314 : vector<8x8xf32>
    %cst_123 = arith.constant dense<0.000000e+00> : vector<8xf32>
    %316 = vector.multi_reduction <add>, %315, %cst_123 [1] : vector<8x8xf32> to vector<8xf32>
    %317 = vector.shape_cast %316 : vector<8xf32> to vector<8x1xf32>
    %318 = tpu.reciprocal %317 {approx = true} : vector<8x1xf32> -> vector<8x1xf32>
    %319 = vector.broadcast %318 : vector<8x1xf32> to vector<8x8xf32>
    %320 = arith.mulf %315, %319 : vector<8x8xf32>
    %cst_124 = arith.constant dense<0.000000e+00> : vector<8x4xf32>
    %321 = tpu.matmul %320, %306, %cst_124 {dimension_numbers = #tpu.dot_dimension_numbers<[1], [0], [0], [1], [0, 0, 1, 1], [], []>} : vector<8x8xf32>, vector<8x4xf32>, vector<8x4xf32> -> vector<8x4xf32>
    %322 = vector.extract_strided_slice %245 {offsets = [0, 16], sizes = [8, 4], strides = [1, 1]} : vector<8x32xf32> to vector<8x4xf32>
    %323 = vector.extract_strided_slice %246 {offsets = [0, 16], sizes = [8, 4], strides = [1, 1]} : vector<8x32xf32> to vector<8x4xf32>
    %324 = vector.extract_strided_slice %247 {offsets = [0, 16], sizes = [8, 4], strides = [1, 1]} : vector<8x32xf32> to vector<8x4xf32>
    %cst_125 = arith.constant dense<0.000000e+00> : vector<8x8xf32>
    %325 = tpu.matmul %322, %323, %cst_125 {dimension_numbers = #tpu.dot_dimension_numbers<[1], [1], [0], [0], [0, 0, 1, 0], [], []>} : vector<8x4xf32>, vector<8x4xf32>, vector<8x8xf32> -> vector<8x8xf32>
    %cst_126 = arith.constant 5.000000e-01 : f32
    %326 = vector.broadcast %cst_126 : f32 to vector<8x8xf32>
    %327 = arith.mulf %325, %326 : vector<8x8xf32>
    %328 = arith.addf %327, %19 : vector<8x8xf32>
    %cst_127 = arith.constant dense<0xFF800000> : vector<8xf32>
    %329 = vector.multi_reduction <maximumf>, %328, %cst_127 [1] : vector<8x8xf32> to vector<8xf32>
    %330 = vector.shape_cast %329 : vector<8xf32> to vector<8x1xf32>
    %331 = vector.broadcast %330 : vector<8x1xf32> to vector<8x8xf32>
    %332 = arith.subf %328, %331 : vector<8x8xf32>
    %333 = math.exp %332 : vector<8x8xf32>
    %cst_128 = arith.constant dense<0.000000e+00> : vector<8xf32>
    %334 = vector.multi_reduction <add>, %333, %cst_128 [1] : vector<8x8xf32> to vector<8xf32>
    %335 = vector.shape_cast %334 : vector<8xf32> to vector<8x1xf32>
    %336 = tpu.reciprocal %335 {approx = true} : vector<8x1xf32> -> vector<8x1xf32>
    %337 = vector.broadcast %336 : vector<8x1xf32> to vector<8x8xf32>
    %338 = arith.mulf %333, %337 : vector<8x8xf32>
    %cst_129 = arith.constant dense<0.000000e+00> : vector<8x4xf32>
    %339 = tpu.matmul %338, %324, %cst_129 {dimension_numbers = #tpu.dot_dimension_numbers<[1], [0], [0], [1], [0, 0, 1, 1], [], []>} : vector<8x8xf32>, vector<8x4xf32>, vector<8x4xf32> -> vector<8x4xf32>
    %340 = vector.extract_strided_slice %245 {offsets = [0, 20], sizes = [8, 4], strides = [1, 1]} : vector<8x32xf32> to vector<8x4xf32>
    %341 = vector.extract_strided_slice %246 {offsets = [0, 20], sizes = [8, 4], strides = [1, 1]} : vector<8x32xf32> to vector<8x4xf32>
    %342 = vector.extract_strided_slice %247 {offsets = [0, 20], sizes = [8, 4], strides = [1, 1]} : vector<8x32xf32> to vector<8x4xf32>
    %cst_130 = arith.constant dense<0.000000e+00> : vector<8x8xf32>
    %343 = tpu.matmul %340, %341, %cst_130 {dimension_numbers = #tpu.dot_dimension_numbers<[1], [1], [0], [0], [0, 0, 1, 0], [], []>} : vector<8x4xf32>, vector<8x4xf32>, vector<8x8xf32> -> vector<8x8xf32>
    %cst_131 = arith.constant 5.000000e-01 : f32
    %344 = vector.broadcast %cst_131 : f32 to vector<8x8xf32>
    %345 = arith.mulf %343, %344 : vector<8x8xf32>
    %346 = arith.addf %345, %19 : vector<8x8xf32>
    %cst_132 = arith.constant dense<0xFF800000> : vector<8xf32>
    %347 = vector.multi_reduction <maximumf>, %346, %cst_132 [1] : vector<8x8xf32> to vector<8xf32>
    %348 = vector.shape_cast %347 : vector<8xf32> to vector<8x1xf32>
    %349 = vector.broadcast %348 : vector<8x1xf32> to vector<8x8xf32>
    %350 = arith.subf %346, %349 : vector<8x8xf32>
    %351 = math.exp %350 : vector<8x8xf32>
    %cst_133 = arith.constant dense<0.000000e+00> : vector<8xf32>
    %352 = vector.multi_reduction <add>, %351, %cst_133 [1] : vector<8x8xf32> to vector<8xf32>
    %353 = vector.shape_cast %352 : vector<8xf32> to vector<8x1xf32>
    %354 = tpu.reciprocal %353 {approx = true} : vector<8x1xf32> -> vector<8x1xf32>
    %355 = vector.broadcast %354 : vector<8x1xf32> to vector<8x8xf32>
    %356 = arith.mulf %351, %355 : vector<8x8xf32>
    %cst_134 = arith.constant dense<0.000000e+00> : vector<8x4xf32>
    %357 = tpu.matmul %356, %342, %cst_134 {dimension_numbers = #tpu.dot_dimension_numbers<[1], [0], [0], [1], [0, 0, 1, 1], [], []>} : vector<8x8xf32>, vector<8x4xf32>, vector<8x4xf32> -> vector<8x4xf32>
    %358 = vector.extract_strided_slice %245 {offsets = [0, 24], sizes = [8, 4], strides = [1, 1]} : vector<8x32xf32> to vector<8x4xf32>
    %359 = vector.extract_strided_slice %246 {offsets = [0, 24], sizes = [8, 4], strides = [1, 1]} : vector<8x32xf32> to vector<8x4xf32>
    %360 = vector.extract_strided_slice %247 {offsets = [0, 24], sizes = [8, 4], strides = [1, 1]} : vector<8x32xf32> to vector<8x4xf32>
    %cst_135 = arith.constant dense<0.000000e+00> : vector<8x8xf32>
    %361 = tpu.matmul %358, %359, %cst_135 {dimension_numbers = #tpu.dot_dimension_numbers<[1], [1], [0], [0], [0, 0, 1, 0], [], []>} : vector<8x4xf32>, vector<8x4xf32>, vector<8x8xf32> -> vector<8x8xf32>
    %cst_136 = arith.constant 5.000000e-01 : f32
    %362 = vector.broadcast %cst_136 : f32 to vector<8x8xf32>
    %363 = arith.mulf %361, %362 : vector<8x8xf32>
    %364 = arith.addf %363, %19 : vector<8x8xf32>
    %cst_137 = arith.constant dense<0xFF800000> : vector<8xf32>
    %365 = vector.multi_reduction <maximumf>, %364, %cst_137 [1] : vector<8x8xf32> to vector<8xf32>
    %366 = vector.shape_cast %365 : vector<8xf32> to vector<8x1xf32>
    %367 = vector.broadcast %366 : vector<8x1xf32> to vector<8x8xf32>
    %368 = arith.subf %364, %367 : vector<8x8xf32>
    %369 = math.exp %368 : vector<8x8xf32>
    %cst_138 = arith.constant dense<0.000000e+00> : vector<8xf32>
    %370 = vector.multi_reduction <add>, %369, %cst_138 [1] : vector<8x8xf32> to vector<8xf32>
    %371 = vector.shape_cast %370 : vector<8xf32> to vector<8x1xf32>
    %372 = tpu.reciprocal %371 {approx = true} : vector<8x1xf32> -> vector<8x1xf32>
    %373 = vector.broadcast %372 : vector<8x1xf32> to vector<8x8xf32>
    %374 = arith.mulf %369, %373 : vector<8x8xf32>
    %cst_139 = arith.constant dense<0.000000e+00> : vector<8x4xf32>
    %375 = tpu.matmul %374, %360, %cst_139 {dimension_numbers = #tpu.dot_dimension_numbers<[1], [0], [0], [1], [0, 0, 1, 1], [], []>} : vector<8x8xf32>, vector<8x4xf32>, vector<8x4xf32> -> vector<8x4xf32>
    %376 = vector.extract_strided_slice %245 {offsets = [0, 28], sizes = [8, 4], strides = [1, 1]} : vector<8x32xf32> to vector<8x4xf32>
    %377 = vector.extract_strided_slice %246 {offsets = [0, 28], sizes = [8, 4], strides = [1, 1]} : vector<8x32xf32> to vector<8x4xf32>
    %378 = vector.extract_strided_slice %247 {offsets = [0, 28], sizes = [8, 4], strides = [1, 1]} : vector<8x32xf32> to vector<8x4xf32>
    %cst_140 = arith.constant dense<0.000000e+00> : vector<8x8xf32>
    %379 = tpu.matmul %376, %377, %cst_140 {dimension_numbers = #tpu.dot_dimension_numbers<[1], [1], [0], [0], [0, 0, 1, 0], [], []>} : vector<8x4xf32>, vector<8x4xf32>, vector<8x8xf32> -> vector<8x8xf32>
    %cst_141 = arith.constant 5.000000e-01 : f32
    %380 = vector.broadcast %cst_141 : f32 to vector<8x8xf32>
    %381 = arith.mulf %379, %380 : vector<8x8xf32>
    %382 = arith.addf %381, %19 : vector<8x8xf32>
    %cst_142 = arith.constant dense<0xFF800000> : vector<8xf32>
    %383 = vector.multi_reduction <maximumf>, %382, %cst_142 [1] : vector<8x8xf32> to vector<8xf32>
    %384 = vector.shape_cast %383 : vector<8xf32> to vector<8x1xf32>
    %385 = vector.broadcast %384 : vector<8x1xf32> to vector<8x8xf32>
    %386 = arith.subf %382, %385 : vector<8x8xf32>
    %387 = math.exp %386 : vector<8x8xf32>
    %cst_143 = arith.constant dense<0.000000e+00> : vector<8xf32>
    %388 = vector.multi_reduction <add>, %387, %cst_143 [1] : vector<8x8xf32> to vector<8xf32>
    %389 = vector.shape_cast %388 : vector<8xf32> to vector<8x1xf32>
    %390 = tpu.reciprocal %389 {approx = true} : vector<8x1xf32> -> vector<8x1xf32>
    %391 = vector.broadcast %390 : vector<8x1xf32> to vector<8x8xf32>
    %392 = arith.mulf %387, %391 : vector<8x8xf32>
    %cst_144 = arith.constant dense<0.000000e+00> : vector<8x4xf32>
    %393 = tpu.matmul %392, %378, %cst_144 {dimension_numbers = #tpu.dot_dimension_numbers<[1], [0], [0], [1], [0, 0, 1, 1], [], []>} : vector<8x8xf32>, vector<8x4xf32>, vector<8x4xf32> -> vector<8x4xf32>
    %394 = tpu.concatenate %267, %285, %303, %321, %339, %357, %375, %393 in 1 : vector<8x4xf32>, vector<8x4xf32>, vector<8x4xf32>, vector<8x4xf32>, vector<8x4xf32>, vector<8x4xf32>, vector<8x4xf32>, vector<8x4xf32> -> vector<8x32xf32>
    %cst_145 = arith.constant dense<0.000000e+00> : vector<8x32xf32>
    %395 = tpu.matmul %394, %248, %cst_145 {dimension_numbers = #tpu.dot_dimension_numbers<[1], [0], [0], [1], [0, 0, 1, 1], [], []>} : vector<8x32xf32>, vector<32x32xf32>, vector<8x32xf32> -> vector<8x32xf32>
    %396 = vector.broadcast %249 : vector<1x32xf32> to vector<8x32xf32>
    %397 = arith.addf %395, %396 : vector<8x32xf32>
    %398 = arith.addf %239, %397 : vector<8x32xf32>
    %c0_146 = arith.constant 0 : index
    %c0_147 = arith.constant 0 : index
    %399 = vector.load %arg74[%c0_146, %c0_147] : memref<1x32xf32, #tpu.memory_space<vmem>>, vector<1x32xf32>
    %c0_148 = arith.constant 0 : index
    %c0_149 = arith.constant 0 : index
    %400 = vector.load %arg73[%c0_148, %c0_149] : memref<1x32xf32, #tpu.memory_space<vmem>>, vector<1x32xf32>
    %cst_150 = arith.constant dense<0.000000e+00> : vector<8xf32>
    %401 = vector.multi_reduction <add>, %398, %cst_150 [1] : vector<8x32xf32> to vector<8xf32>
    %402 = vector.shape_cast %401 : vector<8xf32> to vector<8x1xf32>
    %cst_151 = arith.constant 3.200000e+01 : f32
    %403 = vector.broadcast %cst_151 : f32 to vector<8x1xf32>
    %404 = arith.divf %402, %403 : vector<8x1xf32>
    %405 = vector.broadcast %404 : vector<8x1xf32> to vector<8x32xf32>
    %406 = arith.subf %398, %405 : vector<8x32xf32>
    %407 = arith.mulf %406, %406 : vector<8x32xf32>
    %cst_152 = arith.constant dense<0.000000e+00> : vector<8xf32>
    %408 = vector.multi_reduction <add>, %407, %cst_152 [1] : vector<8x32xf32> to vector<8xf32>
    %409 = vector.shape_cast %408 : vector<8xf32> to vector<8x1xf32>
    %cst_153 = arith.constant 3.200000e+01 : f32
    %410 = vector.broadcast %cst_153 : f32 to vector<8x1xf32>
    %411 = arith.divf %409, %410 : vector<8x1xf32>
    %412 = vector.broadcast %404 : vector<8x1xf32> to vector<8x32xf32>
    %413 = arith.subf %398, %412 : vector<8x32xf32>
    %cst_154 = arith.constant 9.99999974E-6 : f32
    %414 = vector.broadcast %cst_154 : f32 to vector<8x1xf32>
    %415 = arith.addf %411, %414 : vector<8x1xf32>
    %416 = math.rsqrt %415 : vector<8x1xf32>
    %417 = vector.broadcast %416 : vector<8x1xf32> to vector<8x32xf32>
    %418 = arith.mulf %413, %417 : vector<8x32xf32>
    %419 = vector.broadcast %399 : vector<1x32xf32> to vector<8x32xf32>
    %420 = arith.mulf %418, %419 : vector<8x32xf32>
    %421 = vector.broadcast %400 : vector<1x32xf32> to vector<8x32xf32>
    %422 = arith.addf %420, %421 : vector<8x32xf32>
    %c0_155 = arith.constant 0 : index
    %c0_156 = arith.constant 0 : index
    %423 = vector.load %arg70[%c0_155, %c0_156] : memref<32x256xf32, #tpu.memory_space<vmem>>, vector<32x256xf32>
    %cst_157 = arith.constant dense<0.000000e+00> : vector<8x256xf32>
    %424 = tpu.matmul %422, %423, %cst_157 {dimension_numbers = #tpu.dot_dimension_numbers<[1], [0], [0], [1], [0, 0, 1, 1], [], []>} : vector<8x32xf32>, vector<32x256xf32>, vector<8x256xf32> -> vector<8x256xf32>
    %c0_158 = arith.constant 0 : index
    %c0_159 = arith.constant 0 : index
    %425 = vector.load %arg69[%c0_158, %c0_159] : memref<1x256xf32, #tpu.memory_space<vmem>>, vector<1x256xf32>
    %426 = vector.broadcast %425 : vector<1x256xf32> to vector<8x256xf32>
    %427 = arith.addf %424, %426 : vector<8x256xf32>
    %cst_160 = arith.constant 0.000000e+00 : f32
    %428 = vector.broadcast %cst_160 : f32 to vector<8x256xf32>
    %429 = arith.maximumf %427, %428 : vector<8x256xf32>
    %c0_161 = arith.constant 0 : index
    %c0_162 = arith.constant 0 : index
    %430 = vector.load %arg72[%c0_161, %c0_162] : memref<256x32xf32, #tpu.memory_space<vmem>>, vector<256x32xf32>
    %cst_163 = arith.constant dense<0.000000e+00> : vector<8x32xf32>
    %431 = tpu.matmul %429, %430, %cst_163 {dimension_numbers = #tpu.dot_dimension_numbers<[1], [0], [0], [1], [0, 0, 1, 1], [], []>} : vector<8x256xf32>, vector<256x32xf32>, vector<8x32xf32> -> vector<8x32xf32>
    %c0_164 = arith.constant 0 : index
    %c0_165 = arith.constant 0 : index
    %432 = vector.load %arg71[%c0_164, %c0_165] : memref<1x32xf32, #tpu.memory_space<vmem>>, vector<1x32xf32>
    %433 = vector.broadcast %432 : vector<1x32xf32> to vector<8x32xf32>
    %434 = arith.addf %431, %433 : vector<8x32xf32>
    %435 = arith.addf %422, %434 : vector<8x32xf32>
    %c0_166 = arith.constant 0 : index
    %c0_167 = arith.constant 0 : index
    %436 = vector.load %arg76[%c0_166, %c0_167] : memref<1x32xf32, #tpu.memory_space<vmem>>, vector<1x32xf32>
    %c0_168 = arith.constant 0 : index
    %c0_169 = arith.constant 0 : index
    %437 = vector.load %arg75[%c0_168, %c0_169] : memref<1x32xf32, #tpu.memory_space<vmem>>, vector<1x32xf32>
    %cst_170 = arith.constant dense<0.000000e+00> : vector<8xf32>
    %438 = vector.multi_reduction <add>, %435, %cst_170 [1] : vector<8x32xf32> to vector<8xf32>
    %439 = vector.shape_cast %438 : vector<8xf32> to vector<8x1xf32>
    %cst_171 = arith.constant 3.200000e+01 : f32
    %440 = vector.broadcast %cst_171 : f32 to vector<8x1xf32>
    %441 = arith.divf %439, %440 : vector<8x1xf32>
    %442 = vector.broadcast %441 : vector<8x1xf32> to vector<8x32xf32>
    %443 = arith.subf %435, %442 : vector<8x32xf32>
    %444 = arith.mulf %443, %443 : vector<8x32xf32>
    %cst_172 = arith.constant dense<0.000000e+00> : vector<8xf32>
    %445 = vector.multi_reduction <add>, %444, %cst_172 [1] : vector<8x32xf32> to vector<8xf32>
    %446 = vector.shape_cast %445 : vector<8xf32> to vector<8x1xf32>
    %cst_173 = arith.constant 3.200000e+01 : f32
    %447 = vector.broadcast %cst_173 : f32 to vector<8x1xf32>
    %448 = arith.divf %446, %447 : vector<8x1xf32>
    %449 = vector.broadcast %441 : vector<8x1xf32> to vector<8x32xf32>
    %450 = arith.subf %435, %449 : vector<8x32xf32>
    %cst_174 = arith.constant 9.99999974E-6 : f32
    %451 = vector.broadcast %cst_174 : f32 to vector<8x1xf32>
    %452 = arith.addf %448, %451 : vector<8x1xf32>
    %453 = math.rsqrt %452 : vector<8x1xf32>
    %454 = vector.broadcast %453 : vector<8x1xf32> to vector<8x32xf32>
    %455 = arith.mulf %450, %454 : vector<8x32xf32>
    %456 = vector.broadcast %436 : vector<1x32xf32> to vector<8x32xf32>
    %457 = arith.mulf %455, %456 : vector<8x32xf32>
    %458 = vector.broadcast %437 : vector<1x32xf32> to vector<8x32xf32>
    %459 = arith.addf %457, %458 : vector<8x32xf32>
    %c0_175 = arith.constant 0 : index
    %c0_176 = arith.constant 0 : index
    %460 = vector.load %arg86[%c0_175, %c0_176] : memref<1x32xf32, #tpu.memory_space<vmem>>, vector<1x32xf32>
    %c0_177 = arith.constant 0 : index
    %c0_178 = arith.constant 0 : index
    %461 = vector.load %arg85[%c0_177, %c0_178] : memref<1x32xf32, #tpu.memory_space<vmem>>, vector<1x32xf32>
    %cst_179 = arith.constant dense<0.000000e+00> : vector<8xf32>
    %462 = vector.multi_reduction <add>, %459, %cst_179 [1] : vector<8x32xf32> to vector<8xf32>
    %463 = vector.shape_cast %462 : vector<8xf32> to vector<8x1xf32>
    %cst_180 = arith.constant 3.200000e+01 : f32
    %464 = vector.broadcast %cst_180 : f32 to vector<8x1xf32>
    %465 = arith.divf %463, %464 : vector<8x1xf32>
    %466 = vector.broadcast %465 : vector<8x1xf32> to vector<8x32xf32>
    %467 = arith.subf %459, %466 : vector<8x32xf32>
    %468 = arith.mulf %467, %467 : vector<8x32xf32>
    %cst_181 = arith.constant dense<0.000000e+00> : vector<8xf32>
    %469 = vector.multi_reduction <add>, %468, %cst_181 [1] : vector<8x32xf32> to vector<8xf32>
    %470 = vector.shape_cast %469 : vector<8xf32> to vector<8x1xf32>
    %cst_182 = arith.constant 3.200000e+01 : f32
    %471 = vector.broadcast %cst_182 : f32 to vector<8x1xf32>
    %472 = arith.divf %470, %471 : vector<8x1xf32>
    %473 = vector.broadcast %465 : vector<8x1xf32> to vector<8x32xf32>
    %474 = arith.subf %459, %473 : vector<8x32xf32>
    %cst_183 = arith.constant 9.99999974E-6 : f32
    %475 = vector.broadcast %cst_183 : f32 to vector<8x1xf32>
    %476 = arith.addf %472, %475 : vector<8x1xf32>
    %477 = math.rsqrt %476 : vector<8x1xf32>
    %478 = vector.broadcast %477 : vector<8x1xf32> to vector<8x32xf32>
    %479 = arith.mulf %474, %478 : vector<8x32xf32>
    %480 = vector.broadcast %460 : vector<1x32xf32> to vector<8x32xf32>
    %481 = arith.mulf %479, %480 : vector<8x32xf32>
    %482 = vector.broadcast %461 : vector<1x32xf32> to vector<8x32xf32>
    %483 = arith.addf %481, %482 : vector<8x32xf32>
    %cst_184 = arith.constant dense<0.000000e+00> : vector<32xf32>
    %484 = vector.multi_reduction <add>, %483, %cst_184 [0] : vector<8x32xf32> to vector<32xf32>
    %485 = vector.shape_cast %484 : vector<32xf32> to vector<1x32xf32>
    %cst_185 = arith.constant 8.000000e+00 : f32
    %486 = vector.broadcast %cst_185 : f32 to vector<1x32xf32>
    %487 = arith.divf %485, %486 : vector<1x32xf32>
    %488 = vector.extract_strided_slice %483 {offsets = [7, 0], sizes = [1, 32], strides = [1, 1]} : vector<8x32xf32> to vector<1x32xf32>
    %cst_186 = arith.constant dense<0xFF800000> : vector<32xf32>
    %489 = vector.multi_reduction <maximumf>, %483, %cst_186 [0] : vector<8x32xf32> to vector<32xf32>
    %490 = vector.shape_cast %489 : vector<32xf32> to vector<1x32xf32>
    %c0_187 = arith.constant 0 : index
    %c0_188 = arith.constant 0 : index
    %491 = vector.load %arg84[%c0_187, %c0_188] : memref<32x32xf32, #tpu.memory_space<vmem>>, vector<32x32xf32>
    %cst_189 = arith.constant dense<0.000000e+00> : vector<1x32xf32>
    %492 = tpu.matmul %487, %491, %cst_189 {dimension_numbers = #tpu.dot_dimension_numbers<[1], [0], [0], [1], [0, 0, 1, 1], [], []>} : vector<1x32xf32>, vector<32x32xf32>, vector<1x32xf32> -> vector<1x32xf32>
    %c0_190 = arith.constant 0 : index
    %c0_191 = arith.constant 0 : index
    %493 = vector.load %arg82[%c0_190, %c0_191] : memref<32x32xf32, #tpu.memory_space<vmem>>, vector<32x32xf32>
    %cst_192 = arith.constant dense<0.000000e+00> : vector<1x32xf32>
    %494 = tpu.matmul %488, %493, %cst_192 {dimension_numbers = #tpu.dot_dimension_numbers<[1], [0], [0], [1], [0, 0, 1, 1], [], []>} : vector<1x32xf32>, vector<32x32xf32>, vector<1x32xf32> -> vector<1x32xf32>
    %495 = arith.addf %492, %494 : vector<1x32xf32>
    %c0_193 = arith.constant 0 : index
    %c0_194 = arith.constant 0 : index
    %496 = vector.load %arg83[%c0_193, %c0_194] : memref<32x32xf32, #tpu.memory_space<vmem>>, vector<32x32xf32>
    %cst_195 = arith.constant dense<0.000000e+00> : vector<1x32xf32>
    %497 = tpu.matmul %490, %496, %cst_195 {dimension_numbers = #tpu.dot_dimension_numbers<[1], [0], [0], [1], [0, 0, 1, 1], [], []>} : vector<1x32xf32>, vector<32x32xf32>, vector<1x32xf32> -> vector<1x32xf32>
    %498 = arith.addf %495, %497 : vector<1x32xf32>
    %c0_196 = arith.constant 0 : index
    %c0_197 = arith.constant 0 : index
    %499 = vector.load %arg81[%c0_196, %c0_197] : memref<1x32xf32, #tpu.memory_space<vmem>>, vector<1x32xf32>
    %500 = arith.addf %498, %499 : vector<1x32xf32>
    %c0_198 = arith.constant 0 : index
    %c0_199 = arith.constant 0 : index
    %501 = vector.load %arg5[%c0_198, %c0_199] : memref<3x32xf32, #tpu.memory_space<vmem>>, vector<3x32xf32>
    %cst_200 = arith.constant dense<0.000000e+00> : vector<8x32xf32>
    %502 = tpu.matmul %5, %501, %cst_200 {dimension_numbers = #tpu.dot_dimension_numbers<[1], [0], [0], [1], [0, 0, 1, 1], [], []>} : vector<8x3xf32>, vector<3x32xf32>, vector<8x32xf32> -> vector<8x32xf32>
    %c0_201 = arith.constant 0 : index
    %c0_202 = arith.constant 0 : index
    %503 = vector.load %arg4[%c0_201, %c0_202] : memref<1x32xf32, #tpu.memory_space<vmem>>, vector<1x32xf32>
    %504 = vector.broadcast %503 : vector<1x32xf32> to vector<8x32xf32>
    %505 = arith.addf %502, %504 : vector<8x32xf32>
    %c0_203 = arith.constant 0 : index
    %c0_204 = arith.constant 0 : index
    %506 = vector.load %arg53[%c0_203, %c0_204] : memref<32x32xf32, #tpu.memory_space<vmem>>, vector<32x32xf32>
    %cst_205 = arith.constant dense<0.000000e+00> : vector<1x32xf32>
    %507 = tpu.matmul %500, %506, %cst_205 {dimension_numbers = #tpu.dot_dimension_numbers<[1], [0], [0], [1], [0, 0, 1, 1], [], []>} : vector<1x32xf32>, vector<32x32xf32>, vector<1x32xf32> -> vector<1x32xf32>
    %c0_206 = arith.constant 0 : index
    %c0_207 = arith.constant 0 : index
    %508 = vector.load %arg52[%c0_206, %c0_207] : memref<1x32xf32, #tpu.memory_space<vmem>>, vector<1x32xf32>
    %509 = arith.addf %507, %508 : vector<1x32xf32>
    %510 = vector.shape_cast %509 : vector<1x32xf32> to vector<1x32xf32>
    %511 = vector.broadcast %510 : vector<1x32xf32> to vector<8x32xf32>
    %512 = tpu.iota {dimensions = array<i32: 0>} : vector<8x8xi32>
    %513 = tpu.iota {dimensions = array<i32: 1>} : vector<8x8xi32>
    %514 = arith.cmpi sle, %513, %512 : vector<8x8xi32>
    %cst_208 = arith.constant 0.000000e+00 : f32
    %cst_209 = arith.constant -1.000000e+09 : f32
    %515 = vector.broadcast %cst_208 : f32 to vector<8x8xf32>
    %516 = vector.broadcast %cst_209 : f32 to vector<8x8xf32>
    %517 = arith.select %514, %515, %516 : vector<8x8xi1>, vector<8x8xf32>
    %c0_210 = arith.constant 0 : index
    %c0_211 = arith.constant 0 : index
    %518 = vector.load %arg25[%c0_210, %c0_211] : memref<32x96xf32, #tpu.memory_space<vmem>>, vector<32x96xf32>
    %cst_212 = arith.constant dense<0.000000e+00> : vector<8x96xf32>
    %519 = tpu.matmul %505, %518, %cst_212 {dimension_numbers = #tpu.dot_dimension_numbers<[1], [0], [0], [1], [0, 0, 1, 1], [], []>} : vector<8x32xf32>, vector<32x96xf32>, vector<8x96xf32> -> vector<8x96xf32>
    %c0_213 = arith.constant 0 : index
    %c0_214 = arith.constant 0 : index
    %520 = vector.load %arg24[%c0_213, %c0_214] : memref<1x96xf32, #tpu.memory_space<vmem>>, vector<1x96xf32>
    %521 = vector.broadcast %520 : vector<1x96xf32> to vector<8x96xf32>
    %522 = arith.addf %519, %521 : vector<8x96xf32>
    %523 = vector.extract_strided_slice %522 {offsets = [0, 0], sizes = [8, 32], strides = [1, 1]} : vector<8x96xf32> to vector<8x32xf32>
    %524 = vector.extract_strided_slice %522 {offsets = [0, 32], sizes = [8, 32], strides = [1, 1]} : vector<8x96xf32> to vector<8x32xf32>
    %525 = vector.extract_strided_slice %522 {offsets = [0, 64], sizes = [8, 32], strides = [1, 1]} : vector<8x96xf32> to vector<8x32xf32>
    %c0_215 = arith.constant 0 : index
    %c0_216 = arith.constant 0 : index
    %526 = vector.load %arg23[%c0_215, %c0_216] : memref<32x32xf32, #tpu.memory_space<vmem>>, vector<32x32xf32>
    %c0_217 = arith.constant 0 : index
    %c0_218 = arith.constant 0 : index
    %527 = vector.load %arg22[%c0_217, %c0_218] : memref<1x32xf32, #tpu.memory_space<vmem>>, vector<1x32xf32>
    %528 = vector.extract_strided_slice %523 {offsets = [0, 0], sizes = [8, 4], strides = [1, 1]} : vector<8x32xf32> to vector<8x4xf32>
    %529 = vector.extract_strided_slice %524 {offsets = [0, 0], sizes = [8, 4], strides = [1, 1]} : vector<8x32xf32> to vector<8x4xf32>
    %530 = vector.extract_strided_slice %525 {offsets = [0, 0], sizes = [8, 4], strides = [1, 1]} : vector<8x32xf32> to vector<8x4xf32>
    %cst_219 = arith.constant dense<0.000000e+00> : vector<8x8xf32>
    %531 = tpu.matmul %528, %529, %cst_219 {dimension_numbers = #tpu.dot_dimension_numbers<[1], [1], [0], [0], [0, 0, 1, 0], [], []>} : vector<8x4xf32>, vector<8x4xf32>, vector<8x8xf32> -> vector<8x8xf32>
    %cst_220 = arith.constant 5.000000e-01 : f32
    %532 = vector.broadcast %cst_220 : f32 to vector<8x8xf32>
    %533 = arith.mulf %531, %532 : vector<8x8xf32>
    %534 = arith.addf %533, %517 : vector<8x8xf32>
    %cst_221 = arith.constant dense<0xFF800000> : vector<8xf32>
    %535 = vector.multi_reduction <maximumf>, %534, %cst_221 [1] : vector<8x8xf32> to vector<8xf32>
    %536 = vector.shape_cast %535 : vector<8xf32> to vector<8x1xf32>
    %537 = vector.broadcast %536 : vector<8x1xf32> to vector<8x8xf32>
    %538 = arith.subf %534, %537 : vector<8x8xf32>
    %539 = math.exp %538 : vector<8x8xf32>
    %cst_222 = arith.constant dense<0.000000e+00> : vector<8xf32>
    %540 = vector.multi_reduction <add>, %539, %cst_222 [1] : vector<8x8xf32> to vector<8xf32>
    %541 = vector.shape_cast %540 : vector<8xf32> to vector<8x1xf32>
    %542 = tpu.reciprocal %541 {approx = true} : vector<8x1xf32> -> vector<8x1xf32>
    %543 = vector.broadcast %542 : vector<8x1xf32> to vector<8x8xf32>
    %544 = arith.mulf %539, %543 : vector<8x8xf32>
    %cst_223 = arith.constant dense<0.000000e+00> : vector<8x4xf32>
    %545 = tpu.matmul %544, %530, %cst_223 {dimension_numbers = #tpu.dot_dimension_numbers<[1], [0], [0], [1], [0, 0, 1, 1], [], []>} : vector<8x8xf32>, vector<8x4xf32>, vector<8x4xf32> -> vector<8x4xf32>
    %546 = vector.extract_strided_slice %523 {offsets = [0, 4], sizes = [8, 4], strides = [1, 1]} : vector<8x32xf32> to vector<8x4xf32>
    %547 = vector.extract_strided_slice %524 {offsets = [0, 4], sizes = [8, 4], strides = [1, 1]} : vector<8x32xf32> to vector<8x4xf32>
    %548 = vector.extract_strided_slice %525 {offsets = [0, 4], sizes = [8, 4], strides = [1, 1]} : vector<8x32xf32> to vector<8x4xf32>
    %cst_224 = arith.constant dense<0.000000e+00> : vector<8x8xf32>
    %549 = tpu.matmul %546, %547, %cst_224 {dimension_numbers = #tpu.dot_dimension_numbers<[1], [1], [0], [0], [0, 0, 1, 0], [], []>} : vector<8x4xf32>, vector<8x4xf32>, vector<8x8xf32> -> vector<8x8xf32>
    %cst_225 = arith.constant 5.000000e-01 : f32
    %550 = vector.broadcast %cst_225 : f32 to vector<8x8xf32>
    %551 = arith.mulf %549, %550 : vector<8x8xf32>
    %552 = arith.addf %551, %517 : vector<8x8xf32>
    %cst_226 = arith.constant dense<0xFF800000> : vector<8xf32>
    %553 = vector.multi_reduction <maximumf>, %552, %cst_226 [1] : vector<8x8xf32> to vector<8xf32>
    %554 = vector.shape_cast %553 : vector<8xf32> to vector<8x1xf32>
    %555 = vector.broadcast %554 : vector<8x1xf32> to vector<8x8xf32>
    %556 = arith.subf %552, %555 : vector<8x8xf32>
    %557 = math.exp %556 : vector<8x8xf32>
    %cst_227 = arith.constant dense<0.000000e+00> : vector<8xf32>
    %558 = vector.multi_reduction <add>, %557, %cst_227 [1] : vector<8x8xf32> to vector<8xf32>
    %559 = vector.shape_cast %558 : vector<8xf32> to vector<8x1xf32>
    %560 = tpu.reciprocal %559 {approx = true} : vector<8x1xf32> -> vector<8x1xf32>
    %561 = vector.broadcast %560 : vector<8x1xf32> to vector<8x8xf32>
    %562 = arith.mulf %557, %561 : vector<8x8xf32>
    %cst_228 = arith.constant dense<0.000000e+00> : vector<8x4xf32>
    %563 = tpu.matmul %562, %548, %cst_228 {dimension_numbers = #tpu.dot_dimension_numbers<[1], [0], [0], [1], [0, 0, 1, 1], [], []>} : vector<8x8xf32>, vector<8x4xf32>, vector<8x4xf32> -> vector<8x4xf32>
    %564 = vector.extract_strided_slice %523 {offsets = [0, 8], sizes = [8, 4], strides = [1, 1]} : vector<8x32xf32> to vector<8x4xf32>
    %565 = vector.extract_strided_slice %524 {offsets = [0, 8], sizes = [8, 4], strides = [1, 1]} : vector<8x32xf32> to vector<8x4xf32>
    %566 = vector.extract_strided_slice %525 {offsets = [0, 8], sizes = [8, 4], strides = [1, 1]} : vector<8x32xf32> to vector<8x4xf32>
    %cst_229 = arith.constant dense<0.000000e+00> : vector<8x8xf32>
    %567 = tpu.matmul %564, %565, %cst_229 {dimension_numbers = #tpu.dot_dimension_numbers<[1], [1], [0], [0], [0, 0, 1, 0], [], []>} : vector<8x4xf32>, vector<8x4xf32>, vector<8x8xf32> -> vector<8x8xf32>
    %cst_230 = arith.constant 5.000000e-01 : f32
    %568 = vector.broadcast %cst_230 : f32 to vector<8x8xf32>
    %569 = arith.mulf %567, %568 : vector<8x8xf32>
    %570 = arith.addf %569, %517 : vector<8x8xf32>
    %cst_231 = arith.constant dense<0xFF800000> : vector<8xf32>
    %571 = vector.multi_reduction <maximumf>, %570, %cst_231 [1] : vector<8x8xf32> to vector<8xf32>
    %572 = vector.shape_cast %571 : vector<8xf32> to vector<8x1xf32>
    %573 = vector.broadcast %572 : vector<8x1xf32> to vector<8x8xf32>
    %574 = arith.subf %570, %573 : vector<8x8xf32>
    %575 = math.exp %574 : vector<8x8xf32>
    %cst_232 = arith.constant dense<0.000000e+00> : vector<8xf32>
    %576 = vector.multi_reduction <add>, %575, %cst_232 [1] : vector<8x8xf32> to vector<8xf32>
    %577 = vector.shape_cast %576 : vector<8xf32> to vector<8x1xf32>
    %578 = tpu.reciprocal %577 {approx = true} : vector<8x1xf32> -> vector<8x1xf32>
    %579 = vector.broadcast %578 : vector<8x1xf32> to vector<8x8xf32>
    %580 = arith.mulf %575, %579 : vector<8x8xf32>
    %cst_233 = arith.constant dense<0.000000e+00> : vector<8x4xf32>
    %581 = tpu.matmul %580, %566, %cst_233 {dimension_numbers = #tpu.dot_dimension_numbers<[1], [0], [0], [1], [0, 0, 1, 1], [], []>} : vector<8x8xf32>, vector<8x4xf32>, vector<8x4xf32> -> vector<8x4xf32>
    %582 = vector.extract_strided_slice %523 {offsets = [0, 12], sizes = [8, 4], strides = [1, 1]} : vector<8x32xf32> to vector<8x4xf32>
    %583 = vector.extract_strided_slice %524 {offsets = [0, 12], sizes = [8, 4], strides = [1, 1]} : vector<8x32xf32> to vector<8x4xf32>
    %584 = vector.extract_strided_slice %525 {offsets = [0, 12], sizes = [8, 4], strides = [1, 1]} : vector<8x32xf32> to vector<8x4xf32>
    %cst_234 = arith.constant dense<0.000000e+00> : vector<8x8xf32>
    %585 = tpu.matmul %582, %583, %cst_234 {dimension_numbers = #tpu.dot_dimension_numbers<[1], [1], [0], [0], [0, 0, 1, 0], [], []>} : vector<8x4xf32>, vector<8x4xf32>, vector<8x8xf32> -> vector<8x8xf32>
    %cst_235 = arith.constant 5.000000e-01 : f32
    %586 = vector.broadcast %cst_235 : f32 to vector<8x8xf32>
    %587 = arith.mulf %585, %586 : vector<8x8xf32>
    %588 = arith.addf %587, %517 : vector<8x8xf32>
    %cst_236 = arith.constant dense<0xFF800000> : vector<8xf32>
    %589 = vector.multi_reduction <maximumf>, %588, %cst_236 [1] : vector<8x8xf32> to vector<8xf32>
    %590 = vector.shape_cast %589 : vector<8xf32> to vector<8x1xf32>
    %591 = vector.broadcast %590 : vector<8x1xf32> to vector<8x8xf32>
    %592 = arith.subf %588, %591 : vector<8x8xf32>
    %593 = math.exp %592 : vector<8x8xf32>
    %cst_237 = arith.constant dense<0.000000e+00> : vector<8xf32>
    %594 = vector.multi_reduction <add>, %593, %cst_237 [1] : vector<8x8xf32> to vector<8xf32>
    %595 = vector.shape_cast %594 : vector<8xf32> to vector<8x1xf32>
    %596 = tpu.reciprocal %595 {approx = true} : vector<8x1xf32> -> vector<8x1xf32>
    %597 = vector.broadcast %596 : vector<8x1xf32> to vector<8x8xf32>
    %598 = arith.mulf %593, %597 : vector<8x8xf32>
    %cst_238 = arith.constant dense<0.000000e+00> : vector<8x4xf32>
    %599 = tpu.matmul %598, %584, %cst_238 {dimension_numbers = #tpu.dot_dimension_numbers<[1], [0], [0], [1], [0, 0, 1, 1], [], []>} : vector<8x8xf32>, vector<8x4xf32>, vector<8x4xf32> -> vector<8x4xf32>
    %600 = vector.extract_strided_slice %523 {offsets = [0, 16], sizes = [8, 4], strides = [1, 1]} : vector<8x32xf32> to vector<8x4xf32>
    %601 = vector.extract_strided_slice %524 {offsets = [0, 16], sizes = [8, 4], strides = [1, 1]} : vector<8x32xf32> to vector<8x4xf32>
    %602 = vector.extract_strided_slice %525 {offsets = [0, 16], sizes = [8, 4], strides = [1, 1]} : vector<8x32xf32> to vector<8x4xf32>
    %cst_239 = arith.constant dense<0.000000e+00> : vector<8x8xf32>
    %603 = tpu.matmul %600, %601, %cst_239 {dimension_numbers = #tpu.dot_dimension_numbers<[1], [1], [0], [0], [0, 0, 1, 0], [], []>} : vector<8x4xf32>, vector<8x4xf32>, vector<8x8xf32> -> vector<8x8xf32>
    %cst_240 = arith.constant 5.000000e-01 : f32
    %604 = vector.broadcast %cst_240 : f32 to vector<8x8xf32>
    %605 = arith.mulf %603, %604 : vector<8x8xf32>
    %606 = arith.addf %605, %517 : vector<8x8xf32>
    %cst_241 = arith.constant dense<0xFF800000> : vector<8xf32>
    %607 = vector.multi_reduction <maximumf>, %606, %cst_241 [1] : vector<8x8xf32> to vector<8xf32>
    %608 = vector.shape_cast %607 : vector<8xf32> to vector<8x1xf32>
    %609 = vector.broadcast %608 : vector<8x1xf32> to vector<8x8xf32>
    %610 = arith.subf %606, %609 : vector<8x8xf32>
    %611 = math.exp %610 : vector<8x8xf32>
    %cst_242 = arith.constant dense<0.000000e+00> : vector<8xf32>
    %612 = vector.multi_reduction <add>, %611, %cst_242 [1] : vector<8x8xf32> to vector<8xf32>
    %613 = vector.shape_cast %612 : vector<8xf32> to vector<8x1xf32>
    %614 = tpu.reciprocal %613 {approx = true} : vector<8x1xf32> -> vector<8x1xf32>
    %615 = vector.broadcast %614 : vector<8x1xf32> to vector<8x8xf32>
    %616 = arith.mulf %611, %615 : vector<8x8xf32>
    %cst_243 = arith.constant dense<0.000000e+00> : vector<8x4xf32>
    %617 = tpu.matmul %616, %602, %cst_243 {dimension_numbers = #tpu.dot_dimension_numbers<[1], [0], [0], [1], [0, 0, 1, 1], [], []>} : vector<8x8xf32>, vector<8x4xf32>, vector<8x4xf32> -> vector<8x4xf32>
    %618 = vector.extract_strided_slice %523 {offsets = [0, 20], sizes = [8, 4], strides = [1, 1]} : vector<8x32xf32> to vector<8x4xf32>
    %619 = vector.extract_strided_slice %524 {offsets = [0, 20], sizes = [8, 4], strides = [1, 1]} : vector<8x32xf32> to vector<8x4xf32>
    %620 = vector.extract_strided_slice %525 {offsets = [0, 20], sizes = [8, 4], strides = [1, 1]} : vector<8x32xf32> to vector<8x4xf32>
    %cst_244 = arith.constant dense<0.000000e+00> : vector<8x8xf32>
    %621 = tpu.matmul %618, %619, %cst_244 {dimension_numbers = #tpu.dot_dimension_numbers<[1], [1], [0], [0], [0, 0, 1, 0], [], []>} : vector<8x4xf32>, vector<8x4xf32>, vector<8x8xf32> -> vector<8x8xf32>
    %cst_245 = arith.constant 5.000000e-01 : f32
    %622 = vector.broadcast %cst_245 : f32 to vector<8x8xf32>
    %623 = arith.mulf %621, %622 : vector<8x8xf32>
    %624 = arith.addf %623, %517 : vector<8x8xf32>
    %cst_246 = arith.constant dense<0xFF800000> : vector<8xf32>
    %625 = vector.multi_reduction <maximumf>, %624, %cst_246 [1] : vector<8x8xf32> to vector<8xf32>
    %626 = vector.shape_cast %625 : vector<8xf32> to vector<8x1xf32>
    %627 = vector.broadcast %626 : vector<8x1xf32> to vector<8x8xf32>
    %628 = arith.subf %624, %627 : vector<8x8xf32>
    %629 = math.exp %628 : vector<8x8xf32>
    %cst_247 = arith.constant dense<0.000000e+00> : vector<8xf32>
    %630 = vector.multi_reduction <add>, %629, %cst_247 [1] : vector<8x8xf32> to vector<8xf32>
    %631 = vector.shape_cast %630 : vector<8xf32> to vector<8x1xf32>
    %632 = tpu.reciprocal %631 {approx = true} : vector<8x1xf32> -> vector<8x1xf32>
    %633 = vector.broadcast %632 : vector<8x1xf32> to vector<8x8xf32>
    %634 = arith.mulf %629, %633 : vector<8x8xf32>
    %cst_248 = arith.constant dense<0.000000e+00> : vector<8x4xf32>
    %635 = tpu.matmul %634, %620, %cst_248 {dimension_numbers = #tpu.dot_dimension_numbers<[1], [0], [0], [1], [0, 0, 1, 1], [], []>} : vector<8x8xf32>, vector<8x4xf32>, vector<8x4xf32> -> vector<8x4xf32>
    %636 = vector.extract_strided_slice %523 {offsets = [0, 24], sizes = [8, 4], strides = [1, 1]} : vector<8x32xf32> to vector<8x4xf32>
    %637 = vector.extract_strided_slice %524 {offsets = [0, 24], sizes = [8, 4], strides = [1, 1]} : vector<8x32xf32> to vector<8x4xf32>
    %638 = vector.extract_strided_slice %525 {offsets = [0, 24], sizes = [8, 4], strides = [1, 1]} : vector<8x32xf32> to vector<8x4xf32>
    %cst_249 = arith.constant dense<0.000000e+00> : vector<8x8xf32>
    %639 = tpu.matmul %636, %637, %cst_249 {dimension_numbers = #tpu.dot_dimension_numbers<[1], [1], [0], [0], [0, 0, 1, 0], [], []>} : vector<8x4xf32>, vector<8x4xf32>, vector<8x8xf32> -> vector<8x8xf32>
    %cst_250 = arith.constant 5.000000e-01 : f32
    %640 = vector.broadcast %cst_250 : f32 to vector<8x8xf32>
    %641 = arith.mulf %639, %640 : vector<8x8xf32>
    %642 = arith.addf %641, %517 : vector<8x8xf32>
    %cst_251 = arith.constant dense<0xFF800000> : vector<8xf32>
    %643 = vector.multi_reduction <maximumf>, %642, %cst_251 [1] : vector<8x8xf32> to vector<8xf32>
    %644 = vector.shape_cast %643 : vector<8xf32> to vector<8x1xf32>
    %645 = vector.broadcast %644 : vector<8x1xf32> to vector<8x8xf32>
    %646 = arith.subf %642, %645 : vector<8x8xf32>
    %647 = math.exp %646 : vector<8x8xf32>
    %cst_252 = arith.constant dense<0.000000e+00> : vector<8xf32>
    %648 = vector.multi_reduction <add>, %647, %cst_252 [1] : vector<8x8xf32> to vector<8xf32>
    %649 = vector.shape_cast %648 : vector<8xf32> to vector<8x1xf32>
    %650 = tpu.reciprocal %649 {approx = true} : vector<8x1xf32> -> vector<8x1xf32>
    %651 = vector.broadcast %650 : vector<8x1xf32> to vector<8x8xf32>
    %652 = arith.mulf %647, %651 : vector<8x8xf32>
    %cst_253 = arith.constant dense<0.000000e+00> : vector<8x4xf32>
    %653 = tpu.matmul %652, %638, %cst_253 {dimension_numbers = #tpu.dot_dimension_numbers<[1], [0], [0], [1], [0, 0, 1, 1], [], []>} : vector<8x8xf32>, vector<8x4xf32>, vector<8x4xf32> -> vector<8x4xf32>
    %654 = vector.extract_strided_slice %523 {offsets = [0, 28], sizes = [8, 4], strides = [1, 1]} : vector<8x32xf32> to vector<8x4xf32>
    %655 = vector.extract_strided_slice %524 {offsets = [0, 28], sizes = [8, 4], strides = [1, 1]} : vector<8x32xf32> to vector<8x4xf32>
    %656 = vector.extract_strided_slice %525 {offsets = [0, 28], sizes = [8, 4], strides = [1, 1]} : vector<8x32xf32> to vector<8x4xf32>
    %cst_254 = arith.constant dense<0.000000e+00> : vector<8x8xf32>
    %657 = tpu.matmul %654, %655, %cst_254 {dimension_numbers = #tpu.dot_dimension_numbers<[1], [1], [0], [0], [0, 0, 1, 0], [], []>} : vector<8x4xf32>, vector<8x4xf32>, vector<8x8xf32> -> vector<8x8xf32>
    %cst_255 = arith.constant 5.000000e-01 : f32
    %658 = vector.broadcast %cst_255 : f32 to vector<8x8xf32>
    %659 = arith.mulf %657, %658 : vector<8x8xf32>
    %660 = arith.addf %659, %517 : vector<8x8xf32>
    %cst_256 = arith.constant dense<0xFF800000> : vector<8xf32>
    %661 = vector.multi_reduction <maximumf>, %660, %cst_256 [1] : vector<8x8xf32> to vector<8xf32>
    %662 = vector.shape_cast %661 : vector<8xf32> to vector<8x1xf32>
    %663 = vector.broadcast %662 : vector<8x1xf32> to vector<8x8xf32>
    %664 = arith.subf %660, %663 : vector<8x8xf32>
    %665 = math.exp %664 : vector<8x8xf32>
    %cst_257 = arith.constant dense<0.000000e+00> : vector<8xf32>
    %666 = vector.multi_reduction <add>, %665, %cst_257 [1] : vector<8x8xf32> to vector<8xf32>
    %667 = vector.shape_cast %666 : vector<8xf32> to vector<8x1xf32>
    %668 = tpu.reciprocal %667 {approx = true} : vector<8x1xf32> -> vector<8x1xf32>
    %669 = vector.broadcast %668 : vector<8x1xf32> to vector<8x8xf32>
    %670 = arith.mulf %665, %669 : vector<8x8xf32>
    %cst_258 = arith.constant dense<0.000000e+00> : vector<8x4xf32>
    %671 = tpu.matmul %670, %656, %cst_258 {dimension_numbers = #tpu.dot_dimension_numbers<[1], [0], [0], [1], [0, 0, 1, 1], [], []>} : vector<8x8xf32>, vector<8x4xf32>, vector<8x4xf32> -> vector<8x4xf32>
    %672 = tpu.concatenate %545, %563, %581, %599, %617, %635, %653, %671 in 1 : vector<8x4xf32>, vector<8x4xf32>, vector<8x4xf32>, vector<8x4xf32>, vector<8x4xf32>, vector<8x4xf32>, vector<8x4xf32>, vector<8x4xf32> -> vector<8x32xf32>
    %cst_259 = arith.constant dense<0.000000e+00> : vector<8x32xf32>
    %673 = tpu.matmul %672, %526, %cst_259 {dimension_numbers = #tpu.dot_dimension_numbers<[1], [0], [0], [1], [0, 0, 1, 1], [], []>} : vector<8x32xf32>, vector<32x32xf32>, vector<8x32xf32> -> vector<8x32xf32>
    %674 = vector.broadcast %527 : vector<1x32xf32> to vector<8x32xf32>
    %675 = arith.addf %673, %674 : vector<8x32xf32>
    %676 = arith.addf %505, %675 : vector<8x32xf32>
    %c0_260 = arith.constant 0 : index
    %c0_261 = arith.constant 0 : index
    %677 = vector.load %arg17[%c0_260, %c0_261] : memref<1x32xf32, #tpu.memory_space<vmem>>, vector<1x32xf32>
    %c0_262 = arith.constant 0 : index
    %c0_263 = arith.constant 0 : index
    %678 = vector.load %arg16[%c0_262, %c0_263] : memref<1x32xf32, #tpu.memory_space<vmem>>, vector<1x32xf32>
    %cst_264 = arith.constant dense<0.000000e+00> : vector<8xf32>
    %679 = vector.multi_reduction <add>, %676, %cst_264 [1] : vector<8x32xf32> to vector<8xf32>
    %680 = vector.shape_cast %679 : vector<8xf32> to vector<8x1xf32>
    %cst_265 = arith.constant 3.200000e+01 : f32
    %681 = vector.broadcast %cst_265 : f32 to vector<8x1xf32>
    %682 = arith.divf %680, %681 : vector<8x1xf32>
    %683 = vector.broadcast %682 : vector<8x1xf32> to vector<8x32xf32>
    %684 = arith.subf %676, %683 : vector<8x32xf32>
    %685 = arith.mulf %684, %684 : vector<8x32xf32>
    %cst_266 = arith.constant dense<0.000000e+00> : vector<8xf32>
    %686 = vector.multi_reduction <add>, %685, %cst_266 [1] : vector<8x32xf32> to vector<8xf32>
    %687 = vector.shape_cast %686 : vector<8xf32> to vector<8x1xf32>
    %cst_267 = arith.constant 3.200000e+01 : f32
    %688 = vector.broadcast %cst_267 : f32 to vector<8x1xf32>
    %689 = arith.divf %687, %688 : vector<8x1xf32>
    %690 = vector.broadcast %682 : vector<8x1xf32> to vector<8x32xf32>
    %691 = arith.subf %676, %690 : vector<8x32xf32>
    %cst_268 = arith.constant 9.99999974E-6 : f32
    %692 = vector.broadcast %cst_268 : f32 to vector<8x1xf32>
    %693 = arith.addf %689, %692 : vector<8x1xf32>
    %694 = math.rsqrt %693 : vector<8x1xf32>
    %695 = vector.broadcast %694 : vector<8x1xf32> to vector<8x32xf32>
    %696 = arith.mulf %691, %695 : vector<8x32xf32>
    %697 = vector.broadcast %677 : vector<1x32xf32> to vector<8x32xf32>
    %698 = arith.mulf %696, %697 : vector<8x32xf32>
    %699 = vector.broadcast %678 : vector<1x32xf32> to vector<8x32xf32>
    %700 = arith.addf %698, %699 : vector<8x32xf32>
    %c0_269 = arith.constant 0 : index
    %c0_270 = arith.constant 0 : index
    %701 = vector.load %arg11[%c0_269, %c0_270] : memref<32x32xf32, #tpu.memory_space<vmem>>, vector<32x32xf32>
    %cst_271 = arith.constant dense<0.000000e+00> : vector<8x32xf32>
    %702 = tpu.matmul %700, %701, %cst_271 {dimension_numbers = #tpu.dot_dimension_numbers<[1], [0], [0], [1], [0, 0, 1, 1], [], []>} : vector<8x32xf32>, vector<32x32xf32>, vector<8x32xf32> -> vector<8x32xf32>
    %c0_272 = arith.constant 0 : index
    %c0_273 = arith.constant 0 : index
    %703 = vector.load %arg10[%c0_272, %c0_273] : memref<1x32xf32, #tpu.memory_space<vmem>>, vector<1x32xf32>
    %704 = vector.broadcast %703 : vector<1x32xf32> to vector<8x32xf32>
    %705 = arith.addf %702, %704 : vector<8x32xf32>
    %c0_274 = arith.constant 0 : index
    %c0_275 = arith.constant 0 : index
    %706 = vector.load %arg7[%c0_274, %c0_275] : memref<32x64xf32, #tpu.memory_space<vmem>>, vector<32x64xf32>
    %cst_276 = arith.constant dense<0.000000e+00> : vector<8x64xf32>
    %707 = tpu.matmul %511, %706, %cst_276 {dimension_numbers = #tpu.dot_dimension_numbers<[1], [0], [0], [1], [0, 0, 1, 1], [], []>} : vector<8x32xf32>, vector<32x64xf32>, vector<8x64xf32> -> vector<8x64xf32>
    %c0_277 = arith.constant 0 : index
    %c0_278 = arith.constant 0 : index
    %708 = vector.load %arg6[%c0_277, %c0_278] : memref<1x64xf32, #tpu.memory_space<vmem>>, vector<1x64xf32>
    %709 = vector.broadcast %708 : vector<1x64xf32> to vector<8x64xf32>
    %710 = arith.addf %707, %709 : vector<8x64xf32>
    %711 = vector.extract_strided_slice %710 {offsets = [0, 0], sizes = [8, 32], strides = [1, 1]} : vector<8x64xf32> to vector<8x32xf32>
    %712 = vector.extract_strided_slice %710 {offsets = [0, 32], sizes = [8, 32], strides = [1, 1]} : vector<8x64xf32> to vector<8x32xf32>
    %c0_279 = arith.constant 0 : index
    %c0_280 = arith.constant 0 : index
    %713 = vector.load %arg9[%c0_279, %c0_280] : memref<32x32xf32, #tpu.memory_space<vmem>>, vector<32x32xf32>
    %c0_281 = arith.constant 0 : index
    %c0_282 = arith.constant 0 : index
    %714 = vector.load %arg8[%c0_281, %c0_282] : memref<1x32xf32, #tpu.memory_space<vmem>>, vector<1x32xf32>
    %715 = vector.extract_strided_slice %705 {offsets = [0, 0], sizes = [8, 4], strides = [1, 1]} : vector<8x32xf32> to vector<8x4xf32>
    %716 = vector.extract_strided_slice %711 {offsets = [0, 0], sizes = [8, 4], strides = [1, 1]} : vector<8x32xf32> to vector<8x4xf32>
    %717 = vector.extract_strided_slice %712 {offsets = [0, 0], sizes = [8, 4], strides = [1, 1]} : vector<8x32xf32> to vector<8x4xf32>
    %cst_283 = arith.constant dense<0.000000e+00> : vector<8x8xf32>
    %718 = tpu.matmul %715, %716, %cst_283 {dimension_numbers = #tpu.dot_dimension_numbers<[1], [1], [0], [0], [0, 0, 1, 0], [], []>} : vector<8x4xf32>, vector<8x4xf32>, vector<8x8xf32> -> vector<8x8xf32>
    %cst_284 = arith.constant 5.000000e-01 : f32
    %719 = vector.broadcast %cst_284 : f32 to vector<8x8xf32>
    %720 = arith.mulf %718, %719 : vector<8x8xf32>
    %cst_285 = arith.constant dense<0xFF800000> : vector<8xf32>
    %721 = vector.multi_reduction <maximumf>, %720, %cst_285 [1] : vector<8x8xf32> to vector<8xf32>
    %722 = vector.shape_cast %721 : vector<8xf32> to vector<8x1xf32>
    %723 = vector.broadcast %722 : vector<8x1xf32> to vector<8x8xf32>
    %724 = arith.subf %720, %723 : vector<8x8xf32>
    %725 = math.exp %724 : vector<8x8xf32>
    %cst_286 = arith.constant dense<0.000000e+00> : vector<8xf32>
    %726 = vector.multi_reduction <add>, %725, %cst_286 [1] : vector<8x8xf32> to vector<8xf32>
    %727 = vector.shape_cast %726 : vector<8xf32> to vector<8x1xf32>
    %728 = tpu.reciprocal %727 {approx = true} : vector<8x1xf32> -> vector<8x1xf32>
    %729 = vector.broadcast %728 : vector<8x1xf32> to vector<8x8xf32>
    %730 = arith.mulf %725, %729 : vector<8x8xf32>
    %cst_287 = arith.constant dense<0.000000e+00> : vector<8x4xf32>
    %731 = tpu.matmul %730, %717, %cst_287 {dimension_numbers = #tpu.dot_dimension_numbers<[1], [0], [0], [1], [0, 0, 1, 1], [], []>} : vector<8x8xf32>, vector<8x4xf32>, vector<8x4xf32> -> vector<8x4xf32>
    %732 = vector.extract_strided_slice %705 {offsets = [0, 4], sizes = [8, 4], strides = [1, 1]} : vector<8x32xf32> to vector<8x4xf32>
    %733 = vector.extract_strided_slice %711 {offsets = [0, 4], sizes = [8, 4], strides = [1, 1]} : vector<8x32xf32> to vector<8x4xf32>
    %734 = vector.extract_strided_slice %712 {offsets = [0, 4], sizes = [8, 4], strides = [1, 1]} : vector<8x32xf32> to vector<8x4xf32>
    %cst_288 = arith.constant dense<0.000000e+00> : vector<8x8xf32>
    %735 = tpu.matmul %732, %733, %cst_288 {dimension_numbers = #tpu.dot_dimension_numbers<[1], [1], [0], [0], [0, 0, 1, 0], [], []>} : vector<8x4xf32>, vector<8x4xf32>, vector<8x8xf32> -> vector<8x8xf32>
    %cst_289 = arith.constant 5.000000e-01 : f32
    %736 = vector.broadcast %cst_289 : f32 to vector<8x8xf32>
    %737 = arith.mulf %735, %736 : vector<8x8xf32>
    %cst_290 = arith.constant dense<0xFF800000> : vector<8xf32>
    %738 = vector.multi_reduction <maximumf>, %737, %cst_290 [1] : vector<8x8xf32> to vector<8xf32>
    %739 = vector.shape_cast %738 : vector<8xf32> to vector<8x1xf32>
    %740 = vector.broadcast %739 : vector<8x1xf32> to vector<8x8xf32>
    %741 = arith.subf %737, %740 : vector<8x8xf32>
    %742 = math.exp %741 : vector<8x8xf32>
    %cst_291 = arith.constant dense<0.000000e+00> : vector<8xf32>
    %743 = vector.multi_reduction <add>, %742, %cst_291 [1] : vector<8x8xf32> to vector<8xf32>
    %744 = vector.shape_cast %743 : vector<8xf32> to vector<8x1xf32>
    %745 = tpu.reciprocal %744 {approx = true} : vector<8x1xf32> -> vector<8x1xf32>
    %746 = vector.broadcast %745 : vector<8x1xf32> to vector<8x8xf32>
    %747 = arith.mulf %742, %746 : vector<8x8xf32>
    %cst_292 = arith.constant dense<0.000000e+00> : vector<8x4xf32>
    %748 = tpu.matmul %747, %734, %cst_292 {dimension_numbers = #tpu.dot_dimension_numbers<[1], [0], [0], [1], [0, 0, 1, 1], [], []>} : vector<8x8xf32>, vector<8x4xf32>, vector<8x4xf32> -> vector<8x4xf32>
    %749 = vector.extract_strided_slice %705 {offsets = [0, 8], sizes = [8, 4], strides = [1, 1]} : vector<8x32xf32> to vector<8x4xf32>
    %750 = vector.extract_strided_slice %711 {offsets = [0, 8], sizes = [8, 4], strides = [1, 1]} : vector<8x32xf32> to vector<8x4xf32>
    %751 = vector.extract_strided_slice %712 {offsets = [0, 8], sizes = [8, 4], strides = [1, 1]} : vector<8x32xf32> to vector<8x4xf32>
    %cst_293 = arith.constant dense<0.000000e+00> : vector<8x8xf32>
    %752 = tpu.matmul %749, %750, %cst_293 {dimension_numbers = #tpu.dot_dimension_numbers<[1], [1], [0], [0], [0, 0, 1, 0], [], []>} : vector<8x4xf32>, vector<8x4xf32>, vector<8x8xf32> -> vector<8x8xf32>
    %cst_294 = arith.constant 5.000000e-01 : f32
    %753 = vector.broadcast %cst_294 : f32 to vector<8x8xf32>
    %754 = arith.mulf %752, %753 : vector<8x8xf32>
    %cst_295 = arith.constant dense<0xFF800000> : vector<8xf32>
    %755 = vector.multi_reduction <maximumf>, %754, %cst_295 [1] : vector<8x8xf32> to vector<8xf32>
    %756 = vector.shape_cast %755 : vector<8xf32> to vector<8x1xf32>
    %757 = vector.broadcast %756 : vector<8x1xf32> to vector<8x8xf32>
    %758 = arith.subf %754, %757 : vector<8x8xf32>
    %759 = math.exp %758 : vector<8x8xf32>
    %cst_296 = arith.constant dense<0.000000e+00> : vector<8xf32>
    %760 = vector.multi_reduction <add>, %759, %cst_296 [1] : vector<8x8xf32> to vector<8xf32>
    %761 = vector.shape_cast %760 : vector<8xf32> to vector<8x1xf32>
    %762 = tpu.reciprocal %761 {approx = true} : vector<8x1xf32> -> vector<8x1xf32>
    %763 = vector.broadcast %762 : vector<8x1xf32> to vector<8x8xf32>
    %764 = arith.mulf %759, %763 : vector<8x8xf32>
    %cst_297 = arith.constant dense<0.000000e+00> : vector<8x4xf32>
    %765 = tpu.matmul %764, %751, %cst_297 {dimension_numbers = #tpu.dot_dimension_numbers<[1], [0], [0], [1], [0, 0, 1, 1], [], []>} : vector<8x8xf32>, vector<8x4xf32>, vector<8x4xf32> -> vector<8x4xf32>
    %766 = vector.extract_strided_slice %705 {offsets = [0, 12], sizes = [8, 4], strides = [1, 1]} : vector<8x32xf32> to vector<8x4xf32>
    %767 = vector.extract_strided_slice %711 {offsets = [0, 12], sizes = [8, 4], strides = [1, 1]} : vector<8x32xf32> to vector<8x4xf32>
    %768 = vector.extract_strided_slice %712 {offsets = [0, 12], sizes = [8, 4], strides = [1, 1]} : vector<8x32xf32> to vector<8x4xf32>
    %cst_298 = arith.constant dense<0.000000e+00> : vector<8x8xf32>
    %769 = tpu.matmul %766, %767, %cst_298 {dimension_numbers = #tpu.dot_dimension_numbers<[1], [1], [0], [0], [0, 0, 1, 0], [], []>} : vector<8x4xf32>, vector<8x4xf32>, vector<8x8xf32> -> vector<8x8xf32>
    %cst_299 = arith.constant 5.000000e-01 : f32
    %770 = vector.broadcast %cst_299 : f32 to vector<8x8xf32>
    %771 = arith.mulf %769, %770 : vector<8x8xf32>
    %cst_300 = arith.constant dense<0xFF800000> : vector<8xf32>
    %772 = vector.multi_reduction <maximumf>, %771, %cst_300 [1] : vector<8x8xf32> to vector<8xf32>
    %773 = vector.shape_cast %772 : vector<8xf32> to vector<8x1xf32>
    %774 = vector.broadcast %773 : vector<8x1xf32> to vector<8x8xf32>
    %775 = arith.subf %771, %774 : vector<8x8xf32>
    %776 = math.exp %775 : vector<8x8xf32>
    %cst_301 = arith.constant dense<0.000000e+00> : vector<8xf32>
    %777 = vector.multi_reduction <add>, %776, %cst_301 [1] : vector<8x8xf32> to vector<8xf32>
    %778 = vector.shape_cast %777 : vector<8xf32> to vector<8x1xf32>
    %779 = tpu.reciprocal %778 {approx = true} : vector<8x1xf32> -> vector<8x1xf32>
    %780 = vector.broadcast %779 : vector<8x1xf32> to vector<8x8xf32>
    %781 = arith.mulf %776, %780 : vector<8x8xf32>
    %cst_302 = arith.constant dense<0.000000e+00> : vector<8x4xf32>
    %782 = tpu.matmul %781, %768, %cst_302 {dimension_numbers = #tpu.dot_dimension_numbers<[1], [0], [0], [1], [0, 0, 1, 1], [], []>} : vector<8x8xf32>, vector<8x4xf32>, vector<8x4xf32> -> vector<8x4xf32>
    %783 = vector.extract_strided_slice %705 {offsets = [0, 16], sizes = [8, 4], strides = [1, 1]} : vector<8x32xf32> to vector<8x4xf32>
    %784 = vector.extract_strided_slice %711 {offsets = [0, 16], sizes = [8, 4], strides = [1, 1]} : vector<8x32xf32> to vector<8x4xf32>
    %785 = vector.extract_strided_slice %712 {offsets = [0, 16], sizes = [8, 4], strides = [1, 1]} : vector<8x32xf32> to vector<8x4xf32>
    %cst_303 = arith.constant dense<0.000000e+00> : vector<8x8xf32>
    %786 = tpu.matmul %783, %784, %cst_303 {dimension_numbers = #tpu.dot_dimension_numbers<[1], [1], [0], [0], [0, 0, 1, 0], [], []>} : vector<8x4xf32>, vector<8x4xf32>, vector<8x8xf32> -> vector<8x8xf32>
    %cst_304 = arith.constant 5.000000e-01 : f32
    %787 = vector.broadcast %cst_304 : f32 to vector<8x8xf32>
    %788 = arith.mulf %786, %787 : vector<8x8xf32>
    %cst_305 = arith.constant dense<0xFF800000> : vector<8xf32>
    %789 = vector.multi_reduction <maximumf>, %788, %cst_305 [1] : vector<8x8xf32> to vector<8xf32>
    %790 = vector.shape_cast %789 : vector<8xf32> to vector<8x1xf32>
    %791 = vector.broadcast %790 : vector<8x1xf32> to vector<8x8xf32>
    %792 = arith.subf %788, %791 : vector<8x8xf32>
    %793 = math.exp %792 : vector<8x8xf32>
    %cst_306 = arith.constant dense<0.000000e+00> : vector<8xf32>
    %794 = vector.multi_reduction <add>, %793, %cst_306 [1] : vector<8x8xf32> to vector<8xf32>
    %795 = vector.shape_cast %794 : vector<8xf32> to vector<8x1xf32>
    %796 = tpu.reciprocal %795 {approx = true} : vector<8x1xf32> -> vector<8x1xf32>
    %797 = vector.broadcast %796 : vector<8x1xf32> to vector<8x8xf32>
    %798 = arith.mulf %793, %797 : vector<8x8xf32>
    %cst_307 = arith.constant dense<0.000000e+00> : vector<8x4xf32>
    %799 = tpu.matmul %798, %785, %cst_307 {dimension_numbers = #tpu.dot_dimension_numbers<[1], [0], [0], [1], [0, 0, 1, 1], [], []>} : vector<8x8xf32>, vector<8x4xf32>, vector<8x4xf32> -> vector<8x4xf32>
    %800 = vector.extract_strided_slice %705 {offsets = [0, 20], sizes = [8, 4], strides = [1, 1]} : vector<8x32xf32> to vector<8x4xf32>
    %801 = vector.extract_strided_slice %711 {offsets = [0, 20], sizes = [8, 4], strides = [1, 1]} : vector<8x32xf32> to vector<8x4xf32>
    %802 = vector.extract_strided_slice %712 {offsets = [0, 20], sizes = [8, 4], strides = [1, 1]} : vector<8x32xf32> to vector<8x4xf32>
    %cst_308 = arith.constant dense<0.000000e+00> : vector<8x8xf32>
    %803 = tpu.matmul %800, %801, %cst_308 {dimension_numbers = #tpu.dot_dimension_numbers<[1], [1], [0], [0], [0, 0, 1, 0], [], []>} : vector<8x4xf32>, vector<8x4xf32>, vector<8x8xf32> -> vector<8x8xf32>
    %cst_309 = arith.constant 5.000000e-01 : f32
    %804 = vector.broadcast %cst_309 : f32 to vector<8x8xf32>
    %805 = arith.mulf %803, %804 : vector<8x8xf32>
    %cst_310 = arith.constant dense<0xFF800000> : vector<8xf32>
    %806 = vector.multi_reduction <maximumf>, %805, %cst_310 [1] : vector<8x8xf32> to vector<8xf32>
    %807 = vector.shape_cast %806 : vector<8xf32> to vector<8x1xf32>
    %808 = vector.broadcast %807 : vector<8x1xf32> to vector<8x8xf32>
    %809 = arith.subf %805, %808 : vector<8x8xf32>
    %810 = math.exp %809 : vector<8x8xf32>
    %cst_311 = arith.constant dense<0.000000e+00> : vector<8xf32>
    %811 = vector.multi_reduction <add>, %810, %cst_311 [1] : vector<8x8xf32> to vector<8xf32>
    %812 = vector.shape_cast %811 : vector<8xf32> to vector<8x1xf32>
    %813 = tpu.reciprocal %812 {approx = true} : vector<8x1xf32> -> vector<8x1xf32>
    %814 = vector.broadcast %813 : vector<8x1xf32> to vector<8x8xf32>
    %815 = arith.mulf %810, %814 : vector<8x8xf32>
    %cst_312 = arith.constant dense<0.000000e+00> : vector<8x4xf32>
    %816 = tpu.matmul %815, %802, %cst_312 {dimension_numbers = #tpu.dot_dimension_numbers<[1], [0], [0], [1], [0, 0, 1, 1], [], []>} : vector<8x8xf32>, vector<8x4xf32>, vector<8x4xf32> -> vector<8x4xf32>
    %817 = vector.extract_strided_slice %705 {offsets = [0, 24], sizes = [8, 4], strides = [1, 1]} : vector<8x32xf32> to vector<8x4xf32>
    %818 = vector.extract_strided_slice %711 {offsets = [0, 24], sizes = [8, 4], strides = [1, 1]} : vector<8x32xf32> to vector<8x4xf32>
    %819 = vector.extract_strided_slice %712 {offsets = [0, 24], sizes = [8, 4], strides = [1, 1]} : vector<8x32xf32> to vector<8x4xf32>
    %cst_313 = arith.constant dense<0.000000e+00> : vector<8x8xf32>
    %820 = tpu.matmul %817, %818, %cst_313 {dimension_numbers = #tpu.dot_dimension_numbers<[1], [1], [0], [0], [0, 0, 1, 0], [], []>} : vector<8x4xf32>, vector<8x4xf32>, vector<8x8xf32> -> vector<8x8xf32>
    %cst_314 = arith.constant 5.000000e-01 : f32
    %821 = vector.broadcast %cst_314 : f32 to vector<8x8xf32>
    %822 = arith.mulf %820, %821 : vector<8x8xf32>
    %cst_315 = arith.constant dense<0xFF800000> : vector<8xf32>
    %823 = vector.multi_reduction <maximumf>, %822, %cst_315 [1] : vector<8x8xf32> to vector<8xf32>
    %824 = vector.shape_cast %823 : vector<8xf32> to vector<8x1xf32>
    %825 = vector.broadcast %824 : vector<8x1xf32> to vector<8x8xf32>
    %826 = arith.subf %822, %825 : vector<8x8xf32>
    %827 = math.exp %826 : vector<8x8xf32>
    %cst_316 = arith.constant dense<0.000000e+00> : vector<8xf32>
    %828 = vector.multi_reduction <add>, %827, %cst_316 [1] : vector<8x8xf32> to vector<8xf32>
    %829 = vector.shape_cast %828 : vector<8xf32> to vector<8x1xf32>
    %830 = tpu.reciprocal %829 {approx = true} : vector<8x1xf32> -> vector<8x1xf32>
    %831 = vector.broadcast %830 : vector<8x1xf32> to vector<8x8xf32>
    %832 = arith.mulf %827, %831 : vector<8x8xf32>
    %cst_317 = arith.constant dense<0.000000e+00> : vector<8x4xf32>
    %833 = tpu.matmul %832, %819, %cst_317 {dimension_numbers = #tpu.dot_dimension_numbers<[1], [0], [0], [1], [0, 0, 1, 1], [], []>} : vector<8x8xf32>, vector<8x4xf32>, vector<8x4xf32> -> vector<8x4xf32>
    %834 = vector.extract_strided_slice %705 {offsets = [0, 28], sizes = [8, 4], strides = [1, 1]} : vector<8x32xf32> to vector<8x4xf32>
    %835 = vector.extract_strided_slice %711 {offsets = [0, 28], sizes = [8, 4], strides = [1, 1]} : vector<8x32xf32> to vector<8x4xf32>
    %836 = vector.extract_strided_slice %712 {offsets = [0, 28], sizes = [8, 4], strides = [1, 1]} : vector<8x32xf32> to vector<8x4xf32>
    %cst_318 = arith.constant dense<0.000000e+00> : vector<8x8xf32>
    %837 = tpu.matmul %834, %835, %cst_318 {dimension_numbers = #tpu.dot_dimension_numbers<[1], [1], [0], [0], [0, 0, 1, 0], [], []>} : vector<8x4xf32>, vector<8x4xf32>, vector<8x8xf32> -> vector<8x8xf32>
    %cst_319 = arith.constant 5.000000e-01 : f32
    %838 = vector.broadcast %cst_319 : f32 to vector<8x8xf32>
    %839 = arith.mulf %837, %838 : vector<8x8xf32>
    %cst_320 = arith.constant dense<0xFF800000> : vector<8xf32>
    %840 = vector.multi_reduction <maximumf>, %839, %cst_320 [1] : vector<8x8xf32> to vector<8xf32>
    %841 = vector.shape_cast %840 : vector<8xf32> to vector<8x1xf32>
    %842 = vector.broadcast %841 : vector<8x1xf32> to vector<8x8xf32>
    %843 = arith.subf %839, %842 : vector<8x8xf32>
    %844 = math.exp %843 : vector<8x8xf32>
    %cst_321 = arith.constant dense<0.000000e+00> : vector<8xf32>
    %845 = vector.multi_reduction <add>, %844, %cst_321 [1] : vector<8x8xf32> to vector<8xf32>
    %846 = vector.shape_cast %845 : vector<8xf32> to vector<8x1xf32>
    %847 = tpu.reciprocal %846 {approx = true} : vector<8x1xf32> -> vector<8x1xf32>
    %848 = vector.broadcast %847 : vector<8x1xf32> to vector<8x8xf32>
    %849 = arith.mulf %844, %848 : vector<8x8xf32>
    %cst_322 = arith.constant dense<0.000000e+00> : vector<8x4xf32>
    %850 = tpu.matmul %849, %836, %cst_322 {dimension_numbers = #tpu.dot_dimension_numbers<[1], [0], [0], [1], [0, 0, 1, 1], [], []>} : vector<8x8xf32>, vector<8x4xf32>, vector<8x4xf32> -> vector<8x4xf32>
    %851 = tpu.concatenate %731, %748, %765, %782, %799, %816, %833, %850 in 1 : vector<8x4xf32>, vector<8x4xf32>, vector<8x4xf32>, vector<8x4xf32>, vector<8x4xf32>, vector<8x4xf32>, vector<8x4xf32>, vector<8x4xf32> -> vector<8x32xf32>
    %cst_323 = arith.constant dense<0.000000e+00> : vector<8x32xf32>
    %852 = tpu.matmul %851, %713, %cst_323 {dimension_numbers = #tpu.dot_dimension_numbers<[1], [0], [0], [1], [0, 0, 1, 1], [], []>} : vector<8x32xf32>, vector<32x32xf32>, vector<8x32xf32> -> vector<8x32xf32>
    %853 = vector.broadcast %714 : vector<1x32xf32> to vector<8x32xf32>
    %854 = arith.addf %852, %853 : vector<8x32xf32>
    %855 = arith.addf %700, %854 : vector<8x32xf32>
    %c0_324 = arith.constant 0 : index
    %c0_325 = arith.constant 0 : index
    %856 = vector.load %arg19[%c0_324, %c0_325] : memref<1x32xf32, #tpu.memory_space<vmem>>, vector<1x32xf32>
    %c0_326 = arith.constant 0 : index
    %c0_327 = arith.constant 0 : index
    %857 = vector.load %arg18[%c0_326, %c0_327] : memref<1x32xf32, #tpu.memory_space<vmem>>, vector<1x32xf32>
    %cst_328 = arith.constant dense<0.000000e+00> : vector<8xf32>
    %858 = vector.multi_reduction <add>, %855, %cst_328 [1] : vector<8x32xf32> to vector<8xf32>
    %859 = vector.shape_cast %858 : vector<8xf32> to vector<8x1xf32>
    %cst_329 = arith.constant 3.200000e+01 : f32
    %860 = vector.broadcast %cst_329 : f32 to vector<8x1xf32>
    %861 = arith.divf %859, %860 : vector<8x1xf32>
    %862 = vector.broadcast %861 : vector<8x1xf32> to vector<8x32xf32>
    %863 = arith.subf %855, %862 : vector<8x32xf32>
    %864 = arith.mulf %863, %863 : vector<8x32xf32>
    %cst_330 = arith.constant dense<0.000000e+00> : vector<8xf32>
    %865 = vector.multi_reduction <add>, %864, %cst_330 [1] : vector<8x32xf32> to vector<8xf32>
    %866 = vector.shape_cast %865 : vector<8xf32> to vector<8x1xf32>
    %cst_331 = arith.constant 3.200000e+01 : f32
    %867 = vector.broadcast %cst_331 : f32 to vector<8x1xf32>
    %868 = arith.divf %866, %867 : vector<8x1xf32>
    %869 = vector.broadcast %861 : vector<8x1xf32> to vector<8x32xf32>
    %870 = arith.subf %855, %869 : vector<8x32xf32>
    %cst_332 = arith.constant 9.99999974E-6 : f32
    %871 = vector.broadcast %cst_332 : f32 to vector<8x1xf32>
    %872 = arith.addf %868, %871 : vector<8x1xf32>
    %873 = math.rsqrt %872 : vector<8x1xf32>
    %874 = vector.broadcast %873 : vector<8x1xf32> to vector<8x32xf32>
    %875 = arith.mulf %870, %874 : vector<8x32xf32>
    %876 = vector.broadcast %856 : vector<1x32xf32> to vector<8x32xf32>
    %877 = arith.mulf %875, %876 : vector<8x32xf32>
    %878 = vector.broadcast %857 : vector<1x32xf32> to vector<8x32xf32>
    %879 = arith.addf %877, %878 : vector<8x32xf32>
    %c0_333 = arith.constant 0 : index
    %c0_334 = arith.constant 0 : index
    %880 = vector.load %arg13[%c0_333, %c0_334] : memref<32x256xf32, #tpu.memory_space<vmem>>, vector<32x256xf32>
    %cst_335 = arith.constant dense<0.000000e+00> : vector<8x256xf32>
    %881 = tpu.matmul %879, %880, %cst_335 {dimension_numbers = #tpu.dot_dimension_numbers<[1], [0], [0], [1], [0, 0, 1, 1], [], []>} : vector<8x32xf32>, vector<32x256xf32>, vector<8x256xf32> -> vector<8x256xf32>
    %c0_336 = arith.constant 0 : index
    %c0_337 = arith.constant 0 : index
    %882 = vector.load %arg12[%c0_336, %c0_337] : memref<1x256xf32, #tpu.memory_space<vmem>>, vector<1x256xf32>
    %883 = vector.broadcast %882 : vector<1x256xf32> to vector<8x256xf32>
    %884 = arith.addf %881, %883 : vector<8x256xf32>
    %cst_338 = arith.constant 0.000000e+00 : f32
    %885 = vector.broadcast %cst_338 : f32 to vector<8x256xf32>
    %886 = arith.maximumf %884, %885 : vector<8x256xf32>
    %c0_339 = arith.constant 0 : index
    %c0_340 = arith.constant 0 : index
    %887 = vector.load %arg15[%c0_339, %c0_340] : memref<256x32xf32, #tpu.memory_space<vmem>>, vector<256x32xf32>
    %cst_341 = arith.constant dense<0.000000e+00> : vector<8x32xf32>
    %888 = tpu.matmul %886, %887, %cst_341 {dimension_numbers = #tpu.dot_dimension_numbers<[1], [0], [0], [1], [0, 0, 1, 1], [], []>} : vector<8x256xf32>, vector<256x32xf32>, vector<8x32xf32> -> vector<8x32xf32>
    %c0_342 = arith.constant 0 : index
    %c0_343 = arith.constant 0 : index
    %889 = vector.load %arg14[%c0_342, %c0_343] : memref<1x32xf32, #tpu.memory_space<vmem>>, vector<1x32xf32>
    %890 = vector.broadcast %889 : vector<1x32xf32> to vector<8x32xf32>
    %891 = arith.addf %888, %890 : vector<8x32xf32>
    %892 = arith.addf %879, %891 : vector<8x32xf32>
    %c0_344 = arith.constant 0 : index
    %c0_345 = arith.constant 0 : index
    %893 = vector.load %arg21[%c0_344, %c0_345] : memref<1x32xf32, #tpu.memory_space<vmem>>, vector<1x32xf32>
    %c0_346 = arith.constant 0 : index
    %c0_347 = arith.constant 0 : index
    %894 = vector.load %arg20[%c0_346, %c0_347] : memref<1x32xf32, #tpu.memory_space<vmem>>, vector<1x32xf32>
    %cst_348 = arith.constant dense<0.000000e+00> : vector<8xf32>
    %895 = vector.multi_reduction <add>, %892, %cst_348 [1] : vector<8x32xf32> to vector<8xf32>
    %896 = vector.shape_cast %895 : vector<8xf32> to vector<8x1xf32>
    %cst_349 = arith.constant 3.200000e+01 : f32
    %897 = vector.broadcast %cst_349 : f32 to vector<8x1xf32>
    %898 = arith.divf %896, %897 : vector<8x1xf32>
    %899 = vector.broadcast %898 : vector<8x1xf32> to vector<8x32xf32>
    %900 = arith.subf %892, %899 : vector<8x32xf32>
    %901 = arith.mulf %900, %900 : vector<8x32xf32>
    %cst_350 = arith.constant dense<0.000000e+00> : vector<8xf32>
    %902 = vector.multi_reduction <add>, %901, %cst_350 [1] : vector<8x32xf32> to vector<8xf32>
    %903 = vector.shape_cast %902 : vector<8xf32> to vector<8x1xf32>
    %cst_351 = arith.constant 3.200000e+01 : f32
    %904 = vector.broadcast %cst_351 : f32 to vector<8x1xf32>
    %905 = arith.divf %903, %904 : vector<8x1xf32>
    %906 = vector.broadcast %898 : vector<8x1xf32> to vector<8x32xf32>
    %907 = arith.subf %892, %906 : vector<8x32xf32>
    %cst_352 = arith.constant 9.99999974E-6 : f32
    %908 = vector.broadcast %cst_352 : f32 to vector<8x1xf32>
    %909 = arith.addf %905, %908 : vector<8x1xf32>
    %910 = math.rsqrt %909 : vector<8x1xf32>
    %911 = vector.broadcast %910 : vector<8x1xf32> to vector<8x32xf32>
    %912 = arith.mulf %907, %911 : vector<8x32xf32>
    %913 = vector.broadcast %893 : vector<1x32xf32> to vector<8x32xf32>
    %914 = arith.mulf %912, %913 : vector<8x32xf32>
    %915 = vector.broadcast %894 : vector<1x32xf32> to vector<8x32xf32>
    %916 = arith.addf %914, %915 : vector<8x32xf32>
    %c0_353 = arith.constant 0 : index
    %c0_354 = arith.constant 0 : index
    %917 = vector.load %arg45[%c0_353, %c0_354] : memref<32x96xf32, #tpu.memory_space<vmem>>, vector<32x96xf32>
    %cst_355 = arith.constant dense<0.000000e+00> : vector<8x96xf32>
    %918 = tpu.matmul %916, %917, %cst_355 {dimension_numbers = #tpu.dot_dimension_numbers<[1], [0], [0], [1], [0, 0, 1, 1], [], []>} : vector<8x32xf32>, vector<32x96xf32>, vector<8x96xf32> -> vector<8x96xf32>
    %c0_356 = arith.constant 0 : index
    %c0_357 = arith.constant 0 : index
    %919 = vector.load %arg44[%c0_356, %c0_357] : memref<1x96xf32, #tpu.memory_space<vmem>>, vector<1x96xf32>
    %920 = vector.broadcast %919 : vector<1x96xf32> to vector<8x96xf32>
    %921 = arith.addf %918, %920 : vector<8x96xf32>
    %922 = vector.extract_strided_slice %921 {offsets = [0, 0], sizes = [8, 32], strides = [1, 1]} : vector<8x96xf32> to vector<8x32xf32>
    %923 = vector.extract_strided_slice %921 {offsets = [0, 32], sizes = [8, 32], strides = [1, 1]} : vector<8x96xf32> to vector<8x32xf32>
    %924 = vector.extract_strided_slice %921 {offsets = [0, 64], sizes = [8, 32], strides = [1, 1]} : vector<8x96xf32> to vector<8x32xf32>
    %c0_358 = arith.constant 0 : index
    %c0_359 = arith.constant 0 : index
    %925 = vector.load %arg43[%c0_358, %c0_359] : memref<32x32xf32, #tpu.memory_space<vmem>>, vector<32x32xf32>
    %c0_360 = arith.constant 0 : index
    %c0_361 = arith.constant 0 : index
    %926 = vector.load %arg42[%c0_360, %c0_361] : memref<1x32xf32, #tpu.memory_space<vmem>>, vector<1x32xf32>
    %927 = vector.extract_strided_slice %922 {offsets = [0, 0], sizes = [8, 4], strides = [1, 1]} : vector<8x32xf32> to vector<8x4xf32>
    %928 = vector.extract_strided_slice %923 {offsets = [0, 0], sizes = [8, 4], strides = [1, 1]} : vector<8x32xf32> to vector<8x4xf32>
    %929 = vector.extract_strided_slice %924 {offsets = [0, 0], sizes = [8, 4], strides = [1, 1]} : vector<8x32xf32> to vector<8x4xf32>
    %cst_362 = arith.constant dense<0.000000e+00> : vector<8x8xf32>
    %930 = tpu.matmul %927, %928, %cst_362 {dimension_numbers = #tpu.dot_dimension_numbers<[1], [1], [0], [0], [0, 0, 1, 0], [], []>} : vector<8x4xf32>, vector<8x4xf32>, vector<8x8xf32> -> vector<8x8xf32>
    %cst_363 = arith.constant 5.000000e-01 : f32
    %931 = vector.broadcast %cst_363 : f32 to vector<8x8xf32>
    %932 = arith.mulf %930, %931 : vector<8x8xf32>
    %933 = arith.addf %932, %517 : vector<8x8xf32>
    %cst_364 = arith.constant dense<0xFF800000> : vector<8xf32>
    %934 = vector.multi_reduction <maximumf>, %933, %cst_364 [1] : vector<8x8xf32> to vector<8xf32>
    %935 = vector.shape_cast %934 : vector<8xf32> to vector<8x1xf32>
    %936 = vector.broadcast %935 : vector<8x1xf32> to vector<8x8xf32>
    %937 = arith.subf %933, %936 : vector<8x8xf32>
    %938 = math.exp %937 : vector<8x8xf32>
    %cst_365 = arith.constant dense<0.000000e+00> : vector<8xf32>
    %939 = vector.multi_reduction <add>, %938, %cst_365 [1] : vector<8x8xf32> to vector<8xf32>
    %940 = vector.shape_cast %939 : vector<8xf32> to vector<8x1xf32>
    %941 = tpu.reciprocal %940 {approx = true} : vector<8x1xf32> -> vector<8x1xf32>
    %942 = vector.broadcast %941 : vector<8x1xf32> to vector<8x8xf32>
    %943 = arith.mulf %938, %942 : vector<8x8xf32>
    %cst_366 = arith.constant dense<0.000000e+00> : vector<8x4xf32>
    %944 = tpu.matmul %943, %929, %cst_366 {dimension_numbers = #tpu.dot_dimension_numbers<[1], [0], [0], [1], [0, 0, 1, 1], [], []>} : vector<8x8xf32>, vector<8x4xf32>, vector<8x4xf32> -> vector<8x4xf32>
    %945 = vector.extract_strided_slice %922 {offsets = [0, 4], sizes = [8, 4], strides = [1, 1]} : vector<8x32xf32> to vector<8x4xf32>
    %946 = vector.extract_strided_slice %923 {offsets = [0, 4], sizes = [8, 4], strides = [1, 1]} : vector<8x32xf32> to vector<8x4xf32>
    %947 = vector.extract_strided_slice %924 {offsets = [0, 4], sizes = [8, 4], strides = [1, 1]} : vector<8x32xf32> to vector<8x4xf32>
    %cst_367 = arith.constant dense<0.000000e+00> : vector<8x8xf32>
    %948 = tpu.matmul %945, %946, %cst_367 {dimension_numbers = #tpu.dot_dimension_numbers<[1], [1], [0], [0], [0, 0, 1, 0], [], []>} : vector<8x4xf32>, vector<8x4xf32>, vector<8x8xf32> -> vector<8x8xf32>
    %cst_368 = arith.constant 5.000000e-01 : f32
    %949 = vector.broadcast %cst_368 : f32 to vector<8x8xf32>
    %950 = arith.mulf %948, %949 : vector<8x8xf32>
    %951 = arith.addf %950, %517 : vector<8x8xf32>
    %cst_369 = arith.constant dense<0xFF800000> : vector<8xf32>
    %952 = vector.multi_reduction <maximumf>, %951, %cst_369 [1] : vector<8x8xf32> to vector<8xf32>
    %953 = vector.shape_cast %952 : vector<8xf32> to vector<8x1xf32>
    %954 = vector.broadcast %953 : vector<8x1xf32> to vector<8x8xf32>
    %955 = arith.subf %951, %954 : vector<8x8xf32>
    %956 = math.exp %955 : vector<8x8xf32>
    %cst_370 = arith.constant dense<0.000000e+00> : vector<8xf32>
    %957 = vector.multi_reduction <add>, %956, %cst_370 [1] : vector<8x8xf32> to vector<8xf32>
    %958 = vector.shape_cast %957 : vector<8xf32> to vector<8x1xf32>
    %959 = tpu.reciprocal %958 {approx = true} : vector<8x1xf32> -> vector<8x1xf32>
    %960 = vector.broadcast %959 : vector<8x1xf32> to vector<8x8xf32>
    %961 = arith.mulf %956, %960 : vector<8x8xf32>
    %cst_371 = arith.constant dense<0.000000e+00> : vector<8x4xf32>
    %962 = tpu.matmul %961, %947, %cst_371 {dimension_numbers = #tpu.dot_dimension_numbers<[1], [0], [0], [1], [0, 0, 1, 1], [], []>} : vector<8x8xf32>, vector<8x4xf32>, vector<8x4xf32> -> vector<8x4xf32>
    %963 = vector.extract_strided_slice %922 {offsets = [0, 8], sizes = [8, 4], strides = [1, 1]} : vector<8x32xf32> to vector<8x4xf32>
    %964 = vector.extract_strided_slice %923 {offsets = [0, 8], sizes = [8, 4], strides = [1, 1]} : vector<8x32xf32> to vector<8x4xf32>
    %965 = vector.extract_strided_slice %924 {offsets = [0, 8], sizes = [8, 4], strides = [1, 1]} : vector<8x32xf32> to vector<8x4xf32>
    %cst_372 = arith.constant dense<0.000000e+00> : vector<8x8xf32>
    %966 = tpu.matmul %963, %964, %cst_372 {dimension_numbers = #tpu.dot_dimension_numbers<[1], [1], [0], [0], [0, 0, 1, 0], [], []>} : vector<8x4xf32>, vector<8x4xf32>, vector<8x8xf32> -> vector<8x8xf32>
    %cst_373 = arith.constant 5.000000e-01 : f32
    %967 = vector.broadcast %cst_373 : f32 to vector<8x8xf32>
    %968 = arith.mulf %966, %967 : vector<8x8xf32>
    %969 = arith.addf %968, %517 : vector<8x8xf32>
    %cst_374 = arith.constant dense<0xFF800000> : vector<8xf32>
    %970 = vector.multi_reduction <maximumf>, %969, %cst_374 [1] : vector<8x8xf32> to vector<8xf32>
    %971 = vector.shape_cast %970 : vector<8xf32> to vector<8x1xf32>
    %972 = vector.broadcast %971 : vector<8x1xf32> to vector<8x8xf32>
    %973 = arith.subf %969, %972 : vector<8x8xf32>
    %974 = math.exp %973 : vector<8x8xf32>
    %cst_375 = arith.constant dense<0.000000e+00> : vector<8xf32>
    %975 = vector.multi_reduction <add>, %974, %cst_375 [1] : vector<8x8xf32> to vector<8xf32>
    %976 = vector.shape_cast %975 : vector<8xf32> to vector<8x1xf32>
    %977 = tpu.reciprocal %976 {approx = true} : vector<8x1xf32> -> vector<8x1xf32>
    %978 = vector.broadcast %977 : vector<8x1xf32> to vector<8x8xf32>
    %979 = arith.mulf %974, %978 : vector<8x8xf32>
    %cst_376 = arith.constant dense<0.000000e+00> : vector<8x4xf32>
    %980 = tpu.matmul %979, %965, %cst_376 {dimension_numbers = #tpu.dot_dimension_numbers<[1], [0], [0], [1], [0, 0, 1, 1], [], []>} : vector<8x8xf32>, vector<8x4xf32>, vector<8x4xf32> -> vector<8x4xf32>
    %981 = vector.extract_strided_slice %922 {offsets = [0, 12], sizes = [8, 4], strides = [1, 1]} : vector<8x32xf32> to vector<8x4xf32>
    %982 = vector.extract_strided_slice %923 {offsets = [0, 12], sizes = [8, 4], strides = [1, 1]} : vector<8x32xf32> to vector<8x4xf32>
    %983 = vector.extract_strided_slice %924 {offsets = [0, 12], sizes = [8, 4], strides = [1, 1]} : vector<8x32xf32> to vector<8x4xf32>
    %cst_377 = arith.constant dense<0.000000e+00> : vector<8x8xf32>
    %984 = tpu.matmul %981, %982, %cst_377 {dimension_numbers = #tpu.dot_dimension_numbers<[1], [1], [0], [0], [0, 0, 1, 0], [], []>} : vector<8x4xf32>, vector<8x4xf32>, vector<8x8xf32> -> vector<8x8xf32>
    %cst_378 = arith.constant 5.000000e-01 : f32
    %985 = vector.broadcast %cst_378 : f32 to vector<8x8xf32>
    %986 = arith.mulf %984, %985 : vector<8x8xf32>
    %987 = arith.addf %986, %517 : vector<8x8xf32>
    %cst_379 = arith.constant dense<0xFF800000> : vector<8xf32>
    %988 = vector.multi_reduction <maximumf>, %987, %cst_379 [1] : vector<8x8xf32> to vector<8xf32>
    %989 = vector.shape_cast %988 : vector<8xf32> to vector<8x1xf32>
    %990 = vector.broadcast %989 : vector<8x1xf32> to vector<8x8xf32>
    %991 = arith.subf %987, %990 : vector<8x8xf32>
    %992 = math.exp %991 : vector<8x8xf32>
    %cst_380 = arith.constant dense<0.000000e+00> : vector<8xf32>
    %993 = vector.multi_reduction <add>, %992, %cst_380 [1] : vector<8x8xf32> to vector<8xf32>
    %994 = vector.shape_cast %993 : vector<8xf32> to vector<8x1xf32>
    %995 = tpu.reciprocal %994 {approx = true} : vector<8x1xf32> -> vector<8x1xf32>
    %996 = vector.broadcast %995 : vector<8x1xf32> to vector<8x8xf32>
    %997 = arith.mulf %992, %996 : vector<8x8xf32>
    %cst_381 = arith.constant dense<0.000000e+00> : vector<8x4xf32>
    %998 = tpu.matmul %997, %983, %cst_381 {dimension_numbers = #tpu.dot_dimension_numbers<[1], [0], [0], [1], [0, 0, 1, 1], [], []>} : vector<8x8xf32>, vector<8x4xf32>, vector<8x4xf32> -> vector<8x4xf32>
    %999 = vector.extract_strided_slice %922 {offsets = [0, 16], sizes = [8, 4], strides = [1, 1]} : vector<8x32xf32> to vector<8x4xf32>
    %1000 = vector.extract_strided_slice %923 {offsets = [0, 16], sizes = [8, 4], strides = [1, 1]} : vector<8x32xf32> to vector<8x4xf32>
    %1001 = vector.extract_strided_slice %924 {offsets = [0, 16], sizes = [8, 4], strides = [1, 1]} : vector<8x32xf32> to vector<8x4xf32>
    %cst_382 = arith.constant dense<0.000000e+00> : vector<8x8xf32>
    %1002 = tpu.matmul %999, %1000, %cst_382 {dimension_numbers = #tpu.dot_dimension_numbers<[1], [1], [0], [0], [0, 0, 1, 0], [], []>} : vector<8x4xf32>, vector<8x4xf32>, vector<8x8xf32> -> vector<8x8xf32>
    %cst_383 = arith.constant 5.000000e-01 : f32
    %1003 = vector.broadcast %cst_383 : f32 to vector<8x8xf32>
    %1004 = arith.mulf %1002, %1003 : vector<8x8xf32>
    %1005 = arith.addf %1004, %517 : vector<8x8xf32>
    %cst_384 = arith.constant dense<0xFF800000> : vector<8xf32>
    %1006 = vector.multi_reduction <maximumf>, %1005, %cst_384 [1] : vector<8x8xf32> to vector<8xf32>
    %1007 = vector.shape_cast %1006 : vector<8xf32> to vector<8x1xf32>
    %1008 = vector.broadcast %1007 : vector<8x1xf32> to vector<8x8xf32>
    %1009 = arith.subf %1005, %1008 : vector<8x8xf32>
    %1010 = math.exp %1009 : vector<8x8xf32>
    %cst_385 = arith.constant dense<0.000000e+00> : vector<8xf32>
    %1011 = vector.multi_reduction <add>, %1010, %cst_385 [1] : vector<8x8xf32> to vector<8xf32>
    %1012 = vector.shape_cast %1011 : vector<8xf32> to vector<8x1xf32>
    %1013 = tpu.reciprocal %1012 {approx = true} : vector<8x1xf32> -> vector<8x1xf32>
    %1014 = vector.broadcast %1013 : vector<8x1xf32> to vector<8x8xf32>
    %1015 = arith.mulf %1010, %1014 : vector<8x8xf32>
    %cst_386 = arith.constant dense<0.000000e+00> : vector<8x4xf32>
    %1016 = tpu.matmul %1015, %1001, %cst_386 {dimension_numbers = #tpu.dot_dimension_numbers<[1], [0], [0], [1], [0, 0, 1, 1], [], []>} : vector<8x8xf32>, vector<8x4xf32>, vector<8x4xf32> -> vector<8x4xf32>
    %1017 = vector.extract_strided_slice %922 {offsets = [0, 20], sizes = [8, 4], strides = [1, 1]} : vector<8x32xf32> to vector<8x4xf32>
    %1018 = vector.extract_strided_slice %923 {offsets = [0, 20], sizes = [8, 4], strides = [1, 1]} : vector<8x32xf32> to vector<8x4xf32>
    %1019 = vector.extract_strided_slice %924 {offsets = [0, 20], sizes = [8, 4], strides = [1, 1]} : vector<8x32xf32> to vector<8x4xf32>
    %cst_387 = arith.constant dense<0.000000e+00> : vector<8x8xf32>
    %1020 = tpu.matmul %1017, %1018, %cst_387 {dimension_numbers = #tpu.dot_dimension_numbers<[1], [1], [0], [0], [0, 0, 1, 0], [], []>} : vector<8x4xf32>, vector<8x4xf32>, vector<8x8xf32> -> vector<8x8xf32>
    %cst_388 = arith.constant 5.000000e-01 : f32
    %1021 = vector.broadcast %cst_388 : f32 to vector<8x8xf32>
    %1022 = arith.mulf %1020, %1021 : vector<8x8xf32>
    %1023 = arith.addf %1022, %517 : vector<8x8xf32>
    %cst_389 = arith.constant dense<0xFF800000> : vector<8xf32>
    %1024 = vector.multi_reduction <maximumf>, %1023, %cst_389 [1] : vector<8x8xf32> to vector<8xf32>
    %1025 = vector.shape_cast %1024 : vector<8xf32> to vector<8x1xf32>
    %1026 = vector.broadcast %1025 : vector<8x1xf32> to vector<8x8xf32>
    %1027 = arith.subf %1023, %1026 : vector<8x8xf32>
    %1028 = math.exp %1027 : vector<8x8xf32>
    %cst_390 = arith.constant dense<0.000000e+00> : vector<8xf32>
    %1029 = vector.multi_reduction <add>, %1028, %cst_390 [1] : vector<8x8xf32> to vector<8xf32>
    %1030 = vector.shape_cast %1029 : vector<8xf32> to vector<8x1xf32>
    %1031 = tpu.reciprocal %1030 {approx = true} : vector<8x1xf32> -> vector<8x1xf32>
    %1032 = vector.broadcast %1031 : vector<8x1xf32> to vector<8x8xf32>
    %1033 = arith.mulf %1028, %1032 : vector<8x8xf32>
    %cst_391 = arith.constant dense<0.000000e+00> : vector<8x4xf32>
    %1034 = tpu.matmul %1033, %1019, %cst_391 {dimension_numbers = #tpu.dot_dimension_numbers<[1], [0], [0], [1], [0, 0, 1, 1], [], []>} : vector<8x8xf32>, vector<8x4xf32>, vector<8x4xf32> -> vector<8x4xf32>
    %1035 = vector.extract_strided_slice %922 {offsets = [0, 24], sizes = [8, 4], strides = [1, 1]} : vector<8x32xf32> to vector<8x4xf32>
    %1036 = vector.extract_strided_slice %923 {offsets = [0, 24], sizes = [8, 4], strides = [1, 1]} : vector<8x32xf32> to vector<8x4xf32>
    %1037 = vector.extract_strided_slice %924 {offsets = [0, 24], sizes = [8, 4], strides = [1, 1]} : vector<8x32xf32> to vector<8x4xf32>
    %cst_392 = arith.constant dense<0.000000e+00> : vector<8x8xf32>
    %1038 = tpu.matmul %1035, %1036, %cst_392 {dimension_numbers = #tpu.dot_dimension_numbers<[1], [1], [0], [0], [0, 0, 1, 0], [], []>} : vector<8x4xf32>, vector<8x4xf32>, vector<8x8xf32> -> vector<8x8xf32>
    %cst_393 = arith.constant 5.000000e-01 : f32
    %1039 = vector.broadcast %cst_393 : f32 to vector<8x8xf32>
    %1040 = arith.mulf %1038, %1039 : vector<8x8xf32>
    %1041 = arith.addf %1040, %517 : vector<8x8xf32>
    %cst_394 = arith.constant dense<0xFF800000> : vector<8xf32>
    %1042 = vector.multi_reduction <maximumf>, %1041, %cst_394 [1] : vector<8x8xf32> to vector<8xf32>
    %1043 = vector.shape_cast %1042 : vector<8xf32> to vector<8x1xf32>
    %1044 = vector.broadcast %1043 : vector<8x1xf32> to vector<8x8xf32>
    %1045 = arith.subf %1041, %1044 : vector<8x8xf32>
    %1046 = math.exp %1045 : vector<8x8xf32>
    %cst_395 = arith.constant dense<0.000000e+00> : vector<8xf32>
    %1047 = vector.multi_reduction <add>, %1046, %cst_395 [1] : vector<8x8xf32> to vector<8xf32>
    %1048 = vector.shape_cast %1047 : vector<8xf32> to vector<8x1xf32>
    %1049 = tpu.reciprocal %1048 {approx = true} : vector<8x1xf32> -> vector<8x1xf32>
    %1050 = vector.broadcast %1049 : vector<8x1xf32> to vector<8x8xf32>
    %1051 = arith.mulf %1046, %1050 : vector<8x8xf32>
    %cst_396 = arith.constant dense<0.000000e+00> : vector<8x4xf32>
    %1052 = tpu.matmul %1051, %1037, %cst_396 {dimension_numbers = #tpu.dot_dimension_numbers<[1], [0], [0], [1], [0, 0, 1, 1], [], []>} : vector<8x8xf32>, vector<8x4xf32>, vector<8x4xf32> -> vector<8x4xf32>
    %1053 = vector.extract_strided_slice %922 {offsets = [0, 28], sizes = [8, 4], strides = [1, 1]} : vector<8x32xf32> to vector<8x4xf32>
    %1054 = vector.extract_strided_slice %923 {offsets = [0, 28], sizes = [8, 4], strides = [1, 1]} : vector<8x32xf32> to vector<8x4xf32>
    %1055 = vector.extract_strided_slice %924 {offsets = [0, 28], sizes = [8, 4], strides = [1, 1]} : vector<8x32xf32> to vector<8x4xf32>
    %cst_397 = arith.constant dense<0.000000e+00> : vector<8x8xf32>
    %1056 = tpu.matmul %1053, %1054, %cst_397 {dimension_numbers = #tpu.dot_dimension_numbers<[1], [1], [0], [0], [0, 0, 1, 0], [], []>} : vector<8x4xf32>, vector<8x4xf32>, vector<8x8xf32> -> vector<8x8xf32>
    %cst_398 = arith.constant 5.000000e-01 : f32
    %1057 = vector.broadcast %cst_398 : f32 to vector<8x8xf32>
    %1058 = arith.mulf %1056, %1057 : vector<8x8xf32>
    %1059 = arith.addf %1058, %517 : vector<8x8xf32>
    %cst_399 = arith.constant dense<0xFF800000> : vector<8xf32>
    %1060 = vector.multi_reduction <maximumf>, %1059, %cst_399 [1] : vector<8x8xf32> to vector<8xf32>
    %1061 = vector.shape_cast %1060 : vector<8xf32> to vector<8x1xf32>
    %1062 = vector.broadcast %1061 : vector<8x1xf32> to vector<8x8xf32>
    %1063 = arith.subf %1059, %1062 : vector<8x8xf32>
    %1064 = math.exp %1063 : vector<8x8xf32>
    %cst_400 = arith.constant dense<0.000000e+00> : vector<8xf32>
    %1065 = vector.multi_reduction <add>, %1064, %cst_400 [1] : vector<8x8xf32> to vector<8xf32>
    %1066 = vector.shape_cast %1065 : vector<8xf32> to vector<8x1xf32>
    %1067 = tpu.reciprocal %1066 {approx = true} : vector<8x1xf32> -> vector<8x1xf32>
    %1068 = vector.broadcast %1067 : vector<8x1xf32> to vector<8x8xf32>
    %1069 = arith.mulf %1064, %1068 : vector<8x8xf32>
    %cst_401 = arith.constant dense<0.000000e+00> : vector<8x4xf32>
    %1070 = tpu.matmul %1069, %1055, %cst_401 {dimension_numbers = #tpu.dot_dimension_numbers<[1], [0], [0], [1], [0, 0, 1, 1], [], []>} : vector<8x8xf32>, vector<8x4xf32>, vector<8x4xf32> -> vector<8x4xf32>
    %1071 = tpu.concatenate %944, %962, %980, %998, %1016, %1034, %1052, %1070 in 1 : vector<8x4xf32>, vector<8x4xf32>, vector<8x4xf32>, vector<8x4xf32>, vector<8x4xf32>, vector<8x4xf32>, vector<8x4xf32>, vector<8x4xf32> -> vector<8x32xf32>
    %cst_402 = arith.constant dense<0.000000e+00> : vector<8x32xf32>
    %1072 = tpu.matmul %1071, %925, %cst_402 {dimension_numbers = #tpu.dot_dimension_numbers<[1], [0], [0], [1], [0, 0, 1, 1], [], []>} : vector<8x32xf32>, vector<32x32xf32>, vector<8x32xf32> -> vector<8x32xf32>
    %1073 = vector.broadcast %926 : vector<1x32xf32> to vector<8x32xf32>
    %1074 = arith.addf %1072, %1073 : vector<8x32xf32>
    %1075 = arith.addf %916, %1074 : vector<8x32xf32>
    %c0_403 = arith.constant 0 : index
    %c0_404 = arith.constant 0 : index
    %1076 = vector.load %arg37[%c0_403, %c0_404] : memref<1x32xf32, #tpu.memory_space<vmem>>, vector<1x32xf32>
    %c0_405 = arith.constant 0 : index
    %c0_406 = arith.constant 0 : index
    %1077 = vector.load %arg36[%c0_405, %c0_406] : memref<1x32xf32, #tpu.memory_space<vmem>>, vector<1x32xf32>
    %cst_407 = arith.constant dense<0.000000e+00> : vector<8xf32>
    %1078 = vector.multi_reduction <add>, %1075, %cst_407 [1] : vector<8x32xf32> to vector<8xf32>
    %1079 = vector.shape_cast %1078 : vector<8xf32> to vector<8x1xf32>
    %cst_408 = arith.constant 3.200000e+01 : f32
    %1080 = vector.broadcast %cst_408 : f32 to vector<8x1xf32>
    %1081 = arith.divf %1079, %1080 : vector<8x1xf32>
    %1082 = vector.broadcast %1081 : vector<8x1xf32> to vector<8x32xf32>
    %1083 = arith.subf %1075, %1082 : vector<8x32xf32>
    %1084 = arith.mulf %1083, %1083 : vector<8x32xf32>
    %cst_409 = arith.constant dense<0.000000e+00> : vector<8xf32>
    %1085 = vector.multi_reduction <add>, %1084, %cst_409 [1] : vector<8x32xf32> to vector<8xf32>
    %1086 = vector.shape_cast %1085 : vector<8xf32> to vector<8x1xf32>
    %cst_410 = arith.constant 3.200000e+01 : f32
    %1087 = vector.broadcast %cst_410 : f32 to vector<8x1xf32>
    %1088 = arith.divf %1086, %1087 : vector<8x1xf32>
    %1089 = vector.broadcast %1081 : vector<8x1xf32> to vector<8x32xf32>
    %1090 = arith.subf %1075, %1089 : vector<8x32xf32>
    %cst_411 = arith.constant 9.99999974E-6 : f32
    %1091 = vector.broadcast %cst_411 : f32 to vector<8x1xf32>
    %1092 = arith.addf %1088, %1091 : vector<8x1xf32>
    %1093 = math.rsqrt %1092 : vector<8x1xf32>
    %1094 = vector.broadcast %1093 : vector<8x1xf32> to vector<8x32xf32>
    %1095 = arith.mulf %1090, %1094 : vector<8x32xf32>
    %1096 = vector.broadcast %1076 : vector<1x32xf32> to vector<8x32xf32>
    %1097 = arith.mulf %1095, %1096 : vector<8x32xf32>
    %1098 = vector.broadcast %1077 : vector<1x32xf32> to vector<8x32xf32>
    %1099 = arith.addf %1097, %1098 : vector<8x32xf32>
    %c0_412 = arith.constant 0 : index
    %c0_413 = arith.constant 0 : index
    %1100 = vector.load %arg31[%c0_412, %c0_413] : memref<32x32xf32, #tpu.memory_space<vmem>>, vector<32x32xf32>
    %cst_414 = arith.constant dense<0.000000e+00> : vector<8x32xf32>
    %1101 = tpu.matmul %1099, %1100, %cst_414 {dimension_numbers = #tpu.dot_dimension_numbers<[1], [0], [0], [1], [0, 0, 1, 1], [], []>} : vector<8x32xf32>, vector<32x32xf32>, vector<8x32xf32> -> vector<8x32xf32>
    %c0_415 = arith.constant 0 : index
    %c0_416 = arith.constant 0 : index
    %1102 = vector.load %arg30[%c0_415, %c0_416] : memref<1x32xf32, #tpu.memory_space<vmem>>, vector<1x32xf32>
    %1103 = vector.broadcast %1102 : vector<1x32xf32> to vector<8x32xf32>
    %1104 = arith.addf %1101, %1103 : vector<8x32xf32>
    %c0_417 = arith.constant 0 : index
    %c0_418 = arith.constant 0 : index
    %1105 = vector.load %arg27[%c0_417, %c0_418] : memref<32x64xf32, #tpu.memory_space<vmem>>, vector<32x64xf32>
    %cst_419 = arith.constant dense<0.000000e+00> : vector<8x64xf32>
    %1106 = tpu.matmul %511, %1105, %cst_419 {dimension_numbers = #tpu.dot_dimension_numbers<[1], [0], [0], [1], [0, 0, 1, 1], [], []>} : vector<8x32xf32>, vector<32x64xf32>, vector<8x64xf32> -> vector<8x64xf32>
    %c0_420 = arith.constant 0 : index
    %c0_421 = arith.constant 0 : index
    %1107 = vector.load %arg26[%c0_420, %c0_421] : memref<1x64xf32, #tpu.memory_space<vmem>>, vector<1x64xf32>
    %1108 = vector.broadcast %1107 : vector<1x64xf32> to vector<8x64xf32>
    %1109 = arith.addf %1106, %1108 : vector<8x64xf32>
    %1110 = vector.extract_strided_slice %1109 {offsets = [0, 0], sizes = [8, 32], strides = [1, 1]} : vector<8x64xf32> to vector<8x32xf32>
    %1111 = vector.extract_strided_slice %1109 {offsets = [0, 32], sizes = [8, 32], strides = [1, 1]} : vector<8x64xf32> to vector<8x32xf32>
    %c0_422 = arith.constant 0 : index
    %c0_423 = arith.constant 0 : index
    %1112 = vector.load %arg29[%c0_422, %c0_423] : memref<32x32xf32, #tpu.memory_space<vmem>>, vector<32x32xf32>
    %c0_424 = arith.constant 0 : index
    %c0_425 = arith.constant 0 : index
    %1113 = vector.load %arg28[%c0_424, %c0_425] : memref<1x32xf32, #tpu.memory_space<vmem>>, vector<1x32xf32>
    %1114 = vector.extract_strided_slice %1104 {offsets = [0, 0], sizes = [8, 4], strides = [1, 1]} : vector<8x32xf32> to vector<8x4xf32>
    %1115 = vector.extract_strided_slice %1110 {offsets = [0, 0], sizes = [8, 4], strides = [1, 1]} : vector<8x32xf32> to vector<8x4xf32>
    %1116 = vector.extract_strided_slice %1111 {offsets = [0, 0], sizes = [8, 4], strides = [1, 1]} : vector<8x32xf32> to vector<8x4xf32>
    %cst_426 = arith.constant dense<0.000000e+00> : vector<8x8xf32>
    %1117 = tpu.matmul %1114, %1115, %cst_426 {dimension_numbers = #tpu.dot_dimension_numbers<[1], [1], [0], [0], [0, 0, 1, 0], [], []>} : vector<8x4xf32>, vector<8x4xf32>, vector<8x8xf32> -> vector<8x8xf32>
    %cst_427 = arith.constant 5.000000e-01 : f32
    %1118 = vector.broadcast %cst_427 : f32 to vector<8x8xf32>
    %1119 = arith.mulf %1117, %1118 : vector<8x8xf32>
    %cst_428 = arith.constant dense<0xFF800000> : vector<8xf32>
    %1120 = vector.multi_reduction <maximumf>, %1119, %cst_428 [1] : vector<8x8xf32> to vector<8xf32>
    %1121 = vector.shape_cast %1120 : vector<8xf32> to vector<8x1xf32>
    %1122 = vector.broadcast %1121 : vector<8x1xf32> to vector<8x8xf32>
    %1123 = arith.subf %1119, %1122 : vector<8x8xf32>
    %1124 = math.exp %1123 : vector<8x8xf32>
    %cst_429 = arith.constant dense<0.000000e+00> : vector<8xf32>
    %1125 = vector.multi_reduction <add>, %1124, %cst_429 [1] : vector<8x8xf32> to vector<8xf32>
    %1126 = vector.shape_cast %1125 : vector<8xf32> to vector<8x1xf32>
    %1127 = tpu.reciprocal %1126 {approx = true} : vector<8x1xf32> -> vector<8x1xf32>
    %1128 = vector.broadcast %1127 : vector<8x1xf32> to vector<8x8xf32>
    %1129 = arith.mulf %1124, %1128 : vector<8x8xf32>
    %cst_430 = arith.constant dense<0.000000e+00> : vector<8x4xf32>
    %1130 = tpu.matmul %1129, %1116, %cst_430 {dimension_numbers = #tpu.dot_dimension_numbers<[1], [0], [0], [1], [0, 0, 1, 1], [], []>} : vector<8x8xf32>, vector<8x4xf32>, vector<8x4xf32> -> vector<8x4xf32>
    %1131 = vector.extract_strided_slice %1104 {offsets = [0, 4], sizes = [8, 4], strides = [1, 1]} : vector<8x32xf32> to vector<8x4xf32>
    %1132 = vector.extract_strided_slice %1110 {offsets = [0, 4], sizes = [8, 4], strides = [1, 1]} : vector<8x32xf32> to vector<8x4xf32>
    %1133 = vector.extract_strided_slice %1111 {offsets = [0, 4], sizes = [8, 4], strides = [1, 1]} : vector<8x32xf32> to vector<8x4xf32>
    %cst_431 = arith.constant dense<0.000000e+00> : vector<8x8xf32>
    %1134 = tpu.matmul %1131, %1132, %cst_431 {dimension_numbers = #tpu.dot_dimension_numbers<[1], [1], [0], [0], [0, 0, 1, 0], [], []>} : vector<8x4xf32>, vector<8x4xf32>, vector<8x8xf32> -> vector<8x8xf32>
    %cst_432 = arith.constant 5.000000e-01 : f32
    %1135 = vector.broadcast %cst_432 : f32 to vector<8x8xf32>
    %1136 = arith.mulf %1134, %1135 : vector<8x8xf32>
    %cst_433 = arith.constant dense<0xFF800000> : vector<8xf32>
    %1137 = vector.multi_reduction <maximumf>, %1136, %cst_433 [1] : vector<8x8xf32> to vector<8xf32>
    %1138 = vector.shape_cast %1137 : vector<8xf32> to vector<8x1xf32>
    %1139 = vector.broadcast %1138 : vector<8x1xf32> to vector<8x8xf32>
    %1140 = arith.subf %1136, %1139 : vector<8x8xf32>
    %1141 = math.exp %1140 : vector<8x8xf32>
    %cst_434 = arith.constant dense<0.000000e+00> : vector<8xf32>
    %1142 = vector.multi_reduction <add>, %1141, %cst_434 [1] : vector<8x8xf32> to vector<8xf32>
    %1143 = vector.shape_cast %1142 : vector<8xf32> to vector<8x1xf32>
    %1144 = tpu.reciprocal %1143 {approx = true} : vector<8x1xf32> -> vector<8x1xf32>
    %1145 = vector.broadcast %1144 : vector<8x1xf32> to vector<8x8xf32>
    %1146 = arith.mulf %1141, %1145 : vector<8x8xf32>
    %cst_435 = arith.constant dense<0.000000e+00> : vector<8x4xf32>
    %1147 = tpu.matmul %1146, %1133, %cst_435 {dimension_numbers = #tpu.dot_dimension_numbers<[1], [0], [0], [1], [0, 0, 1, 1], [], []>} : vector<8x8xf32>, vector<8x4xf32>, vector<8x4xf32> -> vector<8x4xf32>
    %1148 = vector.extract_strided_slice %1104 {offsets = [0, 8], sizes = [8, 4], strides = [1, 1]} : vector<8x32xf32> to vector<8x4xf32>
    %1149 = vector.extract_strided_slice %1110 {offsets = [0, 8], sizes = [8, 4], strides = [1, 1]} : vector<8x32xf32> to vector<8x4xf32>
    %1150 = vector.extract_strided_slice %1111 {offsets = [0, 8], sizes = [8, 4], strides = [1, 1]} : vector<8x32xf32> to vector<8x4xf32>
    %cst_436 = arith.constant dense<0.000000e+00> : vector<8x8xf32>
    %1151 = tpu.matmul %1148, %1149, %cst_436 {dimension_numbers = #tpu.dot_dimension_numbers<[1], [1], [0], [0], [0, 0, 1, 0], [], []>} : vector<8x4xf32>, vector<8x4xf32>, vector<8x8xf32> -> vector<8x8xf32>
    %cst_437 = arith.constant 5.000000e-01 : f32
    %1152 = vector.broadcast %cst_437 : f32 to vector<8x8xf32>
    %1153 = arith.mulf %1151, %1152 : vector<8x8xf32>
    %cst_438 = arith.constant dense<0xFF800000> : vector<8xf32>
    %1154 = vector.multi_reduction <maximumf>, %1153, %cst_438 [1] : vector<8x8xf32> to vector<8xf32>
    %1155 = vector.shape_cast %1154 : vector<8xf32> to vector<8x1xf32>
    %1156 = vector.broadcast %1155 : vector<8x1xf32> to vector<8x8xf32>
    %1157 = arith.subf %1153, %1156 : vector<8x8xf32>
    %1158 = math.exp %1157 : vector<8x8xf32>
    %cst_439 = arith.constant dense<0.000000e+00> : vector<8xf32>
    %1159 = vector.multi_reduction <add>, %1158, %cst_439 [1] : vector<8x8xf32> to vector<8xf32>
    %1160 = vector.shape_cast %1159 : vector<8xf32> to vector<8x1xf32>
    %1161 = tpu.reciprocal %1160 {approx = true} : vector<8x1xf32> -> vector<8x1xf32>
    %1162 = vector.broadcast %1161 : vector<8x1xf32> to vector<8x8xf32>
    %1163 = arith.mulf %1158, %1162 : vector<8x8xf32>
    %cst_440 = arith.constant dense<0.000000e+00> : vector<8x4xf32>
    %1164 = tpu.matmul %1163, %1150, %cst_440 {dimension_numbers = #tpu.dot_dimension_numbers<[1], [0], [0], [1], [0, 0, 1, 1], [], []>} : vector<8x8xf32>, vector<8x4xf32>, vector<8x4xf32> -> vector<8x4xf32>
    %1165 = vector.extract_strided_slice %1104 {offsets = [0, 12], sizes = [8, 4], strides = [1, 1]} : vector<8x32xf32> to vector<8x4xf32>
    %1166 = vector.extract_strided_slice %1110 {offsets = [0, 12], sizes = [8, 4], strides = [1, 1]} : vector<8x32xf32> to vector<8x4xf32>
    %1167 = vector.extract_strided_slice %1111 {offsets = [0, 12], sizes = [8, 4], strides = [1, 1]} : vector<8x32xf32> to vector<8x4xf32>
    %cst_441 = arith.constant dense<0.000000e+00> : vector<8x8xf32>
    %1168 = tpu.matmul %1165, %1166, %cst_441 {dimension_numbers = #tpu.dot_dimension_numbers<[1], [1], [0], [0], [0, 0, 1, 0], [], []>} : vector<8x4xf32>, vector<8x4xf32>, vector<8x8xf32> -> vector<8x8xf32>
    %cst_442 = arith.constant 5.000000e-01 : f32
    %1169 = vector.broadcast %cst_442 : f32 to vector<8x8xf32>
    %1170 = arith.mulf %1168, %1169 : vector<8x8xf32>
    %cst_443 = arith.constant dense<0xFF800000> : vector<8xf32>
    %1171 = vector.multi_reduction <maximumf>, %1170, %cst_443 [1] : vector<8x8xf32> to vector<8xf32>
    %1172 = vector.shape_cast %1171 : vector<8xf32> to vector<8x1xf32>
    %1173 = vector.broadcast %1172 : vector<8x1xf32> to vector<8x8xf32>
    %1174 = arith.subf %1170, %1173 : vector<8x8xf32>
    %1175 = math.exp %1174 : vector<8x8xf32>
    %cst_444 = arith.constant dense<0.000000e+00> : vector<8xf32>
    %1176 = vector.multi_reduction <add>, %1175, %cst_444 [1] : vector<8x8xf32> to vector<8xf32>
    %1177 = vector.shape_cast %1176 : vector<8xf32> to vector<8x1xf32>
    %1178 = tpu.reciprocal %1177 {approx = true} : vector<8x1xf32> -> vector<8x1xf32>
    %1179 = vector.broadcast %1178 : vector<8x1xf32> to vector<8x8xf32>
    %1180 = arith.mulf %1175, %1179 : vector<8x8xf32>
    %cst_445 = arith.constant dense<0.000000e+00> : vector<8x4xf32>
    %1181 = tpu.matmul %1180, %1167, %cst_445 {dimension_numbers = #tpu.dot_dimension_numbers<[1], [0], [0], [1], [0, 0, 1, 1], [], []>} : vector<8x8xf32>, vector<8x4xf32>, vector<8x4xf32> -> vector<8x4xf32>
    %1182 = vector.extract_strided_slice %1104 {offsets = [0, 16], sizes = [8, 4], strides = [1, 1]} : vector<8x32xf32> to vector<8x4xf32>
    %1183 = vector.extract_strided_slice %1110 {offsets = [0, 16], sizes = [8, 4], strides = [1, 1]} : vector<8x32xf32> to vector<8x4xf32>
    %1184 = vector.extract_strided_slice %1111 {offsets = [0, 16], sizes = [8, 4], strides = [1, 1]} : vector<8x32xf32> to vector<8x4xf32>
    %cst_446 = arith.constant dense<0.000000e+00> : vector<8x8xf32>
    %1185 = tpu.matmul %1182, %1183, %cst_446 {dimension_numbers = #tpu.dot_dimension_numbers<[1], [1], [0], [0], [0, 0, 1, 0], [], []>} : vector<8x4xf32>, vector<8x4xf32>, vector<8x8xf32> -> vector<8x8xf32>
    %cst_447 = arith.constant 5.000000e-01 : f32
    %1186 = vector.broadcast %cst_447 : f32 to vector<8x8xf32>
    %1187 = arith.mulf %1185, %1186 : vector<8x8xf32>
    %cst_448 = arith.constant dense<0xFF800000> : vector<8xf32>
    %1188 = vector.multi_reduction <maximumf>, %1187, %cst_448 [1] : vector<8x8xf32> to vector<8xf32>
    %1189 = vector.shape_cast %1188 : vector<8xf32> to vector<8x1xf32>
    %1190 = vector.broadcast %1189 : vector<8x1xf32> to vector<8x8xf32>
    %1191 = arith.subf %1187, %1190 : vector<8x8xf32>
    %1192 = math.exp %1191 : vector<8x8xf32>
    %cst_449 = arith.constant dense<0.000000e+00> : vector<8xf32>
    %1193 = vector.multi_reduction <add>, %1192, %cst_449 [1] : vector<8x8xf32> to vector<8xf32>
    %1194 = vector.shape_cast %1193 : vector<8xf32> to vector<8x1xf32>
    %1195 = tpu.reciprocal %1194 {approx = true} : vector<8x1xf32> -> vector<8x1xf32>
    %1196 = vector.broadcast %1195 : vector<8x1xf32> to vector<8x8xf32>
    %1197 = arith.mulf %1192, %1196 : vector<8x8xf32>
    %cst_450 = arith.constant dense<0.000000e+00> : vector<8x4xf32>
    %1198 = tpu.matmul %1197, %1184, %cst_450 {dimension_numbers = #tpu.dot_dimension_numbers<[1], [0], [0], [1], [0, 0, 1, 1], [], []>} : vector<8x8xf32>, vector<8x4xf32>, vector<8x4xf32> -> vector<8x4xf32>
    %1199 = vector.extract_strided_slice %1104 {offsets = [0, 20], sizes = [8, 4], strides = [1, 1]} : vector<8x32xf32> to vector<8x4xf32>
    %1200 = vector.extract_strided_slice %1110 {offsets = [0, 20], sizes = [8, 4], strides = [1, 1]} : vector<8x32xf32> to vector<8x4xf32>
    %1201 = vector.extract_strided_slice %1111 {offsets = [0, 20], sizes = [8, 4], strides = [1, 1]} : vector<8x32xf32> to vector<8x4xf32>
    %cst_451 = arith.constant dense<0.000000e+00> : vector<8x8xf32>
    %1202 = tpu.matmul %1199, %1200, %cst_451 {dimension_numbers = #tpu.dot_dimension_numbers<[1], [1], [0], [0], [0, 0, 1, 0], [], []>} : vector<8x4xf32>, vector<8x4xf32>, vector<8x8xf32> -> vector<8x8xf32>
    %cst_452 = arith.constant 5.000000e-01 : f32
    %1203 = vector.broadcast %cst_452 : f32 to vector<8x8xf32>
    %1204 = arith.mulf %1202, %1203 : vector<8x8xf32>
    %cst_453 = arith.constant dense<0xFF800000> : vector<8xf32>
    %1205 = vector.multi_reduction <maximumf>, %1204, %cst_453 [1] : vector<8x8xf32> to vector<8xf32>
    %1206 = vector.shape_cast %1205 : vector<8xf32> to vector<8x1xf32>
    %1207 = vector.broadcast %1206 : vector<8x1xf32> to vector<8x8xf32>
    %1208 = arith.subf %1204, %1207 : vector<8x8xf32>
    %1209 = math.exp %1208 : vector<8x8xf32>
    %cst_454 = arith.constant dense<0.000000e+00> : vector<8xf32>
    %1210 = vector.multi_reduction <add>, %1209, %cst_454 [1] : vector<8x8xf32> to vector<8xf32>
    %1211 = vector.shape_cast %1210 : vector<8xf32> to vector<8x1xf32>
    %1212 = tpu.reciprocal %1211 {approx = true} : vector<8x1xf32> -> vector<8x1xf32>
    %1213 = vector.broadcast %1212 : vector<8x1xf32> to vector<8x8xf32>
    %1214 = arith.mulf %1209, %1213 : vector<8x8xf32>
    %cst_455 = arith.constant dense<0.000000e+00> : vector<8x4xf32>
    %1215 = tpu.matmul %1214, %1201, %cst_455 {dimension_numbers = #tpu.dot_dimension_numbers<[1], [0], [0], [1], [0, 0, 1, 1], [], []>} : vector<8x8xf32>, vector<8x4xf32>, vector<8x4xf32> -> vector<8x4xf32>
    %1216 = vector.extract_strided_slice %1104 {offsets = [0, 24], sizes = [8, 4], strides = [1, 1]} : vector<8x32xf32> to vector<8x4xf32>
    %1217 = vector.extract_strided_slice %1110 {offsets = [0, 24], sizes = [8, 4], strides = [1, 1]} : vector<8x32xf32> to vector<8x4xf32>
    %1218 = vector.extract_strided_slice %1111 {offsets = [0, 24], sizes = [8, 4], strides = [1, 1]} : vector<8x32xf32> to vector<8x4xf32>
    %cst_456 = arith.constant dense<0.000000e+00> : vector<8x8xf32>
    %1219 = tpu.matmul %1216, %1217, %cst_456 {dimension_numbers = #tpu.dot_dimension_numbers<[1], [1], [0], [0], [0, 0, 1, 0], [], []>} : vector<8x4xf32>, vector<8x4xf32>, vector<8x8xf32> -> vector<8x8xf32>
    %cst_457 = arith.constant 5.000000e-01 : f32
    %1220 = vector.broadcast %cst_457 : f32 to vector<8x8xf32>
    %1221 = arith.mulf %1219, %1220 : vector<8x8xf32>
    %cst_458 = arith.constant dense<0xFF800000> : vector<8xf32>
    %1222 = vector.multi_reduction <maximumf>, %1221, %cst_458 [1] : vector<8x8xf32> to vector<8xf32>
    %1223 = vector.shape_cast %1222 : vector<8xf32> to vector<8x1xf32>
    %1224 = vector.broadcast %1223 : vector<8x1xf32> to vector<8x8xf32>
    %1225 = arith.subf %1221, %1224 : vector<8x8xf32>
    %1226 = math.exp %1225 : vector<8x8xf32>
    %cst_459 = arith.constant dense<0.000000e+00> : vector<8xf32>
    %1227 = vector.multi_reduction <add>, %1226, %cst_459 [1] : vector<8x8xf32> to vector<8xf32>
    %1228 = vector.shape_cast %1227 : vector<8xf32> to vector<8x1xf32>
    %1229 = tpu.reciprocal %1228 {approx = true} : vector<8x1xf32> -> vector<8x1xf32>
    %1230 = vector.broadcast %1229 : vector<8x1xf32> to vector<8x8xf32>
    %1231 = arith.mulf %1226, %1230 : vector<8x8xf32>
    %cst_460 = arith.constant dense<0.000000e+00> : vector<8x4xf32>
    %1232 = tpu.matmul %1231, %1218, %cst_460 {dimension_numbers = #tpu.dot_dimension_numbers<[1], [0], [0], [1], [0, 0, 1, 1], [], []>} : vector<8x8xf32>, vector<8x4xf32>, vector<8x4xf32> -> vector<8x4xf32>
    %1233 = vector.extract_strided_slice %1104 {offsets = [0, 28], sizes = [8, 4], strides = [1, 1]} : vector<8x32xf32> to vector<8x4xf32>
    %1234 = vector.extract_strided_slice %1110 {offsets = [0, 28], sizes = [8, 4], strides = [1, 1]} : vector<8x32xf32> to vector<8x4xf32>
    %1235 = vector.extract_strided_slice %1111 {offsets = [0, 28], sizes = [8, 4], strides = [1, 1]} : vector<8x32xf32> to vector<8x4xf32>
    %cst_461 = arith.constant dense<0.000000e+00> : vector<8x8xf32>
    %1236 = tpu.matmul %1233, %1234, %cst_461 {dimension_numbers = #tpu.dot_dimension_numbers<[1], [1], [0], [0], [0, 0, 1, 0], [], []>} : vector<8x4xf32>, vector<8x4xf32>, vector<8x8xf32> -> vector<8x8xf32>
    %cst_462 = arith.constant 5.000000e-01 : f32
    %1237 = vector.broadcast %cst_462 : f32 to vector<8x8xf32>
    %1238 = arith.mulf %1236, %1237 : vector<8x8xf32>
    %cst_463 = arith.constant dense<0xFF800000> : vector<8xf32>
    %1239 = vector.multi_reduction <maximumf>, %1238, %cst_463 [1] : vector<8x8xf32> to vector<8xf32>
    %1240 = vector.shape_cast %1239 : vector<8xf32> to vector<8x1xf32>
    %1241 = vector.broadcast %1240 : vector<8x1xf32> to vector<8x8xf32>
    %1242 = arith.subf %1238, %1241 : vector<8x8xf32>
    %1243 = math.exp %1242 : vector<8x8xf32>
    %cst_464 = arith.constant dense<0.000000e+00> : vector<8xf32>
    %1244 = vector.multi_reduction <add>, %1243, %cst_464 [1] : vector<8x8xf32> to vector<8xf32>
    %1245 = vector.shape_cast %1244 : vector<8xf32> to vector<8x1xf32>
    %1246 = tpu.reciprocal %1245 {approx = true} : vector<8x1xf32> -> vector<8x1xf32>
    %1247 = vector.broadcast %1246 : vector<8x1xf32> to vector<8x8xf32>
    %1248 = arith.mulf %1243, %1247 : vector<8x8xf32>
    %cst_465 = arith.constant dense<0.000000e+00> : vector<8x4xf32>
    %1249 = tpu.matmul %1248, %1235, %cst_465 {dimension_numbers = #tpu.dot_dimension_numbers<[1], [0], [0], [1], [0, 0, 1, 1], [], []>} : vector<8x8xf32>, vector<8x4xf32>, vector<8x4xf32> -> vector<8x4xf32>
    %1250 = tpu.concatenate %1130, %1147, %1164, %1181, %1198, %1215, %1232, %1249 in 1 : vector<8x4xf32>, vector<8x4xf32>, vector<8x4xf32>, vector<8x4xf32>, vector<8x4xf32>, vector<8x4xf32>, vector<8x4xf32>, vector<8x4xf32> -> vector<8x32xf32>
    %cst_466 = arith.constant dense<0.000000e+00> : vector<8x32xf32>
    %1251 = tpu.matmul %1250, %1112, %cst_466 {dimension_numbers = #tpu.dot_dimension_numbers<[1], [0], [0], [1], [0, 0, 1, 1], [], []>} : vector<8x32xf32>, vector<32x32xf32>, vector<8x32xf32> -> vector<8x32xf32>
    %1252 = vector.broadcast %1113 : vector<1x32xf32> to vector<8x32xf32>
    %1253 = arith.addf %1251, %1252 : vector<8x32xf32>
    %1254 = arith.addf %1099, %1253 : vector<8x32xf32>
    %c0_467 = arith.constant 0 : index
    %c0_468 = arith.constant 0 : index
    %1255 = vector.load %arg39[%c0_467, %c0_468] : memref<1x32xf32, #tpu.memory_space<vmem>>, vector<1x32xf32>
    %c0_469 = arith.constant 0 : index
    %c0_470 = arith.constant 0 : index
    %1256 = vector.load %arg38[%c0_469, %c0_470] : memref<1x32xf32, #tpu.memory_space<vmem>>, vector<1x32xf32>
    %cst_471 = arith.constant dense<0.000000e+00> : vector<8xf32>
    %1257 = vector.multi_reduction <add>, %1254, %cst_471 [1] : vector<8x32xf32> to vector<8xf32>
    %1258 = vector.shape_cast %1257 : vector<8xf32> to vector<8x1xf32>
    %cst_472 = arith.constant 3.200000e+01 : f32
    %1259 = vector.broadcast %cst_472 : f32 to vector<8x1xf32>
    %1260 = arith.divf %1258, %1259 : vector<8x1xf32>
    %1261 = vector.broadcast %1260 : vector<8x1xf32> to vector<8x32xf32>
    %1262 = arith.subf %1254, %1261 : vector<8x32xf32>
    %1263 = arith.mulf %1262, %1262 : vector<8x32xf32>
    %cst_473 = arith.constant dense<0.000000e+00> : vector<8xf32>
    %1264 = vector.multi_reduction <add>, %1263, %cst_473 [1] : vector<8x32xf32> to vector<8xf32>
    %1265 = vector.shape_cast %1264 : vector<8xf32> to vector<8x1xf32>
    %cst_474 = arith.constant 3.200000e+01 : f32
    %1266 = vector.broadcast %cst_474 : f32 to vector<8x1xf32>
    %1267 = arith.divf %1265, %1266 : vector<8x1xf32>
    %1268 = vector.broadcast %1260 : vector<8x1xf32> to vector<8x32xf32>
    %1269 = arith.subf %1254, %1268 : vector<8x32xf32>
    %cst_475 = arith.constant 9.99999974E-6 : f32
    %1270 = vector.broadcast %cst_475 : f32 to vector<8x1xf32>
    %1271 = arith.addf %1267, %1270 : vector<8x1xf32>
    %1272 = math.rsqrt %1271 : vector<8x1xf32>
    %1273 = vector.broadcast %1272 : vector<8x1xf32> to vector<8x32xf32>
    %1274 = arith.mulf %1269, %1273 : vector<8x32xf32>
    %1275 = vector.broadcast %1255 : vector<1x32xf32> to vector<8x32xf32>
    %1276 = arith.mulf %1274, %1275 : vector<8x32xf32>
    %1277 = vector.broadcast %1256 : vector<1x32xf32> to vector<8x32xf32>
    %1278 = arith.addf %1276, %1277 : vector<8x32xf32>
    %c0_476 = arith.constant 0 : index
    %c0_477 = arith.constant 0 : index
    %1279 = vector.load %arg33[%c0_476, %c0_477] : memref<32x256xf32, #tpu.memory_space<vmem>>, vector<32x256xf32>
    %cst_478 = arith.constant dense<0.000000e+00> : vector<8x256xf32>
    %1280 = tpu.matmul %1278, %1279, %cst_478 {dimension_numbers = #tpu.dot_dimension_numbers<[1], [0], [0], [1], [0, 0, 1, 1], [], []>} : vector<8x32xf32>, vector<32x256xf32>, vector<8x256xf32> -> vector<8x256xf32>
    %c0_479 = arith.constant 0 : index
    %c0_480 = arith.constant 0 : index
    %1281 = vector.load %arg32[%c0_479, %c0_480] : memref<1x256xf32, #tpu.memory_space<vmem>>, vector<1x256xf32>
    %1282 = vector.broadcast %1281 : vector<1x256xf32> to vector<8x256xf32>
    %1283 = arith.addf %1280, %1282 : vector<8x256xf32>
    %cst_481 = arith.constant 0.000000e+00 : f32
    %1284 = vector.broadcast %cst_481 : f32 to vector<8x256xf32>
    %1285 = arith.maximumf %1283, %1284 : vector<8x256xf32>
    %c0_482 = arith.constant 0 : index
    %c0_483 = arith.constant 0 : index
    %1286 = vector.load %arg35[%c0_482, %c0_483] : memref<256x32xf32, #tpu.memory_space<vmem>>, vector<256x32xf32>
    %cst_484 = arith.constant dense<0.000000e+00> : vector<8x32xf32>
    %1287 = tpu.matmul %1285, %1286, %cst_484 {dimension_numbers = #tpu.dot_dimension_numbers<[1], [0], [0], [1], [0, 0, 1, 1], [], []>} : vector<8x256xf32>, vector<256x32xf32>, vector<8x32xf32> -> vector<8x32xf32>
    %c0_485 = arith.constant 0 : index
    %c0_486 = arith.constant 0 : index
    %1288 = vector.load %arg34[%c0_485, %c0_486] : memref<1x32xf32, #tpu.memory_space<vmem>>, vector<1x32xf32>
    %1289 = vector.broadcast %1288 : vector<1x32xf32> to vector<8x32xf32>
    %1290 = arith.addf %1287, %1289 : vector<8x32xf32>
    %1291 = arith.addf %1278, %1290 : vector<8x32xf32>
    %c0_487 = arith.constant 0 : index
    %c0_488 = arith.constant 0 : index
    %1292 = vector.load %arg41[%c0_487, %c0_488] : memref<1x32xf32, #tpu.memory_space<vmem>>, vector<1x32xf32>
    %c0_489 = arith.constant 0 : index
    %c0_490 = arith.constant 0 : index
    %1293 = vector.load %arg40[%c0_489, %c0_490] : memref<1x32xf32, #tpu.memory_space<vmem>>, vector<1x32xf32>
    %cst_491 = arith.constant dense<0.000000e+00> : vector<8xf32>
    %1294 = vector.multi_reduction <add>, %1291, %cst_491 [1] : vector<8x32xf32> to vector<8xf32>
    %1295 = vector.shape_cast %1294 : vector<8xf32> to vector<8x1xf32>
    %cst_492 = arith.constant 3.200000e+01 : f32
    %1296 = vector.broadcast %cst_492 : f32 to vector<8x1xf32>
    %1297 = arith.divf %1295, %1296 : vector<8x1xf32>
    %1298 = vector.broadcast %1297 : vector<8x1xf32> to vector<8x32xf32>
    %1299 = arith.subf %1291, %1298 : vector<8x32xf32>
    %1300 = arith.mulf %1299, %1299 : vector<8x32xf32>
    %cst_493 = arith.constant dense<0.000000e+00> : vector<8xf32>
    %1301 = vector.multi_reduction <add>, %1300, %cst_493 [1] : vector<8x32xf32> to vector<8xf32>
    %1302 = vector.shape_cast %1301 : vector<8xf32> to vector<8x1xf32>
    %cst_494 = arith.constant 3.200000e+01 : f32
    %1303 = vector.broadcast %cst_494 : f32 to vector<8x1xf32>
    %1304 = arith.divf %1302, %1303 : vector<8x1xf32>
    %1305 = vector.broadcast %1297 : vector<8x1xf32> to vector<8x32xf32>
    %1306 = arith.subf %1291, %1305 : vector<8x32xf32>
    %cst_495 = arith.constant 9.99999974E-6 : f32
    %1307 = vector.broadcast %cst_495 : f32 to vector<8x1xf32>
    %1308 = arith.addf %1304, %1307 : vector<8x1xf32>
    %1309 = math.rsqrt %1308 : vector<8x1xf32>
    %1310 = vector.broadcast %1309 : vector<8x1xf32> to vector<8x32xf32>
    %1311 = arith.mulf %1306, %1310 : vector<8x32xf32>
    %1312 = vector.broadcast %1292 : vector<1x32xf32> to vector<8x32xf32>
    %1313 = arith.mulf %1311, %1312 : vector<8x32xf32>
    %1314 = vector.broadcast %1293 : vector<1x32xf32> to vector<8x32xf32>
    %1315 = arith.addf %1313, %1314 : vector<8x32xf32>
    %c0_496 = arith.constant 0 : index
    %c0_497 = arith.constant 0 : index
    %1316 = vector.load %arg49[%c0_496, %c0_497] : memref<1x32xf32, #tpu.memory_space<vmem>>, vector<1x32xf32>
    %c0_498 = arith.constant 0 : index
    %c0_499 = arith.constant 0 : index
    %1317 = vector.load %arg48[%c0_498, %c0_499] : memref<1x32xf32, #tpu.memory_space<vmem>>, vector<1x32xf32>
    %cst_500 = arith.constant dense<0.000000e+00> : vector<8xf32>
    %1318 = vector.multi_reduction <add>, %1315, %cst_500 [1] : vector<8x32xf32> to vector<8xf32>
    %1319 = vector.shape_cast %1318 : vector<8xf32> to vector<8x1xf32>
    %cst_501 = arith.constant 3.200000e+01 : f32
    %1320 = vector.broadcast %cst_501 : f32 to vector<8x1xf32>
    %1321 = arith.divf %1319, %1320 : vector<8x1xf32>
    %1322 = vector.broadcast %1321 : vector<8x1xf32> to vector<8x32xf32>
    %1323 = arith.subf %1315, %1322 : vector<8x32xf32>
    %1324 = arith.mulf %1323, %1323 : vector<8x32xf32>
    %cst_502 = arith.constant dense<0.000000e+00> : vector<8xf32>
    %1325 = vector.multi_reduction <add>, %1324, %cst_502 [1] : vector<8x32xf32> to vector<8xf32>
    %1326 = vector.shape_cast %1325 : vector<8xf32> to vector<8x1xf32>
    %cst_503 = arith.constant 3.200000e+01 : f32
    %1327 = vector.broadcast %cst_503 : f32 to vector<8x1xf32>
    %1328 = arith.divf %1326, %1327 : vector<8x1xf32>
    %1329 = vector.broadcast %1321 : vector<8x1xf32> to vector<8x32xf32>
    %1330 = arith.subf %1315, %1329 : vector<8x32xf32>
    %cst_504 = arith.constant 9.99999974E-6 : f32
    %1331 = vector.broadcast %cst_504 : f32 to vector<8x1xf32>
    %1332 = arith.addf %1328, %1331 : vector<8x1xf32>
    %1333 = math.rsqrt %1332 : vector<8x1xf32>
    %1334 = vector.broadcast %1333 : vector<8x1xf32> to vector<8x32xf32>
    %1335 = arith.mulf %1330, %1334 : vector<8x32xf32>
    %1336 = vector.broadcast %1316 : vector<1x32xf32> to vector<8x32xf32>
    %1337 = arith.mulf %1335, %1336 : vector<8x32xf32>
    %1338 = vector.broadcast %1317 : vector<1x32xf32> to vector<8x32xf32>
    %1339 = arith.addf %1337, %1338 : vector<8x32xf32>
    %c0_505 = arith.constant 0 : index
    %c0_506 = arith.constant 0 : index
    %1340 = vector.load %arg47[%c0_505, %c0_506] : memref<32x2xf32, #tpu.memory_space<vmem>>, vector<32x2xf32>
    %cst_507 = arith.constant dense<0.000000e+00> : vector<8x2xf32>
    %1341 = tpu.matmul %1339, %1340, %cst_507 {dimension_numbers = #tpu.dot_dimension_numbers<[1], [0], [0], [1], [0, 0, 1, 1], [], []>} : vector<8x32xf32>, vector<32x2xf32>, vector<8x2xf32> -> vector<8x2xf32>
    %c0_508 = arith.constant 0 : index
    %c0_509 = arith.constant 0 : index
    %1342 = vector.load %arg46[%c0_508, %c0_509] : memref<1x2xf32, #tpu.memory_space<vmem>>, vector<1x2xf32>
    %1343 = vector.broadcast %1342 : vector<1x2xf32> to vector<8x2xf32>
    %1344 = arith.addf %1341, %1343 : vector<8x2xf32>
    %c0_510 = arith.constant 0 : index
    %c0_511 = arith.constant 0 : index
    %1345 = vector.load %arg51[%c0_510, %c0_511] : memref<32x2xf32, #tpu.memory_space<vmem>>, vector<32x2xf32>
    %cst_512 = arith.constant dense<0.000000e+00> : vector<8x2xf32>
    %1346 = tpu.matmul %1339, %1345, %cst_512 {dimension_numbers = #tpu.dot_dimension_numbers<[1], [0], [0], [1], [0, 0, 1, 1], [], []>} : vector<8x32xf32>, vector<32x2xf32>, vector<8x2xf32> -> vector<8x2xf32>
    %c0_513 = arith.constant 0 : index
    %c0_514 = arith.constant 0 : index
    %1347 = vector.load %arg50[%c0_513, %c0_514] : memref<1x2xf32, #tpu.memory_space<vmem>>, vector<1x2xf32>
    %1348 = vector.broadcast %1347 : vector<1x2xf32> to vector<8x2xf32>
    %1349 = arith.addf %1346, %1348 : vector<8x2xf32>
    %cst_515 = arith.constant 2.000000e+01 : f32
    %1350 = vector.broadcast %cst_515 : f32 to vector<8x2xf32>
    %1351 = arith.cmpf ogt, %1349, %1350 : vector<8x2xf32>
    %cst_516 = arith.constant 2.000000e+01 : f32
    %1352 = vector.broadcast %cst_516 : f32 to vector<8x2xf32>
    %1353 = arith.minimumf %1349, %1352 : vector<8x2xf32>
    %1354 = math.exp %1353 : vector<8x2xf32>
    %1355 = math.log1p %1354 : vector<8x2xf32>
    %1356 = arith.select %1351, %1349, %1355 : vector<8x2xi1>, vector<8x2xf32>
    %cst_517 = arith.constant 9.900000e-01 : f32
    %1357 = vector.broadcast %cst_517 : f32 to vector<8x2xf32>
    %1358 = arith.mulf %1357, %1356 : vector<8x2xf32>
    %cst_518 = arith.constant 0.00999999977 : f32
    %1359 = vector.broadcast %cst_518 : f32 to vector<8x2xf32>
    %1360 = arith.addf %1359, %1358 : vector<8x2xf32>
    %c0_519 = arith.constant 0 : index
    %c0_520 = arith.constant 0 : index
    %c0_521 = arith.constant 0 : index
    %1361 = vector.load %arg87[%c0_519, %c0_520, %c0_521] : memref<1x8x2xf32, #tpu.memory_space<vmem>>, vector<1x8x2xf32>
    %1362 = vector.shape_cast %1361 : vector<1x8x2xf32> to vector<8x2xf32>
    %1363 = vector.shape_cast %1344 : vector<8x2xf32> to vector<1x8x2xf32>
    tpu.vector_store %arg87[%c0_519, %c0_520, %c0_521], %1363 {strides = array<i32>} : memref<1x8x2xf32, #tpu.memory_space<vmem>>, vector<1x8x2xf32>,
    %c0_522 = arith.constant 0 : index
    %c0_523 = arith.constant 0 : index
    %c0_524 = arith.constant 0 : index
    %1364 = vector.load %arg88[%c0_522, %c0_523, %c0_524] : memref<1x8x2xf32, #tpu.memory_space<vmem>>, vector<1x8x2xf32>
    %1365 = vector.shape_cast %1364 : vector<1x8x2xf32> to vector<8x2xf32>
    %1366 = vector.shape_cast %1360 : vector<8x2xf32> to vector<1x8x2xf32>
    tpu.vector_store %arg88[%c0_522, %c0_523, %c0_524], %1366 {strides = array<i32>} : memref<1x8x2xf32, #tpu.memory_space<vmem>>, vector<1x8x2xf32>,
    return
  }
  func.func @transform_0(%arg0: i32) -> (i32, i32, i32) {
    %c0_i32 = arith.constant 0 : i32
    %c0_i32_0 = arith.constant 0 : i32
    %c0_i32_1 = arith.constant 0 : i32
    return %arg0, %c0_i32, %c0_i32_0 : i32, i32, i32
  }
  func.func @transform_1(%arg0: i32) -> (i32, i32, i32) {
    %c0_i32 = arith.constant 0 : i32
    %c0_i32_0 = arith.constant 0 : i32
    %c0_i32_1 = arith.constant 0 : i32
    return %arg0, %c0_i32, %c0_i32_0 : i32, i32, i32
  }
  func.func @transform_2(%arg0: i32) -> (i32, i32, i32) {
    %c0_i32 = arith.constant 0 : i32
    %c0_i32_0 = arith.constant 0 : i32
    %c0_i32_1 = arith.constant 0 : i32
    return %arg0, %c0_i32, %c0_i32_0 : i32, i32, i32
  }
  func.func @transform_3(%arg0: i32) -> (i32, i32) {
    %c0_i32 = arith.constant 0 : i32
    %c0_i32_0 = arith.constant 0 : i32
    %c0_i32_1 = arith.constant 0 : i32
    return %c0_i32, %c0_i32_0 : i32, i32
  }
  func.func @transform_4(%arg0: i32) -> (i32, i32) {
    %c0_i32 = arith.constant 0 : i32
    %c0_i32_0 = arith.constant 0 : i32
    %c0_i32_1 = arith.constant 0 : i32
    return %c0_i32, %c0_i32_0 : i32, i32
  }
  func.func @transform_5(%arg0: i32) -> (i32, i32) {
    %c0_i32 = arith.constant 0 : i32
    %c0_i32_0 = arith.constant 0 : i32
    %c0_i32_1 = arith.constant 0 : i32
    return %c0_i32, %c0_i32_0 : i32, i32
  }
  func.func @transform_6(%arg0: i32) -> (i32, i32) {
    %c0_i32 = arith.constant 0 : i32
    %c0_i32_0 = arith.constant 0 : i32
    %c0_i32_1 = arith.constant 0 : i32
    return %c0_i32, %c0_i32_0 : i32, i32
  }
  func.func @transform_7(%arg0: i32) -> (i32, i32) {
    %c0_i32 = arith.constant 0 : i32
    %c0_i32_0 = arith.constant 0 : i32
    %c0_i32_1 = arith.constant 0 : i32
    return %c0_i32, %c0_i32_0 : i32, i32
  }
  func.func @transform_8(%arg0: i32) -> (i32, i32) {
    %c0_i32 = arith.constant 0 : i32
    %c0_i32_0 = arith.constant 0 : i32
    %c0_i32_1 = arith.constant 0 : i32
    return %c0_i32, %c0_i32_0 : i32, i32
  }
  func.func @transform_9(%arg0: i32) -> (i32, i32) {
    %c0_i32 = arith.constant 0 : i32
    %c0_i32_0 = arith.constant 0 : i32
    %c0_i32_1 = arith.constant 0 : i32
    return %c0_i32, %c0_i32_0 : i32, i32
  }
  func.func @transform_10(%arg0: i32) -> (i32, i32) {
    %c0_i32 = arith.constant 0 : i32
    %c0_i32_0 = arith.constant 0 : i32
    %c0_i32_1 = arith.constant 0 : i32
    return %c0_i32, %c0_i32_0 : i32, i32
  }
  func.func @transform_11(%arg0: i32) -> (i32, i32) {
    %c0_i32 = arith.constant 0 : i32
    %c0_i32_0 = arith.constant 0 : i32
    %c0_i32_1 = arith.constant 0 : i32
    return %c0_i32, %c0_i32_0 : i32, i32
  }
  func.func @transform_12(%arg0: i32) -> (i32, i32) {
    %c0_i32 = arith.constant 0 : i32
    %c0_i32_0 = arith.constant 0 : i32
    %c0_i32_1 = arith.constant 0 : i32
    return %c0_i32, %c0_i32_0 : i32, i32
  }
  func.func @transform_13(%arg0: i32) -> (i32, i32) {
    %c0_i32 = arith.constant 0 : i32
    %c0_i32_0 = arith.constant 0 : i32
    %c0_i32_1 = arith.constant 0 : i32
    return %c0_i32, %c0_i32_0 : i32, i32
  }
  func.func @transform_14(%arg0: i32) -> (i32, i32) {
    %c0_i32 = arith.constant 0 : i32
    %c0_i32_0 = arith.constant 0 : i32
    %c0_i32_1 = arith.constant 0 : i32
    return %c0_i32, %c0_i32_0 : i32, i32
  }
  func.func @transform_15(%arg0: i32) -> (i32, i32) {
    %c0_i32 = arith.constant 0 : i32
    %c0_i32_0 = arith.constant 0 : i32
    %c0_i32_1 = arith.constant 0 : i32
    return %c0_i32, %c0_i32_0 : i32, i32
  }
  func.func @transform_16(%arg0: i32) -> (i32, i32) {
    %c0_i32 = arith.constant 0 : i32
    %c0_i32_0 = arith.constant 0 : i32
    %c0_i32_1 = arith.constant 0 : i32
    return %c0_i32, %c0_i32_0 : i32, i32
  }
  func.func @transform_17(%arg0: i32) -> (i32, i32) {
    %c0_i32 = arith.constant 0 : i32
    %c0_i32_0 = arith.constant 0 : i32
    %c0_i32_1 = arith.constant 0 : i32
    return %c0_i32, %c0_i32_0 : i32, i32
  }
  func.func @transform_18(%arg0: i32) -> (i32, i32) {
    %c0_i32 = arith.constant 0 : i32
    %c0_i32_0 = arith.constant 0 : i32
    %c0_i32_1 = arith.constant 0 : i32
    return %c0_i32, %c0_i32_0 : i32, i32
  }
  func.func @transform_19(%arg0: i32) -> (i32, i32) {
    %c0_i32 = arith.constant 0 : i32
    %c0_i32_0 = arith.constant 0 : i32
    %c0_i32_1 = arith.constant 0 : i32
    return %c0_i32, %c0_i32_0 : i32, i32
  }
  func.func @transform_20(%arg0: i32) -> (i32, i32) {
    %c0_i32 = arith.constant 0 : i32
    %c0_i32_0 = arith.constant 0 : i32
    %c0_i32_1 = arith.constant 0 : i32
    return %c0_i32, %c0_i32_0 : i32, i32
  }
  func.func @transform_21(%arg0: i32) -> (i32, i32) {
    %c0_i32 = arith.constant 0 : i32
    %c0_i32_0 = arith.constant 0 : i32
    %c0_i32_1 = arith.constant 0 : i32
    return %c0_i32, %c0_i32_0 : i32, i32
  }
  func.func @transform_22(%arg0: i32) -> (i32, i32) {
    %c0_i32 = arith.constant 0 : i32
    %c0_i32_0 = arith.constant 0 : i32
    %c0_i32_1 = arith.constant 0 : i32
    return %c0_i32, %c0_i32_0 : i32, i32
  }
  func.func @transform_23(%arg0: i32) -> (i32, i32) {
    %c0_i32 = arith.constant 0 : i32
    %c0_i32_0 = arith.constant 0 : i32
    %c0_i32_1 = arith.constant 0 : i32
    return %c0_i32, %c0_i32_0 : i32, i32
  }
  func.func @transform_24(%arg0: i32) -> (i32, i32) {
    %c0_i32 = arith.constant 0 : i32
    %c0_i32_0 = arith.constant 0 : i32
    %c0_i32_1 = arith.constant 0 : i32
    return %c0_i32, %c0_i32_0 : i32, i32
  }
  func.func @transform_25(%arg0: i32) -> (i32, i32) {
    %c0_i32 = arith.constant 0 : i32
    %c0_i32_0 = arith.constant 0 : i32
    %c0_i32_1 = arith.constant 0 : i32
    return %c0_i32, %c0_i32_0 : i32, i32
  }
  func.func @transform_26(%arg0: i32) -> (i32, i32) {
    %c0_i32 = arith.constant 0 : i32
    %c0_i32_0 = arith.constant 0 : i32
    %c0_i32_1 = arith.constant 0 : i32
    return %c0_i32, %c0_i32_0 : i32, i32
  }
  func.func @transform_27(%arg0: i32) -> (i32, i32) {
    %c0_i32 = arith.constant 0 : i32
    %c0_i32_0 = arith.constant 0 : i32
    %c0_i32_1 = arith.constant 0 : i32
    return %c0_i32, %c0_i32_0 : i32, i32
  }
  func.func @transform_28(%arg0: i32) -> (i32, i32) {
    %c0_i32 = arith.constant 0 : i32
    %c0_i32_0 = arith.constant 0 : i32
    %c0_i32_1 = arith.constant 0 : i32
    return %c0_i32, %c0_i32_0 : i32, i32
  }
  func.func @transform_29(%arg0: i32) -> (i32, i32) {
    %c0_i32 = arith.constant 0 : i32
    %c0_i32_0 = arith.constant 0 : i32
    %c0_i32_1 = arith.constant 0 : i32
    return %c0_i32, %c0_i32_0 : i32, i32
  }
  func.func @transform_30(%arg0: i32) -> (i32, i32) {
    %c0_i32 = arith.constant 0 : i32
    %c0_i32_0 = arith.constant 0 : i32
    %c0_i32_1 = arith.constant 0 : i32
    return %c0_i32, %c0_i32_0 : i32, i32
  }
  func.func @transform_31(%arg0: i32) -> (i32, i32) {
    %c0_i32 = arith.constant 0 : i32
    %c0_i32_0 = arith.constant 0 : i32
    %c0_i32_1 = arith.constant 0 : i32
    return %c0_i32, %c0_i32_0 : i32, i32
  }
  func.func @transform_32(%arg0: i32) -> (i32, i32) {
    %c0_i32 = arith.constant 0 : i32
    %c0_i32_0 = arith.constant 0 : i32
    %c0_i32_1 = arith.constant 0 : i32
    return %c0_i32, %c0_i32_0 : i32, i32
  }
  func.func @transform_33(%arg0: i32) -> (i32, i32) {
    %c0_i32 = arith.constant 0 : i32
    %c0_i32_0 = arith.constant 0 : i32
    %c0_i32_1 = arith.constant 0 : i32
    return %c0_i32, %c0_i32_0 : i32, i32
  }
  func.func @transform_34(%arg0: i32) -> (i32, i32) {
    %c0_i32 = arith.constant 0 : i32
    %c0_i32_0 = arith.constant 0 : i32
    %c0_i32_1 = arith.constant 0 : i32
    return %c0_i32, %c0_i32_0 : i32, i32
  }
  func.func @transform_35(%arg0: i32) -> (i32, i32) {
    %c0_i32 = arith.constant 0 : i32
    %c0_i32_0 = arith.constant 0 : i32
    %c0_i32_1 = arith.constant 0 : i32
    return %c0_i32, %c0_i32_0 : i32, i32
  }
  func.func @transform_36(%arg0: i32) -> (i32, i32) {
    %c0_i32 = arith.constant 0 : i32
    %c0_i32_0 = arith.constant 0 : i32
    %c0_i32_1 = arith.constant 0 : i32
    return %c0_i32, %c0_i32_0 : i32, i32
  }
  func.func @transform_37(%arg0: i32) -> (i32, i32) {
    %c0_i32 = arith.constant 0 : i32
    %c0_i32_0 = arith.constant 0 : i32
    %c0_i32_1 = arith.constant 0 : i32
    return %c0_i32, %c0_i32_0 : i32, i32
  }
  func.func @transform_38(%arg0: i32) -> (i32, i32) {
    %c0_i32 = arith.constant 0 : i32
    %c0_i32_0 = arith.constant 0 : i32
    %c0_i32_1 = arith.constant 0 : i32
    return %c0_i32, %c0_i32_0 : i32, i32
  }
  func.func @transform_39(%arg0: i32) -> (i32, i32) {
    %c0_i32 = arith.constant 0 : i32
    %c0_i32_0 = arith.constant 0 : i32
    %c0_i32_1 = arith.constant 0 : i32
    return %c0_i32, %c0_i32_0 : i32, i32
  }
  func.func @transform_40(%arg0: i32) -> (i32, i32) {
    %c0_i32 = arith.constant 0 : i32
    %c0_i32_0 = arith.constant 0 : i32
    %c0_i32_1 = arith.constant 0 : i32
    return %c0_i32, %c0_i32_0 : i32, i32
  }
  func.func @transform_41(%arg0: i32) -> (i32, i32) {
    %c0_i32 = arith.constant 0 : i32
    %c0_i32_0 = arith.constant 0 : i32
    %c0_i32_1 = arith.constant 0 : i32
    return %c0_i32, %c0_i32_0 : i32, i32
  }
  func.func @transform_42(%arg0: i32) -> (i32, i32) {
    %c0_i32 = arith.constant 0 : i32
    %c0_i32_0 = arith.constant 0 : i32
    %c0_i32_1 = arith.constant 0 : i32
    return %c0_i32, %c0_i32_0 : i32, i32
  }
  func.func @transform_43(%arg0: i32) -> (i32, i32) {
    %c0_i32 = arith.constant 0 : i32
    %c0_i32_0 = arith.constant 0 : i32
    %c0_i32_1 = arith.constant 0 : i32
    return %c0_i32, %c0_i32_0 : i32, i32
  }
  func.func @transform_44(%arg0: i32) -> (i32, i32) {
    %c0_i32 = arith.constant 0 : i32
    %c0_i32_0 = arith.constant 0 : i32
    %c0_i32_1 = arith.constant 0 : i32
    return %c0_i32, %c0_i32_0 : i32, i32
  }
  func.func @transform_45(%arg0: i32) -> (i32, i32) {
    %c0_i32 = arith.constant 0 : i32
    %c0_i32_0 = arith.constant 0 : i32
    %c0_i32_1 = arith.constant 0 : i32
    return %c0_i32, %c0_i32_0 : i32, i32
  }
  func.func @transform_46(%arg0: i32) -> (i32, i32) {
    %c0_i32 = arith.constant 0 : i32
    %c0_i32_0 = arith.constant 0 : i32
    %c0_i32_1 = arith.constant 0 : i32
    return %c0_i32, %c0_i32_0 : i32, i32
  }
  func.func @transform_47(%arg0: i32) -> (i32, i32) {
    %c0_i32 = arith.constant 0 : i32
    %c0_i32_0 = arith.constant 0 : i32
    %c0_i32_1 = arith.constant 0 : i32
    return %c0_i32, %c0_i32_0 : i32, i32
  }
  func.func @transform_48(%arg0: i32) -> (i32, i32) {
    %c0_i32 = arith.constant 0 : i32
    %c0_i32_0 = arith.constant 0 : i32
    %c0_i32_1 = arith.constant 0 : i32
    return %c0_i32, %c0_i32_0 : i32, i32
  }
  func.func @transform_49(%arg0: i32) -> (i32, i32) {
    %c0_i32 = arith.constant 0 : i32
    %c0_i32_0 = arith.constant 0 : i32
    %c0_i32_1 = arith.constant 0 : i32
    return %c0_i32, %c0_i32_0 : i32, i32
  }
  func.func @transform_50(%arg0: i32) -> (i32, i32) {
    %c0_i32 = arith.constant 0 : i32
    %c0_i32_0 = arith.constant 0 : i32
    %c0_i32_1 = arith.constant 0 : i32
    return %c0_i32, %c0_i32_0 : i32, i32
  }
  func.func @transform_51(%arg0: i32) -> (i32, i32) {
    %c0_i32 = arith.constant 0 : i32
    %c0_i32_0 = arith.constant 0 : i32
    %c0_i32_1 = arith.constant 0 : i32
    return %c0_i32, %c0_i32_0 : i32, i32
  }
  func.func @transform_52(%arg0: i32) -> (i32, i32) {
    %c0_i32 = arith.constant 0 : i32
    %c0_i32_0 = arith.constant 0 : i32
    %c0_i32_1 = arith.constant 0 : i32
    return %c0_i32, %c0_i32_0 : i32, i32
  }
  func.func @transform_53(%arg0: i32) -> (i32, i32) {
    %c0_i32 = arith.constant 0 : i32
    %c0_i32_0 = arith.constant 0 : i32
    %c0_i32_1 = arith.constant 0 : i32
    return %c0_i32, %c0_i32_0 : i32, i32
  }
  func.func @transform_54(%arg0: i32) -> (i32, i32) {
    %c0_i32 = arith.constant 0 : i32
    %c0_i32_0 = arith.constant 0 : i32
    %c0_i32_1 = arith.constant 0 : i32
    return %c0_i32, %c0_i32_0 : i32, i32
  }
  func.func @transform_55(%arg0: i32) -> (i32, i32) {
    %c0_i32 = arith.constant 0 : i32
    %c0_i32_0 = arith.constant 0 : i32
    %c0_i32_1 = arith.constant 0 : i32
    return %c0_i32, %c0_i32_0 : i32, i32
  }
  func.func @transform_56(%arg0: i32) -> (i32, i32) {
    %c0_i32 = arith.constant 0 : i32
    %c0_i32_0 = arith.constant 0 : i32
    %c0_i32_1 = arith.constant 0 : i32
    return %c0_i32, %c0_i32_0 : i32, i32
  }
  func.func @transform_57(%arg0: i32) -> (i32, i32) {
    %c0_i32 = arith.constant 0 : i32
    %c0_i32_0 = arith.constant 0 : i32
    %c0_i32_1 = arith.constant 0 : i32
    return %c0_i32, %c0_i32_0 : i32, i32
  }
  func.func @transform_58(%arg0: i32) -> (i32, i32) {
    %c0_i32 = arith.constant 0 : i32
    %c0_i32_0 = arith.constant 0 : i32
    %c0_i32_1 = arith.constant 0 : i32
    return %c0_i32, %c0_i32_0 : i32, i32
  }
  func.func @transform_59(%arg0: i32) -> (i32, i32) {
    %c0_i32 = arith.constant 0 : i32
    %c0_i32_0 = arith.constant 0 : i32
    %c0_i32_1 = arith.constant 0 : i32
    return %c0_i32, %c0_i32_0 : i32, i32
  }
  func.func @transform_60(%arg0: i32) -> (i32, i32) {
    %c0_i32 = arith.constant 0 : i32
    %c0_i32_0 = arith.constant 0 : i32
    %c0_i32_1 = arith.constant 0 : i32
    return %c0_i32, %c0_i32_0 : i32, i32
  }
  func.func @transform_61(%arg0: i32) -> (i32, i32) {
    %c0_i32 = arith.constant 0 : i32
    %c0_i32_0 = arith.constant 0 : i32
    %c0_i32_1 = arith.constant 0 : i32
    return %c0_i32, %c0_i32_0 : i32, i32
  }
  func.func @transform_62(%arg0: i32) -> (i32, i32) {
    %c0_i32 = arith.constant 0 : i32
    %c0_i32_0 = arith.constant 0 : i32
    %c0_i32_1 = arith.constant 0 : i32
    return %c0_i32, %c0_i32_0 : i32, i32
  }
  func.func @transform_63(%arg0: i32) -> (i32, i32) {
    %c0_i32 = arith.constant 0 : i32
    %c0_i32_0 = arith.constant 0 : i32
    %c0_i32_1 = arith.constant 0 : i32
    return %c0_i32, %c0_i32_0 : i32, i32
  }
  func.func @transform_64(%arg0: i32) -> (i32, i32) {
    %c0_i32 = arith.constant 0 : i32
    %c0_i32_0 = arith.constant 0 : i32
    %c0_i32_1 = arith.constant 0 : i32
    return %c0_i32, %c0_i32_0 : i32, i32
  }
  func.func @transform_65(%arg0: i32) -> (i32, i32) {
    %c0_i32 = arith.constant 0 : i32
    %c0_i32_0 = arith.constant 0 : i32
    %c0_i32_1 = arith.constant 0 : i32
    return %c0_i32, %c0_i32_0 : i32, i32
  }
  func.func @transform_66(%arg0: i32) -> (i32, i32) {
    %c0_i32 = arith.constant 0 : i32
    %c0_i32_0 = arith.constant 0 : i32
    %c0_i32_1 = arith.constant 0 : i32
    return %c0_i32, %c0_i32_0 : i32, i32
  }
  func.func @transform_67(%arg0: i32) -> (i32, i32) {
    %c0_i32 = arith.constant 0 : i32
    %c0_i32_0 = arith.constant 0 : i32
    %c0_i32_1 = arith.constant 0 : i32
    return %c0_i32, %c0_i32_0 : i32, i32
  }
  func.func @transform_68(%arg0: i32) -> (i32, i32) {
    %c0_i32 = arith.constant 0 : i32
    %c0_i32_0 = arith.constant 0 : i32
    %c0_i32_1 = arith.constant 0 : i32
    return %c0_i32, %c0_i32_0 : i32, i32
  }
  func.func @transform_69(%arg0: i32) -> (i32, i32) {
    %c0_i32 = arith.constant 0 : i32
    %c0_i32_0 = arith.constant 0 : i32
    %c0_i32_1 = arith.constant 0 : i32
    return %c0_i32, %c0_i32_0 : i32, i32
  }
  func.func @transform_70(%arg0: i32) -> (i32, i32) {
    %c0_i32 = arith.constant 0 : i32
    %c0_i32_0 = arith.constant 0 : i32
    %c0_i32_1 = arith.constant 0 : i32
    return %c0_i32, %c0_i32_0 : i32, i32
  }
  func.func @transform_71(%arg0: i32) -> (i32, i32) {
    %c0_i32 = arith.constant 0 : i32
    %c0_i32_0 = arith.constant 0 : i32
    %c0_i32_1 = arith.constant 0 : i32
    return %c0_i32, %c0_i32_0 : i32, i32
  }
  func.func @transform_72(%arg0: i32) -> (i32, i32) {
    %c0_i32 = arith.constant 0 : i32
    %c0_i32_0 = arith.constant 0 : i32
    %c0_i32_1 = arith.constant 0 : i32
    return %c0_i32, %c0_i32_0 : i32, i32
  }
  func.func @transform_73(%arg0: i32) -> (i32, i32) {
    %c0_i32 = arith.constant 0 : i32
    %c0_i32_0 = arith.constant 0 : i32
    %c0_i32_1 = arith.constant 0 : i32
    return %c0_i32, %c0_i32_0 : i32, i32
  }
  func.func @transform_74(%arg0: i32) -> (i32, i32) {
    %c0_i32 = arith.constant 0 : i32
    %c0_i32_0 = arith.constant 0 : i32
    %c0_i32_1 = arith.constant 0 : i32
    return %c0_i32, %c0_i32_0 : i32, i32
  }
  func.func @transform_75(%arg0: i32) -> (i32, i32) {
    %c0_i32 = arith.constant 0 : i32
    %c0_i32_0 = arith.constant 0 : i32
    %c0_i32_1 = arith.constant 0 : i32
    return %c0_i32, %c0_i32_0 : i32, i32
  }
  func.func @transform_76(%arg0: i32) -> (i32, i32) {
    %c0_i32 = arith.constant 0 : i32
    %c0_i32_0 = arith.constant 0 : i32
    %c0_i32_1 = arith.constant 0 : i32
    return %c0_i32, %c0_i32_0 : i32, i32
  }
  func.func @transform_77(%arg0: i32) -> (i32, i32) {
    %c0_i32 = arith.constant 0 : i32
    %c0_i32_0 = arith.constant 0 : i32
    %c0_i32_1 = arith.constant 0 : i32
    return %c0_i32, %c0_i32_0 : i32, i32
  }
  func.func @transform_78(%arg0: i32) -> (i32, i32) {
    %c0_i32 = arith.constant 0 : i32
    %c0_i32_0 = arith.constant 0 : i32
    %c0_i32_1 = arith.constant 0 : i32
    return %c0_i32, %c0_i32_0 : i32, i32
  }
  func.func @transform_79(%arg0: i32) -> (i32, i32) {
    %c0_i32 = arith.constant 0 : i32
    %c0_i32_0 = arith.constant 0 : i32
    %c0_i32_1 = arith.constant 0 : i32
    return %c0_i32, %c0_i32_0 : i32, i32
  }
  func.func @transform_80(%arg0: i32) -> (i32, i32) {
    %c0_i32 = arith.constant 0 : i32
    %c0_i32_0 = arith.constant 0 : i32
    %c0_i32_1 = arith.constant 0 : i32
    return %c0_i32, %c0_i32_0 : i32, i32
  }
  func.func @transform_81(%arg0: i32) -> (i32, i32) {
    %c0_i32 = arith.constant 0 : i32
    %c0_i32_0 = arith.constant 0 : i32
    %c0_i32_1 = arith.constant 0 : i32
    return %c0_i32, %c0_i32_0 : i32, i32
  }
  func.func @transform_82(%arg0: i32) -> (i32, i32) {
    %c0_i32 = arith.constant 0 : i32
    %c0_i32_0 = arith.constant 0 : i32
    %c0_i32_1 = arith.constant 0 : i32
    return %c0_i32, %c0_i32_0 : i32, i32
  }
  func.func @transform_83(%arg0: i32) -> (i32, i32) {
    %c0_i32 = arith.constant 0 : i32
    %c0_i32_0 = arith.constant 0 : i32
    %c0_i32_1 = arith.constant 0 : i32
    return %c0_i32, %c0_i32_0 : i32, i32
  }
  func.func @transform_84(%arg0: i32) -> (i32, i32) {
    %c0_i32 = arith.constant 0 : i32
    %c0_i32_0 = arith.constant 0 : i32
    %c0_i32_1 = arith.constant 0 : i32
    return %c0_i32, %c0_i32_0 : i32, i32
  }
  func.func @transform_85(%arg0: i32) -> (i32, i32) {
    %c0_i32 = arith.constant 0 : i32
    %c0_i32_0 = arith.constant 0 : i32
    %c0_i32_1 = arith.constant 0 : i32
    return %c0_i32, %c0_i32_0 : i32, i32
  }
  func.func @transform_86(%arg0: i32) -> (i32, i32, i32) {
    %c0_i32 = arith.constant 0 : i32
    %c0_i32_0 = arith.constant 0 : i32
    %c0_i32_1 = arith.constant 0 : i32
    return %arg0, %c0_i32, %c0_i32_0 : i32, i32, i32
  }
  func.func @transform_87(%arg0: i32) -> (i32, i32, i32) {
    %c0_i32 = arith.constant 0 : i32
    %c0_i32_0 = arith.constant 0 : i32
    %c0_i32_1 = arith.constant 0 : i32
    return %arg0, %c0_i32, %c0_i32_0 : i32, i32, i32
  }
}

</mosaic_0001>

<bundles_post_ra>
// kernel: tpu_custom_call.1
= control target key start
LH: loop header
LB: loop body
LE: loop exit
PB: predicated region body
PF: predicated region fallthrough
CT: control target
= control target key end

     0   :  { %s18242_s6 = smov 1   ;;  %s18243_s10 = smov 2   ;;  %s20718_s0 = inlined_call_operand.smem [shape: u32[88], index: -1, kind: input, shape index: {}] }
   0x1   :  { %s18412_s5 = sld [smem:[%s20718_s0]]   ;;  %s18244_s14 = smov 3  }
   0x2   :  { %s18417_s9 = sld [smem:[%s20718_s0 + %s18242_s6]]   ;;  %s18245_s18 = smov 4  }
   0x3   :  { %s18422_s13 = sld [smem:[%s20718_s0 + %s18243_s10]]   ;;  %s18246_s22 = smov 5  }
   0x4   :  { %s18427_s17 = sld [smem:[%s20718_s0 + %s18244_s14]]   ;;  %s18247_s26 = smov 6  }
   0x5   :  { %s18432_s21 = sld [smem:[%s20718_s0 + %s18245_s18]]   ;;  %s18248_s30 = smov 7  }
   0x6   :  { %s18437_s25 = sld [smem:[%s20718_s0 + %s18246_s22]]   ;;  %s18249_s4 = smov 8  }
   0x7   :  { %20831 = sst [smem:[#allocation88_spill]] %s18412_s5  ;;  %s18250_s10 = smov 9  }
   0x8   :  { %20832 = sst [smem:[#allocation89_spill]] %s18417_s9  ;;  %s18251_s15 = smov 10  }
   0x9   :  { %20833 = sst [smem:[#allocation90_spill]] %s18422_s13  ;;  %s18252_s20 = smov 11  }
   0xa   :  { %20834 = sst [smem:[#allocation91_spill]] %s18427_s17  ;;  %s18254_s1 = smov 13  }
   0xb   :  { %20835 = sst [smem:[#allocation92_spill]] %s18432_s21  ;;  %s18255_s7 = smov 14  }
   0xc   :  { %20836 = sst [smem:[#allocation93_spill]] %s18437_s25  ;;  %s18257_s22 = smov 16  }
   0xd   :  { %s18442_s29 = sld [smem:[%s20718_s0 + %s18247_s26]]   ;;  %s18253_s26 = smov 12  }
   0xe   :  { %s18447_s3 = sld [smem:[%s20718_s0 + %s18248_s30]]   ;;  %s18258_s28 = smov 17  }
   0xf   :  { %s18452_s8 = sld [smem:[%s20718_s0 + %s18249_s4]]  }
  0x10   :  { %s18457_s14 = sld [smem:[%s20718_s0 + %s18250_s10]]  }
  0x11   :  { %s18462_s19 = sld [smem:[%s20718_s0 + %s18251_s15]]   ;;  %s18256_s15 = smov 15  }
  0x12   :  { %s18467_s24 = sld [smem:[%s20718_s0 + %s18252_s20]]  }
  0x13   :  { %20837 = sst [smem:[#allocation94_spill]] %s18442_s29 }
  0x14   :  { %20838 = sst [smem:[#allocation95_spill]] %s18447_s3 }
  0x15   :  { %20839 = sst [smem:[#allocation96_spill]] %s18452_s8 }
  0x16   :  { %20840 = sst [smem:[#allocation97_spill]] %s18457_s14 }
  0x17   :  { %20841 = sst [smem:[#allocation98_spill]] %s18462_s19 }
  0x18   :  { %20842 = sst [smem:[#allocation99_spill]] %s18467_s24 }
  0x19   :  { %s18472_s30 = sld [smem:[%s20718_s0 + %s18253_s26]]  }
  0x1a   :  { %s18477_s6 = sld [smem:[%s20718_s0 + %s18254_s1]]  }
  0x1b   :  { %s18482_s12 = sld [smem:[%s20718_s0 + %s18255_s7]]   ;;  %s18259_s7 = smov 18  }
  0x1c   :  { %s18487_s20 = sld [smem:[%s20718_s0 + %s18256_s15]]   ;;  %s18260_s15 = smov 19  }
  0x1d   :  { %s18492_s27 = sld [smem:[%s20718_s0 + %s18257_s22]]   ;;  %s18261_s22 = smov 20  }
  0x1e   :  { %s18497_s4 = sld [smem:[%s20718_s0 + %s18258_s28]]   ;;  %s18262_s28 = smov 21  }
  0x1f   :  { %20843 = sst [smem:[#allocation100_spill]] %s18472_s30 }
  0x20   :  { %20844 = sst [smem:[#allocation101_spill]] %s18477_s6 }
  0x21   :  { %20845 = sst [smem:[#allocation102_spill]] %s18482_s12 }
  0x22   :  { %20846 = sst [smem:[#allocation103_spill]] %s18487_s20 }
  0x23   :  { %20847 = sst [smem:[#allocation104_spill]] %s18492_s27 }
  0x24   :  { %20848 = sst [smem:[#allocation105_spill]] %s18497_s4 }
  0x25   :  { %s18502_s6 = sld [smem:[%s20718_s0 + %s18259_s7]]   ;;  %s18263_s7 = smov 22  }
  0x26   :  { %s18507_s24 = sld [smem:[%s20718_s0 + %s18260_s15]]   ;;  %s18264_s15 = smov 23  }
  0x27   :  { %s18512_s12 = sld [smem:[%s20718_s0 + %s18261_s22]]   ;;  %s18265_s22 = smov 24  }
  0x28   :  { %s18517_s30 = sld [smem:[%s20718_s0 + %s18262_s28]]   ;;  %s18266_s28 = smov 25  }
  0x29   :  { %s18522_s3 = sld [smem:[%s20718_s0 + %s18263_s7]]   ;;  %s18267_s7 = smov 26  }
  0x2a   :  { %s18527_s8 = sld [smem:[%s20718_s0 + %s18264_s15]]   ;;  %s18268_s15 = smov 27  }
  0x2b   :  { %20849 = sst [smem:[#allocation106_spill]] %s18502_s6 }
  0x2c   :  { %20850 = sst [smem:[#allocation107_spill]] %s18507_s24 }
  0x2d   :  { %20851 = sst [smem:[#allocation108_spill]] %s18512_s12 }
  0x2e   :  { %20852 = sst [smem:[#allocation109_spill]] %s18517_s30 }
  0x2f   :  { %20853 = sst [smem:[#allocation110_spill]] %s18522_s3 }
  0x30   :  { %20854 = sst [smem:[#allocation111_spill]] %s18527_s8 }
  0x31   :  { %s18532_s14 = sld [smem:[%s20718_s0 + %s18265_s22]]   ;;  %s18269_s22 = smov 28  }
  0x32   :  { %s18537_s20 = sld [smem:[%s20718_s0 + %s18266_s28]]   ;;  %s18270_s28 = smov 29  }
  0x33   :  { %s18542_s19 = sld [smem:[%s20718_s0 + %s18267_s7]]   ;;  %s18271_s7 = smov 30  }
  0x34   :  { %s18547_s25 = sld [smem:[%s20718_s0 + %s18268_s15]]   ;;  %s18272_s15 = smov 31  }
  0x35   :  { %s18552_s29 = sld [smem:[%s20718_s0 + %s18269_s22]]   ;;  %s18273_s22 = smov 32  }
  0x36   :  { %s18557_s3 = sld [smem:[%s20718_s0 + %s18270_s28]]   ;;  %s18274_s28 = smov 33  }
  0x37   :  { %20855 = sst [smem:[#allocation112_spill]] %s18532_s14 }
  0x38   :  { %20856 = sst [smem:[#allocation113_spill]] %s18537_s20 }
  0x39   :  { %20857 = sst [smem:[#allocation114_spill]] %s18542_s19 }
  0x3a   :  { %20858 = sst [smem:[#allocation115_spill]] %s18547_s25 }
  0x3b   :  { %20859 = sst [smem:[#allocation116_spill]] %s18552_s29 }
  0x3c   :  { %20860 = sst [smem:[#allocation117_spill]] %s18557_s3 }
  0x3d   :  { %s18562_s19 = sld [smem:[%s20718_s0 + %s18271_s7]]   ;;  %s18275_s7 = smov 34  }
  0x3e   :  { %s18567_s17 = sld [smem:[%s20718_s0 + %s18272_s15]]   ;;  %s18276_s15 = smov 35  }
  0x3f   :  { %s18572_s29 = sld [smem:[%s20718_s0 + %s18273_s22]]   ;;  %s18277_s22 = smov 36  }
  0x40   :  { %s18577_s14 = sld [smem:[%s20718_s0 + %s18274_s28]]   ;;  %s18278_s28 = smov 37  }
  0x41   :  { %s18597_s13 = sld [smem:[%s20718_s0 + %s18278_s28]]   ;;  %s18282_s28 = smov 41  }
  0x42   :  { %s18617_s9 = sld [smem:[%s20718_s0 + %s18282_s28]]   ;;  %s18286_s28 = smov 45  }
  0x43   :  { %20861 = sst [smem:[#allocation118_spill]] %s18562_s19 }
  0x44   :  { %20862 = sst [smem:[#allocation119_spill]] %s18567_s17 }
  0x45   :  { %20863 = sst [smem:[#allocation120_spill]] %s18572_s29 }
  0x46   :  { %20864 = sst [smem:[#allocation121_spill]] %s18577_s14 }
  0x47   :  { %s18582_s19 = sld [smem:[%s20718_s0 + %s18275_s7]]   ;;  %s18279_s7 = smov 38  }
  0x48   :  { %s18587_s17 = sld [smem:[%s20718_s0 + %s18276_s15]]   ;;  %s18280_s15 = smov 39  }
  0x49   :  { %s18592_s29 = sld [smem:[%s20718_s0 + %s18277_s22]]   ;;  %s18281_s22 = smov 40  }
  0x4a   :  { %20868 = sst [smem:[#allocation125_spill]] %s18597_s13 }
  0x4b   :  { %s18607_s21 = sld [smem:[%s20718_s0 + %s18280_s15]]   ;;  %s18284_s15 = smov 43  }
  0x4c   :  { %s18612_s5 = sld [smem:[%s20718_s0 + %s18281_s22]]   ;;  %s18285_s22 = smov 44  }
  0x4d   :  { %20865 = sst [smem:[#allocation122_spill]] %s18582_s19 }
  0x4e   :  { %20866 = sst [smem:[#allocation123_spill]] %s18587_s17 }
  0x4f   :  { %20867 = sst [smem:[#allocation124_spill]] %s18592_s29 }
  0x50   :  { %s18602_s19 = sld [smem:[%s20718_s0 + %s18279_s7]]   ;;  %s18283_s7 = smov 42  }
  0x51   :  { %20870 = sst [smem:[#allocation127_spill]] %s18607_s21 }
  0x52   :  { %20871 = sst [smem:[#allocation128_spill]] %s18612_s5 }
  0x53   :  { %20872 = sst [smem:[#allocation129_spill]] %s18617_s9 }
  0x54   :  { %s18627_s29 = sld [smem:[%s20718_s0 + %s18284_s15]]   ;;  %s18288_s15 = smov 47  }
  0x55   :  { %s18632_s5 = sld [smem:[%s20718_s0 + %s18285_s22]]   ;;  %s18289_s22 = smov 48  }
  0x56   :  { %20869 = sst [smem:[#allocation126_spill]] %s18602_s19 }
  0x57   :  { %s18622_s19 = sld [smem:[%s20718_s0 + %s18283_s7]]   ;;  %s18287_s7 = smov 46  }
  0x58   :  { %s18637_s14 = sld [smem:[%s20718_s0 + %s18286_s28]]   ;;  %s18290_s28 = smov 49  }
  0x59   :  { %s18657_s25 = sld [smem:[%s20718_s0 + %s18290_s28]]   ;;  %s18294_s28 = smov 53  }
  0x5a   :  { %20874 = sst [smem:[#allocation131_spill]] %s18627_s29 }
  0x5b   :  { %20875 = sst [smem:[#allocation132_spill]] %s18632_s5 }
  0x5c   :  { %s18647_s29 = sld [smem:[%s20718_s0 + %s18288_s15]]   ;;  %s18292_s15 = smov 51  }
  0x5d   :  { %20873 = sst [smem:[#allocation130_spill]] %s18622_s19 }
  0x5e   :  { %20876 = sst [smem:[#allocation133_spill]] %s18637_s14 }
  0x5f   :  { %s18642_s19 = sld [smem:[%s20718_s0 + %s18287_s7]]   ;;  %s18291_s7 = smov 50  }
  0x60   :  { %s18652_s5 = sld [smem:[%s20718_s0 + %s18289_s22]]   ;;  %s18293_s22 = smov 52  }
  0x61   :  { %20880 = sst [smem:[#allocation137_spill]] %s18657_s25 }
  0x62   :  { %20878 = sst [smem:[#allocation135_spill]] %s18647_s29 }
  0x63   :  { %s18667_s29 = sld [smem:[%s20718_s0 + %s18292_s15]]   ;;  %s18296_s15 = smov 55  }
  0x64   :  { %s18672_s8 = sld [smem:[%s20718_s0 + %s18293_s22]]   ;;  %s18297_s22 = smov 56  }
  0x65   :  { %20877 = sst [smem:[#allocation134_spill]] %s18642_s19 }
  0x66   :  { %20879 = sst [smem:[#allocation136_spill]] %s18652_s5 }
  0x67   :  { %s18662_s19 = sld [smem:[%s20718_s0 + %s18291_s7]]   ;;  %s18295_s7 = smov 54  }
  0x68   :  { %s18677_s25 = sld [smem:[%s20718_s0 + %s18294_s28]]   ;;  %s18298_s28 = smov 57  }
  0x69   :  { %20882 = sst [smem:[#allocation139_spill]] %s18667_s29 }
  0x6a   :  { %20883 = sst [smem:[#allocation140_spill]] %s18672_s8 }
  0x6b   :  { %s18687_s12 = sld [smem:[%s20718_s0 + %s18296_s15]]   ;;  %s18300_s15 = smov 59  }
  0x6c   :  { %s18692_s8 = sld [smem:[%s20718_s0 + %s18297_s22]]   ;;  %s18301_s22 = smov 60  }
  0x6d   :  { %20881 = sst [smem:[#allocation138_spill]] %s18662_s19 }
  0x6e   :  { %20884 = sst [smem:[#allocation141_spill]] %s18677_s25 }
  0x6f   :  { %s18682_s19 = sld [smem:[%s20718_s0 + %s18295_s7]]   ;;  %s18299_s7 = smov 58  }
  0x70   :  { %s18697_s25 = sld [smem:[%s20718_s0 + %s18298_s28]]   ;;  %s18302_s28 = smov 61  }
  0x71   :  { %20886 = sst [smem:[#allocation143_spill]] %s18687_s12 }
  0x72   :  { %20887 = sst [smem:[#allocation144_spill]] %s18692_s8 }
  0x73   :  { %s18707_s12 = sld [smem:[%s20718_s0 + %s18300_s15]]   ;;  %s18304_s15 = smov 63  }
  0x74   :  { %s18712_s8 = sld [smem:[%s20718_s0 + %s18301_s22]]   ;;  %s18305_s22 = smov 64  }
  0x75   :  { %20885 = sst [smem:[#allocation142_spill]] %s18682_s19 }
  0x76   :  { %20888 = sst [smem:[#allocation145_spill]] %s18697_s25 }
  0x77   :  { %s18702_s19 = sld [smem:[%s20718_s0 + %s18299_s7]]   ;;  %s18303_s7 = smov 62  }
  0x78   :  { %s18717_s25 = sld [smem:[%s20718_s0 + %s18302_s28]]   ;;  %s18306_s28 = smov 65  }
  0x79   :  { %20890 = sst [smem:[#allocation147_spill]] %s18707_s12 }
  0x7a   :  { %20891 = sst [smem:[#allocation148_spill]] %s18712_s8 }
  0x7b   :  { %s18722_s6 = sld [smem:[%s20718_s0 + %s18303_s7]]   ;;  %s18307_s7 = smov 66  }
  0x7c   :  { %s18727_s12 = sld [smem:[%s20718_s0 + %s18304_s15]]   ;;  %s18308_s15 = smov 67  }
  0x7d   :  { %20889 = sst [smem:[#allocation146_spill]] %s18702_s19 }
  0x7e   :  { %20892 = sst [smem:[#allocation149_spill]] %s18717_s25 }
  0x7f   :  { %s18732_s8 = sld [smem:[%s20718_s0 + %s18305_s22]]   ;;  %s18309_s22 = smov 68  }
  0x80   :  { %s18737_s27 = sld [smem:[%s20718_s0 + %s18306_s28]]   ;;  %s18310_s28 = smov 69  }
  0x81   :  { %20893 = sst [smem:[#allocation150_spill]] %s18722_s6 }
  0x82   :  { %20894 = sst [smem:[#allocation151_spill]] %s18727_s12 }
  0x83   :  { %s18742_s6 = sld [smem:[%s20718_s0 + %s18307_s7]]   ;;  %s18311_s7 = smov 70  }
  0x84   :  { %s18747_s12 = sld [smem:[%s20718_s0 + %s18308_s15]]   ;;  %s18312_s15 = smov 71  }
  0x85   :  { %20895 = sst [smem:[#allocation152_spill]] %s18732_s8 }
  0x86   :  { %20896 = sst [smem:[#allocation153_spill]] %s18737_s27 }
  0x87   :  { %s18752_s8 = sld [smem:[%s20718_s0 + %s18309_s22]]   ;;  %s18313_s22 = smov 72  }
  0x88   :  { %s18757_s27 = sld [smem:[%s20718_s0 + %s18310_s28]]   ;;  %s18314_s28 = smov 73  }
  0x89   :  { %20897 = sst [smem:[#allocation154_spill]] %s18742_s6 }
  0x8a   :  { %20898 = sst [smem:[#allocation155_spill]] %s18747_s12 }
  0x8b   :  { %s18762_s6 = sld [smem:[%s20718_s0 + %s18311_s7]]   ;;  %s18315_s7 = smov 74  }
  0x8c   :  { %s18767_s12 = sld [smem:[%s20718_s0 + %s18312_s15]]   ;;  %s18316_s15 = smov 75  }
  0x8d   :  { %20899 = sst [smem:[#allocation156_spill]] %s18752_s8 }
  0x8e   :  { %20900 = sst [smem:[#allocation157_spill]] %s18757_s27 }
  0x8f   :  { %s18772_s8 = sld [smem:[%s20718_s0 + %s18313_s22]]   ;;  %s18317_s22 = smov 76  }
  0x90   :  { %s18777_s27 = sld [smem:[%s20718_s0 + %s18314_s28]]   ;;  %s18318_s28 = smov 77  }
  0x91   :  { %20901 = sst [smem:[#allocation158_spill]] %s18762_s6 }
  0x92   :  { %20902 = sst [smem:[#allocation159_spill]] %s18767_s12 }
  0x93   :  { %s18782_s6 = sld [smem:[%s20718_s0 + %s18315_s7]]   ;;  %s18319_s7 = smov 78  }
  0x94   :  { %s18787_s12 = sld [smem:[%s20718_s0 + %s18316_s15]]   ;;  %s18320_s15 = smov 79  }
  0x95   :  { %20903 = sst [smem:[#allocation160_spill]] %s18772_s8 }
  0x96   :  { %20904 = sst [smem:[#allocation161_spill]] %s18777_s27 }
  0x97   :  { %s18792_s8 = sld [smem:[%s20718_s0 + %s18317_s22]]   ;;  %s18321_s22 = smov 80  }
  0x98   :  { %s18797_s27 = sld [smem:[%s20718_s0 + %s18318_s28]]   ;;  %s18322_s28 = smov 81  }
  0x99   :  { %20905 = sst [smem:[#allocation162_spill]] %s18782_s6 }
  0x9a   :  { %20906 = sst [smem:[#allocation163_spill]] %s18787_s12 }
  0x9b   :  { %s18802_s6 = sld [smem:[%s20718_s0 + %s18319_s7]]   ;;  %s18323_s7 = smov 82  }
  0x9c   :  { %s18807_s12 = sld [smem:[%s20718_s0 + %s18320_s15]]   ;;  %s18324_s15 = smov 83  }
  0x9d   :  { %20907 = sst [smem:[#allocation164_spill]] %s18792_s8 }
  0x9e   :  { %20908 = sst [smem:[#allocation165_spill]] %s18797_s27 }
  0x9f   :  { %s18812_s8 = sld [smem:[%s20718_s0 + %s18321_s22]]   ;;  %s18325_s22 = smov 84  }
  0xa0   :  { %s18817_s27 = sld [smem:[%s20718_s0 + %s18322_s28]]   ;;  %s18326_s28 = smov 85  }
  0xa1   :  { %20909 = sst [smem:[#allocation166_spill]] %s18802_s6 }
  0xa2   :  { %20910 = sst [smem:[#allocation167_spill]] %s18807_s12 }
  0xa3   :  { %s18822_s6 = sld [smem:[%s20718_s0 + %s18323_s7]]   ;;  %s18327_s7 = smov 86  }
  0xa4   :  { %s18827_s12 = sld [smem:[%s20718_s0 + %s18324_s15]]   ;;  %s18328_s15 = smov 87  }
  0xa5   :  { %20911 = sst [smem:[#allocation168_spill]] %s18812_s8 }
  0xa6   :  { %20912 = sst [smem:[#allocation169_spill]] %s18817_s27 }
  0xa7   :  { %s18832_s8 = sld [smem:[%s20718_s0 + %s18325_s22]]  }
  0xa8   :  { %s18837_s27 = sld [smem:[%s20718_s0 + %s18326_s28]]  }
  0xa9   :  { %20913 = sst [smem:[#allocation170_spill]] %s18822_s6 }
  0xaa   :  { %20914 = sst [smem:[#allocation171_spill]] %s18827_s12 }
  0xab   :  { %s18842_s6 = sld [smem:[%s20718_s0 + %s18327_s7]]  }
  0xac   :  { %s18847_s12 = sld [smem:[%s20718_s0 + %s18328_s15]]  }
  0xad   :  { %20915 = sst [smem:[#allocation172_spill]] %s18832_s8 }
  0xae   :  { %20916 = sst [smem:[#allocation173_spill]] %s18837_s27 }
  0xb1   :  { %20917 = sst [smem:[#allocation174_spill]] %s18842_s6 }
  0xb2   :  { %20918 = sst [smem:[#allocation175_spill]] %s18847_s12 }
  0xb3   :  { %181 = vsyncpa [#allocation3], 0 }
  0xb4   :  { %182 = vsyncpa [#allocation5], 0 }
  0xb5   :  { %183 = vsyncpa [#allocation8], 0 }
  0xb6   :  { %184 = vsyncpa [#allocation11], 0 }
  0xb7   :  { %185 = vsyncpa [#allocation14], 0 }
  0xb8   :  { %186 = vsyncpa [#allocation17], 0 }
  0xb9   :  { %187 = vsyncpa [#allocation20], 0 }
  0xba   :  { %188 = vsyncpa [#allocation23], 0 }
  0xbb   :  { %189 = vsyncpa [#allocation26], 0 }
  0xbc   :  { %190 = vsyncpa [#allocation29], 0 }
  0xbd   :  { %191 = vsyncpa [#allocation32], 0 }
  0xbe   :  { %192 = vsyncpa [#allocation35], 0 }
  0xbf   :  { %193 = vsyncpa [#allocation38], 0 }
  0xc0   :  { %194 = vsyncpa [#allocation41], 0 }
  0xc1   :  { %195 = vsyncpa [#allocation44], 0 }
  0xc2   :  { %196 = vsyncpa [#allocation47], 0 }
  0xc3   :  { %197 = vsyncpa [#allocation50], 0 }
  0xc4   :  { %198 = vsyncpa [#allocation53], 0 }
  0xc5   :  { %199 = vsyncpa [#allocation56], 0 }
  0xc6   :  { %200 = vsyncpa [#allocation59], 0 }
  0xc7   :  { %201 = vsyncpa [#allocation62], 0 }
  0xc8   :  { %202 = vsyncpa [#allocation65], 0  ;;  %s18849_s0 = smov 0  }
  0xc9 LB: > { %20919 = sst [smem:[#allocation176_spill]] %s18240_s0  ;;  %s18855_s22 = sadd.s32 4294967295, %s18240_s0   ;;  %s18240_s0 = sphi %s18849_s0, %s208_s0  }
  0xca   : > { %p15029_p0 = scmp.ge.s32.totalorder %s18240_s0, 1  ;;  %p2086_p1 = scmp.lt.s32.totalorder %s18240_s0, 3 }
  0xcc   : > { %p18859_p2 = pnand %p15029_p0, %p2086_p1 }
  0xcd   : > { %p16664_p3 = scmp.eq.s32.totalorder (!%p18859_p2), %s18855_s22, 0  ;;  %s18329_s26 = smov (!%p18859_p2), [#allocation4]  }
  0xce   : > { %2090 = sbr.rel (%p18859_p2) target bundleno = 674 (0x2a2), region = 12  ;;  %s2149_s28 = sshll.u32 (!%p18859_p2), %s18329_s26, 4  ;;  %s2150_s28 = int_to_ptr.vmem [resolvable:$true] %s2149_s28 }
  0xcf   : > { %s18330_s1 = smov (!%p18859_p2), [#allocation7]   ;;  %s17148_s7 = scalar_lea.vmem (!%p18859_p2), %s2150_s28, 16 }
  0xd0   : > { %s2171_s2 = sshll.u32 (!%p18859_p2), %s18330_s1, 4  ;;  %p17149_p4 = scmp.ne.s32.totalorder (!%p18859_p2), %s2150_s28, %s17148_s7  ;;  %s2172_s2 = int_to_ptr.vmem [resolvable:$true] %s2171_s2 }
  0xd1   : > { %s17154_s10 = scalar_lea.vmem (!%p18859_p2), %s2150_s28, 32  ;;  %p17155_p7 = scmp.lt.s32.totalorder (!%p18859_p2), %s2150_s28, %s2150_s28 }
  0xd2   : > { %p17150_p5 = pnand (!%p18859_p2), %p17149_p4, %p16664_p3  ;;  %p17156_p8 = scmp.lt.s32.totalorder (!%p18859_p2), %s17154_s10, %s17148_s7 }
  0xd4   : > { %p17151_p6 = pneg %p17150_p5  ;;  %p17157_p9 = por %p17156_p8, %p17155_p7 }
  0xd6   : > { %p17158_p10 = pnand %p17157_p9, %p17151_p6 }
  0xd8   : > { %17161 = shalt.err (!%p17158_p10)
}
  0xd9   : > { %s20921_s4 = sld [smem:[#allocation105_spill]]  ;;  %s17172_s11 = scalar_lea.vmem %s2172_s2, 16 }
  0xda   : > { %p17173_p11 = scmp.ne.s32.totalorder %s2172_s2, %s17172_s11  ;;  %s17178_s15 = scalar_lea.vmem %s2172_s2, 32 }
  0xdb   : > { %p17179_p0 = scmp.lt.s32.totalorder %s2172_s2, %s2172_s2  ;;  %p17180_p1 = scmp.lt.s32.totalorder %s17178_s15, %s17172_s11 }
  0xdc   : > { %p17174_p12 = pnand %p17173_p11, %p16664_p3 }
  0xdd   : > { %p17181_p4 = por %p17180_p1, %p17179_p0 }
  0xde   : > { %p17175_p13 = pneg %p17174_p12 }
  0xdf   : > { %16499 = dma.hbm_to_vmem [thread:$0]  (%p16664_p3), %s20921_s4, 16, %s2150_s28, [#allocation5]  }
  0xe0   : > { %p17182_p5 = pnand %p17181_p4, %p17175_p13 }
  0xe2   : > { %17185 = shalt.err (!%p17182_p5)
}
  0xe3   : > { %s20922_s24 = sld [smem:[#allocation107_spill]]  ;;  %s18331_s16 = smov [#allocation10]  }
  0xe4   : > { %s2193_s18 = sshll.u32 %s18331_s16, 4  ;;  %s18332_s26 = smov [#allocation13]   ;;  %s2194_s18 = int_to_ptr.vmem [resolvable:$true] %s2193_s18 }
  0xe5   : > { %s2221_s28 = sshll.u32 %s18332_s26, 4  ;;  %s17196_s1 = scalar_lea.vmem %s2194_s18, 16  ;;  %s2222_s28 = int_to_ptr.vmem [resolvable:$true] %s2221_s28 }
  0xe6   : > { %p17197_p6 = scmp.ne.s32.totalorder %s2194_s18, %s17196_s1  ;;  %s17202_s7 = scalar_lea.vmem %s2194_s18, 32 }
  0xe7   : > { %p17203_p9 = scmp.lt.s32.totalorder %s2194_s18, %s2194_s18  ;;  %p17204_p10 = scmp.lt.s32.totalorder %s17202_s7, %s17196_s1 }
  0xe8   : > { %p17198_p7 = pnand %p17197_p6, %p16664_p3 }
  0xe9   : > { %16503 = dma.hbm_to_vmem [thread:$0]  (%p16664_p3), %s20922_s24, 16, %s2172_s2, [#allocation8]  }
  0xea   : > { %p17199_p8 = pneg %p17198_p7  ;;  %p17205_p11 = por %p17204_p10, %p17203_p9 }
  0xec   : > { %p17206_p12 = pnand %p17205_p11, %p17199_p8 }
  0xee   : > { %17209 = shalt.err (!%p17206_p12)
}
  0xef   : > { %s20923_s30 = sld [smem:[#allocation109_spill]]  ;;  %s17220_s2 = scalar_lea.vmem %s2222_s28, 16 }
  0xf0   : > { %p17221_p13 = scmp.ne.s32.totalorder %s2222_s28, %s17220_s2  ;;  %s17226_s10 = scalar_lea.vmem %s2222_s28, 32 }
  0xf1   : > { %p17227_p4 = scmp.lt.s32.totalorder %s2222_s28, %s2222_s28  ;;  %p17228_p5 = scmp.lt.s32.totalorder %s17226_s10, %s17220_s2 }
  0xf2   : > { %p17222_p0 = pnand %p17221_p13, %p16664_p3 }
  0xf3   : > { %p17229_p6 = por %p17228_p5, %p17227_p4 }
  0xf4   : > { %p17223_p1 = pneg %p17222_p0 }
  0xf5   : > { %16507 = dma.hbm_to_vmem [thread:$0]  (%p16664_p3), %s20923_s30, 16, %s2194_s18, [#allocation11]  }
  0xf6   : > { %p17230_p7 = pnand %p17229_p6, %p17223_p1 }
  0xf8   : > { %17233 = shalt.err (!%p17230_p7)
}
  0xf9   : > { %s20924_s20 = sld [smem:[#allocation113_spill]]  ;;  %s18333_s11 = smov [#allocation16]  }
  0xfa   : > { %s2249_s15 = sshll.u32 %s18333_s11, 4  ;;  %s18334_s16 = smov [#allocation19]   ;;  %s2250_s15 = int_to_ptr.vmem [resolvable:$true] %s2249_s15 }
  0xfb   : > { %s2283_s18 = sshll.u32 %s18334_s16, 4  ;;  %s17244_s26 = scalar_lea.vmem %s2250_s15, 16  ;;  %s2284_s18 = int_to_ptr.vmem [resolvable:$true] %s2283_s18 }
  0xfc   : > { %p17245_p8 = scmp.ne.s32.totalorder %s2250_s15, %s17244_s26  ;;  %s17250_s1 = scalar_lea.vmem %s2250_s15, 32 }
  0xfd   : > { %p17251_p11 = scmp.lt.s32.totalorder %s2250_s15, %s2250_s15  ;;  %p17252_p12 = scmp.lt.s32.totalorder %s17250_s1, %s17244_s26 }
  0xfe   : > { %p17246_p9 = pnand %p17245_p8, %p16664_p3 }
  0xff   : > { %16511 = dma.hbm_to_vmem [thread:$0]  (%p16664_p3), %s20924_s20, 16, %s2222_s28, [#allocation14]  }
 0x100   : > { %p17247_p10 = pneg %p17246_p9  ;;  %p17253_p13 = por %p17252_p12, %p17251_p11 }
 0x102   : > { %p17254_p0 = pnand %p17253_p13, %p17247_p10 }
 0x104   : > { %17257 = shalt.err (!%p17254_p0)
}
 0x105   : > { %s20925_s3 = sld [smem:[#allocation117_spill]]  ;;  %s17268_s28 = scalar_lea.vmem %s2284_s18, 16 }
 0x106   : > { %p17269_p1 = scmp.ne.s32.totalorder %s2284_s18, %s17268_s28  ;;  %s17274_s7 = scalar_lea.vmem %s2284_s18, 32 }
 0x107   : > { %p17275_p6 = scmp.lt.s32.totalorder %s2284_s18, %s2284_s18  ;;  %p17276_p7 = scmp.lt.s32.totalorder %s17274_s7, %s17268_s28 }
 0x108   : > { %p17270_p4 = pnand %p17269_p1, %p16664_p3 }
 0x109   : > { %p17277_p8 = por %p17276_p7, %p17275_p6 }
 0x10a   : > { %p17271_p5 = pneg %p17270_p4 }
 0x10b   : > { %16515 = dma.hbm_to_vmem [thread:$0]  (%p16664_p3), %s20925_s3, 16, %s2250_s15, [#allocation17]  }
 0x10c   : > { %p17278_p9 = pnand %p17277_p8, %p17271_p5 }
 0x10e   : > { %17281 = shalt.err (!%p17278_p9)
}
 0x10f   : > { %s20926_s17 = sld [smem:[#allocation123_spill]]  ;;  %s18335_s2 = smov [#allocation22]  }
 0x110   : > { %s2305_s10 = sshll.u32 %s18335_s2, 4  ;;  %s18336_s11 = smov [#allocation25]   ;;  %s2306_s10 = int_to_ptr.vmem [resolvable:$true] %s2305_s10 }
 0x111   : > { %s2327_s15 = sshll.u32 %s18336_s11, 4  ;;  %s17292_s16 = scalar_lea.vmem %s2306_s10, 16  ;;  %s2328_s15 = int_to_ptr.vmem [resolvable:$true] %s2327_s15 }
 0x112   : > { %p17293_p10 = scmp.ne.s32.totalorder %s2306_s10, %s17292_s16  ;;  %s17298_s26 = scalar_lea.vmem %s2306_s10, 32 }
 0x113   : > { %p17299_p13 = scmp.lt.s32.totalorder %s2306_s10, %s2306_s10  ;;  %p17300_p0 = scmp.lt.s32.totalorder %s17298_s26, %s17292_s16 }
 0x114   : > { %p17294_p11 = pnand %p17293_p10, %p16664_p3 }
 0x115   : > { %16519 = dma.hbm_to_vmem [thread:$0]  (%p16664_p3), %s20926_s17, 16, %s2284_s18, [#allocation20]  }
 0x116   : > { %p17295_p12 = pneg %p17294_p11  ;;  %p17301_p1 = por %p17300_p0, %p17299_p13 }
 0x118   : > { %p17302_p4 = pnand %p17301_p1, %p17295_p12 }
 0x11a   : > { %17305 = shalt.err (!%p17302_p4)
}
 0x11b   : > { %s20927_s13 = sld [smem:[#allocation125_spill]]  ;;  %s17316_s18 = scalar_lea.vmem %s2328_s15, 16 }
 0x11c   : > { %p17317_p5 = scmp.ne.s32.totalorder %s2328_s15, %s17316_s18  ;;  %s17322_s1 = scalar_lea.vmem %s2328_s15, 32 }
 0x11d   : > { %p17323_p8 = scmp.lt.s32.totalorder %s2328_s15, %s2328_s15  ;;  %p17324_p9 = scmp.lt.s32.totalorder %s17322_s1, %s17316_s18 }
 0x11e   : > { %p17318_p6 = pnand %p17317_p5, %p16664_p3 }
 0x11f   : > { %p17325_p10 = por %p17324_p9, %p17323_p8 }
 0x120   : > { %p17319_p7 = pneg %p17318_p6 }
 0x121   : > { %16523 = dma.hbm_to_vmem [thread:$0]  (%p16664_p3), %s20927_s13, 16, %s2306_s10, [#allocation23]  }
 0x122   : > { %p17326_p11 = pnand %p17325_p10, %p17319_p7 }
 0x124   : > { %17329 = shalt.err (!%p17326_p11)
}
 0x125   : > { %s20928_s21 = sld [smem:[#allocation127_spill]]  ;;  %s18337_s28 = smov [#allocation28]  }
 0x126   : > { %s2349_s7 = sshll.u32 %s18337_s28, 4  ;;  %s18338_s2 = smov [#allocation31]   ;;  %s2350_s7 = int_to_ptr.vmem [resolvable:$true] %s2349_s7 }
 0x127   : > { %s2377_s10 = sshll.u32 %s18338_s2, 4  ;;  %s17340_s11 = scalar_lea.vmem %s2350_s7, 16  ;;  %s2378_s10 = int_to_ptr.vmem [resolvable:$true] %s2377_s10 }
 0x128   : > { %p17341_p12 = scmp.ne.s32.totalorder %s2350_s7, %s17340_s11  ;;  %s17346_s16 = scalar_lea.vmem %s2350_s7, 32 }
 0x129   : > { %p17347_p1 = scmp.lt.s32.totalorder %s2350_s7, %s2350_s7  ;;  %p17348_p4 = scmp.lt.s32.totalorder %s17346_s16, %s17340_s11 }
 0x12a   : > { %p17342_p13 = pnand %p17341_p12, %p16664_p3 }
 0x12b   : > { %16527 = dma.hbm_to_vmem [thread:$0]  (%p16664_p3), %s20928_s21, 16, %s2328_s15, [#allocation26]  }
 0x12c   : > { %p17343_p0 = pneg %p17342_p13  ;;  %p17349_p5 = por %p17348_p4, %p17347_p1 }
 0x12e   : > { %p17350_p6 = pnand %p17349_p5, %p17343_p0 }
 0x130   : > { %17353 = shalt.err (!%p17350_p6)
}
 0x131   : > { %s20929_s9 = sld [smem:[#allocation129_spill]]  ;;  %s17364_s15 = scalar_lea.vmem %s2378_s10, 16 }
 0x132   : > { %p17365_p7 = scmp.ne.s32.totalorder %s2378_s10, %s17364_s15  ;;  %s17370_s26 = scalar_lea.vmem %s2378_s10, 32 }
 0x133   : > { %p17371_p10 = scmp.lt.s32.totalorder %s2378_s10, %s2378_s10  ;;  %p17372_p11 = scmp.lt.s32.totalorder %s17370_s26, %s17364_s15 }
 0x134   : > { %p17366_p8 = pnand %p17365_p7, %p16664_p3 }
 0x135   : > { %p17373_p12 = por %p17372_p11, %p17371_p10 }
 0x136   : > { %p17367_p9 = pneg %p17366_p8 }
 0x137   : > { %16531 = dma.hbm_to_vmem [thread:$0]  (%p16664_p3), %s20929_s9, 16, %s2350_s7, [#allocation29]  }
 0x138   : > { %p17374_p13 = pnand %p17373_p12, %p17367_p9 }
 0x13a   : > { %17377 = shalt.err (!%p17374_p13)
}
 0x13b   : > { %s20930_s14 = sld [smem:[#allocation133_spill]]  ;;  %s18339_s18 = smov [#allocation34]  }
 0x13c   : > { %s2402_s1 = sshll.u32 %s18339_s18, 4  ;;  %s18340_s28 = smov [#allocation37]   ;;  %s2403_s1 = int_to_ptr.vmem [resolvable:$true] %s2402_s1 }
 0x13d   : > { %s2427_s7 = sshll.u32 %s18340_s28, 4  ;;  %s17388_s2 = scalar_lea.vmem %s2403_s1, 16  ;;  %s2428_s7 = int_to_ptr.vmem [resolvable:$true] %s2427_s7 }
 0x13e   : > { %p17389_p0 = scmp.ne.s32.totalorder %s2403_s1, %s17388_s2  ;;  %s17394_s11 = scalar_lea.vmem %s2403_s1, 32 }
 0x13f   : > { %p17395_p5 = scmp.lt.s32.totalorder %s2403_s1, %s2403_s1  ;;  %p17396_p6 = scmp.lt.s32.totalorder %s17394_s11, %s17388_s2 }
 0x140   : > { %p17390_p1 = pnand %p17389_p0, %p16664_p3 }
 0x141   : > { %16535 = dma.hbm_to_vmem [thread:$0]  (%p16664_p3), %s20930_s14, 16, %s2378_s10, [#allocation32]  }
 0x142   : > { %p17391_p4 = pneg %p17390_p1  ;;  %p17397_p7 = por %p17396_p6, %p17395_p5 }
 0x144   : > { %p17398_p8 = pnand %p17397_p7, %p17391_p4 }
 0x146   : > { %17401 = shalt.err (!%p17398_p8)
}
 0x147   : > { %s20931_s5 = sld [smem:[#allocation136_spill]]  ;;  %s17412_s10 = scalar_lea.vmem %s2428_s7, 16 }
 0x148   : > { %p17413_p9 = scmp.ne.s32.totalorder %s2428_s7, %s17412_s10  ;;  %s17418_s16 = scalar_lea.vmem %s2428_s7, 32 }
 0x149   : > { %p17419_p12 = scmp.lt.s32.totalorder %s2428_s7, %s2428_s7  ;;  %p17420_p13 = scmp.lt.s32.totalorder %s17418_s16, %s17412_s10 }
 0x14a   : > { %p17414_p10 = pnand %p17413_p9, %p16664_p3 }
 0x14b   : > { %p17421_p0 = por %p17420_p13, %p17419_p12 }
 0x14c   : > { %p17415_p11 = pneg %p17414_p10 }
 0x14d   : > { %16539 = dma.hbm_to_vmem [thread:$0]  (%p16664_p3), %s20931_s5, 16, %s2403_s1, [#allocation35]  }
 0x14e   : > { %p17422_p1 = pnand %p17421_p0, %p17415_p11 }
 0x150   : > { %17425 = shalt.err (!%p17422_p1)
}
 0x151   : > { %s20932_s29 = sld [smem:[#allocation139_spill]]  ;;  %s18341_s15 = smov [#allocation40]  }
 0x152   : > { %s2464_s26 = sshll.u32 %s18341_s15, 4  ;;  %s18342_s18 = smov [#allocation43]   ;;  %s2465_s26 = int_to_ptr.vmem [resolvable:$true] %s2464_s26 }
 0x153   : > { %s2489_s1 = sshll.u32 %s18342_s18, 4  ;;  %s17436_s28 = scalar_lea.vmem %s2465_s26, 16  ;;  %s2490_s1 = int_to_ptr.vmem [resolvable:$true] %s2489_s1 }
 0x154   : > { %p17437_p4 = scmp.ne.s32.totalorder %s2465_s26, %s17436_s28  ;;  %s17442_s2 = scalar_lea.vmem %s2465_s26, 32 }
 0x155   : > { %p17443_p7 = scmp.lt.s32.totalorder %s2465_s26, %s2465_s26  ;;  %p17444_p8 = scmp.lt.s32.totalorder %s17442_s2, %s17436_s28 }
 0x156   : > { %p17438_p5 = pnand %p17437_p4, %p16664_p3 }
 0x157   : > { %16543 = dma.hbm_to_vmem [thread:$0]  (%p16664_p3), %s20932_s29, 16, %s2428_s7, [#allocation38]  }
 0x158   : > { %p17439_p6 = pneg %p17438_p5  ;;  %p17445_p9 = por %p17444_p8, %p17443_p7 }
 0x15a   : > { %p17446_p10 = pnand %p17445_p9, %p17439_p6 }
 0x15c   : > { %17449 = shalt.err (!%p17446_p10)
}
 0x15d   : > { %s20933_s19 = sld [smem:[#allocation146_spill]]  ;;  %s17460_s7 = scalar_lea.vmem %s2490_s1, 16 }
 0x15e   : > { %p17461_p11 = scmp.ne.s32.totalorder %s2490_s1, %s17460_s7  ;;  %s17466_s11 = scalar_lea.vmem %s2490_s1, 32 }
 0x15f   : > { %p17467_p0 = scmp.lt.s32.totalorder %s2490_s1, %s2490_s1  ;;  %p17468_p1 = scmp.lt.s32.totalorder %s17466_s11, %s17460_s7 }
 0x160   : > { %p17462_p12 = pnand %p17461_p11, %p16664_p3 }
 0x161   : > { %p17469_p4 = por %p17468_p1, %p17467_p0 }
 0x162   : > { %p17463_p13 = pneg %p17462_p12 }
 0x163   : > { %16547 = dma.hbm_to_vmem [thread:$0]  (%p16664_p3), %s20933_s19, 16, %s2465_s26, [#allocation41]  }
 0x164   : > { %p17470_p5 = pnand %p17469_p4, %p17463_p13 }
 0x166   : > { %17473 = shalt.err (!%p17470_p5)
}
 0x167   : > { %s20934_s25 = sld [smem:[#allocation149_spill]]  ;;  %s18343_s10 = smov [#allocation46]  }
 0x168   : > { %s2511_s16 = sshll.u32 %s18343_s10, 4  ;;  %s18344_s15 = smov [#allocation49]   ;;  %s2512_s16 = int_to_ptr.vmem [resolvable:$true] %s2511_s16 }
 0x169   : > { %s2536_s26 = sshll.u32 %s18344_s15, 4  ;;  %s17484_s18 = scalar_lea.vmem %s2512_s16, 16  ;;  %s2537_s26 = int_to_ptr.vmem [resolvable:$true] %s2536_s26 }
 0x16a   : > { %p17485_p6 = scmp.ne.s32.totalorder %s2512_s16, %s17484_s18  ;;  %s17490_s28 = scalar_lea.vmem %s2512_s16, 32 }
 0x16b   : > { %p17491_p9 = scmp.lt.s32.totalorder %s2512_s16, %s2512_s16  ;;  %p17492_p10 = scmp.lt.s32.totalorder %s17490_s28, %s17484_s18 }
 0x16c   : > { %p17486_p7 = pnand %p17485_p6, %p16664_p3 }
 0x16d   : > { %16551 = dma.hbm_to_vmem [thread:$0]  (%p16664_p3), %s20934_s25, 16, %s2490_s1, [#allocation44]  }
 0x16e   : > { %p17487_p8 = pneg %p17486_p7  ;;  %p17493_p11 = por %p17492_p10, %p17491_p9 }
 0x170   : > { %p17494_p12 = pnand %p17493_p11, %p17487_p8 }
 0x172   : > { %17497 = shalt.err (!%p17494_p12)
}
 0x173   : > { %s20935_s2 = sld [smem:[#allocation151_spill]]  ;;  %s17508_s1 = scalar_lea.vmem %s2537_s26, 16 }
 0x174   : > { %p17509_p13 = scmp.ne.s32.totalorder %s2537_s26, %s17508_s1  ;;  %s17514_s7 = scalar_lea.vmem %s2537_s26, 32 }
 0x175   : > { %p17515_p4 = scmp.lt.s32.totalorder %s2537_s26, %s2537_s26  ;;  %p17516_p5 = scmp.lt.s32.totalorder %s17514_s7, %s17508_s1 }
 0x176   : > { %p17510_p0 = pnand %p17509_p13, %p16664_p3 }
 0x177   : > { %p17517_p6 = por %p17516_p5, %p17515_p4 }
 0x178   : > { %p17511_p1 = pneg %p17510_p0 }
 0x179   : > { %16555 = dma.hbm_to_vmem [thread:$0]  (%p16664_p3), %s20935_s2, 16, %s2512_s16, [#allocation47]  }
 0x17a   : > { %p17518_p7 = pnand %p17517_p6, %p17511_p1 }
 0x17c   : > { %17521 = shalt.err (!%p17518_p7)
}
 0x17d   : > { %s20936_s11 = sld [smem:[#allocation154_spill]]  ;;  %s18345_s10 = smov [#allocation52]  }
 0x17e   : > { %s2570_s15 = sshll.u32 %s18345_s10, 4  ;;  %s18346_s16 = smov [#allocation55]   ;;  %s2571_s15 = int_to_ptr.vmem [resolvable:$true] %s2570_s15 }
 0x17f   : > { %s2592_s18 = sshll.u32 %s18346_s16, 4  ;;  %s17532_s28 = scalar_lea.vmem %s2571_s15, 16  ;;  %s2593_s18 = int_to_ptr.vmem [resolvable:$true] %s2592_s18 }
 0x180   : > { %p17533_p8 = scmp.ne.s32.totalorder %s2571_s15, %s17532_s28  ;;  %s17538_s2 = scalar_lea.vmem %s2571_s15, 32 }
 0x181   : > { %p17539_p11 = scmp.lt.s32.totalorder %s2571_s15, %s2571_s15  ;;  %p17540_p12 = scmp.lt.s32.totalorder %s17538_s2, %s17532_s28 }
 0x182   : > { %p17534_p9 = pnand %p17533_p8, %p16664_p3 }
 0x183   : > { %16559 = dma.hbm_to_vmem [thread:$0]  (%p16664_p3), %s20936_s11, 16, %s2537_s26, [#allocation50]  }
 0x184   : > { %p17535_p10 = pneg %p17534_p9  ;;  %p17541_p13 = por %p17540_p12, %p17539_p11 }
 0x186   : > { %p17542_p0 = pnand %p17541_p13, %p17535_p10 }
 0x188   : > { %17545 = shalt.err (!%p17542_p0)
}
 0x189   : > { %s20937_s1 = sld [smem:[#allocation160_spill]]  ;;  %s17556_s26 = scalar_lea.vmem %s2593_s18, 16 }
 0x18a   : > { %p17557_p1 = scmp.ne.s32.totalorder %s2593_s18, %s17556_s26  ;;  %s17562_s7 = scalar_lea.vmem %s2593_s18, 32 }
 0x18b   : > { %p17563_p6 = scmp.lt.s32.totalorder %s2593_s18, %s2593_s18  ;;  %p17564_p7 = scmp.lt.s32.totalorder %s17562_s7, %s17556_s26 }
 0x18c   : > { %p17558_p4 = pnand %p17557_p1, %p16664_p3 }
 0x18d   : > { %p17565_p8 = por %p17564_p7, %p17563_p6 }
 0x18e   : > { %p17559_p5 = pneg %p17558_p4 }
 0x18f   : > { %16563 = dma.hbm_to_vmem [thread:$0]  (%p16664_p3), %s20937_s1, 16, %s2571_s15, [#allocation53]  }
 0x190   : > { %p17566_p9 = pnand %p17565_p8, %p17559_p5 }
 0x192   : > { %17569 = shalt.err (!%p17566_p9)
}
 0x193   : > { %s20938_s11 = sld [smem:[#allocation162_spill]]  ;;  %s18347_s10 = smov [#allocation58]  }
 0x194   : > { %s2614_s16 = sshll.u32 %s18347_s10, 4  ;;  %s18348_s15 = smov [#allocation61]   ;;  %s2615_s16 = int_to_ptr.vmem [resolvable:$true] %s2614_s16 }
 0x195   : > { %s2642_s28 = sshll.u32 %s18348_s15, 4  ;;  %s17580_s2 = scalar_lea.vmem %s2615_s16, 16  ;;  %s2643_s28 = int_to_ptr.vmem [resolvable:$true] %s2642_s28 }
 0x196   : > { %p17581_p10 = scmp.ne.s32.totalorder %s2615_s16, %s17580_s2  ;;  %s17586_s1 = scalar_lea.vmem %s2615_s16, 32 }
 0x197   : > { %p17587_p13 = scmp.lt.s32.totalorder %s2615_s16, %s2615_s16  ;;  %p17588_p0 = scmp.lt.s32.totalorder %s17586_s1, %s17580_s2 }
 0x198   : > { %p17582_p11 = pnand %p17581_p10, %p16664_p3 }
 0x199   : > { %16567 = dma.hbm_to_vmem [thread:$0]  (%p16664_p3), %s20938_s11, 16, %s2593_s18, [#allocation56]  }
 0x19a   : > { %p17583_p12 = pneg %p17582_p11  ;;  %p17589_p1 = por %p17588_p0, %p17587_p13 }
 0x19c   : > { %p17590_p4 = pnand %p17589_p1, %p17583_p12 }
 0x19e   : > { %17593 = shalt.err (!%p17590_p4)
}
 0x19f   : > { %s20939_s26 = sld [smem:[#allocation164_spill]]  ;;  %s17604_s18 = scalar_lea.vmem %s2643_s28, 16 }
 0x1a0   : > { %p17605_p5 = scmp.ne.s32.totalorder %s2643_s28, %s17604_s18  ;;  %s17610_s7 = scalar_lea.vmem %s2643_s28, 32 }
 0x1a1   : > { %p17611_p8 = scmp.lt.s32.totalorder %s2643_s28, %s2643_s28  ;;  %p17612_p9 = scmp.lt.s32.totalorder %s17610_s7, %s17604_s18 }
 0x1a2   : > { %p17606_p6 = pnand %p17605_p5, %p16664_p3 }
 0x1a3   : > { %p17613_p10 = por %p17612_p9, %p17611_p8 }
 0x1a4   : > { %p17607_p7 = pneg %p17606_p6 }
 0x1a5   : > { %16571 = dma.hbm_to_vmem [thread:$0]  (%p16664_p3), %s20939_s26, 16, %s2615_s16, [#allocation59]  }
 0x1a6   : > { %p17614_p11 = pnand %p17613_p10, %p17607_p7 }
 0x1a8   : > { %17617 = shalt.err (!%p17614_p11)
}
 0x1a9   : > { %s20940_s11 = sld [smem:[#allocation168_spill]]  ;;  %s18349_s10 = smov [#allocation2]  }
 0x1aa   : > { %s2138_s15 = sshll.u32 %s18349_s10, 4  ;;  %s18350_s16 = smov [#allocation6]   ;;  %s2139_s15 = int_to_ptr.vmem [resolvable:$true] %s2138_s15 }
 0x1ab   : > { %s2160_s2 = sshll.u32 %s18350_s16, 4  ;;  %s17628_s1 = scalar_lea.vmem %s2139_s15, 16  ;;  %s2161_s2 = int_to_ptr.vmem [resolvable:$true] %s2160_s2 }
 0x1ac   : > { %p17629_p12 = scmp.ne.s32.totalorder %s2139_s15, %s17628_s1  ;;  %s17634_s26 = scalar_lea.vmem %s2139_s15, 32 }
 0x1ad   : > { %p17635_p1 = scmp.lt.s32.totalorder %s2139_s15, %s2139_s15  ;;  %p17636_p4 = scmp.lt.s32.totalorder %s17634_s26, %s17628_s1 }
 0x1ae   : > { %p17630_p13 = pnand %p17629_p12, %p16664_p3 }
 0x1af   : > { %16575 = dma.hbm_to_vmem [thread:$0]  (%p16664_p3), %s20940_s11, 16, %s2643_s28, [#allocation62]  }
 0x1b0   : > { %p17631_p0 = pneg %p17630_p13  ;;  %p17637_p5 = por %p17636_p4, %p17635_p1 }
 0x1b2   : > { %p17638_p6 = pnand %p17637_p5, %p17631_p0 }
 0x1b4   : > { %17641 = shalt.err (!%p17638_p6)
}
 0x1b5   : > { %s20941_s28 = sld [smem:[#allocation104_spill]]  ;;  %s17652_s18 = scalar_lea.vmem %s2161_s2, 16 }
 0x1b6   : > { %p17653_p7 = scmp.ne.s32.totalorder %s2161_s2, %s17652_s18  ;;  %s17658_s7 = scalar_lea.vmem %s2161_s2, 32 }
 0x1b7   : > { %p17659_p10 = scmp.lt.s32.totalorder %s2161_s2, %s2161_s2  ;;  %p17660_p11 = scmp.lt.s32.totalorder %s17658_s7, %s17652_s18 }
 0x1b8   : > { %p17654_p8 = pnand %p17653_p7, %p16664_p3 }
 0x1b9   : > { %p17661_p12 = por %p17660_p11, %p17659_p10 }
 0x1ba   : > { %p17655_p9 = pneg %p17654_p8 }
 0x1bb   : > { %16497 = dma.hbm_to_vmem [thread:$0]  (%p16664_p3), %s20941_s28, 16, %s2139_s15, [#allocation3]  }
 0x1bc   : > { %p17662_p13 = pnand %p17661_p12, %p17655_p9 }
 0x1be   : > { %17665 = shalt.err (!%p17662_p13)
}
 0x1bf   : > { %s20942_s11 = sld [smem:[#allocation106_spill]]  ;;  %s18351_s10 = smov [#allocation9]  }
 0x1c0   : > { %s2182_s16 = sshll.u32 %s18351_s10, 4  ;;  %s18352_s1 = smov [#allocation12]   ;;  %s2183_s16 = int_to_ptr.vmem [resolvable:$true] %s2182_s16 }
 0x1c1   : > { %s2207_s15 = sshll.u32 %s18352_s1, 4  ;;  %s17676_s26 = scalar_lea.vmem %s2183_s16, 16  ;;  %s2208_s15 = int_to_ptr.vmem [resolvable:$true] %s2207_s15 }
 0x1c2   : > { %p17677_p0 = scmp.ne.s32.totalorder %s2183_s16, %s17676_s26  ;;  %s17682_s28 = scalar_lea.vmem %s2183_s16, 32 }
 0x1c3   : > { %p17683_p5 = scmp.lt.s32.totalorder %s2183_s16, %s2183_s16  ;;  %p17684_p6 = scmp.lt.s32.totalorder %s17682_s28, %s17676_s26 }
 0x1c4   : > { %p17678_p1 = pnand %p17677_p0, %p16664_p3 }
 0x1c5   : > { %16501 = dma.hbm_to_vmem [thread:$0]  (%p16664_p3), %s20942_s11, 16, %s2161_s2, [#allocation5]  }
 0x1c6   : > { %p17679_p4 = pneg %p17678_p1  ;;  %p17685_p7 = por %p17684_p6, %p17683_p5 }
 0x1c8   : > { %p17686_p8 = pnand %p17685_p7, %p17679_p4 }
 0x1ca   : > { %17689 = shalt.err (!%p17686_p8)
}
 0x1cb   : > { %s20943_s2 = sld [smem:[#allocation108_spill]]  ;;  %s17700_s18 = scalar_lea.vmem %s2208_s15, 16 }
 0x1cc   : > { %p17701_p9 = scmp.ne.s32.totalorder %s2208_s15, %s17700_s18  ;;  %s17706_s7 = scalar_lea.vmem %s2208_s15, 32 }
 0x1cd   : > { %p17707_p12 = scmp.lt.s32.totalorder %s2208_s15, %s2208_s15  ;;  %p17708_p13 = scmp.lt.s32.totalorder %s17706_s7, %s17700_s18 }
 0x1ce   : > { %p17702_p10 = pnand %p17701_p9, %p16664_p3 }
 0x1cf   : > { %p17709_p0 = por %p17708_p13, %p17707_p12 }
 0x1d0   : > { %p17703_p11 = pneg %p17702_p10 }
 0x1d1   : > { %16505 = dma.hbm_to_vmem [thread:$0]  (%p16664_p3), %s20943_s2, 16, %s2183_s16, [#allocation8]  }
 0x1d2   : > { %p17710_p1 = pnand %p17709_p0, %p17703_p11 }
 0x1d4   : > { %17713 = shalt.err (!%p17710_p1)
}
 0x1d5   : > { %s20944_s11 = sld [smem:[#allocation111_spill]]  ;;  %s18353_s10 = smov [#allocation15]  }
 0x1d6   : > { %s2235_s1 = sshll.u32 %s18353_s10, 4  ;;  %s18354_s26 = smov [#allocation18]   ;;  %s2236_s1 = int_to_ptr.vmem [resolvable:$true] %s2235_s1 }
 0x1d7   : > { %s2269_s16 = sshll.u32 %s18354_s26, 4  ;;  %s17724_s28 = scalar_lea.vmem %s2236_s1, 16  ;;  %s2270_s16 = int_to_ptr.vmem [resolvable:$true] %s2269_s16 }
 0x1d8   : > { %p17725_p4 = scmp.ne.s32.totalorder %s2236_s1, %s17724_s28  ;;  %s17730_s2 = scalar_lea.vmem %s2236_s1, 32 }
 0x1d9   : > { %p17731_p7 = scmp.lt.s32.totalorder %s2236_s1, %s2236_s1  ;;  %p17732_p8 = scmp.lt.s32.totalorder %s17730_s2, %s17724_s28 }
 0x1da   : > { %p17726_p5 = pnand %p17725_p4, %p16664_p3 }
 0x1db   : > { %16509 = dma.hbm_to_vmem [thread:$0]  (%p16664_p3), %s20944_s11, 16, %s2208_s15, [#allocation11]  }
 0x1dc   : > { %p17727_p6 = pneg %p17726_p5  ;;  %p17733_p9 = por %p17732_p8, %p17731_p7 }
 0x1de   : > { %p17734_p10 = pnand %p17733_p9, %p17727_p6 }
 0x1e0   : > { %17737 = shalt.err (!%p17734_p10)
}
 0x1e1   : > { %s20945_s15 = sld [smem:[#allocation115_spill]]  ;;  %s17748_s18 = scalar_lea.vmem %s2270_s16, 16 }
 0x1e2   : > { %p17749_p11 = scmp.ne.s32.totalorder %s2270_s16, %s17748_s18  ;;  %s17754_s7 = scalar_lea.vmem %s2270_s16, 32 }
 0x1e3   : > { %p17755_p0 = scmp.lt.s32.totalorder %s2270_s16, %s2270_s16  ;;  %p17756_p1 = scmp.lt.s32.totalorder %s17754_s7, %s17748_s18 }
 0x1e4   : > { %p17750_p12 = pnand %p17749_p11, %p16664_p3 }
 0x1e5   : > { %p17757_p4 = por %p17756_p1, %p17755_p0 }
 0x1e6   : > { %p17751_p13 = pneg %p17750_p12 }
 0x1e7   : > { %16513 = dma.hbm_to_vmem [thread:$0]  (%p16664_p3), %s20945_s15, 16, %s2236_s1, [#allocation14]  }
 0x1e8   : > { %p17758_p5 = pnand %p17757_p4, %p17751_p13 }
 0x1ea   : > { %17761 = shalt.err (!%p17758_p5)
}
 0x1eb   : > { %s20946_s11 = sld [smem:[#allocation121_spill]]  ;;  %s18355_s10 = smov [#allocation21]  }
 0x1ec   : > { %s2294_s26 = sshll.u32 %s18355_s10, 4  ;;  %s18356_s28 = smov [#allocation24]   ;;  %s2295_s26 = int_to_ptr.vmem [resolvable:$true] %s2294_s26 }
 0x1ed   : > { %s2316_s1 = sshll.u32 %s18356_s28, 4  ;;  %s17772_s2 = scalar_lea.vmem %s2295_s26, 16  ;;  %s2317_s1 = int_to_ptr.vmem [resolvable:$true] %s2316_s1 }
 0x1ee   : > { %p17773_p6 = scmp.ne.s32.totalorder %s2295_s26, %s17772_s2  ;;  %s17778_s15 = scalar_lea.vmem %s2295_s26, 32 }
 0x1ef   : > { %p17779_p9 = scmp.lt.s32.totalorder %s2295_s26, %s2295_s26  ;;  %p17780_p10 = scmp.lt.s32.totalorder %s17778_s15, %s17772_s2 }
 0x1f0   : > { %p17774_p7 = pnand %p17773_p6, %p16664_p3 }
 0x1f1   : > { %16517 = dma.hbm_to_vmem [thread:$0]  (%p16664_p3), %s20946_s11, 16, %s2270_s16, [#allocation17]  }
 0x1f2   : > { %p17775_p8 = pneg %p17774_p7  ;;  %p17781_p11 = por %p17780_p10, %p17779_p9 }
 0x1f4   : > { %p17782_p12 = pnand %p17781_p11, %p17775_p8 }
 0x1f6   : > { %17785 = shalt.err (!%p17782_p12)
}
 0x1f7   : > { %s20947_s16 = sld [smem:[#allocation124_spill]]  ;;  %s17796_s18 = scalar_lea.vmem %s2317_s1, 16 }
 0x1f8   : > { %p17797_p13 = scmp.ne.s32.totalorder %s2317_s1, %s17796_s18  ;;  %s17802_s7 = scalar_lea.vmem %s2317_s1, 32 }
 0x1f9   : > { %p17803_p4 = scmp.lt.s32.totalorder %s2317_s1, %s2317_s1  ;;  %p17804_p5 = scmp.lt.s32.totalorder %s17802_s7, %s17796_s18 }
 0x1fa   : > { %p17798_p0 = pnand %p17797_p13, %p16664_p3 }
 0x1fb   : > { %p17805_p6 = por %p17804_p5, %p17803_p4 }
 0x1fc   : > { %p17799_p1 = pneg %p17798_p0 }
 0x1fd   : > { %16521 = dma.hbm_to_vmem [thread:$0]  (%p16664_p3), %s20947_s16, 16, %s2295_s26, [#allocation20]  }
 0x1fe   : > { %p17806_p7 = pnand %p17805_p6, %p17799_p1 }
 0x200   : > { %17809 = shalt.err (!%p17806_p7)
}
 0x201   : > { %s20948_s11 = sld [smem:[#allocation126_spill]]  ;;  %s18357_s10 = smov [#allocation27]  }
 0x202   : > { %s2338_s28 = sshll.u32 %s18357_s10, 4  ;;  %s18358_s2 = smov [#allocation30]   ;;  %s2339_s28 = int_to_ptr.vmem [resolvable:$true] %s2338_s28 }
 0x203   : > { %s2363_s26 = sshll.u32 %s18358_s2, 4  ;;  %s17820_s15 = scalar_lea.vmem %s2339_s28, 16  ;;  %s2364_s26 = int_to_ptr.vmem [resolvable:$true] %s2363_s26 }
 0x204   : > { %p17821_p8 = scmp.ne.s32.totalorder %s2339_s28, %s17820_s15  ;;  %s17826_s16 = scalar_lea.vmem %s2339_s28, 32 }
 0x205   : > { %p17827_p11 = scmp.lt.s32.totalorder %s2339_s28, %s2339_s28  ;;  %p17828_p12 = scmp.lt.s32.totalorder %s17826_s16, %s17820_s15 }
 0x206   : > { %p17822_p9 = pnand %p17821_p8, %p16664_p3 }
 0x207   : > { %16525 = dma.hbm_to_vmem [thread:$0]  (%p16664_p3), %s20948_s11, 16, %s2317_s1, [#allocation23]  }
 0x208   : > { %p17823_p10 = pneg %p17822_p9  ;;  %p17829_p13 = por %p17828_p12, %p17827_p11 }
 0x20a   : > { %p17830_p0 = pnand %p17829_p13, %p17823_p10 }
 0x20c   : > { %17833 = shalt.err (!%p17830_p0)
}
 0x20d   : > { %s20949_s1 = sld [smem:[#allocation128_spill]]  ;;  %s17844_s18 = scalar_lea.vmem %s2364_s26, 16 }
 0x20e   : > { %p17845_p1 = scmp.ne.s32.totalorder %s2364_s26, %s17844_s18  ;;  %s17850_s7 = scalar_lea.vmem %s2364_s26, 32 }
 0x20f   : > { %p17851_p6 = scmp.lt.s32.totalorder %s2364_s26, %s2364_s26  ;;  %p17852_p7 = scmp.lt.s32.totalorder %s17850_s7, %s17844_s18 }
 0x210   : > { %p17846_p4 = pnand %p17845_p1, %p16664_p3 }
 0x211   : > { %p17853_p8 = por %p17852_p7, %p17851_p6 }
 0x212   : > { %p17847_p5 = pneg %p17846_p4 }
 0x213   : > { %16529 = dma.hbm_to_vmem [thread:$0]  (%p16664_p3), %s20949_s1, 16, %s2339_s28, [#allocation26]  }
 0x214   : > { %p17854_p9 = pnand %p17853_p8, %p17847_p5 }
 0x216   : > { %17857 = shalt.err (!%p17854_p9)
}
 0x217   : > { %s20950_s11 = sld [smem:[#allocation131_spill]]  ;;  %s18359_s10 = smov [#allocation33]  }
 0x218   : > { %s2391_s2 = sshll.u32 %s18359_s10, 4  ;;  %s18360_s15 = smov [#allocation36]   ;;  %s2392_s2 = int_to_ptr.vmem [resolvable:$true] %s2391_s2 }
 0x219   : > { %s2413_s28 = sshll.u32 %s18360_s15, 4  ;;  %s17868_s16 = scalar_lea.vmem %s2392_s2, 16  ;;  %s2414_s28 = int_to_ptr.vmem [resolvable:$true] %s2413_s28 }
 0x21a   : > { %p17869_p10 = scmp.ne.s32.totalorder %s2392_s2, %s17868_s16  ;;  %s17874_s1 = scalar_lea.vmem %s2392_s2, 32 }
 0x21b   : > { %p17875_p13 = scmp.lt.s32.totalorder %s2392_s2, %s2392_s2  ;;  %p17876_p0 = scmp.lt.s32.totalorder %s17874_s1, %s17868_s16 }
 0x21c   : > { %p17870_p11 = pnand %p17869_p10, %p16664_p3 }
 0x21d   : > { %16533 = dma.hbm_to_vmem [thread:$0]  (%p16664_p3), %s20950_s11, 16, %s2364_s26, [#allocation29]  }
 0x21e   : > { %p17871_p12 = pneg %p17870_p11  ;;  %p17877_p1 = por %p17876_p0, %p17875_p13 }
 0x220   : > { %p17878_p4 = pnand %p17877_p1, %p17871_p12 }
 0x222   : > { %17881 = shalt.err (!%p17878_p4)
}
 0x223   : > { %s20951_s26 = sld [smem:[#allocation135_spill]]  ;;  %s17892_s18 = scalar_lea.vmem %s2414_s28, 16 }
 0x224   : > { %p17893_p5 = scmp.ne.s32.totalorder %s2414_s28, %s17892_s18  ;;  %s17898_s7 = scalar_lea.vmem %s2414_s28, 32 }
 0x225   : > { %p17899_p8 = scmp.lt.s32.totalorder %s2414_s28, %s2414_s28  ;;  %p17900_p9 = scmp.lt.s32.totalorder %s17898_s7, %s17892_s18 }
 0x226   : > { %p17894_p6 = pnand %p17893_p5, %p16664_p3 }
 0x227   : > { %p17901_p10 = por %p17900_p9, %p17899_p8 }
 0x228   : > { %p17895_p7 = pneg %p17894_p6 }
 0x229   : > { %16537 = dma.hbm_to_vmem [thread:$0]  (%p16664_p3), %s20951_s26, 16, %s2392_s2, [#allocation32]  }
 0x22a   : > { %p17902_p11 = pnand %p17901_p10, %p17895_p7 }
 0x22c   : > { %17905 = shalt.err (!%p17902_p11)
}
 0x22d   : > { %s20952_s11 = sld [smem:[#allocation137_spill]]  ;;  %s18361_s10 = smov [#allocation39]  }
 0x22e   : > { %s2441_s15 = sshll.u32 %s18361_s10, 4  ;;  %s18362_s16 = smov [#allocation42]   ;;  %s2442_s15 = int_to_ptr.vmem [resolvable:$true] %s2441_s15 }
 0x22f   : > { %s2478_s2 = sshll.u32 %s18362_s16, 4  ;;  %s17916_s1 = scalar_lea.vmem %s2442_s15, 16  ;;  %s2479_s2 = int_to_ptr.vmem [resolvable:$true] %s2478_s2 }
 0x230   : > { %p17917_p12 = scmp.ne.s32.totalorder %s2442_s15, %s17916_s1  ;;  %s17922_s26 = scalar_lea.vmem %s2442_s15, 32 }
 0x231   : > { %p17923_p1 = scmp.lt.s32.totalorder %s2442_s15, %s2442_s15  ;;  %p17924_p4 = scmp.lt.s32.totalorder %s17922_s26, %s17916_s1 }
 0x232   : > { %p17918_p13 = pnand %p17917_p12, %p16664_p3 }
 0x233   : > { %16541 = dma.hbm_to_vmem [thread:$0]  (%p16664_p3), %s20952_s11, 16, %s2414_s28, [#allocation35]  }
 0x234   : > { %p17919_p0 = pneg %p17918_p13  ;;  %p17925_p5 = por %p17924_p4, %p17923_p1 }
 0x236   : > { %p17926_p6 = pnand %p17925_p5, %p17919_p0 }
 0x238   : > { %17929 = shalt.err (!%p17926_p6)
}
 0x239   : > { %s20953_s28 = sld [smem:[#allocation141_spill]]  ;;  %s17940_s18 = scalar_lea.vmem %s2479_s2, 16 }
 0x23a   : > { %p17941_p7 = scmp.ne.s32.totalorder %s2479_s2, %s17940_s18  ;;  %s17946_s7 = scalar_lea.vmem %s2479_s2, 32 }
 0x23b   : > { %p17947_p10 = scmp.lt.s32.totalorder %s2479_s2, %s2479_s2  ;;  %p17948_p11 = scmp.lt.s32.totalorder %s17946_s7, %s17940_s18 }
 0x23c   : > { %p17942_p8 = pnand %p17941_p7, %p16664_p3 }
 0x23d   : > { %p17949_p12 = por %p17948_p11, %p17947_p10 }
 0x23e   : > { %p17943_p9 = pneg %p17942_p8 }
 0x23f   : > { %16545 = dma.hbm_to_vmem [thread:$0]  (%p16664_p3), %s20953_s28, 16, %s2442_s15, [#allocation38]  }
 0x240   : > { %p17950_p13 = pnand %p17949_p12, %p17943_p9 }
 0x242   : > { %17953 = shalt.err (!%p17950_p13)
}
 0x243   : > { %s20954_s11 = sld [smem:[#allocation148_spill]]  ;;  %s18363_s10 = smov [#allocation45]  }
 0x244   : > { %s2500_s16 = sshll.u32 %s18363_s10, 4  ;;  %s18364_s1 = smov [#allocation48]   ;;  %s2501_s16 = int_to_ptr.vmem [resolvable:$true] %s2500_s16 }
 0x245   : > { %s2522_s15 = sshll.u32 %s18364_s1, 4  ;;  %s17964_s26 = scalar_lea.vmem %s2501_s16, 16  ;;  %s2523_s15 = int_to_ptr.vmem [resolvable:$true] %s2522_s15 }
 0x246   : > { %p17965_p0 = scmp.ne.s32.totalorder %s2501_s16, %s17964_s26  ;;  %s17970_s28 = scalar_lea.vmem %s2501_s16, 32 }
 0x247   : > { %p17971_p5 = scmp.lt.s32.totalorder %s2501_s16, %s2501_s16  ;;  %p17972_p6 = scmp.lt.s32.totalorder %s17970_s28, %s17964_s26 }
 0x248   : > { %p17966_p1 = pnand %p17965_p0, %p16664_p3 }
 0x249   : > { %16549 = dma.hbm_to_vmem [thread:$0]  (%p16664_p3), %s20954_s11, 16, %s2479_s2, [#allocation41]  }
 0x24a   : > { %p17967_p4 = pneg %p17966_p1  ;;  %p17973_p7 = por %p17972_p6, %p17971_p5 }
 0x24c   : > { %p17974_p8 = pnand %p17973_p7, %p17967_p4 }
 0x24e   : > { %17977 = shalt.err (!%p17974_p8)
}
 0x24f   : > { %s20955_s2 = sld [smem:[#allocation150_spill]]  ;;  %s17988_s18 = scalar_lea.vmem %s2523_s15, 16 }
 0x250   : > { %p17989_p9 = scmp.ne.s32.totalorder %s2523_s15, %s17988_s18  ;;  %s17994_s7 = scalar_lea.vmem %s2523_s15, 32 }
 0x251   : > { %p17995_p12 = scmp.lt.s32.totalorder %s2523_s15, %s2523_s15  ;;  %p17996_p13 = scmp.lt.s32.totalorder %s17994_s7, %s17988_s18 }
 0x252   : > { %p17990_p10 = pnand %p17989_p9, %p16664_p3 }
 0x253   : > { %p17997_p0 = por %p17996_p13, %p17995_p12 }
 0x254   : > { %p17991_p11 = pneg %p17990_p10 }
 0x255   : > { %16553 = dma.hbm_to_vmem [thread:$0]  (%p16664_p3), %s20955_s2, 16, %s2501_s16, [#allocation44]  }
 0x256   : > { %p17998_p1 = pnand %p17997_p0, %p17991_p11 }
 0x258   : > { %18001 = shalt.err (!%p17998_p1)
}
 0x259   : > { %s20956_s11 = sld [smem:[#allocation152_spill]]  ;;  %s18365_s10 = smov [#allocation51]  }
 0x25a   : > { %s2556_s1 = sshll.u32 %s18365_s10, 4  ;;  %s18366_s26 = smov [#allocation54]   ;;  %s2557_s1 = int_to_ptr.vmem [resolvable:$true] %s2556_s1 }
 0x25b   : > { %s2581_s16 = sshll.u32 %s18366_s26, 4  ;;  %s18012_s28 = scalar_lea.vmem %s2557_s1, 16  ;;  %s2582_s16 = int_to_ptr.vmem [resolvable:$true] %s2581_s16 }
 0x25c   : > { %p18013_p4 = scmp.ne.s32.totalorder %s2557_s1, %s18012_s28  ;;  %s18018_s2 = scalar_lea.vmem %s2557_s1, 32 }
 0x25d   : > { %p18019_p7 = scmp.lt.s32.totalorder %s2557_s1, %s2557_s1  ;;  %p18020_p8 = scmp.lt.s32.totalorder %s18018_s2, %s18012_s28 }
 0x25e   : > { %p18014_p5 = pnand %p18013_p4, %p16664_p3 }
 0x25f   : > { %16557 = dma.hbm_to_vmem [thread:$0]  (%p16664_p3), %s20956_s11, 16, %s2523_s15, [#allocation47]  }
 0x260   : > { %p18015_p6 = pneg %p18014_p5  ;;  %p18021_p9 = por %p18020_p8, %p18019_p7 }
 0x262   : > { %p18022_p10 = pnand %p18021_p9, %p18015_p6 }
 0x264   : > { %18025 = shalt.err (!%p18022_p10)
}
 0x265   : > { %s20957_s15 = sld [smem:[#allocation158_spill]]  ;;  %s18036_s18 = scalar_lea.vmem %s2582_s16, 16 }
 0x266   : > { %p18037_p11 = scmp.ne.s32.totalorder %s2582_s16, %s18036_s18  ;;  %s18042_s7 = scalar_lea.vmem %s2582_s16, 32 }
 0x267   : > { %p18043_p0 = scmp.lt.s32.totalorder %s2582_s16, %s2582_s16  ;;  %p18044_p1 = scmp.lt.s32.totalorder %s18042_s7, %s18036_s18 }
 0x268   : > { %p18038_p12 = pnand %p18037_p11, %p16664_p3 }
 0x269   : > { %p18045_p4 = por %p18044_p1, %p18043_p0 }
 0x26a   : > { %p18039_p13 = pneg %p18038_p12 }
 0x26b   : > { %16561 = dma.hbm_to_vmem [thread:$0]  (%p16664_p3), %s20957_s15, 16, %s2557_s1, [#allocation50]  }
 0x26c   : > { %p18046_p5 = pnand %p18045_p4, %p18039_p13 }
 0x26e   : > { %18049 = shalt.err (!%p18046_p5)
}
 0x26f   : > { %s20958_s11 = sld [smem:[#allocation161_spill]]  ;;  %s18367_s10 = smov [#allocation57]  }
 0x270   : > { %s2603_s26 = sshll.u32 %s18367_s10, 4  ;;  %s18368_s28 = smov [#allocation60]   ;;  %s2604_s26 = int_to_ptr.vmem [resolvable:$true] %s2603_s26 }
 0x271   : > { %s2628_s1 = sshll.u32 %s18368_s28, 4  ;;  %s18060_s2 = scalar_lea.vmem %s2604_s26, 16  ;;  %s2629_s1 = int_to_ptr.vmem [resolvable:$true] %s2628_s1 }
 0x272   : > { %p18061_p6 = scmp.ne.s32.totalorder %s2604_s26, %s18060_s2  ;;  %s18066_s15 = scalar_lea.vmem %s2604_s26, 32 }
 0x273   : > { %p18067_p9 = scmp.lt.s32.totalorder %s2604_s26, %s2604_s26  ;;  %p18068_p10 = scmp.lt.s32.totalorder %s18066_s15, %s18060_s2 }
 0x274   : > { %p18062_p7 = pnand %p18061_p6, %p16664_p3 }
 0x275   : > { %16565 = dma.hbm_to_vmem [thread:$0]  (%p16664_p3), %s20958_s11, 16, %s2582_s16, [#allocation53]  }
 0x276   : > { %p18063_p8 = pneg %p18062_p7  ;;  %p18069_p11 = por %p18068_p10, %p18067_p9 }
 0x278   : > { %p18070_p12 = pnand %p18069_p11, %p18063_p8 }
 0x27a   : > { %18073 = shalt.err (!%p18070_p12)
}
 0x27b   : > { %s20959_s16 = sld [smem:[#allocation163_spill]]  ;;  %s18084_s18 = scalar_lea.vmem %s2629_s1, 16 }
 0x27c   : > { %p18085_p13 = scmp.ne.s32.totalorder %s2629_s1, %s18084_s18  ;;  %s18090_s7 = scalar_lea.vmem %s2629_s1, 32 }
 0x27d   : > { %p18091_p4 = scmp.lt.s32.totalorder %s2629_s1, %s2629_s1  ;;  %p18092_p5 = scmp.lt.s32.totalorder %s18090_s7, %s18084_s18 }
 0x27e   : > { %p18086_p0 = pnand %p18085_p13, %p16664_p3 }
 0x27f   : > { %p18093_p6 = por %p18092_p5, %p18091_p4 }
 0x280   : > { %p18087_p1 = pneg %p18086_p0 }
 0x281   : > { %16569 = dma.hbm_to_vmem [thread:$0]  (%p16664_p3), %s20959_s16, 16, %s2604_s26, [#allocation56]  }
 0x282   : > { %p18094_p7 = pnand %p18093_p6, %p18087_p1 }
 0x284   : > { %18097 = shalt.err (!%p18094_p7)
}
 0x285   : > { %s20960_s11 = sld [smem:[#allocation166_spill]]  ;;  %s18369_s10 = smov [#allocation63]  }
 0x286   : > { %s2662_s28 = sshll.u32 %s18369_s10, 4  ;;  %s18370_s2 = smov [#allocation64]   ;;  %s2663_s28 = int_to_ptr.vmem [resolvable:$true] %s2662_s28 }
 0x287   : > { %s2673_s26 = sshll.u32 %s18370_s2, 4  ;;  %s18108_s15 = scalar_lea.vmem %s2663_s28, 16  ;;  %s2674_s26 = int_to_ptr.vmem [resolvable:$true] %s2673_s26 }
 0x288   : > { %p18109_p8 = scmp.ne.s32.totalorder %s2663_s28, %s18108_s15  ;;  %s18114_s16 = scalar_lea.vmem %s2663_s28, 32 }
 0x289   : > { %p18115_p11 = scmp.lt.s32.totalorder %s2663_s28, %s2663_s28  ;;  %p18116_p12 = scmp.lt.s32.totalorder %s18114_s16, %s18108_s15 }
 0x28a   : > { %p18110_p9 = pnand %p18109_p8, %p16664_p3 }
 0x28b   : > { %16573 = dma.hbm_to_vmem [thread:$0]  (%p16664_p3), %s20960_s11, 16, %s2629_s1, [#allocation59]  }
 0x28c   : > { %p18111_p10 = pneg %p18110_p9  ;;  %p18117_p13 = por %p18116_p12, %p18115_p11 }
 0x28e   : > { %p18118_p0 = pnand %p18117_p13, %p18111_p10 }
 0x290   : > { %18121 = shalt.err (!%p18118_p0)
}
 0x291   : > { %s20961_s8 = sld [smem:[#allocation172_spill]]  ;;  %s18132_s1 = scalar_lea.vmem %s2674_s26, 16 }
 0x292   : > { %p18133_p1 = scmp.ne.s32.totalorder %s2674_s26, %s18132_s1  ;;  %s18138_s18 = scalar_lea.vmem %s2674_s26, 32 }
 0x293   : > { %p18139_p6 = scmp.lt.s32.totalorder %s2674_s26, %s2674_s26  ;;  %p18140_p7 = scmp.lt.s32.totalorder %s18138_s18, %s18132_s1 }
 0x294   : > { %p18134_p4 = pnand %p18133_p1, %p16664_p3 }
 0x295   : > { %p18141_p8 = por %p18140_p7, %p18139_p6 }
 0x296   : > { %p18135_p5 = pneg %p18134_p4 }
 0x297   : > { %16577 = dma.hbm_to_vmem [thread:$0]  (%p16664_p3), %s20961_s8, 16, %s2663_s28, [#allocation62]  }
 0x298   : > { %p18142_p9 = pnand %p18141_p8, %p18135_p5 }
 0x29a   : > { %18145 = shalt.err (!%p18142_p9)
}
 0x29b   : > { %s20962_s27 = sld [smem:[#allocation173_spill]] }
 0x2a1   : > { %16579 = dma.hbm_to_vmem [thread:$0]  (%p16664_p3), %s20962_s27, 16, %s2674_s26, [#allocation65]  }
 0x2a2 PF: > { %2707 = sbr.rel (%p18859_p2) target bundleno = 17102 (0x42ce), region = 364 }
 0x2a7   : > { %p16706_p10 = scmp.eq.s32.totalorder %s18855_s22, 0 }
 0x2a9   : > { %18151 = dma.done.wait (%p16706_p10), [#allocation3], 16  }
 0x2aa   : > { %18153 = vsyncadd (%p16706_p10), [#allocation3], 4294967280 }
 0x2ab   : > { %18155 = dma.done.wait (%p16706_p10), [#allocation5], 32  }
 0x2ac   : > { %18157 = vsyncadd (%p16706_p10), [#allocation5], 4294967264 }
 0x2ad   : > { %18159 = dma.done.wait (%p16706_p10), [#allocation8], 32  }
 0x2ae   : > { %18161 = vsyncadd (%p16706_p10), [#allocation8], 4294967264 }
 0x2af   : > { %18163 = dma.done.wait (%p16706_p10), [#allocation11], 32  }
 0x2b0   : > { %18165 = vsyncadd (%p16706_p10), [#allocation11], 4294967264 }
 0x2b1   : > { %18167 = dma.done.wait (%p16706_p10), [#allocation14], 32  }
 0x2b2   : > { %18169 = vsyncadd (%p16706_p10), [#allocation14], 4294967264 }
 0x2b3   : > { %18171 = dma.done.wait (%p16706_p10), [#allocation17], 32  }
 0x2b4   : > { %18173 = vsyncadd (%p16706_p10), [#allocation17], 4294967264 }
 0x2b5   : > { %18175 = dma.done.wait (%p16706_p10), [#allocation20], 32  }
 0x2b6   : > { %18177 = vsyncadd (%p16706_p10), [#allocation20], 4294967264 }
 0x2b7   : > { %18179 = dma.done.wait (%p16706_p10), [#allocation23], 32  }
 0x2b8   : > { %18181 = vsyncadd (%p16706_p10), [#allocation23], 4294967264 }
 0x2b9   : > { %18183 = dma.done.wait (%p16706_p10), [#allocation26], 32  }
 0x2ba   : > { %18185 = vsyncadd (%p16706_p10), [#allocation26], 4294967264 }
 0x2bb   : > { %18187 = dma.done.wait (%p16706_p10), [#allocation29], 32  }
 0x2bc   : > { %18189 = vsyncadd (%p16706_p10), [#allocation29], 4294967264 }
 0x2bd   : > { %18191 = dma.done.wait (%p16706_p10), [#allocation32], 32  }
 0x2be   : > { %18193 = vsyncadd (%p16706_p10), [#allocation32], 4294967264 }
 0x2bf   : > { %18195 = dma.done.wait (%p16706_p10), [#allocation35], 32  }
 0x2c0   : > { %18197 = vsyncadd (%p16706_p10), [#allocation35], 4294967264 }
 0x2c1   : > { %18199 = dma.done.wait (%p16706_p10), [#allocation38], 32  }
 0x2c2   : > { %18201 = vsyncadd (%p16706_p10), [#allocation38], 4294967264 }
 0x2c3   : > { %18203 = dma.done.wait (%p16706_p10), [#allocation41], 32  }
 0x2c4   : > { %18205 = vsyncadd (%p16706_p10), [#allocation41], 4294967264 }
 0x2c5   : > { %18207 = dma.done.wait (%p16706_p10), [#allocation44], 32  }
 0x2c6   : > { %18209 = vsyncadd (%p16706_p10), [#allocation44], 4294967264 }
 0x2c7   : > { %18211 = dma.done.wait (%p16706_p10), [#allocation47], 32  }
 0x2c8   : > { %18213 = vsyncadd (%p16706_p10), [#allocation47], 4294967264 }
 0x2c9   : > { %18215 = dma.done.wait (%p16706_p10), [#allocation50], 32  }
 0x2ca   : > { %18217 = vsyncadd (%p16706_p10), [#allocation50], 4294967264 }
 0x2cb   : > { %18219 = dma.done.wait (%p16706_p10), [#allocation53], 32  }
 0x2cc   : > { %18221 = vsyncadd (%p16706_p10), [#allocation53], 4294967264 }
 0x2cd   : > { %18223 = dma.done.wait (%p16706_p10), [#allocation56], 32  }
 0x2ce   : > { %18225 = vsyncadd (%p16706_p10), [#allocation56], 4294967264 }
 0x2cf   : > { %18227 = dma.done.wait (%p16706_p10), [#allocation59], 32  }
 0x2d0   : > { %18229 = vsyncadd (%p16706_p10), [#allocation59], 4294967264 }
 0x2d1   : > { %18231 = dma.done.wait (%p16706_p10), [#allocation62], 32  }
 0x2d2   : > { %18233 = vsyncadd (%p16706_p10), [#allocation62], 4294967264 }
 0x2d3   : > { %18235 = dma.done.wait (%p16706_p10), [#allocation65], 16  }
 0x2d4   : > { %18237 = vsyncadd (%p16706_p10), [#allocation65], 4294967280  ;;  %s20963_s23 = sld [smem:[#allocation89_spill]]  ;;  %v18371_v0 = vmov 0.0   ;;  %p3073_p2 = scmp.lt.s32.totalorder %s18855_s22, 1  ;;  %vm18372_vm0 = vmmov 0   ;;  %v3262_v36 = vlaneseq }
 0x2d5   : > { %s20964_s7 = sld [smem:[#allocation143_spill]]  ;;  %15781 = vmatprep.subr.mxu0 %v18371_v0  ;;  %15786 = vmatprep.subr.mxu1 %v18371_v0  ;;  %vm3102_vm1 = vcmask 1041408   ;;  %vm3180_vm2 = vcmask 1042432   ;;  %vm3098_vm3 = vcmask 15360   ;;  %vm3176_vm4 = vcmask 23552   ;;  %s20801_s16 = smov 96  }
 0x2d6   : > { %s20965_s11 = sld [smem:[#allocation142_spill]]  ;;  %15783 = vmatprep.mubr.msk.f32.mxu0 %vm18372_vm0, %v18371_v0  ;;  %15788 = vmatprep.mubr.msk.f32.mxu1 %vm18372_vm0, %v18371_v0  ;;  %s21046_s22 = smov (!%p3073_p2, %s18855_s22), 1  ;;  %v15125_v11 = vld [vmem:[#allocation39] ss:$0 sm:$0xff]  ;;  %vm3279_vm5 = vcmask 261120   ;;  %vm3361_vm6 = vcmask 31744  }
 0x2d7   : > { %s20966_s10 = sld [smem:[#allocation88_spill]]  ;;  %s19175_s2 = sshll.u32 %s21046_s22, 3  ;;  %v15126_v16 = vld [vmem:[#allocation49] ss:$0 sm:$0xff]  ;;  %v19282_v37 = vshrl.u32 %v3262_v36, 7  ;;  %v3265_v38 = vand.u32 127, %v3262_v36 }
 0x2d8   : > { %s20967_s28 = sld [smem:[#allocation155_spill]]  ;;  %s20799_s22 = smov 124   ;;  %v18389_v40 = vmov -1e+09   ;;  %vm3438_vm8 = vcmask 64512   ;;  %vm4725_vm9 = vcmask 97280  }
 0x2d9   : > { %20968 = sst [smem:[#allocation177_spill]] %s19175_s2  ;;  %s20747_s1 = smov 88   ;;  %vm3266_vm7 = vcmp.le.s32.totalorder %v3265_v38, %v19282_v37  ;;  %vm4727_vm10 = vcmask 130048   ;;  %vm4729_vm11 = vcmask 162816   ;;  %vm4731_vm12 = vcmask 195584  }
 0x2da   : > { %s3080_s26 = scalar_lea.vmem %s20963_s23, %s19175_s2  ;;  %s20803_s18 = smov 92   ;;  %v19285_v41 = vsel %vm3266_vm7, 0.0, %v18389_v40  ;;  %vm4733_vm13 = vcmask 228352  }
 0x2db   : > { %v3097_v1 = vld [vmem:[%s20964_s7] sm:$0x3]  ;;  %s20749_s23 = smov 84   ;;  %s20787_s7 = smov 120  }
 0x2dc   : > { %v3096_v2 = vld [vmem:[%s20965_s11] sm:$0x7]  ;;  %15782 = vmatpush3.msk.msra.mxu0 %vm3102_vm1, %v3097_v1  ;;  %s20751_s11 = smov 80   ;;  %s20981_s3 = smov 116  }
 0x2dd   : > { %v3094_v3 = vld [vmem:[%s3080_s26] sm:$0xff]  ;;  %s3076_s15 = scalar_lea.vmem %s20966_s10, %s19175_s2  ;;  %15787 = vmatpush3.msk.msra.mxu1 %vm3180_vm2, %v3096_v2  ;;  %15791 = vmatprep.subr.mxu0 %v18371_v0  ;;  %s20753_s10 = smov 116  }
 0x2de   : > { %v3093_v4 = vld [vmem:[%s3076_s15] sm:$0xff]  ;;  %v3271_v5 = vld [vmem:[%s20967_s28 + $0x18] sm:$0xff]  ;;  %15784 = vmatmul.mubr.msk.f32.vlgmr.msra.gmra.mxu0 %vm3098_vm3, %v3094_v3  ;;  %15807 = vmatprep.subr.mxu1 %v18371_v0  ;;  %v3270_v6 = vld [vmem:[%s20967_s28 + $0x10] sm:$0xff]  ;;  %s20755_s26 = smov 76   ;;  %s20757_s15 = smov 112  }
 0x2df   : > { %15789 = vmatmul.mubr.msk.f32.vlgmr.msra.gmra.mxu1 %vm3176_vm4, %v3093_v4  ;;  %15799 = vmatprep.mubr.msk.f32.mxu0 %vm18372_vm0, %v18371_v0  ;;  %v3269_v7 = vld [vmem:[%s20967_s28 + $0x8] sm:$0xff]  ;;  %v3268_v8 = vld [vmem:[%s20967_s28] sm:$0xff]  ;;  %s20982_s4 = smov 112   ;;  %s20983_s5 = smov 108  }
 0x2e0   : > { %15792 = vmatpush3.msra.mxu0 %v3271_v5  ;;  %15809 = vmatprep.mubr.msk.f32.mxu1 %vm18372_vm0, %v18371_v0  ;;  %s20985_s8 = smov 100   ;;  %s20986_s9 = smov 52  }
 0x2e1   : > { %15793 = vmatprep.subr.mxu0 %v18371_v0  ;;  %s20988_s13 = smov 48   ;;  %s20989_s14 = smov 44  }
 0x2e2   : > { %15794 = vmatpush3.msra.mxu0 %v3270_v6  ;;  %s20991_s17 = smov 36   ;;  %s20992_s19 = smov 4  }
 0x2e3   : > { %15795 = vmatprep.subr.mxu0 %v18371_v0  ;;  %s20993_s20 = sld [smem:[#allocation165_spill]]  ;;  %s20994_s21 = smov 8  }
 0x2e4   : > { %15796 = vmatpush3.msra.mxu0 %v3269_v7  ;;  %s20995_s24 = smov 12   ;;  %s20996_s25 = smov 16  }
 0x2e5   : > { %15797 = vmatprep.subr.mxu0 %v18371_v0  ;;  %s20997_s27 = smov 20   ;;  %s20998_s28 = smov 24  }
 0x2e6   : > { %15798 = vmatpush3.msra.mxu0 %v3268_v8  ;;  %s20999_s29 = smov 28   ;;  %s21001_s30 = sld [smem:[#allocation159_spill]] }
 0x2e7   : > { %15802 = vmatprep.subr.mxu0 %v18371_v0  ;;  %s21006_s0 = sld [smem:[#allocation92_spill]] }
 0x2e8   : > { %s21007_s12 = sld [smem:[#allocation90_spill]] }
 0x2e9   : > { %s21009_s6 = sld [smem:[#allocation112_spill]] }
 0x39e   : > { %v3172_v9 = vpop.f32.mrf.mxu0 }
 0x39f   : > { %v3250_v10 = vpop.f32.mrf.mxu1 }
 0x3a0   : > { %v3251_v12 = vadd.f32 %v3250_v10, %v3172_v9  ;;  %v15785_v13 = vpop.f32.mrf.mxu0 }
 0x3a1   : > { %v15790_v14 = vpop.f32.mrf.mxu1 }
 0x3a2   : > { %v19200_v15 = vadd.f32 %v15125_v11, %v3251_v12 }
 0x3a4   : > { %15800 = vmatmul.mubr.msk.f32.vlgmr.msra.gmra.mxu0 %vm3279_vm5, %v19200_v15 }
 0x3a5   : > { %15804 = vmatprep.mubr.msk.f32.mxu0 %vm18372_vm0, %v18371_v0 }
 0x464   : > { %v3349_v17 = vpop.f32.mrf.mxu0 }
 0x465   : > { %v19206_v18 = vadd.f32 %v15126_v16, %v3349_v17 }
 0x466   : > { %v15801_v19 = vpop.f32.mrf.mxu0 }
 0x467   : > { %3526 = vrot.lane.b32.xlu1 %v19206_v18, %s20799_s22  ;;  %3359 = vrot.lane.b32.xlu0 %v19206_v18, %s20801_s16 }
 0x46b   : > { %3695 = vrot.lane.b32.xlu1 %v19206_v18, %s20747_s1  ;;  %3528 = vrot.lane.b32.xlu0 %v19206_v18, %s20803_s18  ;;  %s20779_s1 = smov 72  }
 0x46f   : > { %3862 = vrot.lane.b32.xlu1 %v19206_v18, %s20749_s23  ;;  %3693 = vrot.lane.b32.xlu0 %v19206_v18, %s20787_s7  ;;  %s20763_s23 = smov 108   ;;  %s20789_s7 = smov 28  }
 0x473   : > { %4029 = vrot.lane.b32.xlu1 %v19206_v18, %s20751_s11  ;;  %3860 = vrot.lane.b32.xlu0 %v19206_v18, %s20753_s10  ;;  %s20777_s11 = smov 68   ;;  %s20761_s10 = smov 104  }
 0x477   : > { %4196 = vrot.lane.b32.xlu1 %v19206_v18, %s20755_s26  ;;  %4027 = vrot.lane.b32.xlu0 %v19206_v18, %s20757_s15  ;;  %s20797_s26 = smov 64   ;;  %s20759_s15 = smov 100  }
 0x47b   : > { %4363 = vrot.lane.b32.xlu1 %v19206_v18, %s20779_s1  ;;  %4194 = vrot.lane.b32.xlu0 %v19206_v18, %s20763_s23  ;;  %s20767_s23 = smov 52   ;;  %s20785_s1 = smov 12  }
 0x47f   : > { %4530 = vrot.lane.b32.xlu1 %v19206_v18, %s20777_s11  ;;  %4361 = vrot.lane.b32.xlu0 %v19206_v18, %s20761_s10  ;;  %s20806_s10 = smov 60   ;;  %s20781_s11 = smov 8  }
 0x483   : > { %3450 = vrot.lane.b32.xlu1 %v19206_v18, %s20797_s26  ;;  %4528 = vrot.lane.b32.xlu0 %v19206_v18, %s20759_s15  ;;  %s20765_s15 = smov 56  }
 0x4d9   : > { %v3527_v20 = vpop.permute.xlu1 %3526  ;;  %v3360_v21 = vpop.permute.xlu0 %3359 }
 0x4da   : > { %15803 = vmatpush3.xpose.msk.msra.mxu0 %vm3361_vm6, %v3360_v21 }
 0x4db   : > { %15812 = vmatprep.subr.mxu0 %v18371_v0 }
 0x4dd   : > { %v3696_v22 = vpop.permute.xlu1 %3695  ;;  %15805 = vmatmul.mubr.msk.f32.vlgmr.msra.gmra.mxu0 %vm3361_vm6, %v19206_v18  ;;  %v3529_v23 = vpop.permute.xlu0 %3528 }
 0x4de   : > { %15813 = vmatpush3.xpose.msk.msra.mxu0 %vm3361_vm6, %v3529_v23  ;;  %15814 = vmatprep.mubr.msk.f32.mxu0 %vm18372_vm0, %v18371_v0 }
 0x4df   : > { %15822 = vmatprep.subr.mxu0 %v18371_v0 }
 0x4e1   : > { %v3863_v24 = vpop.permute.xlu1 %3862  ;;  %15815 = vmatmul.mubr.msk.f32.vlgmr.msra.gmra.mxu0 %vm3361_vm6, %v3527_v20  ;;  %v3694_v25 = vpop.permute.xlu0 %3693 }
 0x4e2   : > { %15823 = vmatpush3.xpose.msk.msra.mxu0 %vm3361_vm6, %v3696_v22  ;;  %15824 = vmatprep.mubr.msk.f32.mxu0 %vm18372_vm0, %v18371_v0 }
 0x4e3   : > { %15832 = vmatprep.subr.mxu0 %v18371_v0 }
 0x4e5   : > { %v4030_v26 = vpop.permute.xlu1 %4029  ;;  %15825 = vmatmul.mubr.msk.f32.vlgmr.msra.gmra.mxu0 %vm3361_vm6, %v3694_v25  ;;  %v3861_v27 = vpop.permute.xlu0 %3860 }
 0x4e6   : > { %15833 = vmatpush3.xpose.msk.msra.mxu0 %vm3361_vm6, %v3863_v24  ;;  %15834 = vmatprep.mubr.msk.f32.mxu0 %vm18372_vm0, %v18371_v0 }
 0x4e7   : > { %15842 = vmatprep.subr.mxu0 %v18371_v0 }
 0x4e9   : > { %v4197_v28 = vpop.permute.xlu1 %4196  ;;  %15835 = vmatmul.mubr.msk.f32.vlgmr.msra.gmra.mxu0 %vm3361_vm6, %v3861_v27  ;;  %v4028_v29 = vpop.permute.xlu0 %4027 }
 0x4ea   : > { %15843 = vmatpush3.xpose.msk.msra.mxu0 %vm3361_vm6, %v4030_v26  ;;  %15844 = vmatprep.mubr.msk.f32.mxu0 %vm18372_vm0, %v18371_v0 }
 0x4eb   : > { %15852 = vmatprep.subr.mxu0 %v18371_v0 }
 0x4ed   : > { %v4364_v30 = vpop.permute.xlu1 %4363  ;;  %15845 = vmatmul.mubr.msk.f32.vlgmr.msra.gmra.mxu0 %vm3361_vm6, %v4028_v29  ;;  %v4195_v31 = vpop.permute.xlu0 %4194 }
 0x4ee   : > { %15853 = vmatpush3.xpose.msk.msra.mxu0 %vm3361_vm6, %v4197_v28  ;;  %15854 = vmatprep.mubr.msk.f32.mxu0 %vm18372_vm0, %v18371_v0 }
 0x4ef   : > { %15862 = vmatprep.subr.mxu0 %v18371_v0 }
 0x4f1   : > { %v4531_v32 = vpop.permute.xlu1 %4530  ;;  %15855 = vmatmul.mubr.msk.f32.vlgmr.msra.gmra.mxu0 %vm3361_vm6, %v4195_v31  ;;  %v4362_v33 = vpop.permute.xlu0 %4361 }
 0x4f2   : > { %15863 = vmatpush3.xpose.msk.msra.mxu0 %vm3361_vm6, %v4364_v30  ;;  %15864 = vmatprep.mubr.msk.f32.mxu0 %vm18372_vm0, %v18371_v0 }
 0x4f3   : > { %15872 = vmatprep.subr.mxu0 %v18371_v0 }
 0x4f5   : > { %v3451_v34 = vpop.permute.xlu1 %3450  ;;  %15865 = vmatmul.mubr.msk.f32.vlgmr.msra.gmra.mxu0 %vm3361_vm6, %v4362_v33  ;;  %v4529_v35 = vpop.permute.xlu0 %4528 }
 0x4f6   : > { %15808 = vmatpush3.msra.mxu1 %v3451_v34  ;;  %15873 = vmatpush3.xpose.msk.msra.mxu0 %vm3361_vm6, %v4531_v32 }
 0x4f7   : > { %15874 = vmatprep.mubr.msk.f32.mxu0 %vm18372_vm0, %v18371_v0  ;;  %15817 = vmatprep.subr.mxu1 %v18371_v0 }
 0x4f8   : > { %15882 = vmatprep.subr.mxu0 %v18371_v0 }
 0x4f9   : > { %15875 = vmatmul.mubr.msk.f32.vlgmr.msra.gmra.mxu0 %vm3361_vm6, %v4529_v35 }
 0x4fa   : > { %15890 = vmatprep.mubr.msk.f32.mxu0 %vm18372_vm0, %v18371_v0 }
 0x59d   : > { %v3432_v39 = vpop.f32.mrf.mxu0 }
 0x59e   : > { %v3436_v42 = vmul.f32 0.5, %v3432_v39 }
 0x59f   : > { %v15806_v43 = vpop.f32.mrf.mxu0 }
 0x5a0   : > { %v3437_v44 = vadd.f32 %v3436_v42, %v19285_v41 }
 0x5a1   : > { %v3600_v45 = vpop.f32.mrf.mxu0 }
 0x5a2   : > { %v3604_v46 = vmul.f32 0.5, %v3600_v45  ;;  %v3439_v47 = vsel %vm3438_vm8, %v3437_v44, -inf }
 0x5a3   : > { %3440 = vmax.xlane.f32.xlu1 %v3439_v47  ;;  %v15816_v48 = vpop.f32.mrf.mxu0 }
 0x5a4   : > { %v3605_v49 = vadd.f32 %v3604_v46, %v19285_v41 }
 0x5a5   : > { %v3767_v50 = vpop.f32.mrf.mxu0 }
 0x5a6   : > { %v3771_v51 = vmul.f32 0.5, %v3767_v50  ;;  %v3606_v52 = vsel %vm3438_vm8, %v3605_v49, -inf }
 0x5a7   : > { %3607 = vmax.xlane.f32.xlu0 %v3606_v52  ;;  %v15826_v53 = vpop.f32.mrf.mxu0 }
 0x5a8   : > { %v3772_v54 = vadd.f32 %v3771_v51, %v19285_v41 }
 0x5a9   : > { %v3934_v55 = vpop.f32.mrf.mxu0 }
 0x5aa   : > { %v3938_v56 = vmul.f32 0.5, %v3934_v55  ;;  %v3773_v57 = vsel %vm3438_vm8, %v3772_v54, -inf }
 0x5ab   : > { %3774 = vmax.xlane.f32.xlu0 %v3773_v57  ;;  %v15836_v58 = vpop.f32.mrf.mxu0 }
 0x5ac   : > { %v19294_v59 = vadd.f32 %v3938_v56, %v19285_v41 }
 0x5ad   : > { %v4101_v60 = vpop.f32.mrf.mxu0 }
 0x5ae   : > { %v4105_v61 = vmul.f32 0.5, %v4101_v60  ;;  %v3940_v62 = vsel %vm3438_vm8, %v19294_v59, -inf }
 0x5af   : > { %3941 = vmax.xlane.f32.xlu1 %v3940_v62  ;;  %v15846_v63 = vpop.f32.mrf.mxu0 }
 0x5b0   : > { %v4106_v1 = vadd.f32 %v4105_v61, %v19285_v41 }
 0x5b1   : > { %v4268_v2 = vpop.f32.mrf.mxu0 }
 0x5b2   : > { %v4272_v3 = vmul.f32 0.5, %v4268_v2  ;;  %v4107_v4 = vsel %vm3438_vm8, %v4106_v1, -inf }
 0x5b3   : > { %4108 = vmax.xlane.f32.xlu0 %v4107_v4  ;;  %v15856_v5 = vpop.f32.mrf.mxu0 }
 0x5b4   : > { %v4273_v6 = vadd.f32 %v4272_v3, %v19285_v41 }
 0x5b5   : > { %v4435_v7 = vpop.f32.mrf.mxu0 }
 0x5b6   : > { %v4439_v8 = vmul.f32 0.5, %v4435_v7  ;;  %v4274_v9 = vsel %vm3438_vm8, %v4273_v6, -inf }
 0x5b7   : > { %4275 = vmax.xlane.f32.xlu1 %v4274_v9  ;;  %v15866_v10 = vpop.f32.mrf.mxu0 }
 0x5b8   : > { %v4440_v11 = vadd.f32 %v4439_v8, %v19285_v41 }
 0x5b9   : > { %v4602_v12 = vpop.f32.mrf.mxu0 }
 0x5ba   : > { %v4441_v13 = vsel %vm3438_vm8, %v4440_v11, -inf  ;;  %v4606_v16 = vmul.f32 0.5, %v4602_v12 }
 0x5bb   : > { %4442 = vmax.xlane.f32.xlu0 %v4441_v13  ;;  %v15876_v14 = vpop.f32.mrf.mxu0 }
 0x5bc   : > { %v4607_v17 = vadd.f32 %v4606_v16, %v19285_v41 }
 0x5be   : > { %v4608_v19 = vsel %vm3438_vm8, %v4607_v17, -inf }
 0x5c8   : > { %3784 = vrot.lane.b32.xlu1 %v19206_v18, %s20765_s15  ;;  %s20771_s15 = smov 48  }
 0x5d1   : > { %3617 = vrot.lane.b32.xlu0 %v19206_v18, %s20806_s10 }
 0x5ec   : > { %4609 = vmax.xlane.f32.xlu1 %v4608_v19 }
 0x5fd   : > { %3951 = vrot.lane.b32.xlu1 %v19206_v18, %s20767_s23  ;;  %s20769_s23 = smov 44  }
 0x62c   : > { %v3441_v20 = vpop.xlane.xlu1 %3440 }
 0x62d   : > { %v3442_v21 = vsub.f32 %v3437_v44, %v3441_v20 }
 0x62f   : > { %v3443_v22 = vmul.f32 1.442695, %v3442_v21 }
 0x630   : > { %v3608_v23 = vpop.xlane.xlu0 %3607 }
 0x631   : > { %16918 = vpow2.f32 %v3443_v22  ;;  %v3609_v24 = vsub.f32 %v3605_v49, %v3608_v23 }
 0x633   : > { %v3610_v25 = vmul.f32 1.442695, %v3609_v24 }
 0x634   : > { %v3775_v26 = vpop.xlane.xlu0 %3774 }
 0x635   : > { %16920 = vpow2.f32 %v3610_v25  ;;  %v3776_v27 = vsub.f32 %v3772_v54, %v3775_v26 }
 0x637   : > { %v3777_v28 = vmul.f32 1.442695, %v3776_v27 }
 0x638   : > { %v3942_v35 = vpop.xlane.xlu1 %3941 }
 0x639   : > { %16922 = vpow2.f32 %v3777_v28  ;;  %v3943_v36 = vsub.f32 %v19294_v59, %v3942_v35 }
 0x63b   : > { %v3944_v42 = vmul.f32 1.442695, %v3943_v36 }
 0x63c   : > { %v4109_v38 = vpop.xlane.xlu0 %4108 }
 0x63d   : > { %v4110_v40 = vsub.f32 %v4106_v1, %v4109_v38  ;;  %16924 = vpow2.f32 %v3944_v42 }
 0x63e   : > { %v16919_v29 = vpop.eup %16918 }
 0x63f   : > { %v3445_v30 = vsel %vm3438_vm8, %v16919_v29, 0.0  ;;  %v4111_v45 = vmul.f32 1.442695, %v4110_v40 }
 0x640   : > { %3446 = vadd.xlane.f32.xlu0 %v3445_v30  ;;  %v4276_v39 = vpop.xlane.xlu1 %4275 }
 0x641   : > { %v4277_v43 = vsub.f32 %v4273_v6, %v4276_v39  ;;  %16926 = vpow2.f32 %v4111_v45 }
 0x642   : > { %v19313_v31 = vpop.eup %16920 }
 0x643   : > { %v3612_v32 = vsel %vm3438_vm8, %v19313_v31, 0.0  ;;  %v4278_v46 = vmul.f32 1.442695, %v4277_v43 }
 0x644   : > { %3613 = vadd.xlane.f32.xlu1 %v3612_v32  ;;  %v4443_v44 = vpop.xlane.xlu0 %4442  ;;  %v3785_v49 = vpop.permute.xlu1 %3784 }
 0x645   : > { %v4444_v47 = vsub.f32 %v4440_v11, %v4443_v44  ;;  %16928 = vpow2.f32 %v4278_v46 }
 0x646   : > { %v19317_v33 = vpop.eup %16922 }
 0x647   : > { %v3779_v34 = vsel %vm3438_vm8, %v19317_v33, 0.0  ;;  %v4445_v48 = vmul.f32 1.442695, %v4444_v47 }
 0x648   : > { %3780 = vadd.xlane.f32.xlu0 %v3779_v34  ;;  %v3618_v63 = vpop.permute.xlu0 %3617 }
 0x649   : > { %16930 = vpow2.f32 %v4445_v48 }
 0x64a   : > { %v16925_v50 = vpop.eup %16924 }
 0x64b   : > { %v3946_v55 = vsel %vm3438_vm8, %v16925_v50, 0.0 }
 0x64e   : > { %v19326_v53 = vpop.eup %16926 }
 0x64f   : > { %v4113_v57 = vsel %vm3438_vm8, %v19326_v53, 0.0 }
 0x652   : > { %v19329_v56 = vpop.eup %16928 }
 0x653   : > { %v4280_v58 = vsel %vm3438_vm8, %v19329_v56, 0.0 }
 0x655   : > { %4118 = vrot.lane.b32.xlu1 %v19206_v18, %s20771_s15  ;;  %s20773_s15 = smov 36  }
 0x656   : > { %v19335_v59 = vpop.eup %16930 }
 0x657   : > { %v4447_v60 = vsel %vm3438_vm8, %v19335_v59, 0.0 }
 0x65e   : > { %4285 = vrot.lane.b32.xlu0 %v19206_v18, %s20769_s23  ;;  %s20775_s23 = smov 40  }
 0x675   : > { %v4610_v51 = vpop.xlane.xlu1 %4609 }
 0x676   : > { %v4611_v52 = vsub.f32 %v4607_v17, %v4610_v51 }
 0x678   : > { %v4612_v54 = vmul.f32 1.442695, %v4611_v52 }
 0x679   : > { %3947 = vadd.xlane.f32.xlu1 %v3946_v55  ;;  %v3952_v1 = vpop.permute.xlu1 %3951 }
 0x67a   : > { %16932 = vpow2.f32 %v4612_v54 }
 0x67d   : > { %4114 = vadd.xlane.f32.xlu0 %v4113_v57  ;;  %4281 = vadd.xlane.f32.xlu1 %v4280_v58 }
 0x681   : > { %4448 = vadd.xlane.f32.xlu0 %v4447_v60 }
 0x687   : > { %v19339_v61 = vpop.eup %16932 }
 0x688   : > { %v4614_v62 = vsel %vm3438_vm8, %v19339_v61, 0.0 }
 0x689   : > { %4615 = vadd.xlane.f32.xlu0 %v4614_v62 }
 0x68e   : > { %4452 = vrot.lane.b32.xlu1 %v19206_v18, %s20775_s23  ;;  %s20783_s23 = smov 4  }
 0x69f   : > { %4619 = vrot.lane.b32.xlu0 %v19206_v18, %s20773_s15  ;;  %s20969_s15 = sld [smem:[#allocation153_spill]] }
 0x6a5   : > { %v3356_v38 = vld [vmem:[%s20969_s15 + $0x18] sm:$0xff]  ;;  %v3355_v40 = vld [vmem:[%s20969_s15 + $0x10] sm:$0xff]  ;;  %v3354_v42 = vld [vmem:[%s20969_s15 + $0x8] sm:$0xff] }
 0x6a6   : > { %15883 = vmatpush3.msra.mxu0 %v3356_v38  ;;  %v3353_v45 = vld [vmem:[%s20969_s15] sm:$0xff]  ;;  %s20990_s15 = smov 40  }
 0x6a7   : > { %15884 = vmatprep.subr.mxu0 %v18371_v0 }
 0x6a8   : > { %15885 = vmatpush3.msra.mxu0 %v3355_v40 }
 0x6a9   : > { %15886 = vmatprep.subr.mxu0 %v18371_v0 }
 0x6aa   : > { %15887 = vmatpush3.msra.mxu0 %v3354_v42 }
 0x6ab   : > { %15888 = vmatprep.subr.mxu0 %v18371_v0 }
 0x6ac   : > { %15889 = vmatpush3.msra.mxu0 %v3353_v45 }
 0x6c9   : > { %v3447_v2 = vpop.xlane.xlu0 %3446 }
 0x6ca   : > { %16934 = vrcp.f32 %v3447_v2 }
 0x6cd   : > { %v3614_v3 = vpop.xlane.xlu1 %3613 }
 0x6ce   : > { %16936 = vrcp.f32 %v3614_v3 }
 0x6d1   : > { %v3781_v4 = vpop.xlane.xlu0 %3780  ;;  %v4119_v10 = vpop.permute.xlu1 %4118 }
 0x6d2   : > { %16938 = vrcp.f32 %v3781_v4  ;;  %v15152_v4 = vld [vmem:[#allocation48] ss:$0 sm:$0xff] }
 0x6d5   : > { %v4286_v11 = vpop.permute.xlu0 %4285 }
 0x6d7   : > { %v16935_v5 = vpop.eup %16934 }
 0x6d8   : > { %v3449_v6 = vmul.f32 %v16935_v5, %v16919_v29 }
 0x6da   : > { %15810 = vmatmul.mubr.msk.f32.vlgmr.msra.gmra.mxu1 %vm3438_vm8, %v3449_v6 }
 0x6db   : > { %v16937_v7 = vpop.eup %16936  ;;  %15818 = vmatpush3.msra.mxu1 %v3618_v63  ;;  %15819 = vmatprep.mubr.msk.f32.mxu1 %vm18372_vm0, %v18371_v0 }
 0x6dc   : > { %15827 = vmatprep.subr.mxu1 %v18371_v0  ;;  %v3616_v18 = vmul.f32 %v16937_v7, %v19313_v31 }
 0x6de   : > { %15820 = vmatmul.mubr.msk.f32.vlgmr.msra.gmra.mxu1 %vm3438_vm8, %v3616_v18 }
 0x6df   : > { %v16939_v8 = vpop.eup %16938  ;;  %15828 = vmatpush3.msra.mxu1 %v3785_v49  ;;  %15829 = vmatprep.mubr.msk.f32.mxu1 %vm18372_vm0, %v18371_v0 }
 0x6e0   : > { %15837 = vmatprep.subr.mxu1 %v18371_v0  ;;  %v3783_v9 = vmul.f32 %v16939_v8, %v19317_v33 }
 0x6e2   : > { %15830 = vmatmul.mubr.msk.f32.vlgmr.msra.gmra.mxu1 %vm3438_vm8, %v3783_v9 }
 0x6e3   : > { %15838 = vmatpush3.msra.mxu1 %v3952_v1  ;;  %15839 = vmatprep.mubr.msk.f32.mxu1 %vm18372_vm0, %v18371_v0 }
 0x6e4   : > { %15847 = vmatprep.subr.mxu1 %v18371_v0 }
 0x702   : > { %v3948_v12 = vpop.xlane.xlu1 %3947 }
 0x703   : > { %16940 = vrcp.f32 %v3948_v12 }
 0x706   : > { %v4115_v13 = vpop.xlane.xlu0 %4114  ;;  %v4282_v14 = vpop.xlane.xlu1 %4281 }
 0x707   : > { %16942 = vrcp.f32 %v4115_v13 }
 0x708   : > { %16944 = vrcp.f32 %v4282_v14 }
 0x70a   : > { %v4449_v16 = vpop.xlane.xlu0 %4448  ;;  %v4453_v26 = vpop.permute.xlu1 %4452 }
 0x70b   : > { %16946 = vrcp.f32 %v4449_v16 }
 0x710   : > { %v16941_v17 = vpop.eup %16940 }
 0x711   : > { %v3950_v19 = vmul.f32 %v16941_v17, %v16925_v50 }
 0x712   : > { %v4616_v20 = vpop.xlane.xlu0 %4615 }
 0x713   : > { %16948 = vrcp.f32 %v4616_v20  ;;  %15840 = vmatmul.mubr.msk.f32.vlgmr.msra.gmra.mxu1 %vm3438_vm8, %v3950_v19 }
 0x714   : > { %v16943_v21 = vpop.eup %16942  ;;  %15848 = vmatpush3.msra.mxu1 %v4119_v10  ;;  %15849 = vmatprep.mubr.msk.f32.mxu1 %vm18372_vm0, %v18371_v0 }
 0x715   : > { %15857 = vmatprep.subr.mxu1 %v18371_v0  ;;  %v4117_v22 = vmul.f32 %v16943_v21, %v19326_v53  ;;  %v16945_v23 = vpop.eup %16944 }
 0x716   : > { %v4284_v24 = vmul.f32 %v16945_v23, %v19329_v56  ;;  %v4620_v28 = vpop.permute.xlu0 %4619 }
 0x717   : > { %15850 = vmatmul.mubr.msk.f32.vlgmr.msra.gmra.mxu1 %vm3438_vm8, %v4117_v22 }
 0x718   : > { %15858 = vmatpush3.msra.mxu1 %v4286_v11  ;;  %15859 = vmatprep.mubr.msk.f32.mxu1 %vm18372_vm0, %v18371_v0  ;;  %v16947_v25 = vpop.eup %16946 }
 0x719   : > { %15867 = vmatprep.subr.mxu1 %v18371_v0  ;;  %v4451_v27 = vmul.f32 %v16947_v25, %v19335_v59 }
 0x71b   : > { %15860 = vmatmul.mubr.msk.f32.vlgmr.msra.gmra.mxu1 %vm3438_vm8, %v4284_v24 }
 0x71c   : > { %15868 = vmatpush3.msra.mxu1 %v4453_v26  ;;  %15869 = vmatprep.mubr.msk.f32.mxu1 %vm18372_vm0, %v18371_v0 }
 0x71d   : > { %15877 = vmatprep.subr.mxu1 %v18371_v0 }
 0x71f   : > { %15870 = vmatmul.mubr.msk.f32.vlgmr.msra.gmra.mxu1 %vm3438_vm8, %v4451_v27 }
 0x720   : > { %v16949_v29 = vpop.eup %16948  ;;  %15878 = vmatpush3.msra.mxu1 %v4620_v28  ;;  %15879 = vmatprep.mubr.msk.f32.mxu1 %vm18372_vm0, %v18371_v0 }
 0x721   : > { %v4618_v30 = vmul.f32 %v16949_v29, %v19339_v61 }
 0x723   : > { %15880 = vmatmul.mubr.msk.f32.vlgmr.msra.gmra.mxu1 %vm3438_vm8, %v4618_v30 }
 0x724   : > { %4932 = vmatprep.mubr.f32.mxu1 %v18371_v0 }
 0x79a   : > { %v3522_v31 = vpop.f32.mrf.mxu1 }
 0x79c   : > { %v15811_v32 = vpop.f32.mrf.mxu1 }
 0x79e   : > { %v3689_v33 = vpop.f32.mrf.mxu1 }
 0x79f   : > { %4696 = vrot.lane.b32.xlu1 %v3689_v33, %s20783_s23  ;;  %s20793_s23 = smov 20  }
 0x7a0   : > { %v15821_v34 = vpop.f32.mrf.mxu1 }
 0x7a2   : > { %v3856_v35 = vpop.f32.mrf.mxu1 }
 0x7a3   : > { %4700 = vrot.lane.b32.xlu0 %v3856_v35, %s20781_s11  ;;  %s20795_s11 = smov 16  }
 0x7a4   : > { %v15831_v36 = vpop.f32.mrf.mxu1 }
 0x7d3   : > { %v4023_v39 = vpop.f32.mrf.mxu1 }
 0x7d4   : > { %4704 = vrot.lane.b32.xlu1 %v4023_v39, %s20785_s1  ;;  %s20791_s1 = smov 24  }
 0x7d5   : > { %v15841_v43 = vpop.f32.mrf.mxu1 }
 0x7d7   : > { %v4190_v44 = vpop.f32.mrf.mxu1 }
 0x7d8   : > { %4708 = vrot.lane.b32.xlu0 %v4190_v44, %s20795_s11  ;;  %s20973_s11 = sld [smem:[#allocation167_spill]] }
 0x7d9   : > { %v15851_v46 = vpop.f32.mrf.mxu1 }
 0x7db   : > { %v4357_v47 = vpop.f32.mrf.mxu1 }
 0x7dc   : > { %4712 = vrot.lane.b32.xlu1 %v4357_v47, %s20793_s23  ;;  %s20972_s23 = sld [smem:[#allocation144_spill]] }
 0x7dd   : > { %v15861_v48 = vpop.f32.mrf.mxu1 }
 0x7df   : > { %v4524_v49 = vpop.f32.mrf.mxu1 }
 0x7e0   : > { %4716 = vrot.lane.b32.xlu0 %v4524_v49, %s20791_s1  ;;  %s20971_s1 = sld [smem:[#allocation147_spill]] }
 0x7e1   : > { %v15871_v50 = vpop.f32.mrf.mxu1 }
 0x7e3   : > { %v4691_v51 = vpop.f32.mrf.mxu1 }
 0x7e4   : > { %4720 = vrot.lane.b32.xlu1 %v4691_v51, %s20789_s7  ;;  %s20970_s7 = sld [smem:[#allocation145_spill]] }
 0x7e5   : > { %v15881_v52 = vpop.f32.mrf.mxu1 }
 0x7e6   : > { %v4972_v23 = vld [vmem:[%s20971_s1 + $0xf8] sm:$0xff]  ;;  %v4971_v25 = vld [vmem:[%s20971_s1 + $0xf0] sm:$0xff]  ;;  %v4970_v27 = vld [vmem:[%s20971_s1 + $0xe8] sm:$0xff] }
 0x7e7   : > { %v4956_v24 = vld [vmem:[%s20971_s1 + $0x78] sm:$0xff]  ;;  %15389 = vmatprep.subr.mxu0 %v4972_v23  ;;  %v4955_v26 = vld [vmem:[%s20971_s1 + $0x70] sm:$0xff]  ;;  %v4954_v28 = vld [vmem:[%s20971_s1 + $0x68] sm:$0xff] }
 0x7e8   : > { %v4969_v29 = vld [vmem:[%s20971_s1 + $0xe0] sm:$0xff]  ;;  %v4952_v32 = vld [vmem:[%s20971_s1 + $0x58] sm:$0xff]  ;;  %v4967_v33 = vld [vmem:[%s20971_s1 + $0xd0] sm:$0xff] }
 0x7e9   : > { %v4953_v30 = vld [vmem:[%s20971_s1 + $0x60] sm:$0xff]  ;;  %v4951_v34 = vld [vmem:[%s20971_s1 + $0x50] sm:$0xff]  ;;  %v4966_v35 = vld [vmem:[%s20971_s1 + $0xc8] sm:$0xff] }
 0x7ea   : > { %v4852_v14 = vld [vmem:[%s20970_s7 + $0x38] sm:$0xff]  ;;  %v4851_v16 = vld [vmem:[%s20970_s7 + $0x30] sm:$0xff]  ;;  %v4849_v17 = vld [vmem:[%s20970_s7 + $0x20] sm:$0xff] }
 0x7eb   : > { %4892 = vmatprep.subr.mxu1 %v4852_v14  ;;  %v4848_v19 = vld [vmem:[%s20970_s7 + $0x18] sm:$0xff]  ;;  %v4847_v20 = vld [vmem:[%s20970_s7 + $0x10] sm:$0xff]  ;;  %v4846_v21 = vld [vmem:[%s20970_s7 + $0x8] sm:$0xff] }
 0x7ec   : > { %4893 = vmatpush1.msra.mxu1 %v4851_v16  ;;  %v4845_v22 = vld [vmem:[%s20970_s7] sm:$0xff]  ;;  %v4950_v36 = vld [vmem:[%s20971_s1 + $0x48] sm:$0xff]  ;;  %v4964_v40 = vld [vmem:[%s20971_s1 + $0xb8] sm:$0xff] }
 0x7ed   : > { %v4965_v38 = vld [vmem:[%s20971_s1 + $0xc0] sm:$0xff]  ;;  %v4948_v42 = vld [vmem:[%s20971_s1 + $0x38] sm:$0xff]  ;;  %v4963_v43 = vld [vmem:[%s20971_s1 + $0xb0] sm:$0xff] }
 0x7ee   : > { %v4949_v39 = vld [vmem:[%s20971_s1 + $0x40] sm:$0xff]  ;;  %v4947_v44 = vld [vmem:[%s20971_s1 + $0x30] sm:$0xff]  ;;  %v4962_v45 = vld [vmem:[%s20971_s1 + $0xa8] sm:$0xff] }
 0x7ef   : > { %v4946_v46 = vld [vmem:[%s20971_s1 + $0x28] sm:$0xff]  ;;  %v4961_v47 = vld [vmem:[%s20971_s1 + $0xa0] sm:$0xff] }
 0x7f0   : > { %v4945_v48 = vld [vmem:[%s20971_s1 + $0x20] sm:$0xff] }
 0x811   : > { %v4697_v53 = vpop.permute.xlu1 %4696 }
 0x812   : > { %v4723_v57 = vsel %vm3361_vm6, %v3522_v31, %v4697_v53  ;;  %v4968_v31 = vld [vmem:[%s20971_s1 + $0xd8] sm:$0xff]  ;;  %v15154_v53 = vld [vmem:[#allocation43] ss:$0 sm:$0xff] }
 0x815   : > { %v4701_v54 = vpop.permute.xlu0 %4700 }
 0x816   : > { %v4724_v58 = vsel %vm3438_vm8, %v4723_v57, %v4701_v54 }
 0x846   : > { %v4705_v55 = vpop.permute.xlu1 %4704 }
 0x847   : > { %v4726_v60 = vsel %vm4725_vm9, %v4724_v58, %v4705_v55  ;;  %v15155_v55 = vld [vmem:[#allocation42] ss:$0 sm:$0xff]  ;;  %v4960_v58 = vld [vmem:[%s20971_s1 + $0x98] sm:$0xff] }
 0x84a   : > { %v4709_v56 = vpop.permute.xlu0 %4708 }
 0x84b   : > { %v4728_v62 = vsel %vm4727_vm10, %v4726_v60, %v4709_v56  ;;  %v4959_v60 = vld [vmem:[%s20971_s1 + $0x90] sm:$0xff] }
 0x84e   : > { %v4713_v59 = vpop.permute.xlu1 %4712 }
 0x84f   : > { %v4730_v63 = vsel %vm4729_vm11, %v4728_v62, %v4713_v59  ;;  %v4944_v59 = vld [vmem:[%s20971_s1 + $0x18] sm:$0xff]  ;;  %v4958_v62 = vld [vmem:[%s20971_s1 + $0x88] sm:$0xff] }
 0x852   : > { %v4717_v61 = vpop.permute.xlu0 %4716 }
 0x853   : > { %v4732_v1 = vsel %vm4731_vm12, %v4730_v63, %v4717_v61  ;;  %v4943_v61 = vld [vmem:[%s20971_s1 + $0x10] sm:$0xff]  ;;  %v4942_v63 = vld [vmem:[%s20971_s1 + $0x8] sm:$0xff] }
 0x856   : > { %v4721_v2 = vpop.permute.xlu1 %4720 }
 0x857   : > { %v4734_v3 = vsel %vm4733_vm13, %v4732_v1, %v4721_v2  ;;  %v4957_v1 = vld [vmem:[%s20971_s1 + $0x80] sm:$0xff] }
 0x858   : > { %15891 = vmatmul.mubr.msk.f32.vlgmr.msra.gmra.mxu0 %vm3279_vm5, %v4734_v3  ;;  %v4941_v2 = vld [vmem:[%s20971_s1] sm:$0xff]  ;;  %v19458_v3 = vsub.s32 0, %v19282_v37  ;;  %s20979_s1 = smov 68  }
 0x859   : > { %15390 = vmatpush3.msra.mxu0 %v4956_v24 }
 0x85a   : > { %15391 = vmatprep.subr.mxu0 %v4971_v25  ;;  %v5083_v25 = vld [vmem:[%s20973_s11 + $0x18] sm:$0xff] }
 0x85b   : > { %15392 = vmatpush3.msra.mxu0 %v4955_v26  ;;  %v5082_v26 = vld [vmem:[%s20973_s11 + $0x10] sm:$0xff] }
 0x85c   : > { %15393 = vmatprep.subr.mxu0 %v4970_v27  ;;  %v5081_v27 = vld [vmem:[%s20973_s11 + $0x8] sm:$0xff] }
 0x85d   : > { %15394 = vmatpush3.msra.mxu0 %v4954_v28  ;;  %v5080_v28 = vld [vmem:[%s20973_s11] sm:$0xff]  ;;  %s20987_s11 = smov 56  }
 0x85e   : > { %15395 = vmatprep.subr.mxu0 %v4969_v29 }
 0x85f   : > { %15396 = vmatpush3.msra.mxu0 %v4953_v30 }
 0x860   : > { %15397 = vmatprep.subr.mxu0 %v4968_v31 }
 0x861   : > { %15398 = vmatpush3.msra.mxu0 %v4952_v32 }
 0x862   : > { %15399 = vmatprep.subr.mxu0 %v4967_v33  ;;  %v15158_v33 = vld [vmem:[#allocation46] ss:$0 sm:$0xff] }
 0x863   : > { %15400 = vmatpush3.msra.mxu0 %v4951_v34 }
 0x864   : > { %15401 = vmatprep.subr.mxu0 %v4966_v35  ;;  %v15159_v35 = vld [vmem:[#allocation45] ss:$0 sm:$0xff] }
 0x865   : > { %15402 = vmatpush3.msra.mxu0 %v4950_v36 }
 0x866   : > { %15403 = vmatprep.subr.mxu0 %v4965_v38 }
 0x867   : > { %15404 = vmatpush3.msra.mxu0 %v4949_v39  ;;  %v15160_v39 = vld [vmem:[#allocation60] ss:$0 sm:$0xff] }
 0x868   : > { %15405 = vmatprep.subr.mxu0 %v4964_v40 }
 0x869   : > { %15406 = vmatpush3.msra.mxu0 %v4948_v42 }
 0x86a   : > { %15407 = vmatprep.subr.mxu0 %v4963_v43 }
 0x86b   : > { %15408 = vmatpush3.msra.mxu0 %v4947_v44 }
 0x86c   : > { %15409 = vmatprep.subr.mxu0 %v4962_v45 }
 0x86d   : > { %15410 = vmatpush3.msra.mxu0 %v4946_v46 }
 0x86e   : > { %15411 = vmatprep.subr.mxu0 %v4961_v47 }
 0x86f   : > { %15412 = vmatpush3.msra.mxu0 %v4945_v48 }
 0x870   : > { %15413 = vmatprep.subr.mxu0 %v4960_v58 }
 0x871   : > { %15414 = vmatpush3.msra.mxu0 %v4944_v59 }
 0x872   : > { %15415 = vmatprep.subr.mxu0 %v4959_v60 }
 0x873   : > { %15416 = vmatpush3.msra.mxu0 %v4943_v61 }
 0x874   : > { %15417 = vmatprep.subr.mxu0 %v4958_v62 }
 0x875   : > { %15418 = vmatpush3.msra.mxu0 %v4942_v63 }
 0x876   : > { %15419 = vmatprep.subr.mxu0 %v4957_v1 }
 0x877   : > { %15420 = vmatpush3.msra.mxu0 %v4941_v2 }
 0x878   : > { %15934 = vmatprep.subr.mxu0 %v18371_v0 }
 0x918   : > { %v4810_v5 = vpop.f32.mrf.mxu0 }
 0x919   : > { %v4811_v6 = vadd.f32 %v15152_v4, %v4810_v5  ;;  %v4853_v4 = vld [vmem:[%s20972_s23] sm:$0x3]  ;;  %v19462_v5 = vsub.s32 1, %v19282_v37  ;;  %v15157_v37 = vld [vmem:[#allocation40] ss:$0 sm:$0xff]  ;;  %s20974_s23 = smov 120  }
 0x91a   : > { %v15892_v7 = vpop.f32.mrf.mxu0 }
 0x91b   : > { %v4814_v18 = vadd.f32 %v4811_v6, %v19200_v15  ;;  %v4850_v15 = vld [vmem:[%s20970_s7 + $0x28] sm:$0xff]  ;;  %v4858_v6 = vrot.slane %v4853_v4, %v19458_v3  ;;  %v4862_v7 = vrot.slane %v4853_v4, %v19462_v5  ;;  %s20984_s7 = smov 104  }
 0x91c   : > { %4894 = vmatprep.subr.mxu1 %v4850_v15 }
 0x91d   : > { %v4817_v8 = vsel %vm3279_vm5, %v4814_v18, 0.0  ;;  %4895 = vmatpush1.msra.mxu1 %v4849_v17 }
 0x91e   : > { %4818 = vadd.xlane.f32.xlu0 %v4817_v8  ;;  %4896 = vmatprep.subr.mxu1 %v4848_v19 }
 0x91f   : > { %4897 = vmatpush1.msra.mxu1 %v4847_v20 }
 0x920   : > { %4898 = vmatprep.subr.mxu1 %v4846_v21 }
 0x921   : > { %4899 = vmatpush1.msra.mxu1 %v4845_v22 }
 0x922   : > { %15893 = vmatprep.subr.mxu1 %v18371_v0 }
 0x9a7   : > { %v4819_v9 = vpop.xlane.xlu0 %4818 }
 0x9a8   : > { %v4821_v10 = vmul.f32 0.03125, %v4819_v9 }
 0x9aa   : > { %v19406_v11 = vsub.f32 %v4814_v18, %v4821_v10 }
 0x9ac   : > { %v4823_v12 = vmul.f32 %v19406_v11, %v19406_v11 }
 0x9ae   : > { %v4824_v13 = vsel %vm3279_vm5, %v4823_v12, 0.0 }
 0x9af   : > { %4825 = vadd.xlane.f32.xlu1 %v4824_v13 }
 0xa38   : > { %v4826_v49 = vpop.xlane.xlu1 %4825 }
 0xa39   : > { %v4827_v50 = vmul.f32 0.03125, %v4826_v49 }
 0xa3b   : > { %v4828_v51 = vadd.f32 1e-05, %v4827_v50 }
 0xa3d   : > { %16950 = vrsqrt.f32 %v4828_v51 }
 0xa4a   : > { %v16951_v52 = vpop.eup %16950 }
 0xa4b   : > { %v4830_v54 = vmul.f32 %v16951_v52, %v19406_v11 }
 0xa4d   : > { %v4837_v56 = vmul.f32 %v15154_v53, %v4830_v54 }
 0xa4f   : > { %v4844_v57 = vadd.f32 %v15155_v55, %v4837_v56 }
 0xa51   : > { %15156 = vmatmul.mubr.msk.f32.vlgmr.msra.gmra.mxu1 %vm3279_vm5, %v4844_v57 }
 0xa52   : > { %15901 = vmatprep.mubr.msk.f32.mxu1 %vm18372_vm0, %v18371_v0  ;;  %15894 = vmatpush3.msra.mxu1 %v5083_v25 }
 0xa53   : > { %15895 = vmatprep.subr.mxu1 %v18371_v0 }
 0xa54   : > { %15896 = vmatpush3.msra.mxu1 %v5082_v26 }
 0xa55   : > { %15897 = vmatprep.subr.mxu1 %v18371_v0 }
 0xa56   : > { %15898 = vmatpush3.msra.mxu1 %v5081_v27 }
 0xa57   : > { %15899 = vmatprep.subr.mxu1 %v18371_v0 }
 0xa58   : > { %15900 = vmatpush3.msra.mxu1 %v5080_v28 }
 0xa59   : > { %15904 = vmatprep.subr.mxu1 %v18371_v0 }
 0xb11   : > { %v4934_v18 = vpop.f32.mrf.mxu1 }
 0xb12   : > { %v4935_v8 = vadd.f32 %v4934_v18, %v4858_v6 }
 0xb13   : > { %v4936_v9 = vpop.f32.mrf.mxu1 }
 0xb14   : > { %v4937_v10 = vadd.f32 %v4936_v9, %v4862_v7  ;;  %v4939_v12 = vmax.f32 %v4935_v8, 0.0 }
 0xb16   : > { %v4940_v11 = vmax.f32 %v4937_v10, 0.0 }
 0xb18   : > { %5044 = vmatprep.mubr.f32.mxu0 %v4940_v11 }
 0xb19   : > { %5045 = vmatmul.mubr.f32.vlgmr.msra.gmra.mxu0 %v4939_v12 }
 0xb1a   : > { %15936 = vmatprep.mubr.msk.f32.mxu0 %vm18372_vm0, %v18371_v0 }
 0xbd9   : > { %v15421_v13 = vpop.f32.mrf.mxu0 }
 0xbdb   : > { %v15422_v14 = vpop.f32.mrf.mxu0 }
 0xbdc   : > { %v15423_v16 = vadd.f32 %v15422_v14, %v15421_v13 }
 0xbde   : > { %v5047_v15 = vadd.f32 %v15423_v16, %v15157_v37 }
 0xbe0   : > { %v5050_v17 = vadd.f32 %v5047_v15, %v4844_v57 }
 0xbe2   : > { %v5053_v19 = vsel %vm3279_vm5, %v5050_v17, 0.0 }
 0xbe3   : > { %5054 = vadd.xlane.f32.xlu0 %v5053_v19 }
 0xc6c   : > { %v5055_v20 = vpop.xlane.xlu0 %5054 }
 0xc6d   : > { %v5056_v21 = vmul.f32 0.03125, %v5055_v20 }
 0xc6f   : > { %v5057_v22 = vsub.f32 %v5050_v17, %v5056_v21 }
 0xc71   : > { %v5058_v23 = vmul.f32 %v5057_v22, %v5057_v22 }
 0xc73   : > { %v5059_v24 = vsel %vm3279_vm5, %v5058_v23, 0.0 }
 0xc74   : > { %5060 = vadd.xlane.f32.xlu0 %v5059_v24 }
 0xcfd   : > { %v5061_v29 = vpop.xlane.xlu0 %5060 }
 0xcfe   : > { %v5062_v30 = vmul.f32 0.03125, %v5061_v29 }
 0xd00   : > { %v5063_v31 = vadd.f32 1e-05, %v5062_v30 }
 0xd02   : > { %16952 = vrsqrt.f32 %v5063_v31 }
 0xd0f   : > { %v16953_v32 = vpop.eup %16952 }
 0xd10   : > { %v5065_v34 = vmul.f32 %v16953_v32, %v5057_v22 }
 0xd12   : > { %v5072_v36 = vmul.f32 %v15158_v33, %v5065_v34 }
 0xd14   : > { %v19478_v38 = vadd.f32 %v15159_v35, %v5072_v36 }
 0xd16   : > { %15902 = vmatmul.mubr.msk.f32.vlgmr.msra.gmra.mxu1 %vm3279_vm5, %v19478_v38 }
 0xd17   : > { %15906 = vmatprep.mubr.msk.f32.mxu1 %vm18372_vm0, %v18371_v0 }
 0xdd6   : > { %v5160_v40 = vpop.f32.mrf.mxu1 }
 0xdd7   : > { %v19484_v42 = vadd.f32 %v15160_v39, %v5160_v40 }
 0xdd8   : > { %v15903_v43 = vpop.f32.mrf.mxu1 }
 0xdd9   : > { %5170 = vrot.lane.b32.xlu1 %v19484_v42, %s20801_s16  ;;  %s20977_s16 = smov 76  }
 0xddd   : > { %5337 = vrot.lane.b32.xlu1 %v19484_v42, %s20803_s18  ;;  %s20978_s18 = smov 72  }
 0xde1   : > { %5335 = vrot.lane.b32.xlu1 %v19484_v42, %s20799_s22  ;;  %s20976_s22 = smov 80  }
 0xe4b   : > { %v5171_v44 = vpop.permute.xlu1 %5170 }
 0xe4c   : > { %15905 = vmatpush3.xpose.msk.msra.mxu1 %vm3361_vm6, %v5171_v44 }
 0xe4d   : > { %15909 = vmatprep.subr.mxu1 %v18371_v0 }
 0xe4f   : > { %15907 = vmatmul.mubr.msk.f32.vlgmr.msra.gmra.mxu1 %vm3361_vm6, %v19484_v42  ;;  %v5338_v58 = vpop.permute.xlu1 %5337 }
 0xe50   : > { %15911 = vmatprep.mubr.msk.f32.mxu1 %vm18372_vm0, %v18371_v0 }
 0xe53   : > { %v5336_v60 = vpop.permute.xlu1 %5335 }
 0xf0f   : > { %v5242_v45 = vpop.f32.mrf.mxu1 }
 0xf10   : > { %v5246_v46 = vmul.f32 0.5, %v5242_v45 }
 0xf11   : > { %v15908_v47 = vpop.f32.mrf.mxu1 }
 0xf12   : > { %v5247_v48 = vadd.f32 %v5246_v46, %v19285_v41 }
 0xf14   : > { %v5248_v49 = vsel %vm3438_vm8, %v5247_v48, -inf }
 0xf15   : > { %5249 = vmax.xlane.f32.xlu0 %v5248_v49 }
 0xf9e   : > { %v5250_v50 = vpop.xlane.xlu0 %5249 }
 0xf9f   : > { %v5251_v51 = vsub.f32 %v5247_v48, %v5250_v50 }
 0xfa1   : > { %v5252_v52 = vmul.f32 1.442695, %v5251_v51 }
 0xfa3   : > { %16954 = vpow2.f32 %v5252_v52 }
 0xfb0   : > { %v16955_v53 = vpop.eup %16954 }
 0xfb1   : > { %v5254_v54 = vsel %vm3438_vm8, %v16955_v53, 0.0 }
 0xfb2   : > { %5255 = vadd.xlane.f32.xlu0 %v5254_v54 }
 0xfc8   : > { %5259 = vrot.lane.b32.xlu0 %v19484_v42, %s20797_s26  ;;  %s20975_s26 = smov 84  }
0x103b   : > { %v5256_v55 = vpop.xlane.xlu0 %5255 }
0x103c   : > { %16956 = vrcp.f32 %v5256_v55 }
0x103f   : > { %v5260_v56 = vpop.permute.xlu0 %5259 }
0x1040   : > { %15910 = vmatpush3.msra.mxu1 %v5260_v56 }
0x1041   : > { %15914 = vmatprep.subr.mxu1 %v18371_v0 }
0x1049   : > { %v16957_v57 = vpop.eup %16956 }
0x104a   : > { %v5258_v59 = vmul.f32 %v16957_v57, %v16955_v53 }
0x104c   : > { %15912 = vmatmul.mubr.msk.f32.vlgmr.msra.gmra.mxu1 %vm3438_vm8, %v5258_v59 }
0x104d   : > { %15915 = vmatpush3.xpose.msk.msra.mxu1 %vm3361_vm6, %v5338_v58  ;;  %15916 = vmatprep.mubr.msk.f32.mxu1 %vm18372_vm0, %v18371_v0 }
0x104e   : > { %15919 = vmatprep.subr.mxu1 %v18371_v0 }
0x1050   : > { %15917 = vmatmul.mubr.msk.f32.vlgmr.msra.gmra.mxu1 %vm3361_vm6, %v5336_v60 }
0x1051   : > { %15921 = vmatprep.mubr.msk.f32.mxu1 %vm18372_vm0, %v18371_v0 }
0x110c   : > { %v19512_v61 = vpop.f32.mrf.mxu1 }
0x110e   : > { %v15913_v62 = vpop.f32.mrf.mxu1 }
0x1110   : > { %v5409_v63 = vpop.f32.mrf.mxu1 }
0x1111   : > { %v5413_v1 = vmul.f32 0.5, %v5409_v63 }
0x1112   : > { %v15918_v2 = vpop.f32.mrf.mxu1 }
0x1113   : > { %v5414_v4 = vadd.f32 %v5413_v1, %v19285_v41 }
0x1115   : > { %v5415_v6 = vsel %vm3438_vm8, %v5414_v4, -inf }
0x1116   : > { %5416 = vmax.xlane.f32.xlu1 %v5415_v6 }
0x1127   : > { %5426 = vrot.lane.b32.xlu1 %v19484_v42, %s20806_s10  ;;  %s20980_s10 = smov 88  }
0x112b   : > { %5502 = vrot.lane.b32.xlu1 %v19484_v42, %s20974_s23 }
0x112f   : > { %5671 = vrot.lane.b32.xlu1 %v19484_v42, %s20975_s26 }
0x1133   : > { %5838 = vrot.lane.b32.xlu1 %v19484_v42, %s20976_s22 }
0x1137   : > { %6005 = vrot.lane.b32.xlu1 %v19484_v42, %s20977_s16 }
0x113b   : > { %6172 = vrot.lane.b32.xlu1 %v19484_v42, %s20978_s18 }
0x113f   : > { %6339 = vrot.lane.b32.xlu1 %v19484_v42, %s20979_s1 }
0x119f   : > { %v5417_v7 = vpop.xlane.xlu1 %5416 }
0x11a0   : > { %v5418_v18 = vsub.f32 %v5414_v4, %v5417_v7 }
0x11a2   : > { %v5419_v8 = vmul.f32 1.442695, %v5418_v18 }
0x11a3   : > { %v5427_v9 = vpop.permute.xlu1 %5426 }
0x11a4   : > { %16958 = vpow2.f32 %v5419_v8  ;;  %15920 = vmatpush3.msra.mxu1 %v5427_v9 }
0x11a5   : > { %15924 = vmatprep.subr.mxu1 %v18371_v0 }
0x11a7   : > { %v5503_v10 = vpop.permute.xlu1 %5502 }
0x11ab   : > { %v5672_v11 = vpop.permute.xlu1 %5671 }
0x11ac   : > { %15935 = vmatpush3.xpose.msk.msra.mxu0 %vm3361_vm6, %v5672_v11 }
0x11ad   : > { %15944 = vmatprep.subr.mxu0 %v18371_v0 }
0x11af   : > { %v5839_v14 = vpop.permute.xlu1 %5838 }
0x11b1   : > { %v16959_v12 = vpop.eup %16958 }
0x11b2   : > { %v5421_v13 = vsel %vm3438_vm8, %v16959_v12, 0.0 }
0x11b3   : > { %5422 = vadd.xlane.f32.xlu0 %v5421_v13  ;;  %v6006_v17 = vpop.permute.xlu1 %6005 }
0x11b7   : > { %v6173_v21 = vpop.permute.xlu1 %6172 }
0x11bb   : > { %v6340_v25 = vpop.permute.xlu1 %6339 }
0x11c9   : > { %5504 = vrot.lane.b32.xlu0 %v19484_v42, %s20980_s10 }
0x11cd   : > { %5669 = vrot.lane.b32.xlu0 %v19484_v42, %s20981_s3 }
0x11d1   : > { %5836 = vrot.lane.b32.xlu0 %v19484_v42, %s20982_s4 }
0x11d5   : > { %6003 = vrot.lane.b32.xlu0 %v19484_v42, %s20983_s5 }
0x11d9   : > { %6170 = vrot.lane.b32.xlu0 %v19484_v42, %s20984_s7 }
0x11dd   : > { %6337 = vrot.lane.b32.xlu0 %v19484_v42, %s20985_s8 }
0x123c   : > { %v5423_v37 = vpop.xlane.xlu0 %5422 }
0x123d   : > { %16960 = vrcp.f32 %v5423_v37 }
0x1240   : > { %v5505_v16 = vpop.permute.xlu0 %5504 }
0x1244   : > { %v5670_v15 = vpop.permute.xlu0 %5669 }
0x1245   : > { %15937 = vmatmul.mubr.msk.f32.vlgmr.msra.gmra.mxu0 %vm3361_vm6, %v5670_v15 }
0x1246   : > { %15945 = vmatpush3.xpose.msk.msra.mxu0 %vm3361_vm6, %v5839_v14  ;;  %15946 = vmatprep.mubr.msk.f32.mxu0 %vm18372_vm0, %v18371_v0 }
0x1247   : > { %15954 = vmatprep.subr.mxu0 %v18371_v0 }
0x1248   : > { %v5837_v19 = vpop.permute.xlu0 %5836 }
0x1249   : > { %15947 = vmatmul.mubr.msk.f32.vlgmr.msra.gmra.mxu0 %vm3361_vm6, %v5837_v19 }
0x124a   : > { %v16961_v20 = vpop.eup %16960  ;;  %15955 = vmatpush3.xpose.msk.msra.mxu0 %vm3361_vm6, %v6006_v17  ;;  %15956 = vmatprep.mubr.msk.f32.mxu0 %vm18372_vm0, %v18371_v0 }
0x124b   : > { %15964 = vmatprep.subr.mxu0 %v18371_v0  ;;  %v5425_v22 = vmul.f32 %v16961_v20, %v16959_v12 }
0x124c   : > { %v6004_v23 = vpop.permute.xlu0 %6003 }
0x124d   : > { %15922 = vmatmul.mubr.msk.f32.vlgmr.msra.gmra.mxu1 %vm3438_vm8, %v5425_v22  ;;  %15957 = vmatmul.mubr.msk.f32.vlgmr.msra.gmra.mxu0 %vm3361_vm6, %v6004_v23 }
0x124e   : > { %15925 = vmatpush3.xpose.msk.msra.mxu1 %vm3361_vm6, %v5505_v16  ;;  %15965 = vmatpush3.xpose.msk.msra.mxu0 %vm3361_vm6, %v6173_v21 }
0x124f   : > { %15926 = vmatprep.mubr.msk.f32.mxu1 %vm18372_vm0, %v18371_v0  ;;  %15966 = vmatprep.mubr.msk.f32.mxu0 %vm18372_vm0, %v18371_v0 }
0x1250   : > { %v6171_v24 = vpop.permute.xlu0 %6170  ;;  %15974 = vmatprep.subr.mxu0 %v18371_v0  ;;  %15929 = vmatprep.subr.mxu1 %v18371_v0 }
0x1251   : > { %15927 = vmatmul.mubr.msk.f32.vlgmr.msra.gmra.mxu1 %vm3361_vm6, %v5503_v10  ;;  %15967 = vmatmul.mubr.msk.f32.vlgmr.msra.gmra.mxu0 %vm3361_vm6, %v6171_v24 }
0x1252   : > { %15975 = vmatpush3.xpose.msk.msra.mxu0 %vm3361_vm6, %v6340_v25  ;;  %15976 = vmatprep.mubr.msk.f32.mxu0 %vm18372_vm0, %v18371_v0 }
0x1253   : > { %15931 = vmatprep.mubr.msk.f32.mxu1 %vm18372_vm0, %v18371_v0  ;;  %15984 = vmatprep.subr.mxu0 %v18371_v0 }
0x1254   : > { %v6338_v26 = vpop.permute.xlu0 %6337 }
0x1255   : > { %15977 = vmatmul.mubr.msk.f32.vlgmr.msra.gmra.mxu0 %vm3361_vm6, %v6338_v26 }
0x1256   : > { %15992 = vmatprep.mubr.msk.f32.mxu0 %vm18372_vm0, %v18371_v0 }
0x1305   : > { %v5743_v27 = vpop.f32.mrf.mxu0 }
0x1306   : > { %v5747_v28 = vmul.f32 0.5, %v5743_v27 }
0x1307   : > { %v15938_v29 = vpop.f32.mrf.mxu0 }
0x1308   : > { %v5748_v30 = vadd.f32 %v5747_v28, %v19285_v41 }
0x1309   : > { %v5910_v31 = vpop.f32.mrf.mxu0 }
0x130a   : > { %v5914_v32 = vmul.f32 0.5, %v5910_v31  ;;  %v5749_v33 = vsel %vm3438_vm8, %v5748_v30, -inf }
0x130b   : > { %5750 = vmax.xlane.f32.xlu0 %v5749_v33  ;;  %v15948_v34 = vpop.f32.mrf.mxu0 }
0x130c   : > { %v5915_v35 = vadd.f32 %v5914_v32, %v19285_v41 }
0x130d   : > { %v19580_v36 = vpop.f32.mrf.mxu1  ;;  %v6077_v39 = vpop.f32.mrf.mxu0 }
0x130e   : > { %v5916_v40 = vsel %vm3438_vm8, %v5915_v35, -inf  ;;  %v6081_v47 = vmul.f32 0.5, %v6077_v39 }
0x130f   : > { %5917 = vmax.xlane.f32.xlu0 %v5916_v40  ;;  %v15923_v43 = vpop.f32.mrf.mxu1  ;;  %v15958_v44 = vpop.f32.mrf.mxu0 }
0x1310   : > { %v6082_v58 = vadd.f32 %v6081_v47, %v19285_v41 }
0x1311   : > { %v5576_v45 = vpop.f32.mrf.mxu1  ;;  %v6244_v46 = vpop.f32.mrf.mxu0 }
0x1312   : > { %v5580_v48 = vmul.f32 0.5, %v5576_v45  ;;  %v6248_v49 = vmul.f32 0.5, %v6244_v46  ;;  %v6083_v60 = vsel %vm3438_vm8, %v6082_v58, -inf }
0x1313   : > { %v15928_v50 = vpop.f32.mrf.mxu1  ;;  %v15968_v51 = vpop.f32.mrf.mxu0 }
0x1314   : > { %v6249_v52 = vadd.f32 %v6248_v49, %v19285_v41  ;;  %v5581_v53 = vadd.f32 %v5580_v48, %v19285_v41 }
0x1315   : > { %v6411_v54 = vpop.f32.mrf.mxu0 }
0x1316   : > { %v6415_v55 = vmul.f32 0.5, %v6411_v54  ;;  %v6250_v56 = vsel %vm3438_vm8, %v6249_v52, -inf  ;;  %v5582_v57 = vsel %vm3438_vm8, %v5581_v53, -inf }
0x1317   : > { %6251 = vmax.xlane.f32.xlu0 %v6250_v56  ;;  %v15978_v59 = vpop.f32.mrf.mxu0  ;;  %5583 = vmax.xlane.f32.xlu1 %v5582_v57 }
0x1318   : > { %v6416_v62 = vadd.f32 %v6415_v55, %v19285_v41 }
0x131a   : > { %v6417_v63 = vsel %vm3438_vm8, %v6416_v62, -inf }
0x131b   : > { %6084 = vmax.xlane.f32.xlu1 %v6083_v60  ;;  %v5167_v60 = vld [vmem:[%s20993_s20 + $0x18] sm:$0xff] }
0x131c   : > { %15985 = vmatpush3.msra.mxu0 %v5167_v60  ;;  %v6769_v60 = vld [vmem:[%s21001_s30 + $0xc8] sm:$0xff] }
0x131d   : > { %15986 = vmatprep.subr.mxu0 %v18371_v0 }
0x131f   : > { %6418 = vmax.xlane.f32.xlu1 %v6417_v63 }
0x1394   : > { %v5751_v1 = vpop.xlane.xlu0 %5750 }
0x1395   : > { %v5752_v2 = vsub.f32 %v5748_v30, %v5751_v1  ;;  %v5166_v1 = vld [vmem:[%s20993_s20 + $0x10] sm:$0xff] }
0x1396   : > { %15987 = vmatpush3.msra.mxu0 %v5166_v1  ;;  %v6752_v1 = vld [vmem:[%s21001_s30 + $0x40] sm:$0xff] }
0x1397   : > { %v5753_v4 = vmul.f32 1.442695, %v5752_v2  ;;  %v5165_v2 = vld [vmem:[%s20993_s20 + $0x8] sm:$0xff]  ;;  %15988 = vmatprep.subr.mxu0 %v18371_v0 }
0x1398   : > { %v5918_v6 = vpop.xlane.xlu0 %5917  ;;  %15989 = vmatpush3.msra.mxu0 %v5165_v2  ;;  %v6767_v2 = vld [vmem:[%s21001_s30 + $0xb8] sm:$0xff] }
0x1399   : > { %16962 = vpow2.f32 %v5753_v4  ;;  %v5919_v7 = vsub.f32 %v5915_v35, %v5918_v6  ;;  %15990 = vmatprep.subr.mxu0 %v18371_v0 }
0x139b   : > { %v5920_v18 = vmul.f32 1.442695, %v5919_v7  ;;  %v5164_v7 = vld [vmem:[%s20993_s20] sm:$0xff]  ;;  %s21000_s20 = sld [smem:[#allocation157_spill]] }
0x139c   : > { %15991 = vmatpush3.msra.mxu0 %v5164_v7  ;;  %v6750_v7 = vld [vmem:[%s21001_s30 + $0x30] sm:$0xff] }
0x139d   : > { %16964 = vpow2.f32 %v5920_v18 }
0x13a0   : > { %v6252_v8 = vpop.xlane.xlu0 %6251  ;;  %v5584_v9 = vpop.xlane.xlu1 %5583 }
0x13a1   : > { %v6253_v10 = vsub.f32 %v6249_v52, %v6252_v8  ;;  %v5585_v11 = vsub.f32 %v5581_v53, %v5584_v9 }
0x13a3   : > { %v6254_v12 = vmul.f32 1.442695, %v6253_v10  ;;  %v5586_v13 = vmul.f32 1.442695, %v5585_v11 }
0x13a4   : > { %v6085_v37 = vpop.xlane.xlu1 %6084 }
0x13a5   : > { %16966 = vpow2.f32 %v6254_v12  ;;  %v6086_v14 = vsub.f32 %v6082_v58, %v6085_v37 }
0x13a6   : > { %v16963_v16 = vpop.eup %16962  ;;  %16968 = vpow2.f32 %v5586_v13 }
0x13a7   : > { %v6087_v15 = vmul.f32 1.442695, %v6086_v14  ;;  %v5755_v17 = vsel %vm3438_vm8, %v16963_v16, 0.0 }
0x13a8   : > { %5756 = vadd.xlane.f32.xlu1 %v5755_v17  ;;  %v6419_v19 = vpop.xlane.xlu1 %6418 }
0x13a9   : > { %16970 = vpow2.f32 %v6087_v15  ;;  %v6420_v20 = vsub.f32 %v6416_v62, %v6419_v19 }
0x13aa   : > { %v16965_v21 = vpop.eup %16964 }
0x13ab   : > { %v6421_v22 = vmul.f32 1.442695, %v6420_v20  ;;  %v5922_v23 = vsel %vm3438_vm8, %v16965_v21, 0.0 }
0x13ac   : > { %5923 = vadd.xlane.f32.xlu0 %v5922_v23 }
0x13ad   : > { %16972 = vpow2.f32 %v6421_v22 }
0x13b2   : > { %v19593_v24 = vpop.eup %16966 }
0x13b3   : > { %v6256_v25 = vsel %vm3438_vm8, %v19593_v24, 0.0  ;;  %v16969_v26 = vpop.eup %16968 }
0x13b4   : > { %6257 = vadd.xlane.f32.xlu0 %v6256_v25  ;;  %v5588_v28 = vsel %vm3438_vm8, %v16969_v26, 0.0 }
0x13b6   : > { %v16971_v27 = vpop.eup %16970 }
0x13b7   : > { %v6089_v29 = vsel %vm3438_vm8, %v16971_v27, 0.0 }
0x13b8   : > { %5589 = vadd.xlane.f32.xlu0 %v5588_v28  ;;  %6090 = vadd.xlane.f32.xlu1 %v6089_v29 }
0x13ba   : > { %v16973_v30 = vpop.eup %16972 }
0x13bb   : > { %v6423_v31 = vsel %vm3438_vm8, %v16973_v30, 0.0 }
0x13bc   : > { %6424 = vadd.xlane.f32.xlu1 %v6423_v31 }
0x13cd   : > { %5760 = vrot.lane.b32.xlu1 %v19484_v42, %s20986_s9 }
0x13ce   : > { %5593 = vrot.lane.b32.xlu0 %v19484_v42, %s20987_s11 }
0x13d1   : > { %5927 = vrot.lane.b32.xlu1 %v19484_v42, %s20988_s13 }
0x13d2   : > { %6094 = vrot.lane.b32.xlu0 %v19484_v42, %s20989_s14 }
0x13d5   : > { %6261 = vrot.lane.b32.xlu1 %v19484_v42, %s20990_s15 }
0x13d6   : > { %6428 = vrot.lane.b32.xlu0 %v19484_v42, %s20991_s17 }
0x13d9   : > { %6505 = vrot.lane.b32.xlu1 %v19580_v36, %s20992_s19 }
0x1431   : > { %v5757_v34 = vpop.xlane.xlu1 %5756 }
0x1435   : > { %v5924_v32 = vpop.xlane.xlu0 %5923 }
0x143d   : > { %v6258_v33 = vpop.xlane.xlu0 %6257 }
0x1441   : > { %v5590_v35 = vpop.xlane.xlu0 %5589  ;;  %v6091_v39 = vpop.xlane.xlu1 %6090 }
0x1442   : > { %16974 = vrcp.f32 %v5590_v35 }
0x1443   : > { %16976 = vrcp.f32 %v5757_v34 }
0x1444   : > { %16978 = vrcp.f32 %v5924_v32 }
0x1445   : > { %v5594_v40 = vpop.permute.xlu0 %5593  ;;  %v6425_v43 = vpop.xlane.xlu1 %6424  ;;  %16980 = vrcp.f32 %v6091_v39 }
0x1446   : > { %15930 = vmatpush3.msra.mxu1 %v5594_v40  ;;  %16982 = vrcp.f32 %v6258_v33 }
0x1447   : > { %15939 = vmatprep.subr.mxu1 %v18371_v0  ;;  %16984 = vrcp.f32 %v6425_v43  ;;  %v6655_v43 = vld [vmem:[%s21000_s20 + $0x38] sm:$0xff] }
0x1449   : > { %v5761_v42 = vpop.permute.xlu1 %5760  ;;  %v6095_v51 = vpop.permute.xlu0 %6094 }
0x144d   : > { %v5928_v48 = vpop.permute.xlu1 %5927  ;;  %v6429_v57 = vpop.permute.xlu0 %6428 }
0x144f   : > { %v16975_v44 = vpop.eup %16974 }
0x1450   : > { %v5592_v45 = vmul.f32 %v16975_v44, %v16969_v26  ;;  %v16977_v46 = vpop.eup %16976  ;;  %v6654_v44 = vld [vmem:[%s21000_s20 + $0x30] sm:$0xff] }
0x1451   : > { %v5759_v36 = vmul.f32 %v16977_v46, %v16963_v16  ;;  %v16979_v47 = vpop.eup %16978  ;;  %v6262_v54 = vpop.permute.xlu1 %6261  ;;  %v6650_v46 = vld [vmem:[%s21000_s20 + $0x10] sm:$0xff] }
0x1452   : > { %15932 = vmatmul.mubr.msk.f32.vlgmr.msra.gmra.mxu1 %vm3438_vm8, %v5592_v45  ;;  %v5926_v49 = vmul.f32 %v16979_v47, %v16965_v21  ;;  %v16981_v50 = vpop.eup %16980  ;;  %v6651_v45 = vld [vmem:[%s21000_s20 + $0x18] sm:$0xff]  ;;  %v6648_v47 = vld [vmem:[%s21000_s20] sm:$0xff] }
0x1453   : > { %15940 = vmatpush3.msra.mxu1 %v5761_v42  ;;  %15941 = vmatprep.mubr.msk.f32.mxu1 %vm18372_vm0, %v18371_v0  ;;  %v6093_v52 = vmul.f32 %v16981_v50, %v16971_v27  ;;  %v16983_v53 = vpop.eup %16982  ;;  %v6652_v42 = vld [vmem:[%s21000_s20 + $0x20] sm:$0xff]  ;;  %v6774_v50 = vld [vmem:[%s21001_s30 + $0xf0] sm:$0xff] }
0x1454   : > { %15949 = vmatprep.subr.mxu1 %v18371_v0  ;;  %v6260_v55 = vmul.f32 %v16983_v53, %v19593_v24  ;;  %v16985_v56 = vpop.eup %16984  ;;  %v6757_v53 = vld [vmem:[%s21001_s30 + $0x68] sm:$0xff] }
0x1455   : > { %v6427_v58 = vmul.f32 %v16985_v56, %v16973_v30  ;;  %v6506_v37 = vpop.permute.xlu1 %6505  ;;  %v6771_v56 = vld [vmem:[%s21001_s30 + $0xd8] sm:$0xff] }
0x1456   : > { %15942 = vmatmul.mubr.msk.f32.vlgmr.msra.gmra.mxu1 %vm3438_vm8, %v5759_v36  ;;  %v6532_v17 = vsel %vm3361_vm6, %v19512_v61, %v6506_v37  ;;  %v15186_v61 = vld [vmem:[#allocation58] ss:$0 sm:$0xff] }
0x1457   : > { %15950 = vmatpush3.msra.mxu1 %v5928_v48  ;;  %15951 = vmatprep.mubr.msk.f32.mxu1 %vm18372_vm0, %v18371_v0  ;;  %v6649_v36 = vld [vmem:[%s21000_s20 + $0x8] sm:$0xff]  ;;  %v6775_v48 = vld [vmem:[%s21001_s30 + $0xf8] sm:$0xff] }
0x1458   : > { %15959 = vmatprep.subr.mxu1 %v18371_v0  ;;  %15466 = vmatprep.subr.mxu0 %v6775_v48 }
0x145a   : > { %15952 = vmatmul.mubr.msk.f32.vlgmr.msra.gmra.mxu1 %vm3438_vm8, %v5926_v49  ;;  %v6759_v49 = vld [vmem:[%s21001_s30 + $0x78] sm:$0xff] }
0x145b   : > { %15960 = vmatpush3.msra.mxu1 %v6095_v51  ;;  %15961 = vmatprep.mubr.msk.f32.mxu1 %vm18372_vm0, %v18371_v0  ;;  %v6758_v51 = vld [vmem:[%s21001_s30 + $0x70] sm:$0xff] }
0x145c   : > { %15969 = vmatprep.subr.mxu1 %v18371_v0 }
0x145e   : > { %15962 = vmatmul.mubr.msk.f32.vlgmr.msra.gmra.mxu1 %vm3438_vm8, %v6093_v52  ;;  %v6773_v52 = vld [vmem:[%s21001_s30 + $0xe8] sm:$0xff] }
0x145f   : > { %15970 = vmatpush3.msra.mxu1 %v6262_v54  ;;  %15971 = vmatprep.mubr.msk.f32.mxu1 %vm18372_vm0, %v18371_v0  ;;  %v6772_v54 = vld [vmem:[%s21001_s30 + $0xe0] sm:$0xff] }
0x1460   : > { %15979 = vmatprep.subr.mxu1 %v18371_v0 }
0x1462   : > { %15972 = vmatmul.mubr.msk.f32.vlgmr.msra.gmra.mxu1 %vm3438_vm8, %v6260_v55  ;;  %v6756_v55 = vld [vmem:[%s21001_s30 + $0x60] sm:$0xff] }
0x1463   : > { %15980 = vmatpush3.msra.mxu1 %v6429_v57  ;;  %15981 = vmatprep.mubr.msk.f32.mxu1 %vm18372_vm0, %v18371_v0  ;;  %v6755_v57 = vld [vmem:[%s21001_s30 + $0x58] sm:$0xff] }
0x1464   : > { %6695 = vmatprep.subr.mxu1 %v6655_v43 }
0x1466   : > { %15982 = vmatmul.mubr.msk.f32.vlgmr.msra.gmra.mxu1 %vm3438_vm8, %v6427_v58  ;;  %v6770_v58 = vld [vmem:[%s21001_s30 + $0xd0] sm:$0xff] }
0x1467   : > { %6735 = vmatprep.mubr.f32.mxu1 %v18371_v0  ;;  %6696 = vmatpush1.msra.mxu1 %v6654_v44 }
0x1512   : > { %v5665_v59 = vpop.f32.mrf.mxu1 }
0x1513   : > { %6509 = vrot.lane.b32.xlu0 %v5665_v59, %s20994_s21  ;;  %v6754_v59 = vld [vmem:[%s21001_s30 + $0x50] sm:$0xff] }
0x1514   : > { %v15933_v62 = vpop.f32.mrf.mxu1 }
0x1515   : > { %v6753_v62 = vld [vmem:[%s21001_s30 + $0x48] sm:$0xff] }
0x1516   : > { %v5832_v63 = vpop.f32.mrf.mxu1 }
0x1517   : > { %6513 = vrot.lane.b32.xlu1 %v5832_v63, %s20995_s24  ;;  %v6768_v63 = vld [vmem:[%s21001_s30 + $0xc0] sm:$0xff] }
0x1518   : > { %v15943_v4 = vpop.f32.mrf.mxu1 }
0x1519   : > { %v6751_v4 = vld [vmem:[%s21001_s30 + $0x38] sm:$0xff] }
0x151a   : > { %v5999_v6 = vpop.f32.mrf.mxu1 }
0x151b   : > { %6517 = vrot.lane.b32.xlu0 %v5999_v6, %s20996_s25  ;;  %v6766_v6 = vld [vmem:[%s21001_s30 + $0xb0] sm:$0xff] }
0x151c   : > { %v15953_v18 = vpop.f32.mrf.mxu1 }
0x151d   : > { %v6765_v18 = vld [vmem:[%s21001_s30 + $0xa8] sm:$0xff] }
0x151e   : > { %v6166_v8 = vpop.f32.mrf.mxu1 }
0x151f   : > { %6521 = vrot.lane.b32.xlu1 %v6166_v8, %s20997_s27  ;;  %v6749_v8 = vld [vmem:[%s21001_s30 + $0x28] sm:$0xff] }
0x1520   : > { %v15963_v9 = vpop.f32.mrf.mxu1 }
0x1521   : > { %v6764_v9 = vld [vmem:[%s21001_s30 + $0xa0] sm:$0xff] }
0x1522   : > { %v6333_v10 = vpop.f32.mrf.mxu1 }
0x1523   : > { %6525 = vrot.lane.b32.xlu0 %v6333_v10, %s20998_s28  ;;  %v6748_v10 = vld [vmem:[%s21001_s30 + $0x20] sm:$0xff] }
0x1524   : > { %v15973_v11 = vpop.f32.mrf.mxu1 }
0x1526   : > { %v6500_v12 = vpop.f32.mrf.mxu1 }
0x1527   : > { %6529 = vrot.lane.b32.xlu1 %v6500_v12, %s20999_s29  ;;  %s3084_s29 = scalar_lea.vmem %s21007_s12, %s19175_s2  ;;  %s21011_s12 = smov 92  }
0x1528   : > { %v15983_v13 = vpop.f32.mrf.mxu1  ;;  %s21018_s2 = sld [smem:[#allocation94_spill]] }
0x1585   : > { %v6510_v14 = vpop.permute.xlu0 %6509 }
0x1586   : > { %v6533_v19 = vsel %vm3438_vm8, %v6532_v17, %v6510_v14  ;;  %v15188_v14 = vld [vmem:[#allocation54] ss:$0 sm:$0xff] }
0x1589   : > { %v6514_v16 = vpop.permute.xlu1 %6513 }
0x158a   : > { %v6534_v21 = vsel %vm4725_vm9, %v6533_v19, %v6514_v16 }
0x158d   : > { %v6518_v15 = vpop.permute.xlu0 %6517 }
0x158e   : > { %v6535_v23 = vsel %vm4727_vm10, %v6534_v21, %v6518_v15  ;;  %v15189_v15 = vld [vmem:[#allocation52] ss:$0 sm:$0xff]  ;;  %v6747_v21 = vld [vmem:[%s21001_s30 + $0x18] sm:$0xff] }
0x1591   : > { %v6522_v20 = vpop.permute.xlu1 %6521 }
0x1592   : > { %v6536_v24 = vsel %vm4729_vm11, %v6535_v23, %v6522_v20  ;;  %v6763_v20 = vld [vmem:[%s21001_s30 + $0x98] sm:$0xff]  ;;  %v6746_v23 = vld [vmem:[%s21001_s30 + $0x10] sm:$0xff] }
0x1595   : > { %v6526_v22 = vpop.permute.xlu0 %6525 }
0x1596   : > { %v6537_v25 = vsel %vm4731_vm12, %v6536_v24, %v6526_v22  ;;  %v6762_v22 = vld [vmem:[%s21001_s30 + $0x90] sm:$0xff]  ;;  %v6761_v24 = vld [vmem:[%s21001_s30 + $0x88] sm:$0xff] }
0x1599   : > { %v6530_v26 = vpop.permute.xlu1 %6529 }
0x159a   : > { %v6538_v27 = vsel %vm4733_vm13, %v6537_v25, %v6530_v26  ;;  %v6745_v25 = vld [vmem:[%s21001_s30 + $0x8] sm:$0xff]  ;;  %v6760_v26 = vld [vmem:[%s21001_s30 + $0x80] sm:$0xff] }
0x159b   : > { %15993 = vmatmul.mubr.msk.f32.vlgmr.msra.gmra.mxu0 %vm3279_vm5, %v6538_v27  ;;  %v6744_v27 = vld [vmem:[%s21001_s30] sm:$0xff]  ;;  %s21004_s30 = sld [smem:[#allocation171_spill]] }
0x159c   : > { %15467 = vmatpush3.msra.mxu0 %v6759_v49 }
0x159d   : > { %15468 = vmatprep.subr.mxu0 %v6774_v50 }
0x159e   : > { %15469 = vmatpush3.msra.mxu0 %v6758_v51 }
0x159f   : > { %15470 = vmatprep.subr.mxu0 %v6773_v52 }
0x15a0   : > { %15471 = vmatpush3.msra.mxu0 %v6757_v53 }
0x15a1   : > { %15472 = vmatprep.subr.mxu0 %v6772_v54  ;;  %v15192_v54 = vld [vmem:[#allocation57] ss:$0 sm:$0xff] }
0x15a2   : > { %15473 = vmatpush3.msra.mxu0 %v6756_v55 }
0x15a3   : > { %15474 = vmatprep.subr.mxu0 %v6771_v56  ;;  %v15193_v56 = vld [vmem:[#allocation55] ss:$0 sm:$0xff] }
0x15a4   : > { %15475 = vmatpush3.msra.mxu0 %v6755_v57 }
0x15a5   : > { %15476 = vmatprep.subr.mxu0 %v6770_v58 }
0x15a6   : > { %15477 = vmatpush3.msra.mxu0 %v6754_v59 }
0x15a7   : > { %15478 = vmatprep.subr.mxu0 %v6769_v60 }
0x15a8   : > { %15479 = vmatpush3.msra.mxu0 %v6753_v62 }
0x15a9   : > { %15480 = vmatprep.subr.mxu0 %v6768_v63 }
0x15aa   : > { %15481 = vmatpush3.msra.mxu0 %v6752_v1 }
0x15ab   : > { %15482 = vmatprep.subr.mxu0 %v6767_v2 }
0x15ac   : > { %15483 = vmatpush3.msra.mxu0 %v6751_v4 }
0x15ad   : > { %15484 = vmatprep.subr.mxu0 %v6766_v6 }
0x15ae   : > { %15485 = vmatpush3.msra.mxu0 %v6750_v7 }
0x15af   : > { %15486 = vmatprep.subr.mxu0 %v6765_v18 }
0x15b0   : > { %15487 = vmatpush3.msra.mxu0 %v6749_v8 }
0x15b1   : > { %15488 = vmatprep.subr.mxu0 %v6764_v9 }
0x15b2   : > { %15489 = vmatpush3.msra.mxu0 %v6748_v10 }
0x15b3   : > { %15490 = vmatprep.subr.mxu0 %v6763_v20 }
0x15b4   : > { %15491 = vmatpush3.msra.mxu0 %v6747_v21 }
0x15b5   : > { %15492 = vmatprep.subr.mxu0 %v6762_v22 }
0x15b6   : > { %15493 = vmatpush3.msra.mxu0 %v6746_v23  ;;  %v6930_v23 = vld [vmem:[%s21004_s30 + $0x10] sm:$0xff] }
0x15b7   : > { %15494 = vmatprep.subr.mxu0 %v6761_v24 }
0x15b8   : > { %15495 = vmatpush3.msra.mxu0 %v6745_v25  ;;  %v6929_v25 = vld [vmem:[%s21004_s30 + $0x8] sm:$0xff] }
0x15b9   : > { %15496 = vmatprep.subr.mxu0 %v6760_v26 }
0x15ba   : > { %15497 = vmatpush3.msra.mxu0 %v6744_v27 }
0x15bb   : > { %16044 = vmatprep.subr.mxu0 %v18371_v0 }
0x165b   : > { %v6614_v28 = vpop.f32.mrf.mxu0 }
0x165c   : > { %v6615_v29 = vadd.f32 %v15186_v61, %v6614_v28 }
0x165d   : > { %v15994_v30 = vpop.f32.mrf.mxu0 }
0x165e   : > { %v6618_v31 = vadd.f32 %v6615_v29, %v19478_v38  ;;  %v6653_v38 = vld [vmem:[%s21000_s20 + $0x28] sm:$0xff]  ;;  %s21002_s20 = sld [smem:[#allocation156_spill]] }
0x165f   : > { %6697 = vmatprep.subr.mxu1 %v6653_v38 }
0x1660   : > { %v6621_v32 = vsel %vm3279_vm5, %v6618_v31, 0.0  ;;  %6698 = vmatpush1.msra.mxu1 %v6652_v42 }
0x1661   : > { %6622 = vadd.xlane.f32.xlu0 %v6621_v32  ;;  %6699 = vmatprep.subr.mxu1 %v6651_v45 }
0x1662   : > { %6700 = vmatpush1.msra.mxu1 %v6650_v46 }
0x1663   : > { %6701 = vmatprep.subr.mxu1 %v6649_v36 }
0x1664   : > { %6702 = vmatpush1.msra.mxu1 %v6648_v47  ;;  %v6656_v61 = vld [vmem:[%s21002_s20] sm:$0x3]  ;;  %s21003_s20 = sld [smem:[#allocation169_spill]] }
0x1665   : > { %15995 = vmatprep.subr.mxu1 %v18371_v0  ;;  %v6661_v28 = vrot.slane %v6656_v61, %v19458_v3  ;;  %v6665_v29 = vrot.slane %v6656_v61, %v19462_v5  ;;  %v6928_v61 = vld [vmem:[%s21004_s30] sm:$0xff] }
0x166a   : > { %v6935_v4 = vld [vmem:[%s21003_s20 + $0x18] sm:$0xff]  ;;  %v6934_v6 = vld [vmem:[%s21003_s20 + $0x10] sm:$0xff]  ;;  %v6933_v7 = vld [vmem:[%s21003_s20 + $0x8] sm:$0xff] }
0x166b   : > { %v6932_v18 = vld [vmem:[%s21003_s20] sm:$0xff]  ;;  %s21005_s20 = sld [smem:[#allocation170_spill]] }
0x16ea   : > { %v6623_v33 = vpop.xlane.xlu0 %6622 }
0x16eb   : > { %v6624_v34 = vmul.f32 0.03125, %v6623_v33 }
0x16ed   : > { %v19661_v35 = vsub.f32 %v6618_v31, %v6624_v34 }
0x16ef   : > { %v6626_v39 = vmul.f32 %v19661_v35, %v19661_v35 }
0x16f1   : > { %v6627_v40 = vsel %vm3279_vm5, %v6626_v39, 0.0 }
0x16f2   : > { %6628 = vadd.xlane.f32.xlu1 %v6627_v40  ;;  %v15191_v40 = vld [vmem:[#allocation51] ss:$0 sm:$0xff] }
0x177b   : > { %v6629_v11 = vpop.xlane.xlu1 %6628 }
0x177c   : > { %v6630_v12 = vmul.f32 0.03125, %v6629_v11 }
0x177e   : > { %v6631_v13 = vadd.f32 1e-05, %v6630_v12  ;;  %v15194_v12 = vld [vmem:[#allocation64] ss:$0 sm:$0xff] }
0x1780   : > { %16986 = vrsqrt.f32 %v6631_v13 }
0x178d   : > { %v16987_v37 = vpop.eup %16986 }
0x178e   : > { %v6633_v16 = vmul.f32 %v16987_v37, %v19661_v35  ;;  %v15195_v37 = vld [vmem:[#allocation63] ss:$0 sm:$0xff] }
0x1790   : > { %v6640_v17 = vmul.f32 %v15188_v14, %v6633_v16 }
0x1792   : > { %v6647_v19 = vadd.f32 %v15189_v15, %v6640_v17  ;;  %v6931_v17 = vld [vmem:[%s21004_s30 + $0x18] sm:$0xff]  ;;  %s21008_s30 = sld [smem:[#allocation140_spill]] }
0x1794   : > { %15190 = vmatmul.mubr.msk.f32.vlgmr.msra.gmra.mxu1 %vm3279_vm5, %v6647_v19 }
0x1795   : > { %16003 = vmatprep.mubr.msk.f32.mxu1 %vm18372_vm0, %v18371_v0  ;;  %15996 = vmatpush3.msra.mxu1 %v6935_v4 }
0x1796   : > { %15997 = vmatprep.subr.mxu1 %v18371_v0 }
0x1797   : > { %15998 = vmatpush3.msra.mxu1 %v6934_v6 }
0x1798   : > { %15999 = vmatprep.subr.mxu1 %v18371_v0 }
0x1799   : > { %16000 = vmatpush3.msra.mxu1 %v6933_v7  ;;  %v15203_v7 = vld [vmem:[#allocation12] ss:$0 sm:$0xff] }
0x179a   : > { %16001 = vmatprep.subr.mxu1 %v18371_v0 }
0x179b   : > { %16002 = vmatpush3.msra.mxu1 %v6932_v18 }
0x179c   : > { %16006 = vmatprep.subr.mxu1 %v18371_v0 }
0x1854   : > { %v6737_v30 = vpop.f32.mrf.mxu1 }
0x1855   : > { %v6738_v31 = vadd.f32 %v6737_v30, %v6661_v28 }
0x1856   : > { %v6739_v32 = vpop.f32.mrf.mxu1 }
0x1857   : > { %v6740_v33 = vadd.f32 %v6739_v32, %v6665_v29  ;;  %v6742_v35 = vmax.f32 %v6738_v31, 0.0 }
0x1859   : > { %v6743_v34 = vmax.f32 %v6740_v33, 0.0  ;;  %v7086_v33 = vld [vmem:[%s21005_s20 + $0x18] sm:$0xff] }
0x185b   : > { %6847 = vmatprep.mubr.f32.mxu0 %v6743_v34 }
0x185c   : > { %6848 = vmatmul.mubr.f32.vlgmr.msra.gmra.mxu0 %v6742_v35  ;;  %v7085_v35 = vld [vmem:[%s21005_s20 + $0x10] sm:$0xff] }
0x185d   : > { %16052 = vmatprep.mubr.msk.f32.mxu0 %vm18372_vm0, %v18371_v0 }
0x191c   : > { %v15498_v39 = vpop.f32.mrf.mxu0 }
0x191e   : > { %v15499_v43 = vpop.f32.mrf.mxu0 }
0x191f   : > { %v15500_v44 = vadd.f32 %v15499_v43, %v15498_v39  ;;  %v7084_v39 = vld [vmem:[%s21005_s20 + $0x8] sm:$0xff]  ;;  %v7083_v43 = vld [vmem:[%s21005_s20] sm:$0xff]  ;;  %s21015_s20 = smov 60  }
0x1921   : > { %v6850_v38 = vadd.f32 %v15500_v44, %v15191_v40 }
0x1923   : > { %v6853_v42 = vadd.f32 %v6850_v38, %v6647_v19  ;;  %v7163_v38 = vld [vmem:[%s21006_s0] sm:$0x7]  ;;  %s21012_s0 = smov 96  }
0x1925   : > { %v6856_v45 = vsel %vm3279_vm5, %v6853_v42, 0.0 }
0x1926   : > { %6857 = vadd.xlane.f32.xlu0 %v6856_v45  ;;  %v7250_v45 = vld [vmem:[%s21008_s30 + $0x18] sm:$0xff] }
0x19af   : > { %v6858_v46 = vpop.xlane.xlu0 %6857 }
0x19b0   : > { %v6859_v36 = vmul.f32 0.03125, %v6858_v46  ;;  %v7249_v46 = vld [vmem:[%s21008_s30 + $0x10] sm:$0xff] }
0x19b2   : > { %v6860_v47 = vsub.f32 %v6853_v42, %v6859_v36  ;;  %v3095_v42 = vld [vmem:[%s3084_s29] sm:$0xff]  ;;  %v7332_v36 = vld [vmem:[%s21009_s6 + $0x18] sm:$0xff]  ;;  %s21010_s29 = sld [smem:[#allocation91_spill]] }
0x19b3   : > { %16045 = vmatpush3.msra.mxu0 %v7332_v36 }
0x19b4   : > { %v6861_v48 = vmul.f32 %v6860_v47, %v6860_v47  ;;  %16046 = vmatprep.subr.mxu0 %v18371_v0 }
0x19b6   : > { %v6862_v49 = vsel %vm3279_vm5, %v6861_v48, 0.0  ;;  %v7331_v48 = vld [vmem:[%s21009_s6 + $0x10] sm:$0xff] }
0x19b7   : > { %6863 = vadd.xlane.f32.xlu0 %v6862_v49  ;;  %16047 = vmatpush3.msra.mxu0 %v7331_v48  ;;  %v7247_v49 = vld [vmem:[%s21008_s30] sm:$0xff] }
0x19b8   : > { %16048 = vmatprep.subr.mxu0 %v18371_v0 }
0x1a40   : > { %v6864_v50 = vpop.xlane.xlu0 %6863 }
0x1a41   : > { %v6865_v51 = vmul.f32 0.03125, %v6864_v50  ;;  %v7330_v50 = vld [vmem:[%s21009_s6 + $0x8] sm:$0xff] }
0x1a42   : > { %16049 = vmatpush3.msra.mxu0 %v7330_v50 }
0x1a43   : > { %v6866_v52 = vadd.f32 1e-05, %v6865_v51  ;;  %16050 = vmatprep.subr.mxu0 %v18371_v0  ;;  %v7329_v51 = vld [vmem:[%s21009_s6] sm:$0xff]  ;;  %s21014_s6 = smov 64  }
0x1a44   : > { %16051 = vmatpush3.msra.mxu0 %v7329_v51 }
0x1a45   : > { %16988 = vrsqrt.f32 %v6866_v52  ;;  %16060 = vmatprep.subr.mxu0 %v18371_v0 }
0x1a52   : > { %v16989_v53 = vpop.eup %16988 }
0x1a53   : > { %v6868_v55 = vmul.f32 %v16989_v53, %v6860_v47  ;;  %v7248_v47 = vld [vmem:[%s21008_s30 + $0x8] sm:$0xff]  ;;  %s21016_s30 = sld [smem:[#allocation110_spill]] }
0x1a55   : > { %v6875_v57 = vmul.f32 %v15192_v54, %v6868_v55 }
0x1a57   : > { %v6882_v58 = vadd.f32 %v15193_v56, %v6875_v57 }
0x1a59   : > { %v6885_v59 = vsel %vm3279_vm5, %v6882_v58, 0.0 }
0x1a5a   : > { %6886 = vadd.xlane.f32.xlu1 %v6885_v59 }
0x1ae3   : > { %v6887_v60 = vpop.xlane.xlu1 %6886 }
0x1ae4   : > { %v6888_v62 = vmul.f32 0.03125, %v6887_v60 }
0x1ae6   : > { %v6889_v63 = vsub.f32 %v6882_v58, %v6888_v62  ;;  %v7161_v58 = vld [vmem:[#allocation61] sm:$0x1]  ;;  %v15199_v62 = vld [vmem:[%s21010_s29] ss:$0 sm:$0xff]  ;;  %s21013_s29 = smov 124  }
0x1ae8   : > { %v6890_v1 = vmul.f32 %v6889_v63, %v6889_v63 }
0x1aea   : > { %v6891_v2 = vsel %vm3279_vm5, %v6890_v1, 0.0 }
0x1aeb   : > { %6892 = vadd.xlane.f32.xlu0 %v6891_v2 }
0x1b74   : > { %v6893_v8 = vpop.xlane.xlu0 %6892 }
0x1b75   : > { %v6894_v9 = vmul.f32 0.03125, %v6893_v8 }
0x1b77   : > { %v6895_v10 = vadd.f32 1e-05, %v6894_v9 }
0x1b79   : > { %16990 = vrsqrt.f32 %v6895_v10 }
0x1b86   : > { %v16991_v11 = vpop.eup %16990 }
0x1b87   : > { %v6897_v13 = vmul.f32 %v16991_v11, %v6889_v63 }
0x1b89   : > { %v6904_v14 = vmul.f32 %v15194_v12, %v6897_v13 }
0x1b8b   : > { %v6911_v16 = vadd.f32 %v15195_v37, %v6904_v14 }
0x1b8d   : > { %v6937_v15 = vrot.slane %v6911_v16, 7  ;;  %v6912_v19 = vsel %vm3279_vm5, %v6911_v16, 0.0  ;;  %v6921_v20 = vsel %vm3279_vm5, %v6911_v16, -inf }
0x1b8e   : > { %v6913_v21 = vrot.slane %v6912_v19, 4  ;;  %v6922_v22 = vrot.slane %v6921_v20, 4 }
0x1b8f   : > { %16004 = vmatmul.mubr.msk.f32.vlgmr.msra.gmra.mxu1 %vm3279_vm5, %v6937_v15 }
0x1b90   : > { %16007 = vmatpush3.msra.mxu1 %v6931_v17  ;;  %16014 = vmatprep.mubr.msk.f32.mxu1 %vm18372_vm0, %v18371_v0  ;;  %v6914_v24 = vadd.f32 %v6913_v21, %v6912_v19  ;;  %v6923_v27 = vmax.f32 %v6921_v20, %v6922_v22 }
0x1b91   : > { %16008 = vmatprep.subr.mxu1 %v18371_v0 }
0x1b92   : > { %16009 = vmatpush3.msra.mxu1 %v6930_v23  ;;  %v6915_v26 = vrot.slane %v6914_v24, 2  ;;  %v6924_v30 = vrot.slane %v6923_v27, 2 }
0x1b93   : > { %16010 = vmatprep.subr.mxu1 %v18371_v0 }
0x1b94   : > { %16011 = vmatpush3.msra.mxu1 %v6929_v25  ;;  %v6916_v28 = vadd.f32 %v6915_v26, %v6914_v24  ;;  %v6925_v34 = vmax.f32 %v6923_v27, %v6924_v30 }
0x1b95   : > { %16012 = vmatprep.subr.mxu1 %v18371_v0 }
0x1b96   : > { %16013 = vmatpush3.msra.mxu1 %v6928_v61  ;;  %v6917_v29 = vrot.slane %v6916_v28, 1  ;;  %v6926_v40 = vrot.slane %v6925_v34, 1 }
0x1b97   : > { %16017 = vmatprep.subr.mxu1 %v18371_v0 }
0x1b98   : > { %v6918_v31 = vadd.f32 %v6917_v29, %v6916_v28  ;;  %v6927_v44 = vmax.f32 %v6925_v34, %v6926_v40 }
0x1b9a   : > { %v6920_v32 = vmul.f32 0.125, %v6918_v31 }
0x1b9c   : > { %16015 = vmatmul.mubr.msk.f32.vlgmr.msra.gmra.mxu1 %vm3279_vm5, %v6920_v32 }
0x1b9d   : > { %16018 = vmatpush3.msra.mxu1 %v7086_v33  ;;  %16025 = vmatprep.mubr.msk.f32.mxu1 %vm18372_vm0, %v18371_v0 }
0x1b9e   : > { %16019 = vmatprep.subr.mxu1 %v18371_v0 }
0x1b9f   : > { %16020 = vmatpush3.msra.mxu1 %v7085_v35 }
0x1ba0   : > { %16021 = vmatprep.subr.mxu1 %v18371_v0 }
0x1ba1   : > { %16022 = vmatpush3.msra.mxu1 %v7084_v39 }
0x1ba2   : > { %16023 = vmatprep.subr.mxu1 %v18371_v0 }
0x1ba3   : > { %16024 = vmatpush3.msra.mxu1 %v7083_v43 }
0x1ba4   : > { %16026 = vmatmul.mubr.msk.f32.vlgmr.msra.gmra.mxu1 %vm3279_vm5, %v6927_v44  ;;  %16028 = vmatprep.subr.mxu1 %v18371_v0 }
0x1ba5   : > { %16029 = vmatpush3.msk.msra.mxu1 %vm3180_vm2, %v7163_v38  ;;  %16030 = vmatprep.mubr.msk.f32.mxu1 %vm18372_vm0, %v18371_v0 }
0x1ba6   : > { %16033 = vmatprep.subr.mxu1 %v18371_v0 }
0x1ba8   : > { %16031 = vmatmul.mubr.msk.f32.vlgmr.msra.gmra.mxu1 %vm3176_vm4, %v3095_v42 }
0x1ba9   : > { %16041 = vmatprep.mubr.msk.f32.mxu1 %vm18372_vm0, %v18371_v0  ;;  %16034 = vmatpush3.msra.mxu1 %v7250_v45 }
0x1baa   : > { %16035 = vmatprep.subr.mxu1 %v18371_v0 }
0x1bab   : > { %16036 = vmatpush3.msra.mxu1 %v7249_v46 }
0x1bac   : > { %16037 = vmatprep.subr.mxu1 %v18371_v0 }
0x1bad   : > { %16038 = vmatpush3.msra.mxu1 %v7248_v47 }
0x1bae   : > { %16039 = vmatprep.subr.mxu1 %v18371_v0 }
0x1baf   : > { %16040 = vmatpush3.msra.mxu1 %v7247_v49 }
0x1bb0   : > { %16055 = vmatprep.subr.mxu1 %v18371_v0 }
0x1c4f   : > { %v7006_v52 = vpop.f32.mrf.mxu1 }
0x1c51   : > { %v16005_v53 = vpop.f32.mrf.mxu1 }
0x1c5c   : > { %v7079_v54 = vpop.f32.mrf.mxu1 }
0x1c5d   : > { %v7080_v56 = vadd.f32 %v7079_v54, %v7006_v52 }
0x1c5e   : > { %v16016_v55 = vpop.f32.mrf.mxu1 }
0x1c64   : > { %v7156_v57 = vpop.f32.mrf.mxu1 }
0x1c65   : > { %v7160_v59 = vadd.f32 %v7156_v57, %v7080_v56 }
0x1c66   : > { %v16027_v60 = vpop.f32.mrf.mxu1 }
0x1c67   : > { %v7162_v63 = vadd.f32 %v7161_v58, %v7160_v59 }
0x1c68   : > { %v7243_v1 = vpop.f32.mrf.mxu1 }
0x1c69   : > { %v19781_v2 = vadd.f32 %v15199_v62, %v7243_v1  ;;  %16042 = vmatmul.mubr.msk.f32.vlgmr.msra.gmra.mxu1 %vm3279_vm5, %v7162_v63 }
0x1c6a   : > { %v16032_v4 = vpop.f32.mrf.mxu1  ;;  %16057 = vmatprep.mubr.msk.f32.mxu1 %vm18372_vm0, %v18371_v0 }
0x1c6b   : > { %16053 = vmatmul.mubr.msk.f32.vlgmr.msra.gmra.mxu0 %vm3279_vm5, %v19781_v2 }
0x1c6c   : > { %16062 = vmatprep.mubr.msk.f32.mxu0 %vm18372_vm0, %v18371_v0 }
0x1d29   : > { %v19790_v6 = vpop.f32.mrf.mxu1 }
0x1d2b   : > { %v16043_v18 = vpop.f32.mrf.mxu1  ;;  %v7409_v8 = vpop.f32.mrf.mxu0 }
0x1d2c   : > { %v19792_v9 = vadd.f32 %v15203_v7, %v7409_v8 }
0x1d2d   : > { %v16054_v10 = vpop.f32.mrf.mxu0 }
0x1d2e   : > { %7586 = vrot.lane.b32.xlu0 %v19792_v9, %s21011_s12  ;;  %7419 = vrot.lane.b32.xlu1 %v19792_v9, %s21012_s0 }
0x1d32   : > { %7751 = vrot.lane.b32.xlu0 %v19792_v9, %s20974_s23  ;;  %7584 = vrot.lane.b32.xlu1 %v19792_v9, %s21013_s29 }
0x1d36   : > { %7918 = vrot.lane.b32.xlu0 %v19792_v9, %s20981_s3  ;;  %7753 = vrot.lane.b32.xlu1 %v19792_v9, %s20980_s10 }
0x1d3a   : > { %8085 = vrot.lane.b32.xlu0 %v19792_v9, %s20982_s4  ;;  %7920 = vrot.lane.b32.xlu1 %v19792_v9, %s20975_s26 }
0x1d3e   : > { %8252 = vrot.lane.b32.xlu0 %v19792_v9, %s20983_s5  ;;  %8087 = vrot.lane.b32.xlu1 %v19792_v9, %s20976_s22 }
0x1d42   : > { %8419 = vrot.lane.b32.xlu0 %v19792_v9, %s20984_s7  ;;  %8254 = vrot.lane.b32.xlu1 %v19792_v9, %s20977_s16 }
0x1d46   : > { %8586 = vrot.lane.b32.xlu0 %v19792_v9, %s20985_s8  ;;  %8421 = vrot.lane.b32.xlu1 %v19792_v9, %s20978_s18 }
0x1d4a   : > { %8588 = vrot.lane.b32.xlu1 %v19792_v9, %s20979_s1 }
0x1d4e   : > { %7508 = vrot.lane.b32.xlu1 %v19792_v9, %s21014_s6 }
0x1da0   : > { %v7587_v11 = vpop.permute.xlu0 %7586  ;;  %v7420_v12 = vpop.permute.xlu1 %7419 }
0x1da1   : > { %16056 = vmatpush3.xpose.msk.msra.mxu1 %vm3361_vm6, %v7420_v12 }
0x1da2   : > { %16065 = vmatprep.subr.mxu1 %v18371_v0 }
0x1da4   : > { %v7752_v13 = vpop.permute.xlu0 %7751  ;;  %16058 = vmatmul.mubr.msk.f32.vlgmr.msra.gmra.mxu1 %vm3361_vm6, %v19792_v9  ;;  %v7585_v37 = vpop.permute.xlu1 %7584 }
0x1da5   : > { %16066 = vmatpush3.xpose.msk.msra.mxu1 %vm3361_vm6, %v7587_v11  ;;  %16067 = vmatprep.mubr.msk.f32.mxu1 %vm18372_vm0, %v18371_v0 }
0x1da6   : > { %16075 = vmatprep.subr.mxu1 %v18371_v0 }
0x1da8   : > { %v7919_v14 = vpop.permute.xlu0 %7918  ;;  %16068 = vmatmul.mubr.msk.f32.vlgmr.msra.gmra.mxu1 %vm3361_vm6, %v7585_v37  ;;  %v7754_v16 = vpop.permute.xlu1 %7753 }
0x1da9   : > { %16076 = vmatpush3.xpose.msk.msra.mxu1 %vm3361_vm6, %v7754_v16  ;;  %16077 = vmatprep.mubr.msk.f32.mxu1 %vm18372_vm0, %v18371_v0 }
0x1daa   : > { %16085 = vmatprep.subr.mxu1 %v18371_v0 }
0x1dac   : > { %16078 = vmatmul.mubr.msk.f32.vlgmr.msra.gmra.mxu1 %vm3361_vm6, %v7752_v13  ;;  %v7921_v15 = vpop.permute.xlu1 %7920  ;;  %v8086_v17 = vpop.permute.xlu0 %8085 }
0x1dad   : > { %16086 = vmatpush3.xpose.msk.msra.mxu1 %vm3361_vm6, %v7921_v15  ;;  %16087 = vmatprep.mubr.msk.f32.mxu1 %vm18372_vm0, %v18371_v0 }
0x1dae   : > { %16095 = vmatprep.subr.mxu1 %v18371_v0 }
0x1db0   : > { %16088 = vmatmul.mubr.msk.f32.vlgmr.msra.gmra.mxu1 %vm3361_vm6, %v7919_v14  ;;  %v8088_v19 = vpop.permute.xlu1 %8087  ;;  %v8253_v20 = vpop.permute.xlu0 %8252 }
0x1db1   : > { %16096 = vmatpush3.xpose.msk.msra.mxu1 %vm3361_vm6, %v8088_v19  ;;  %16097 = vmatprep.mubr.msk.f32.mxu1 %vm18372_vm0, %v18371_v0 }
0x1db2   : > { %16105 = vmatprep.subr.mxu1 %v18371_v0 }
0x1db4   : > { %16098 = vmatmul.mubr.msk.f32.vlgmr.msra.gmra.mxu1 %vm3361_vm6, %v8086_v17  ;;  %v8255_v21 = vpop.permute.xlu1 %8254  ;;  %v8420_v23 = vpop.permute.xlu0 %8419 }
0x1db5   : > { %16106 = vmatpush3.xpose.msk.msra.mxu1 %vm3361_vm6, %v8255_v21  ;;  %16107 = vmatprep.mubr.msk.f32.mxu1 %vm18372_vm0, %v18371_v0 }
0x1db6   : > { %16115 = vmatprep.subr.mxu1 %v18371_v0 }
0x1db8   : > { %16108 = vmatmul.mubr.msk.f32.vlgmr.msra.gmra.mxu1 %vm3361_vm6, %v8253_v20  ;;  %v8422_v22 = vpop.permute.xlu1 %8421  ;;  %v8587_v25 = vpop.permute.xlu0 %8586 }
0x1db9   : > { %16116 = vmatpush3.xpose.msk.msra.mxu1 %vm3361_vm6, %v8422_v22  ;;  %16117 = vmatprep.mubr.msk.f32.mxu1 %vm18372_vm0, %v18371_v0 }
0x1dba   : > { %16125 = vmatprep.subr.mxu1 %v18371_v0 }
0x1dbc   : > { %16118 = vmatmul.mubr.msk.f32.vlgmr.msra.gmra.mxu1 %vm3361_vm6, %v8420_v23  ;;  %v8589_v24 = vpop.permute.xlu1 %8588 }
0x1dbd   : > { %16126 = vmatpush3.xpose.msk.msra.mxu1 %vm3361_vm6, %v8589_v24  ;;  %16127 = vmatprep.mubr.msk.f32.mxu1 %vm18372_vm0, %v18371_v0 }
0x1dbe   : > { %16135 = vmatprep.subr.mxu1 %v18371_v0 }
0x1dc0   : > { %16128 = vmatmul.mubr.msk.f32.vlgmr.msra.gmra.mxu1 %vm3361_vm6, %v8587_v25  ;;  %v7509_v26 = vpop.permute.xlu1 %7508 }
0x1dc1   : > { %16061 = vmatpush3.msra.mxu0 %v7509_v26  ;;  %16143 = vmatprep.mubr.msk.f32.mxu1 %vm18372_vm0, %v18371_v0 }
0x1dc2   : > { %16070 = vmatprep.subr.mxu0 %v18371_v0 }
0x1e64   : > { %v7491_v27 = vpop.f32.mrf.mxu1 }
0x1e65   : > { %v7495_v61 = vmul.f32 0.5, %v7491_v27 }
0x1e66   : > { %v16059_v28 = vpop.f32.mrf.mxu1 }
0x1e67   : > { %v7496_v29 = vadd.f32 %v7495_v61, %v19285_v41 }
0x1e68   : > { %v7658_v30 = vpop.f32.mrf.mxu1 }
0x1e69   : > { %v7662_v31 = vmul.f32 0.5, %v7658_v30  ;;  %v7497_v32 = vsel %vm3438_vm8, %v7496_v29, -inf }
0x1e6a   : > { %7498 = vmax.xlane.f32.xlu1 %v7497_v32  ;;  %v16069_v33 = vpop.f32.mrf.mxu1 }
0x1e6b   : > { %v7663_v34 = vadd.f32 %v7662_v31, %v19285_v41 }
0x1e6c   : > { %v7825_v35 = vpop.f32.mrf.mxu1 }
0x1e6d   : > { %v7829_v39 = vmul.f32 0.5, %v7825_v35  ;;  %v7664_v40 = vsel %vm3438_vm8, %v7663_v34, -inf }
0x1e6e   : > { %7665 = vmax.xlane.f32.xlu0 %v7664_v40  ;;  %v16079_v43 = vpop.f32.mrf.mxu1 }
0x1e6f   : > { %v7830_v44 = vadd.f32 %v7829_v39, %v19285_v41 }
0x1e70   : > { %v7992_v38 = vpop.f32.mrf.mxu1 }
0x1e71   : > { %v7996_v42 = vmul.f32 0.5, %v7992_v38  ;;  %v7831_v45 = vsel %vm3438_vm8, %v7830_v44, -inf }
0x1e72   : > { %7832 = vmax.xlane.f32.xlu0 %v7831_v45  ;;  %v16089_v46 = vpop.f32.mrf.mxu1 }
0x1e73   : > { %v7997_v36 = vadd.f32 %v7996_v42, %v19285_v41 }
0x1e74   : > { %v8159_v47 = vpop.f32.mrf.mxu1 }
0x1e75   : > { %v8163_v48 = vmul.f32 0.5, %v8159_v47  ;;  %v7998_v49 = vsel %vm3438_vm8, %v7997_v36, -inf }
0x1e76   : > { %7999 = vmax.xlane.f32.xlu1 %v7998_v49  ;;  %v16099_v50 = vpop.f32.mrf.mxu1 }
0x1e77   : > { %v8164_v51 = vadd.f32 %v8163_v48, %v19285_v41 }
0x1e78   : > { %v8326_v52 = vpop.f32.mrf.mxu1 }
0x1e79   : > { %v8330_v53 = vmul.f32 0.5, %v8326_v52  ;;  %v8165_v54 = vsel %vm3438_vm8, %v8164_v51, -inf }
0x1e7a   : > { %8166 = vmax.xlane.f32.xlu0 %v8165_v54  ;;  %v16109_v55 = vpop.f32.mrf.mxu1 }
0x1e7b   : > { %v8331_v56 = vadd.f32 %v8330_v53, %v19285_v41 }
0x1e7c   : > { %v8493_v57 = vpop.f32.mrf.mxu1 }
0x1e7d   : > { %v8497_v58 = vmul.f32 0.5, %v8493_v57  ;;  %v8332_v59 = vsel %vm3438_vm8, %v8331_v56, -inf }
0x1e7e   : > { %8333 = vmax.xlane.f32.xlu1 %v8332_v59  ;;  %v16119_v60 = vpop.f32.mrf.mxu1 }
0x1e7f   : > { %v8498_v62 = vadd.f32 %v8497_v58, %v19285_v41 }
0x1e80   : > { %v8660_v63 = vpop.f32.mrf.mxu1 }
0x1e81   : > { %v8499_v1 = vsel %vm3438_vm8, %v8498_v62, -inf  ;;  %v8664_v7 = vmul.f32 0.5, %v8660_v63 }
0x1e82   : > { %8500 = vmax.xlane.f32.xlu0 %v8499_v1  ;;  %v16129_v4 = vpop.f32.mrf.mxu1 }
0x1e83   : > { %v8665_v18 = vadd.f32 %v8664_v7, %v19285_v41 }
0x1e85   : > { %v8666_v8 = vsel %vm3438_vm8, %v8665_v18, -inf }
0x1e8f   : > { %7842 = vrot.lane.b32.xlu1 %v19792_v9, %s20987_s11 }
0x1e98   : > { %7675 = vrot.lane.b32.xlu0 %v19792_v9, %s21015_s20 }
0x1eb3   : > { %8667 = vmax.xlane.f32.xlu1 %v8666_v8 }
0x1ec4   : > { %8009 = vrot.lane.b32.xlu1 %v19792_v9, %s20986_s9 }
0x1ef3   : > { %v7499_v10 = vpop.xlane.xlu1 %7498 }
0x1ef4   : > { %v7500_v11 = vsub.f32 %v7496_v29, %v7499_v10 }
0x1ef6   : > { %v7501_v12 = vmul.f32 1.442695, %v7500_v11 }
0x1ef7   : > { %v7666_v13 = vpop.xlane.xlu0 %7665 }
0x1ef8   : > { %16992 = vpow2.f32 %v7501_v12  ;;  %v7667_v37 = vsub.f32 %v7663_v34, %v7666_v13 }
0x1efa   : > { %v7668_v14 = vmul.f32 1.442695, %v7667_v37 }
0x1efb   : > { %v7833_v16 = vpop.xlane.xlu0 %7832 }
0x1efc   : > { %16994 = vpow2.f32 %v7668_v14  ;;  %v7834_v15 = vsub.f32 %v7830_v44, %v7833_v16 }
0x1efe   : > { %v7835_v17 = vmul.f32 1.442695, %v7834_v15 }
0x1eff   : > { %v8000_v25 = vpop.xlane.xlu1 %7999 }
0x1f00   : > { %16996 = vpow2.f32 %v7835_v17  ;;  %v8001_v26 = vsub.f32 %v7997_v36, %v8000_v25 }
0x1f02   : > { %v8002_v29 = vmul.f32 1.442695, %v8001_v26 }
0x1f03   : > { %v8167_v27 = vpop.xlane.xlu0 %8166 }
0x1f04   : > { %v8168_v28 = vsub.f32 %v8164_v51, %v8167_v27  ;;  %16998 = vpow2.f32 %v8002_v29  ;;  %v7415_v29 = vld [vmem:[%s21016_s30 + $0x10] sm:$0xff] }
0x1f05   : > { %v16993_v19 = vpop.eup %16992 }
0x1f06   : > { %v7503_v20 = vsel %vm3438_vm8, %v16993_v19, 0.0  ;;  %v8169_v32 = vmul.f32 1.442695, %v8168_v28  ;;  %v7416_v28 = vld [vmem:[%s21016_s30 + $0x18] sm:$0xff] }
0x1f07   : > { %7504 = vadd.xlane.f32.xlu0 %v7503_v20  ;;  %v8334_v61 = vpop.xlane.xlu1 %8333  ;;  %16136 = vmatpush3.msra.mxu1 %v7416_v28 }
0x1f08   : > { %v8335_v30 = vsub.f32 %v8331_v56, %v8334_v61  ;;  %17000 = vpow2.f32 %v8169_v32  ;;  %16137 = vmatprep.subr.mxu1 %v18371_v0  ;;  %v7413_v32 = vld [vmem:[%s21016_s30] sm:$0xff] }
0x1f09   : > { %v16995_v21 = vpop.eup %16994  ;;  %16138 = vmatpush3.msra.mxu1 %v7415_v29 }
0x1f0a   : > { %v7670_v22 = vsel %vm3438_vm8, %v16995_v21, 0.0  ;;  %v8336_v33 = vmul.f32 1.442695, %v8335_v30  ;;  %16139 = vmatprep.subr.mxu1 %v18371_v0 }
0x1f0b   : > { %7671 = vadd.xlane.f32.xlu1 %v7670_v22  ;;  %v8501_v31 = vpop.xlane.xlu0 %8500  ;;  %v7843_v39 = vpop.permute.xlu1 %7842 }
0x1f0c   : > { %v8502_v34 = vsub.f32 %v8498_v62, %v8501_v31  ;;  %17002 = vpow2.f32 %v8336_v33  ;;  %v7414_v31 = vld [vmem:[%s21016_s30 + $0x8] sm:$0xff]  ;;  %s21017_s30 = smov 28  }
0x1f0d   : > { %v19892_v23 = vpop.eup %16996  ;;  %16140 = vmatpush3.msra.mxu1 %v7414_v31 }
0x1f0e   : > { %v7837_v24 = vsel %vm3438_vm8, %v19892_v23, 0.0  ;;  %v8503_v35 = vmul.f32 1.442695, %v8502_v34  ;;  %16141 = vmatprep.subr.mxu1 %v18371_v0 }
0x1f0f   : > { %7838 = vadd.xlane.f32.xlu0 %v7837_v24  ;;  %v7676_v52 = vpop.permute.xlu0 %7675  ;;  %16142 = vmatpush3.msra.mxu1 %v7413_v32 }
0x1f10   : > { %17004 = vpow2.f32 %v8503_v35  ;;  %16157 = vmatprep.subr.mxu1 %v18371_v0 }
0x1f11   : > { %v16999_v40 = vpop.eup %16998 }
0x1f12   : > { %v8004_v45 = vsel %vm3438_vm8, %v16999_v40, 0.0 }
0x1f15   : > { %v19900_v38 = vpop.eup %17000 }
0x1f16   : > { %v8171_v36 = vsel %vm3438_vm8, %v19900_v38, 0.0 }
0x1f19   : > { %v19903_v46 = vpop.eup %17002 }
0x1f1a   : > { %v8338_v47 = vsel %vm3438_vm8, %v19903_v46, 0.0 }
0x1f1c   : > { %8176 = vrot.lane.b32.xlu1 %v19792_v9, %s20988_s13 }
0x1f1d   : > { %v19909_v48 = vpop.eup %17004 }
0x1f1e   : > { %v8505_v49 = vsel %vm3438_vm8, %v19909_v48, 0.0 }
0x1f25   : > { %8343 = vrot.lane.b32.xlu0 %v19792_v9, %s20989_s14  ;;  %s21022_s14 = sld [smem:[#allocation97_spill]] }
0x1f3c   : > { %v8668_v43 = vpop.xlane.xlu1 %8667 }
0x1f3d   : > { %v8669_v44 = vsub.f32 %v8665_v18, %v8668_v43 }
0x1f3f   : > { %v8670_v42 = vmul.f32 1.442695, %v8669_v44 }
0x1f40   : > { %8005 = vadd.xlane.f32.xlu1 %v8004_v45  ;;  %v8010_v53 = vpop.permute.xlu1 %8009 }
0x1f41   : > { %17006 = vpow2.f32 %v8670_v42 }
0x1f44   : > { %8172 = vadd.xlane.f32.xlu0 %v8171_v36  ;;  %8339 = vadd.xlane.f32.xlu1 %v8338_v47 }
0x1f48   : > { %8506 = vadd.xlane.f32.xlu0 %v8505_v49 }
0x1f4e   : > { %v19913_v50 = vpop.eup %17006 }
0x1f4f   : > { %v8672_v51 = vsel %vm3438_vm8, %v19913_v50, 0.0 }
0x1f50   : > { %8673 = vadd.xlane.f32.xlu0 %v8672_v51 }
0x1f55   : > { %8510 = vrot.lane.b32.xlu1 %v19792_v9, %s20990_s15 }
0x1f66   : > { %8677 = vrot.lane.b32.xlu0 %v19792_v9, %s20991_s17  ;;  %s21019_s17 = sld [smem:[#allocation93_spill]] }
0x1f90   : > { %v7505_v54 = vpop.xlane.xlu0 %7504 }
0x1f91   : > { %17008 = vrcp.f32 %v7505_v54 }
0x1f94   : > { %v7672_v55 = vpop.xlane.xlu1 %7671 }
0x1f95   : > { %17010 = vrcp.f32 %v7672_v55 }
0x1f98   : > { %v7839_v56 = vpop.xlane.xlu0 %7838  ;;  %v8177_v63 = vpop.permute.xlu1 %8176 }
0x1f99   : > { %17012 = vrcp.f32 %v7839_v56 }
0x1f9c   : > { %v8344_v1 = vpop.permute.xlu0 %8343 }
0x1f9e   : > { %v17009_v57 = vpop.eup %17008 }
0x1f9f   : > { %v7507_v58 = vmul.f32 %v17009_v57, %v16993_v19  ;;  %v8984_v57 = vld [vmem:[%s21018_s2 + $0x18] sm:$0xff] }
0x1fa1   : > { %16063 = vmatmul.mubr.msk.f32.vlgmr.msra.gmra.mxu0 %vm3438_vm8, %v7507_v58  ;;  %v7251_v58 = vld [vmem:[#allocation37] sm:$0x1] }
0x1fa2   : > { %v17011_v59 = vpop.eup %17010  ;;  %16071 = vmatpush3.msra.mxu0 %v7676_v52  ;;  %16072 = vmatprep.mubr.msk.f32.mxu0 %vm18372_vm0, %v18371_v0 }
0x1fa3   : > { %16080 = vmatprep.subr.mxu0 %v18371_v0  ;;  %v7674_v9 = vmul.f32 %v17011_v59, %v16995_v21 }
0x1fa5   : > { %16073 = vmatmul.mubr.msk.f32.vlgmr.msra.gmra.mxu0 %vm3438_vm8, %v7674_v9  ;;  %v8983_v9 = vld [vmem:[%s21018_s2 + $0x10] sm:$0xff] }
0x1fa6   : > { %v17013_v60 = vpop.eup %17012  ;;  %16081 = vmatpush3.msra.mxu0 %v7843_v39  ;;  %16082 = vmatprep.mubr.msk.f32.mxu0 %vm18372_vm0, %v18371_v0 }
0x1fa7   : > { %16090 = vmatprep.subr.mxu0 %v18371_v0  ;;  %v7841_v62 = vmul.f32 %v17013_v60, %v19892_v23  ;;  %v7322_v60 = vadd.f32 %v19790_v6, %v7251_v58  ;;  %v15229_v6 = vld [vmem:[#allocation10] ss:$0 sm:$0xff] }
0x1fa9   : > { %16083 = vmatmul.mubr.msk.f32.vlgmr.msra.gmra.mxu0 %vm3438_vm8, %v7841_v62  ;;  %v8982_v62 = vld [vmem:[%s21018_s2 + $0x8] sm:$0xff] }
0x1faa   : > { %16091 = vmatpush3.msra.mxu0 %v8010_v53  ;;  %16092 = vmatprep.mubr.msk.f32.mxu0 %vm18372_vm0, %v18371_v0 }
0x1fab   : > { %16100 = vmatprep.subr.mxu0 %v18371_v0 }
0x1fc9   : > { %v8006_v4 = vpop.xlane.xlu1 %8005 }
0x1fca   : > { %17014 = vrcp.f32 %v8006_v4 }
0x1fcd   : > { %v8173_v7 = vpop.xlane.xlu0 %8172  ;;  %v8340_v18 = vpop.xlane.xlu1 %8339 }
0x1fce   : > { %17016 = vrcp.f32 %v8173_v7 }
0x1fcf   : > { %17018 = vrcp.f32 %v8340_v18 }
0x1fd1   : > { %v8507_v8 = vpop.xlane.xlu0 %8506  ;;  %v8511_v17 = vpop.permute.xlu1 %8510 }
0x1fd2   : > { %17020 = vrcp.f32 %v8507_v8 }
0x1fd7   : > { %v17015_v10 = vpop.eup %17014 }
0x1fd8   : > { %v8008_v11 = vmul.f32 %v17015_v10, %v16999_v40 }
0x1fd9   : > { %v8674_v12 = vpop.xlane.xlu0 %8673 }
0x1fda   : > { %17022 = vrcp.f32 %v8674_v12  ;;  %16093 = vmatmul.mubr.msk.f32.vlgmr.msra.gmra.mxu0 %vm3438_vm8, %v8008_v11 }
0x1fdb   : > { %v17017_v13 = vpop.eup %17016  ;;  %16101 = vmatpush3.msra.mxu0 %v8177_v63  ;;  %16102 = vmatprep.mubr.msk.f32.mxu0 %vm18372_vm0, %v18371_v0  ;;  %v8981_v63 = vld [vmem:[%s21018_s2] sm:$0xff]  ;;  %s21020_s2 = sld [smem:[#allocation98_spill]] }
0x1fdc   : > { %16110 = vmatprep.subr.mxu0 %v18371_v0  ;;  %v8175_v37 = vmul.f32 %v17017_v13, %v19900_v38  ;;  %v17019_v14 = vpop.eup %17018  ;;  %v15235_v13 = vld [vmem:[%s21019_s17] ss:$0 sm:$0xff]  ;;  %s21021_s17 = sld [smem:[#allocation103_spill]] }
0x1fdd   : > { %v8342_v16 = vmul.f32 %v17019_v14, %v19903_v46  ;;  %v8678_v20 = vpop.permute.xlu0 %8677 }
0x1fde   : > { %16103 = vmatmul.mubr.msk.f32.vlgmr.msra.gmra.mxu0 %vm3438_vm8, %v8175_v37 }
0x1fdf   : > { %16111 = vmatpush3.msra.mxu0 %v8344_v1  ;;  %16112 = vmatprep.mubr.msk.f32.mxu0 %vm18372_vm0, %v18371_v0  ;;  %v17021_v15 = vpop.eup %17020  ;;  %v19990_v1 = vrot.slane %v7322_v60, %v19458_v3 }
0x1fe0   : > { %16120 = vmatprep.subr.mxu0 %v18371_v0  ;;  %v8509_v19 = vmul.f32 %v17021_v15, %v19909_v48 }
0x1fe2   : > { %16113 = vmatmul.mubr.msk.f32.vlgmr.msra.gmra.mxu0 %vm3438_vm8, %v8342_v16  ;;  %v15232_v29 = vld [vmem:[%s21021_s17] ss:$0 sm:$0xff]  ;;  %s21024_s17 = sld [smem:[#allocation95_spill]] }
0x1fe3   : > { %16121 = vmatpush3.msra.mxu0 %v8511_v17  ;;  %16122 = vmatprep.mubr.msk.f32.mxu0 %vm18372_vm0, %v18371_v0 }
0x1fe4   : > { %16130 = vmatprep.subr.mxu0 %v18371_v0 }
0x1fe6   : > { %16123 = vmatmul.mubr.msk.f32.vlgmr.msra.gmra.mxu0 %vm3438_vm8, %v8509_v19 }
0x1fe7   : > { %v17023_v21 = vpop.eup %17022  ;;  %16131 = vmatpush3.msra.mxu0 %v8678_v20  ;;  %16132 = vmatprep.mubr.msk.f32.mxu0 %vm18372_vm0, %v18371_v0  ;;  %v8900_v20 = vld [vmem:[%s21020_s2 + $0x18] sm:$0xff] }
0x1fe8   : > { %v8676_v22 = vmul.f32 %v17023_v21, %v19913_v50  ;;  %16146 = vmatprep.subr.mxu0 %v18371_v0  ;;  %v8899_v21 = vld [vmem:[%s21020_s2 + $0x10] sm:$0xff] }
0x1fea   : > { %16133 = vmatmul.mubr.msk.f32.vlgmr.msra.gmra.mxu0 %vm3438_vm8, %v8676_v22  ;;  %v8898_v22 = vld [vmem:[%s21020_s2 + $0x8] sm:$0xff] }
0x1feb   : > { %16154 = vmatprep.mubr.msk.f32.mxu0 %vm18372_vm0, %v18371_v0  ;;  %16147 = vmatpush3.msra.mxu0 %v8900_v20 }
0x1fec   : > { %16148 = vmatprep.subr.mxu0 %v18371_v0 }
0x1fed   : > { %16149 = vmatpush3.msra.mxu0 %v8899_v21 }
0x1fee   : > { %16150 = vmatprep.subr.mxu0 %v18371_v0 }
0x1fef   : > { %16151 = vmatpush3.msra.mxu0 %v8898_v22 }
0x1ff0   : > { %16152 = vmatprep.subr.mxu0 %v18371_v0 }
0x2061   : > { %v7580_v23 = vpop.f32.mrf.mxu0 }
0x2063   : > { %v16064_v24 = vpop.f32.mrf.mxu0 }
0x2065   : > { %v7747_v25 = vpop.f32.mrf.mxu0 }
0x2066   : > { %8754 = vrot.lane.b32.xlu1 %v7747_v25, %s20992_s19 }
0x2067   : > { %v16074_v26 = vpop.f32.mrf.mxu0 }
0x2069   : > { %v7914_v27 = vpop.f32.mrf.mxu0 }
0x206a   : > { %8758 = vrot.lane.b32.xlu0 %v7914_v27, %s20994_s21 }
0x206b   : > { %v16084_v61 = vpop.f32.mrf.mxu0 }
0x206c   : > { %v15231_v61 = vld [vmem:[#allocation2] ss:$0 sm:$0xff] }
0x209a   : > { %v8081_v30 = vpop.f32.mrf.mxu0 }
0x209b   : > { %8762 = vrot.lane.b32.xlu1 %v8081_v30, %s20995_s24 }
0x209c   : > { %v16094_v33 = vpop.f32.mrf.mxu0 }
0x209e   : > { %v8248_v34 = vpop.f32.mrf.mxu0 }
0x209f   : > { %8766 = vrot.lane.b32.xlu0 %v8248_v34, %s20996_s25 }
0x20a0   : > { %v16104_v35 = vpop.f32.mrf.mxu0 }
0x20a2   : > { %v8415_v39 = vpop.f32.mrf.mxu0 }
0x20a3   : > { %8770 = vrot.lane.b32.xlu1 %v8415_v39, %s20997_s27 }
0x20a4   : > { %v16114_v40 = vpop.f32.mrf.mxu0 }
0x20a6   : > { %v8582_v43 = vpop.f32.mrf.mxu0 }
0x20a7   : > { %8774 = vrot.lane.b32.xlu0 %v8582_v43, %s20998_s28  ;;  %v15233_v43 = vld [vmem:[%s21022_s14] ss:$0 sm:$0xff]  ;;  %s21023_s14 = sld [smem:[#allocation96_spill]] }
0x20a8   : > { %v16124_v44 = vpop.f32.mrf.mxu0 }
0x20aa   : > { %v8749_v38 = vpop.f32.mrf.mxu0 }
0x20ab   : > { %8778 = vrot.lane.b32.xlu1 %v8749_v38, %s21017_s30 }
0x20ac   : > { %v16134_v42 = vpop.f32.mrf.mxu0 }
0x20d8   : > { %v8755_v45 = vpop.permute.xlu1 %8754 }
0x20d9   : > { %v8781_v48 = vsel %vm3361_vm6, %v7580_v23, %v8755_v45  ;;  %v8897_v23 = vld [vmem:[%s21020_s2] sm:$0xff]  ;;  %s21025_s2 = sld [smem:[#allocation100_spill]] }
0x20da   : > { %16153 = vmatpush3.msra.mxu0 %v8897_v23 }
0x20db   : > { %16168 = vmatprep.subr.mxu0 %v18371_v0 }
0x20dc   : > { %v8759_v46 = vpop.permute.xlu0 %8758 }
0x20dd   : > { %v8782_v49 = vsel %vm3438_vm8, %v8781_v48, %v8759_v46 }
0x210d   : > { %v8763_v36 = vpop.permute.xlu1 %8762 }
0x210e   : > { %v8783_v51 = vsel %vm4725_vm9, %v8782_v49, %v8763_v36 }
0x2111   : > { %v8767_v47 = vpop.permute.xlu0 %8766 }
0x2112   : > { %v8784_v53 = vsel %vm4727_vm10, %v8783_v51, %v8767_v47 }
0x2115   : > { %v8771_v50 = vpop.permute.xlu1 %8770 }
0x2116   : > { %v8785_v54 = vsel %vm4729_vm11, %v8784_v53, %v8771_v50 }
0x2119   : > { %v8775_v52 = vpop.permute.xlu0 %8774 }
0x211a   : > { %v8786_v55 = vsel %vm4731_vm12, %v8785_v54, %v8775_v52 }
0x211d   : > { %v8779_v56 = vpop.permute.xlu1 %8778 }
0x211e   : > { %v8787_v59 = vsel %vm4733_vm13, %v8786_v55, %v8779_v56 }
0x211f   : > { %16144 = vmatmul.mubr.msk.f32.vlgmr.msra.gmra.mxu1 %vm3279_vm5, %v8787_v59 }
0x2120   : > { %16158 = vmatpush3.msra.mxu1 %v8984_v57  ;;  %16165 = vmatprep.mubr.msk.f32.mxu1 %vm18372_vm0, %v18371_v0 }
0x2121   : > { %16159 = vmatprep.subr.mxu1 %v18371_v0 }
0x2122   : > { %16160 = vmatpush3.msra.mxu1 %v8983_v9 }
0x2123   : > { %16161 = vmatprep.subr.mxu1 %v18371_v0 }
0x2124   : > { %16162 = vmatpush3.msra.mxu1 %v8982_v62 }
0x2125   : > { %16163 = vmatprep.subr.mxu1 %v18371_v0 }
0x2126   : > { %16164 = vmatpush3.msra.mxu1 %v8981_v63 }
0x2127   : > { %16166 = vmatmul.mubr.msk.f32.vlgmr.msra.gmra.mxu1 %vm3279_vm5, %v19990_v1  ;;  %16178 = vmatprep.subr.mxu1 %v18371_v0 }
0x2128   : > { %16180 = vmatprep.mubr.msk.f32.mxu1 %vm18372_vm0, %v18371_v0 }
0x21df   : > { %v8863_v4 = vpop.f32.mrf.mxu1 }
0x21e0   : > { %v8864_v7 = vadd.f32 %v15229_v6, %v8863_v4 }
0x21e1   : > { %v16145_v18 = vpop.f32.mrf.mxu1 }
0x21e2   : > { %v8867_v8 = vadd.f32 %v8864_v7, %v19781_v2 }
0x21e4   : > { %v8870_v10 = vsel %vm3279_vm5, %v8867_v8, 0.0 }
0x21e5   : > { %8871 = vadd.xlane.f32.xlu0 %v8870_v10 }
0x21e7   : > { %v9061_v11 = vpop.f32.mrf.mxu1 }
0x21e8   : > { %v20001_v37 = vadd.f32 %v15235_v13, %v9061_v11 }
0x21e9   : > { %v16167_v12 = vpop.f32.mrf.mxu1 }
0x21fb   : > { %9236 = vrot.lane.b32.xlu0 %v20001_v37, %s21013_s29 }
0x21ff   : > { %9402 = vrot.lane.b32.xlu0 %v20001_v37, %s20974_s23 }
0x2203   : > { %9568 = vrot.lane.b32.xlu0 %v20001_v37, %s20981_s3 }
0x2207   : > { %9734 = vrot.lane.b32.xlu0 %v20001_v37, %s20982_s4 }
0x220b   : > { %9900 = vrot.lane.b32.xlu0 %v20001_v37, %s20983_s5 }
0x220f   : > { %10066 = vrot.lane.b32.xlu0 %v20001_v37, %s20984_s7 }
0x2213   : > { %10232 = vrot.lane.b32.xlu0 %v20001_v37, %s20985_s8 }
0x2217   : > { %9158 = vrot.lane.b32.xlu0 %v20001_v37, %s21012_s0 }
0x226e   : > { %v8872_v2 = vpop.xlane.xlu0 %8871 }
0x226f   : > { %v8873_v14 = vmul.f32 0.03125, %v8872_v2 }
0x2271   : > { %v8874_v16 = vsub.f32 %v8867_v8, %v8873_v14 }
0x2272   : > { %v9237_v15 = vpop.permute.xlu0 %9236 }
0x2273   : > { %16179 = vmatpush3.xpose.msk.msra.mxu1 %vm3361_vm6, %v9237_v15  ;;  %v8875_v17 = vmul.f32 %v8874_v16, %v8874_v16 }
0x2274   : > { %16188 = vmatprep.subr.mxu1 %v18371_v0 }
0x2275   : > { %v8876_v19 = vsel %vm3279_vm5, %v8875_v17, 0.0 }
0x2276   : > { %8877 = vadd.xlane.f32.xlu1 %v8876_v19  ;;  %v9403_v32 = vpop.permute.xlu0 %9402 }
0x227a   : > { %v9569_v33 = vpop.permute.xlu0 %9568 }
0x227e   : > { %v9735_v34 = vpop.permute.xlu0 %9734 }
0x2282   : > { %v9901_v35 = vpop.permute.xlu0 %9900 }
0x2286   : > { %v10067_v39 = vpop.permute.xlu0 %10066 }
0x228a   : > { %v10233_v40 = vpop.permute.xlu0 %10232 }
0x228e   : > { %v9159_v45 = vpop.permute.xlu0 %9158 }
0x22ff   : > { %v8878_v24 = vpop.xlane.xlu1 %8877 }
0x2300   : > { %v8879_v25 = vmul.f32 0.03125, %v8878_v24 }
0x2302   : > { %v8880_v26 = vadd.f32 1e-05, %v8879_v25 }
0x2304   : > { %17024 = vrsqrt.f32 %v8880_v26 }
0x2311   : > { %v17025_v27 = vpop.eup %17024 }
0x2312   : > { %v8882_v28 = vmul.f32 %v17025_v27, %v8874_v16 }
0x2314   : > { %v8889_v30 = vmul.f32 %v15231_v61, %v8882_v28 }
0x2316   : > { %v20031_v31 = vadd.f32 %v15232_v29, %v8889_v30 }
0x2318   : > { %16155 = vmatmul.mubr.msk.f32.vlgmr.msra.gmra.mxu0 %vm3279_vm5, %v20031_v31 }
0x2319   : > { %16169 = vmatpush3.xpose.msk.msra.mxu0 %vm3361_vm6, %v20001_v37  ;;  %16170 = vmatprep.mubr.msk.f32.mxu0 %vm18372_vm0, %v18371_v0 }
0x231a   : > { %16173 = vmatprep.subr.mxu0 %v18371_v0 }
0x23d8   : > { %v8977_v44 = vpop.f32.mrf.mxu0 }
0x23d9   : > { %v8978_v38 = vadd.f32 %v15233_v43, %v8977_v44 }
0x23da   : > { %v16156_v42 = vpop.f32.mrf.mxu0 }
0x23db   : > { %9234 = vrot.lane.b32.xlu1 %v8978_v38, %s21013_s29  ;;  %16171 = vmatmul.mubr.msk.f32.vlgmr.msra.gmra.mxu0 %vm3361_vm6, %v8978_v38 }
0x23dc   : > { %16174 = vmatpush3.msra.mxu0 %v9159_v45  ;;  %16175 = vmatprep.mubr.msk.f32.mxu0 %vm18372_vm0, %v18371_v0 }
0x23dd   : > { %16183 = vmatprep.subr.mxu0 %v18371_v0 }
0x23df   : > { %9400 = vrot.lane.b32.xlu1 %v8978_v38, %s20974_s23 }
0x23e3   : > { %9566 = vrot.lane.b32.xlu1 %v8978_v38, %s20981_s3 }
0x23e7   : > { %9732 = vrot.lane.b32.xlu1 %v8978_v38, %s20982_s4 }
0x23eb   : > { %9898 = vrot.lane.b32.xlu1 %v8978_v38, %s20983_s5 }
0x23ef   : > { %10064 = vrot.lane.b32.xlu1 %v8978_v38, %s20984_s7 }
0x23f3   : > { %10230 = vrot.lane.b32.xlu1 %v8978_v38, %s20985_s8 }
0x23f7   : > { %9324 = vrot.lane.b32.xlu1 %v20001_v37, %s21011_s12 }
0x244d   : > { %v9235_v46 = vpop.permute.xlu1 %9234 }
0x244e   : > { %16181 = vmatmul.mubr.msk.f32.vlgmr.msra.gmra.mxu1 %vm3361_vm6, %v9235_v46 }
0x244f   : > { %16189 = vmatpush3.xpose.msk.msra.mxu1 %vm3361_vm6, %v9403_v32  ;;  %16190 = vmatprep.mubr.msk.f32.mxu1 %vm18372_vm0, %v18371_v0 }
0x2450   : > { %16198 = vmatprep.subr.mxu1 %v18371_v0 }
0x2451   : > { %v9401_v36 = vpop.permute.xlu1 %9400 }
0x2452   : > { %16191 = vmatmul.mubr.msk.f32.vlgmr.msra.gmra.mxu1 %vm3361_vm6, %v9401_v36 }
0x2453   : > { %16199 = vmatpush3.xpose.msk.msra.mxu1 %vm3361_vm6, %v9569_v33  ;;  %16200 = vmatprep.mubr.msk.f32.mxu1 %vm18372_vm0, %v18371_v0 }
0x2454   : > { %16208 = vmatprep.subr.mxu1 %v18371_v0 }
0x2455   : > { %v9567_v47 = vpop.permute.xlu1 %9566 }
0x2456   : > { %16201 = vmatmul.mubr.msk.f32.vlgmr.msra.gmra.mxu1 %vm3361_vm6, %v9567_v47 }
0x2457   : > { %16209 = vmatpush3.xpose.msk.msra.mxu1 %vm3361_vm6, %v9735_v34  ;;  %16210 = vmatprep.mubr.msk.f32.mxu1 %vm18372_vm0, %v18371_v0 }
0x2458   : > { %16218 = vmatprep.subr.mxu1 %v18371_v0 }
0x2459   : > { %v9733_v48 = vpop.permute.xlu1 %9732 }
0x245a   : > { %16211 = vmatmul.mubr.msk.f32.vlgmr.msra.gmra.mxu1 %vm3361_vm6, %v9733_v48 }
0x245b   : > { %16219 = vmatpush3.xpose.msk.msra.mxu1 %vm3361_vm6, %v9901_v35  ;;  %16220 = vmatprep.mubr.msk.f32.mxu1 %vm18372_vm0, %v18371_v0 }
0x245c   : > { %16228 = vmatprep.subr.mxu1 %v18371_v0 }
0x245d   : > { %v9899_v49 = vpop.permute.xlu1 %9898 }
0x245e   : > { %16221 = vmatmul.mubr.msk.f32.vlgmr.msra.gmra.mxu1 %vm3361_vm6, %v9899_v49 }
0x245f   : > { %16229 = vmatpush3.xpose.msk.msra.mxu1 %vm3361_vm6, %v10067_v39  ;;  %16230 = vmatprep.mubr.msk.f32.mxu1 %vm18372_vm0, %v18371_v0 }
0x2460   : > { %16238 = vmatprep.subr.mxu1 %v18371_v0 }
0x2461   : > { %v10065_v50 = vpop.permute.xlu1 %10064 }
0x2462   : > { %16231 = vmatmul.mubr.msk.f32.vlgmr.msra.gmra.mxu1 %vm3361_vm6, %v10065_v50 }
0x2463   : > { %16239 = vmatpush3.xpose.msk.msra.mxu1 %vm3361_vm6, %v10233_v40  ;;  %16240 = vmatprep.mubr.msk.f32.mxu1 %vm18372_vm0, %v18371_v0 }
0x2464   : > { %16248 = vmatprep.subr.mxu1 %v18371_v0 }
0x2465   : > { %v10231_v51 = vpop.permute.xlu1 %10230 }
0x2466   : > { %16241 = vmatmul.mubr.msk.f32.vlgmr.msra.gmra.mxu1 %vm3361_vm6, %v10231_v51 }
0x2467   : > { %16256 = vmatprep.mubr.msk.f32.mxu1 %vm18372_vm0, %v18371_v0 }
0x2469   : > { %v9325_v29 = vpop.permute.xlu1 %9324 }
0x249b   : > { %v9142_v52 = vpop.f32.mrf.mxu0 }
0x249c   : > { %v9146_v53 = vmul.f32 0.5, %v9142_v52 }
0x249d   : > { %v16172_v54 = vpop.f32.mrf.mxu0 }
0x249e   : > { %v9147_v55 = vsel %vm3438_vm8, %v9146_v53, -inf }
0x249f   : > { %9148 = vmax.xlane.f32.xlu0 %v9147_v55 }
0x250e   : > { %v9308_v56 = vpop.f32.mrf.mxu1 }
0x250f   : > { %v9312_v57 = vmul.f32 0.5, %v9308_v56 }
0x2510   : > { %v16182_v58 = vpop.f32.mrf.mxu1 }
0x2511   : > { %v9313_v59 = vsel %vm3438_vm8, %v9312_v57, -inf }
0x2512   : > { %9314 = vmax.xlane.f32.xlu1 %v9313_v59  ;;  %v9474_v9 = vpop.f32.mrf.mxu1 }
0x2513   : > { %v9478_v60 = vmul.f32 0.5, %v9474_v9 }
0x2514   : > { %v16192_v62 = vpop.f32.mrf.mxu1 }
0x2515   : > { %v9479_v63 = vsel %vm3438_vm8, %v9478_v60, -inf }
0x2516   : > { %9480 = vmax.xlane.f32.xlu0 %v9479_v63  ;;  %v9640_v6 = vpop.f32.mrf.mxu1 }
0x2517   : > { %v9644_v4 = vmul.f32 0.5, %v9640_v6 }
0x2518   : > { %v16202_v7 = vpop.f32.mrf.mxu1 }
0x2519   : > { %v9645_v18 = vsel %vm3438_vm8, %v9644_v4, -inf }
0x251a   : > { %9646 = vmax.xlane.f32.xlu0 %v9645_v18  ;;  %v9806_v8 = vpop.f32.mrf.mxu1 }
0x251b   : > { %v9810_v10 = vmul.f32 0.5, %v9806_v8 }
0x251c   : > { %v16212_v11 = vpop.f32.mrf.mxu1 }
0x251d   : > { %v9811_v12 = vsel %vm3438_vm8, %v9810_v10, -inf }
0x251e   : > { %9812 = vmax.xlane.f32.xlu1 %v9811_v12  ;;  %v9972_v13 = vpop.f32.mrf.mxu1 }
0x251f   : > { %v9976_v2 = vmul.f32 0.5, %v9972_v13 }
0x2520   : > { %v16222_v14 = vpop.f32.mrf.mxu1 }
0x2521   : > { %v9977_v16 = vsel %vm3438_vm8, %v9976_v2, -inf }
0x2522   : > { %9978 = vmax.xlane.f32.xlu0 %v9977_v16  ;;  %v10138_v15 = vpop.f32.mrf.mxu1 }
0x2523   : > { %v10142_v17 = vmul.f32 0.5, %v10138_v15 }
0x2524   : > { %v16232_v19 = vpop.f32.mrf.mxu1 }
0x2525   : > { %v10143_v20 = vsel %vm3438_vm8, %v10142_v17, -inf }
0x2526   : > { %10144 = vmax.xlane.f32.xlu1 %v10143_v20  ;;  %v10304_v21 = vpop.f32.mrf.mxu1 }
0x2527   : > { %v10308_v22 = vmul.f32 0.5, %v10304_v21 }
0x2528   : > { %v16242_v23 = vpop.f32.mrf.mxu1  ;;  %v9149_v25 = vpop.xlane.xlu0 %9148 }
0x2529   : > { %v10309_v24 = vsel %vm3438_vm8, %v10308_v22, -inf  ;;  %v9150_v26 = vsub.f32 %v9146_v53, %v9149_v25 }
0x252a   : > { %10310 = vmax.xlane.f32.xlu0 %v10309_v24 }
0x252b   : > { %v9151_v27 = vmul.f32 1.442695, %v9150_v26 }
0x252d   : > { %17026 = vpow2.f32 %v9151_v27 }
0x2537   : > { %9656 = vrot.lane.b32.xlu1 %v20001_v37, %s20975_s26 }
0x253a   : > { %v17027_v61 = vpop.eup %17026 }
0x253b   : > { %v9153_v28 = vsel %vm3438_vm8, %v17027_v61, 0.0 }
0x2540   : > { %9490 = vrot.lane.b32.xlu0 %v20001_v37, %s20980_s10 }
0x255b   : > { %9154 = vadd.xlane.f32.xlu1 %v9153_v28 }
0x259b   : > { %v9315_v30 = vpop.xlane.xlu1 %9314 }
0x259c   : > { %v9316_v32 = vsub.f32 %v9312_v57, %v9315_v30 }
0x259e   : > { %v9317_v33 = vmul.f32 1.442695, %v9316_v32 }
0x259f   : > { %v9481_v34 = vpop.xlane.xlu0 %9480 }
0x25a0   : > { %17028 = vpow2.f32 %v9317_v33  ;;  %v9482_v35 = vsub.f32 %v9478_v60, %v9481_v34 }
0x25a2   : > { %v9483_v39 = vmul.f32 1.442695, %v9482_v35 }
0x25a3   : > { %v9647_v40 = vpop.xlane.xlu0 %9646 }
0x25a4   : > { %17030 = vpow2.f32 %v9483_v39  ;;  %v9648_v43 = vsub.f32 %v9644_v4, %v9647_v40 }
0x25a6   : > { %v9649_v44 = vmul.f32 1.442695, %v9648_v43 }
0x25a7   : > { %v9813_v48 = vpop.xlane.xlu1 %9812 }
0x25a8   : > { %17032 = vpow2.f32 %v9649_v44  ;;  %v9814_v49 = vsub.f32 %v9810_v10, %v9813_v48  ;;  %v9068_v48 = vld [vmem:[%s21023_s14 + $0x18] sm:$0xff] }
0x25a9   : > { %16249 = vmatpush3.msra.mxu1 %v9068_v48 }
0x25aa   : > { %v9815_v53 = vmul.f32 1.442695, %v9814_v49  ;;  %16250 = vmatprep.subr.mxu1 %v18371_v0  ;;  %v9067_v49 = vld [vmem:[%s21023_s14 + $0x10] sm:$0xff] }
0x25ab   : > { %v9979_v50 = vpop.xlane.xlu0 %9978  ;;  %16251 = vmatpush3.msra.mxu1 %v9067_v49 }
0x25ac   : > { %v9980_v52 = vsub.f32 %v9976_v2, %v9979_v50  ;;  %17034 = vpow2.f32 %v9815_v53  ;;  %v9066_v50 = vld [vmem:[%s21023_s14 + $0x8] sm:$0xff]  ;;  %16252 = vmatprep.subr.mxu1 %v18371_v0 }
0x25ad   : > { %v17029_v38 = vpop.eup %17028  ;;  %16253 = vmatpush3.msra.mxu1 %v9066_v50 }
0x25ae   : > { %v9319_v42 = vsel %vm3438_vm8, %v17029_v38, 0.0  ;;  %v9981_v56 = vmul.f32 1.442695, %v9980_v52  ;;  %16254 = vmatprep.subr.mxu1 %v18371_v0  ;;  %v9065_v52 = vld [vmem:[%s21023_s14] sm:$0xff]  ;;  %s21028_s14 = sld [smem:[#allocation101_spill]] }
0x25af   : > { %9320 = vadd.xlane.f32.xlu0 %v9319_v42  ;;  %v10145_v51 = vpop.xlane.xlu1 %10144  ;;  %16255 = vmatpush3.msra.mxu1 %v9065_v52 }
0x25b0   : > { %v10146_v54 = vsub.f32 %v10142_v17, %v10145_v51  ;;  %17036 = vpow2.f32 %v9981_v56 }
0x25b1   : > { %v17031_v45 = vpop.eup %17030 }
0x25b2   : > { %v9485_v46 = vsel %vm3438_vm8, %v17031_v45, 0.0  ;;  %v10147_v57 = vmul.f32 1.442695, %v10146_v54 }
0x25b3   : > { %9486 = vadd.xlane.f32.xlu1 %v9485_v46  ;;  %v10311_v55 = vpop.xlane.xlu0 %10310  ;;  %v9657_v9 = vpop.permute.xlu1 %9656 }
0x25b4   : > { %v10312_v58 = vsub.f32 %v10308_v22, %v10311_v55  ;;  %17038 = vpow2.f32 %v10147_v57 }
0x25b5   : > { %v20102_v36 = vpop.eup %17032 }
0x25b6   : > { %v9651_v47 = vsel %vm3438_vm8, %v20102_v36, 0.0  ;;  %v10313_v59 = vmul.f32 1.442695, %v10312_v58 }
0x25b7   : > { %9652 = vadd.xlane.f32.xlu0 %v9651_v47  ;;  %v9491_v13 = vpop.permute.xlu0 %9490 }
0x25b8   : > { %17040 = vpow2.f32 %v10313_v59 }
0x25b9   : > { %v17035_v60 = vpop.eup %17034 }
0x25ba   : > { %v9817_v6 = vsel %vm3438_vm8, %v17035_v60, 0.0 }
0x25bd   : > { %v17037_v63 = vpop.eup %17036 }
0x25be   : > { %v9983_v18 = vsel %vm3438_vm8, %v17037_v63, 0.0 }
0x25c1   : > { %v20111_v4 = vpop.eup %17038 }
0x25c2   : > { %v10149_v7 = vsel %vm3438_vm8, %v20111_v4, 0.0 }
0x25c4   : > { %9988 = vrot.lane.b32.xlu1 %v20001_v37, %s20977_s16 }
0x25c5   : > { %v20116_v8 = vpop.eup %17040 }
0x25c6   : > { %v10315_v10 = vsel %vm3438_vm8, %v20116_v8, 0.0 }
0x25cd   : > { %9822 = vrot.lane.b32.xlu0 %v20001_v37, %s20976_s22 }
0x25e4   : > { %v9155_v62 = vpop.xlane.xlu1 %9154 }
0x25e5   : > { %17042 = vrcp.f32 %v9155_v62 }
0x25e8   : > { %9818 = vadd.xlane.f32.xlu1 %v9817_v6 }
0x25ec   : > { %10150 = vadd.xlane.f32.xlu1 %v10149_v7  ;;  %9984 = vadd.xlane.f32.xlu0 %v9983_v18 }
0x25f0   : > { %10316 = vadd.xlane.f32.xlu1 %v10315_v10 }
0x25f2   : > { %v17043_v11 = vpop.eup %17042 }
0x25f3   : > { %v9157_v12 = vmul.f32 %v17043_v11, %v17027_v61 }
0x25f5   : > { %16176 = vmatmul.mubr.msk.f32.vlgmr.msra.gmra.mxu0 %vm3438_vm8, %v9157_v12 }
0x25f6   : > { %16184 = vmatpush3.msra.mxu0 %v9325_v29  ;;  %16185 = vmatprep.mubr.msk.f32.mxu0 %vm18372_vm0, %v18371_v0 }
0x25f7   : > { %16193 = vmatprep.subr.mxu0 %v18371_v0 }
0x2601   : > { %10320 = vrot.lane.b32.xlu1 %v20001_v37, %s20979_s1 }
0x2602   : > { %10154 = vrot.lane.b32.xlu0 %v20001_v37, %s20978_s18 }
0x2638   : > { %v9321_v2 = vpop.xlane.xlu0 %9320 }
0x2639   : > { %17044 = vrcp.f32 %v9321_v2 }
0x263c   : > { %v9487_v14 = vpop.xlane.xlu1 %9486 }
0x263d   : > { %17046 = vrcp.f32 %v9487_v14  ;;  %v15261_v14 = vld [vmem:[%s21024_s17] ss:$0 sm:$0xff]  ;;  %s21026_s17 = sld [smem:[#allocation102_spill]] }
0x2640   : > { %v9653_v16 = vpop.xlane.xlu0 %9652  ;;  %v9989_v23 = vpop.permute.xlu1 %9988 }
0x2641   : > { %17048 = vrcp.f32 %v9653_v16 }
0x2643   : > { %v10660_v48 = vld [vmem:[%s21026_s17 + $0xc0] sm:$0xff]  ;;  %v10659_v50 = vld [vmem:[%s21026_s17 + $0xb8] sm:$0xff]  ;;  %v10658_v52 = vld [vmem:[%s21026_s17 + $0xb0] sm:$0xff] }
0x2644   : > { %v9823_v22 = vpop.permute.xlu0 %9822  ;;  %v10644_v49 = vld [vmem:[%s21026_s17 + $0x40] sm:$0xff] }
0x2646   : > { %v17045_v15 = vpop.eup %17044 }
0x2647   : > { %v9323_v17 = vmul.f32 %v17045_v15, %v17029_v38 }
0x2649   : > { %16186 = vmatmul.mubr.msk.f32.vlgmr.msra.gmra.mxu0 %vm3438_vm8, %v9323_v17 }
0x264a   : > { %v17047_v19 = vpop.eup %17046  ;;  %16194 = vmatpush3.msra.mxu0 %v9491_v13  ;;  %16195 = vmatprep.mubr.msk.f32.mxu0 %vm18372_vm0, %v18371_v0 }
0x264b   : > { %16203 = vmatprep.subr.mxu0 %v18371_v0  ;;  %v9489_v20 = vmul.f32 %v17047_v19, %v17031_v45 }
0x264d   : > { %16196 = vmatmul.mubr.msk.f32.vlgmr.msra.gmra.mxu0 %vm3438_vm8, %v9489_v20 }
0x264e   : > { %v17049_v37 = vpop.eup %17048  ;;  %16204 = vmatpush3.msra.mxu0 %v9657_v9  ;;  %16205 = vmatprep.mubr.msk.f32.mxu0 %vm18372_vm0, %v18371_v0 }
0x264f   : > { %16213 = vmatprep.subr.mxu0 %v18371_v0  ;;  %v9655_v21 = vmul.f32 %v17049_v37, %v20102_v36 }
0x2651   : > { %16206 = vmatmul.mubr.msk.f32.vlgmr.msra.gmra.mxu0 %vm3438_vm8, %v9655_v21 }
0x2652   : > { %16214 = vmatpush3.msra.mxu0 %v9823_v22  ;;  %16215 = vmatprep.mubr.msk.f32.mxu0 %vm18372_vm0, %v18371_v0 }
0x2653   : > { %16223 = vmatprep.subr.mxu0 %v18371_v0 }
0x2671   : > { %v9819_v24 = vpop.xlane.xlu1 %9818 }
0x2672   : > { %17050 = vrcp.f32 %v9819_v24 }
0x2675   : > { %v10151_v25 = vpop.xlane.xlu1 %10150  ;;  %v9985_v26 = vpop.xlane.xlu0 %9984 }
0x2676   : > { %17052 = vrcp.f32 %v9985_v26  ;;  %v10546_v26 = vld [vmem:[%s21025_s2 + $0x30] sm:$0xff] }
0x2677   : > { %17054 = vrcp.f32 %v10151_v25  ;;  %v10547_v25 = vld [vmem:[%s21025_s2 + $0x38] sm:$0xff] }
0x2679   : > { %v10317_v27 = vpop.xlane.xlu1 %10316  ;;  %v10155_v33 = vpop.permute.xlu0 %10154 }
0x267a   : > { %17056 = vrcp.f32 %v10317_v27  ;;  %v10544_v27 = vld [vmem:[%s21025_s2 + $0x20] sm:$0xff] }
0x267d   : > { %v10321_v39 = vpop.permute.xlu1 %10320 }
0x267f   : > { %v17051_v61 = vpop.eup %17050 }
0x2680   : > { %v9821_v28 = vmul.f32 %v17051_v61, %v17035_v60  ;;  %v10543_v61 = vld [vmem:[%s21025_s2 + $0x18] sm:$0xff] }
0x2682   : > { %16216 = vmatmul.mubr.msk.f32.vlgmr.msra.gmra.mxu0 %vm3438_vm8, %v9821_v28  ;;  %v10542_v28 = vld [vmem:[%s21025_s2 + $0x10] sm:$0xff] }
0x2683   : > { %16224 = vmatpush3.msra.mxu0 %v9989_v23  ;;  %16225 = vmatprep.mubr.msk.f32.mxu0 %vm18372_vm0, %v18371_v0  ;;  %v17053_v29 = vpop.eup %17052 }
0x2684   : > { %16233 = vmatprep.subr.mxu0 %v18371_v0  ;;  %v9987_v30 = vmul.f32 %v17053_v29, %v17037_v63  ;;  %v17055_v32 = vpop.eup %17054  ;;  %v10541_v29 = vld [vmem:[%s21025_s2 + $0x8] sm:$0xff] }
0x2685   : > { %v10153_v34 = vmul.f32 %v17055_v32, %v20111_v4  ;;  %v10667_v32 = vld [vmem:[%s21026_s17 + $0xf8] sm:$0xff] }
0x2686   : > { %16226 = vmatmul.mubr.msk.f32.vlgmr.msra.gmra.mxu0 %vm3438_vm8, %v9987_v30  ;;  %v10540_v30 = vld [vmem:[%s21025_s2] sm:$0xff]  ;;  %15612 = vmatprep.subr.mxu1 %v10667_v32 }
0x2687   : > { %16234 = vmatpush3.msra.mxu0 %v10155_v33  ;;  %16235 = vmatprep.mubr.msk.f32.mxu0 %vm18372_vm0, %v18371_v0  ;;  %v17057_v35 = vpop.eup %17056  ;;  %v10651_v33 = vld [vmem:[%s21026_s17 + $0x78] sm:$0xff] }
0x2688   : > { %16243 = vmatprep.subr.mxu0 %v18371_v0  ;;  %v10319_v40 = vmul.f32 %v17057_v35, %v20116_v8  ;;  %v10650_v35 = vld [vmem:[%s21026_s17 + $0x70] sm:$0xff] }
0x268a   : > { %16236 = vmatmul.mubr.msk.f32.vlgmr.msra.gmra.mxu0 %vm3438_vm8, %v10153_v34  ;;  %v10666_v34 = vld [vmem:[%s21026_s17 + $0xf0] sm:$0xff] }
0x268b   : > { %16244 = vmatpush3.msra.mxu0 %v10321_v39  ;;  %16245 = vmatprep.mubr.msk.f32.mxu0 %vm18372_vm0, %v18371_v0  ;;  %v10665_v39 = vld [vmem:[%s21026_s17 + $0xe8] sm:$0xff] }
0x268c   : > { %10587 = vmatprep.subr.mxu0 %v10547_v25  ;;  %v15266_v25 = vld [vmem:[%s21028_s14] ss:$0 sm:$0xff] }
0x268e   : > { %16246 = vmatmul.mubr.msk.f32.vlgmr.msra.gmra.mxu0 %vm3438_vm8, %v10319_v40  ;;  %v10649_v40 = vld [vmem:[%s21026_s17 + $0x68] sm:$0xff] }
0x268f   : > { %10627 = vmatprep.mubr.f32.mxu0 %v18371_v0  ;;  %10588 = vmatpush1.msra.mxu0 %v10546_v26 }
0x26b5   : > { %v9230_v43 = vpop.f32.mrf.mxu0 }
0x26b7   : > { %v16177_v44 = vpop.f32.mrf.mxu0 }
0x26b8   : > { %v10648_v44 = vld [vmem:[%s21026_s17 + $0x60] sm:$0xff] }
0x2709   : > { %v9396_v38 = vpop.f32.mrf.mxu0 }
0x270a   : > { %10397 = vrot.lane.b32.xlu0 %v9396_v38, %s20992_s19  ;;  %v10663_v38 = vld [vmem:[%s21026_s17 + $0xd8] sm:$0xff] }
0x270b   : > { %v16187_v42 = vpop.f32.mrf.mxu0 }
0x270c   : > { %v10647_v42 = vld [vmem:[%s21026_s17 + $0x58] sm:$0xff] }
0x270d   : > { %v9562_v45 = vpop.f32.mrf.mxu0 }
0x270e   : > { %10401 = vrot.lane.b32.xlu1 %v9562_v45, %s20994_s21  ;;  %v10662_v45 = vld [vmem:[%s21026_s17 + $0xd0] sm:$0xff] }
0x270f   : > { %v16197_v46 = vpop.f32.mrf.mxu0 }
0x2710   : > { %v10646_v46 = vld [vmem:[%s21026_s17 + $0x50] sm:$0xff] }
0x2711   : > { %v9728_v36 = vpop.f32.mrf.mxu0 }
0x2712   : > { %10405 = vrot.lane.b32.xlu0 %v9728_v36, %s20995_s24  ;;  %v10661_v36 = vld [vmem:[%s21026_s17 + $0xc8] sm:$0xff] }
0x2713   : > { %v16207_v47 = vpop.f32.mrf.mxu0 }
0x2714   : > { %v10645_v47 = vld [vmem:[%s21026_s17 + $0x48] sm:$0xff] }
0x2742   : > { %v9894_v51 = vpop.f32.mrf.mxu0 }
0x2743   : > { %10409 = vrot.lane.b32.xlu1 %v9894_v51, %s20996_s25  ;;  %v10643_v51 = vld [vmem:[%s21026_s17 + $0x38] sm:$0xff] }
0x2744   : > { %v16217_v53 = vpop.f32.mrf.mxu0 }
0x2745   : > { %v10642_v53 = vld [vmem:[%s21026_s17 + $0x30] sm:$0xff] }
0x2746   : > { %v10060_v54 = vpop.f32.mrf.mxu0 }
0x2747   : > { %10413 = vrot.lane.b32.xlu0 %v10060_v54, %s20997_s27  ;;  %v10657_v54 = vld [vmem:[%s21026_s17 + $0xa8] sm:$0xff] }
0x2748   : > { %v16227_v55 = vpop.f32.mrf.mxu0 }
0x2749   : > { %v10641_v55 = vld [vmem:[%s21026_s17 + $0x28] sm:$0xff] }
0x274a   : > { %v10226_v56 = vpop.f32.mrf.mxu0 }
0x274b   : > { %10417 = vrot.lane.b32.xlu1 %v10226_v56, %s20998_s28  ;;  %v10656_v56 = vld [vmem:[%s21026_s17 + $0xa0] sm:$0xff] }
0x274c   : > { %v16237_v57 = vpop.f32.mrf.mxu0 }
0x274d   : > { %v10640_v57 = vld [vmem:[%s21026_s17 + $0x20] sm:$0xff] }
0x274e   : > { %v10392_v58 = vpop.f32.mrf.mxu0 }
0x274f   : > { %10421 = vrot.lane.b32.xlu0 %v10392_v58, %s21017_s30 }
0x2750   : > { %v16247_v59 = vpop.f32.mrf.mxu0 }
0x277c   : > { %v10398_v9 = vpop.permute.xlu0 %10397 }
0x277d   : > { %v10424_v6 = vsel %vm3361_vm6, %v9230_v43, %v10398_v9  ;;  %v10664_v43 = vld [vmem:[%s21026_s17 + $0xe0] sm:$0xff] }
0x2780   : > { %v10402_v60 = vpop.permute.xlu1 %10401 }
0x2781   : > { %v10425_v4 = vsel %vm3438_vm8, %v10424_v6, %v10402_v60  ;;  %v15264_v6 = vld [vmem:[#allocation4] ss:$0 sm:$0xff] }
0x2784   : > { %v10406_v62 = vpop.permute.xlu0 %10405 }
0x2785   : > { %v10426_v18 = vsel %vm4725_vm9, %v10425_v4, %v10406_v62  ;;  %v15263_v62 = vld [vmem:[#allocation6] ss:$0 sm:$0xff] }
0x27b5   : > { %v10410_v63 = vpop.permute.xlu1 %10409 }
0x27b6   : > { %v10427_v10 = vsel %vm4727_vm10, %v10426_v18, %v10410_v63  ;;  %v10655_v18 = vld [vmem:[%s21026_s17 + $0x98] sm:$0xff] }
0x27b9   : > { %v10414_v7 = vpop.permute.xlu0 %10413 }
0x27ba   : > { %v10428_v11 = vsel %vm4729_vm11, %v10427_v10, %v10414_v7  ;;  %v10654_v10 = vld [vmem:[%s21026_s17 + $0x90] sm:$0xff] }
0x27bd   : > { %v10418_v8 = vpop.permute.xlu1 %10417 }
0x27be   : > { %v10429_v12 = vsel %vm4731_vm12, %v10428_v11, %v10418_v8  ;;  %v10639_v8 = vld [vmem:[%s21026_s17 + $0x18] sm:$0xff]  ;;  %v10638_v11 = vld [vmem:[%s21026_s17 + $0x10] sm:$0xff] }
0x27c1   : > { %v10422_v13 = vpop.permute.xlu0 %10421 }
0x27c2   : > { %v10430_v2 = vsel %vm4733_vm13, %v10429_v12, %v10422_v13  ;;  %v10653_v12 = vld [vmem:[%s21026_s17 + $0x88] sm:$0xff] }
0x27c3   : > { %16257 = vmatmul.mubr.msk.f32.vlgmr.msra.gmra.mxu1 %vm3279_vm5, %v10430_v2  ;;  %v10637_v13 = vld [vmem:[%s21026_s17 + $0x8] sm:$0xff]  ;;  %v10652_v2 = vld [vmem:[%s21026_s17 + $0x80] sm:$0xff] }
0x27c4   : > { %15613 = vmatpush3.msra.mxu1 %v10651_v33 }
0x27c5   : > { %15614 = vmatprep.subr.mxu1 %v10666_v34 }
0x27c6   : > { %15615 = vmatpush3.msra.mxu1 %v10650_v35 }
0x27c7   : > { %15616 = vmatprep.subr.mxu1 %v10665_v39 }
0x27c8   : > { %15617 = vmatpush3.msra.mxu1 %v10649_v40 }
0x27c9   : > { %15618 = vmatprep.subr.mxu1 %v10664_v43 }
0x27ca   : > { %15619 = vmatpush3.msra.mxu1 %v10648_v44 }
0x27cb   : > { %15620 = vmatprep.subr.mxu1 %v10663_v38 }
0x27cc   : > { %15621 = vmatpush3.msra.mxu1 %v10647_v42 }
0x27cd   : > { %15622 = vmatprep.subr.mxu1 %v10662_v45 }
0x27ce   : > { %15623 = vmatpush3.msra.mxu1 %v10646_v46  ;;  %v15267_v46 = vld [vmem:[#allocation9] ss:$0 sm:$0xff] }
0x27cf   : > { %15624 = vmatprep.subr.mxu1 %v10661_v36 }
0x27d0   : > { %15625 = vmatpush3.msra.mxu1 %v10645_v47  ;;  %v15268_v47 = vld [vmem:[#allocation7] ss:$0 sm:$0xff] }
0x27d1   : > { %15626 = vmatprep.subr.mxu1 %v10660_v48 }
0x27d2   : > { %15627 = vmatpush3.msra.mxu1 %v10644_v49 }
0x27d3   : > { %15628 = vmatprep.subr.mxu1 %v10659_v50  ;;  %v15269_v50 = vld [vmem:[#allocation30] ss:$0 sm:$0xff] }
0x27d4   : > { %15629 = vmatpush3.msra.mxu1 %v10643_v51 }
0x27d5   : > { %15630 = vmatprep.subr.mxu1 %v10658_v52 }
0x27d6   : > { %15631 = vmatpush3.msra.mxu1 %v10642_v53 }
0x27d7   : > { %15632 = vmatprep.subr.mxu1 %v10657_v54 }
0x27d8   : > { %15633 = vmatpush3.msra.mxu1 %v10641_v55 }
0x27d9   : > { %15634 = vmatprep.subr.mxu1 %v10656_v56 }
0x27da   : > { %15635 = vmatpush3.msra.mxu1 %v10640_v57 }
0x27db   : > { %15636 = vmatprep.subr.mxu1 %v10655_v18 }
0x27dc   : > { %15637 = vmatpush3.msra.mxu1 %v10639_v8 }
0x27dd   : > { %15638 = vmatprep.subr.mxu1 %v10654_v10 }
0x27de   : > { %15639 = vmatpush3.msra.mxu1 %v10638_v11 }
0x27df   : > { %15640 = vmatprep.subr.mxu1 %v10653_v12 }
0x27e0   : > { %15641 = vmatpush3.msra.mxu1 %v10637_v13 }
0x27e1   : > { %15642 = vmatprep.subr.mxu1 %v10652_v2 }
0x2883   : > { %v10506_v16 = vpop.f32.mrf.mxu1 }
0x2884   : > { %v10507_v15 = vadd.f32 %v15261_v14, %v10506_v16  ;;  %v10636_v14 = vld [vmem:[%s21026_s17] sm:$0xff]  ;;  %s21029_s17 = sld [smem:[#allocation132_spill]] }
0x2885   : > { %v16258_v17 = vpop.f32.mrf.mxu1  ;;  %15643 = vmatpush3.msra.mxu1 %v10636_v14 }
0x2886   : > { %v10510_v19 = vadd.f32 %v10507_v15, %v20031_v31  ;;  %v10545_v31 = vld [vmem:[%s21025_s2 + $0x28] sm:$0xff]  ;;  %s21027_s2 = sld [smem:[#allocation99_spill]]  ;;  %16300 = vmatprep.subr.mxu1 %v18371_v0 }
0x2887   : > { %10589 = vmatprep.subr.mxu0 %v10545_v31 }
0x2888   : > { %v10513_v20 = vsel %vm3279_vm5, %v10510_v19, 0.0  ;;  %10590 = vmatpush1.msra.mxu0 %v10544_v27 }
0x2889   : > { %10514 = vadd.xlane.f32.xlu1 %v10513_v20  ;;  %10591 = vmatprep.subr.mxu0 %v10543_v61 }
0x288a   : > { %10592 = vmatpush1.msra.mxu0 %v10542_v28  ;;  %v10778_v35 = vld [vmem:[%s21029_s17 + $0x18] sm:$0xff]  ;;  %v10777_v39 = vld [vmem:[%s21029_s17 + $0x10] sm:$0xff]  ;;  %v10776_v40 = vld [vmem:[%s21029_s17 + $0x8] sm:$0xff] }
0x288b   : > { %10593 = vmatprep.subr.mxu0 %v10541_v29  ;;  %v10775_v43 = vld [vmem:[%s21029_s17] sm:$0xff] }
0x288c   : > { %10594 = vmatpush1.msra.mxu0 %v10540_v30  ;;  %v10548_v16 = vld [vmem:[%s21027_s2] sm:$0x3]  ;;  %s21033_s2 = sld [smem:[#allocation114_spill]] }
0x288d   : > { %16259 = vmatprep.subr.mxu0 %v18371_v0  ;;  %v10553_v15 = vrot.slane %v10548_v16, %v19458_v3  ;;  %v10557_v17 = vrot.slane %v10548_v16, %v19462_v5 }
0x2912   : > { %v10515_v37 = vpop.xlane.xlu1 %10514 }
0x2913   : > { %v10516_v21 = vmul.f32 0.03125, %v10515_v37 }
0x2915   : > { %v20181_v22 = vsub.f32 %v10510_v19, %v10516_v21 }
0x2917   : > { %v10518_v23 = vmul.f32 %v20181_v22, %v20181_v22 }
0x2919   : > { %v10519_v24 = vsel %vm3279_vm5, %v10518_v23, 0.0 }
0x291a   : > { %10520 = vadd.xlane.f32.xlu0 %v10519_v24 }
0x29a3   : > { %v10521_v58 = vpop.xlane.xlu0 %10520 }
0x29a4   : > { %v10522_v59 = vmul.f32 0.03125, %v10521_v58 }
0x29a6   : > { %v10523_v9 = vadd.f32 1e-05, %v10522_v59 }
0x29a8   : > { %17058 = vrsqrt.f32 %v10523_v9 }
0x29b5   : > { %v17059_v60 = vpop.eup %17058 }
0x29b6   : > { %v10525_v63 = vmul.f32 %v17059_v60, %v20181_v22 }
0x29b8   : > { %v10532_v4 = vmul.f32 %v15263_v62, %v10525_v63 }
0x29ba   : > { %v10539_v7 = vadd.f32 %v15264_v6, %v10532_v4 }
0x29bc   : > { %15265 = vmatmul.mubr.msk.f32.vlgmr.msra.gmra.mxu0 %vm3279_vm5, %v10539_v7 }
0x29bd   : > { %16267 = vmatprep.mubr.msk.f32.mxu0 %vm18372_vm0, %v18371_v0  ;;  %16260 = vmatpush3.msra.mxu0 %v10778_v35 }
0x29be   : > { %16261 = vmatprep.subr.mxu0 %v18371_v0 }
0x29bf   : > { %16262 = vmatpush3.msra.mxu0 %v10777_v39 }
0x29c0   : > { %16263 = vmatprep.subr.mxu0 %v18371_v0 }
0x29c1   : > { %16264 = vmatpush3.msra.mxu0 %v10776_v40 }
0x29c2   : > { %16265 = vmatprep.subr.mxu0 %v18371_v0 }
0x29c3   : > { %16266 = vmatpush3.msra.mxu0 %v10775_v43 }
0x29c4   : > { %16270 = vmatprep.subr.mxu0 %v18371_v0 }
0x2a7c   : > { %v10629_v19 = vpop.f32.mrf.mxu0 }
0x2a7d   : > { %v10630_v20 = vadd.f32 %v10629_v19, %v10553_v15 }
0x2a7e   : > { %v10631_v37 = vpop.f32.mrf.mxu0 }
0x2a7f   : > { %v10632_v21 = vadd.f32 %v10631_v37, %v10557_v17  ;;  %v10634_v23 = vmax.f32 %v10630_v20, 0.0 }
0x2a81   : > { %v10635_v22 = vmax.f32 %v10632_v21, 0.0 }
0x2a83   : > { %10739 = vmatprep.mubr.f32.mxu1 %v10635_v22 }
0x2a84   : > { %10740 = vmatmul.mubr.f32.vlgmr.msra.gmra.mxu1 %v10634_v23 }
0x2a85   : > { %16302 = vmatprep.mubr.msk.f32.mxu1 %vm18372_vm0, %v18371_v0 }
0x2b44   : > { %v15644_v24 = vpop.f32.mrf.mxu1 }
0x2b46   : > { %v15645_v26 = vpop.f32.mrf.mxu1 }
0x2b47   : > { %v15646_v31 = vadd.f32 %v15645_v26, %v15644_v24 }
0x2b49   : > { %v10742_v27 = vadd.f32 %v15646_v31, %v15266_v25 }
0x2b4b   : > { %v10745_v61 = vadd.f32 %v10742_v27, %v10539_v7 }
0x2b4d   : > { %v10748_v28 = vsel %vm3279_vm5, %v10745_v61, 0.0 }
0x2b4e   : > { %10749 = vadd.xlane.f32.xlu0 %v10748_v28 }
0x2bd7   : > { %v10750_v29 = vpop.xlane.xlu0 %10749 }
0x2bd8   : > { %v10751_v30 = vmul.f32 0.03125, %v10750_v29 }
0x2bda   : > { %v10752_v32 = vsub.f32 %v10745_v61, %v10751_v30 }
0x2bdc   : > { %v10753_v33 = vmul.f32 %v10752_v32, %v10752_v32 }
0x2bde   : > { %v10754_v34 = vsel %vm3279_vm5, %v10753_v33, 0.0 }
0x2bdf   : > { %10755 = vadd.xlane.f32.xlu1 %v10754_v34 }
0x2c68   : > { %v10756_v44 = vpop.xlane.xlu1 %10755 }
0x2c69   : > { %v10757_v38 = vmul.f32 0.03125, %v10756_v44 }
0x2c6b   : > { %v10758_v42 = vadd.f32 1e-05, %v10757_v38 }
0x2c6d   : > { %17060 = vrsqrt.f32 %v10758_v42 }
0x2c7a   : > { %v17061_v45 = vpop.eup %17060 }
0x2c7b   : > { %v10760_v36 = vmul.f32 %v17061_v45, %v10752_v32 }
0x2c7d   : > { %v10767_v48 = vmul.f32 %v15267_v46, %v10760_v36 }
0x2c7f   : > { %v20248_v49 = vadd.f32 %v15268_v47, %v10767_v48 }
0x2c81   : > { %16268 = vmatmul.mubr.msk.f32.vlgmr.msra.gmra.mxu0 %vm3279_vm5, %v20248_v49 }
0x2c82   : > { %16272 = vmatprep.mubr.msk.f32.mxu0 %vm18372_vm0, %v18371_v0 }
0x2d41   : > { %v10855_v51 = vpop.f32.mrf.mxu0 }
0x2d42   : > { %v20254_v52 = vadd.f32 %v15269_v50, %v10855_v51 }
0x2d43   : > { %v16269_v53 = vpop.f32.mrf.mxu0 }
0x2d44   : > { %10865 = vrot.lane.b32.xlu0 %v20254_v52, %s21012_s0 }
0x2d48   : > { %11032 = vrot.lane.b32.xlu0 %v20254_v52, %s21011_s12 }
0x2d4c   : > { %11030 = vrot.lane.b32.xlu0 %v20254_v52, %s21013_s29 }
0x2db6   : > { %v10866_v54 = vpop.permute.xlu0 %10865 }
0x2db7   : > { %16271 = vmatpush3.xpose.msk.msra.mxu0 %vm3361_vm6, %v10866_v54 }
0x2db8   : > { %16275 = vmatprep.subr.mxu0 %v18371_v0 }
0x2dba   : > { %16273 = vmatmul.mubr.msk.f32.vlgmr.msra.gmra.mxu0 %vm3361_vm6, %v20254_v52  ;;  %v11033_v8 = vpop.permute.xlu0 %11032 }
0x2dbb   : > { %16277 = vmatprep.mubr.msk.f32.mxu0 %vm18372_vm0, %v18371_v0 }
0x2dbe   : > { %v11031_v11 = vpop.permute.xlu0 %11030 }
0x2e7a   : > { %v10937_v55 = vpop.f32.mrf.mxu0 }
0x2e7b   : > { %v10941_v56 = vmul.f32 0.5, %v10937_v55 }
0x2e7c   : > { %v16274_v57 = vpop.f32.mrf.mxu0 }
0x2e7d   : > { %v10942_v58 = vadd.f32 %v10941_v56, %v19285_v41 }
0x2e7f   : > { %v10943_v59 = vsel %vm3438_vm8, %v10942_v58, -inf }
0x2e80   : > { %10944 = vmax.xlane.f32.xlu1 %v10943_v59 }
0x2f09   : > { %v10945_v9 = vpop.xlane.xlu1 %10944 }
0x2f0a   : > { %v10946_v60 = vsub.f32 %v10942_v58, %v10945_v9 }
0x2f0c   : > { %v10947_v62 = vmul.f32 1.442695, %v10946_v60 }
0x2f0e   : > { %17062 = vpow2.f32 %v10947_v62 }
0x2f1b   : > { %v17063_v63 = vpop.eup %17062 }
0x2f1c   : > { %v10949_v6 = vsel %vm3438_vm8, %v17063_v63, 0.0 }
0x2f1d   : > { %10950 = vadd.xlane.f32.xlu1 %v10949_v6 }
0x2f2e   : > { %10954 = vrot.lane.b32.xlu1 %v20254_v52, %s21014_s6  ;;  %s21030_s6 = smov 44  }
0x2fa6   : > { %v10951_v4 = vpop.xlane.xlu1 %10950 }
0x2fa7   : > { %17064 = vrcp.f32 %v10951_v4 }
0x2faa   : > { %v10955_v7 = vpop.permute.xlu1 %10954 }
0x2fab   : > { %16276 = vmatpush3.msra.mxu0 %v10955_v7 }
0x2fac   : > { %16280 = vmatprep.subr.mxu0 %v18371_v0 }
0x2fb4   : > { %v17065_v18 = vpop.eup %17064 }
0x2fb5   : > { %v10953_v10 = vmul.f32 %v17065_v18, %v17063_v63 }
0x2fb7   : > { %16278 = vmatmul.mubr.msk.f32.vlgmr.msra.gmra.mxu0 %vm3438_vm8, %v10953_v10 }
0x2fb8   : > { %16281 = vmatpush3.xpose.msk.msra.mxu0 %vm3361_vm6, %v11033_v8  ;;  %16282 = vmatprep.mubr.msk.f32.mxu0 %vm18372_vm0, %v18371_v0 }
0x2fb9   : > { %16285 = vmatprep.subr.mxu0 %v18371_v0 }
0x2fbb   : > { %16283 = vmatmul.mubr.msk.f32.vlgmr.msra.gmra.mxu0 %vm3361_vm6, %v11031_v11 }
0x2fbc   : > { %16287 = vmatprep.mubr.msk.f32.mxu0 %vm18372_vm0, %v18371_v0 }
0x3077   : > { %v20282_v12 = vpop.f32.mrf.mxu0 }
0x3079   : > { %v16279_v13 = vpop.f32.mrf.mxu0 }
0x307b   : > { %v11104_v2 = vpop.f32.mrf.mxu0 }
0x307c   : > { %v11108_v14 = vmul.f32 0.5, %v11104_v2 }
0x307d   : > { %v16284_v16 = vpop.f32.mrf.mxu0 }
0x307e   : > { %v11109_v15 = vadd.f32 %v11108_v14, %v19285_v41 }
0x3080   : > { %v11110_v17 = vsel %vm3438_vm8, %v11109_v15, -inf }
0x3081   : > { %11111 = vmax.xlane.f32.xlu1 %v11110_v17 }
0x3092   : > { %11199 = vrot.lane.b32.xlu1 %v20254_v52, %s20980_s10 }
0x3096   : > { %11197 = vrot.lane.b32.xlu1 %v20254_v52, %s20974_s23 }
0x309a   : > { %11364 = vrot.lane.b32.xlu1 %v20254_v52, %s20981_s3 }
0x309e   : > { %11531 = vrot.lane.b32.xlu1 %v20254_v52, %s20982_s4 }
0x30a2   : > { %11698 = vrot.lane.b32.xlu1 %v20254_v52, %s20983_s5 }
0x30a6   : > { %11865 = vrot.lane.b32.xlu1 %v20254_v52, %s20984_s7 }
0x30aa   : > { %12032 = vrot.lane.b32.xlu1 %v20254_v52, %s20985_s8 }
0x310a   : > { %v11112_v19 = vpop.xlane.xlu1 %11111 }
0x310b   : > { %v11113_v20 = vsub.f32 %v11109_v15, %v11112_v19 }
0x310d   : > { %v11114_v37 = vmul.f32 1.442695, %v11113_v20 }
0x310e   : > { %v11200_v23 = vpop.permute.xlu1 %11199 }
0x310f   : > { %17066 = vpow2.f32 %v11114_v37 }
0x3112   : > { %v11198_v24 = vpop.permute.xlu1 %11197 }
0x3116   : > { %v11365_v26 = vpop.permute.xlu1 %11364 }
0x311a   : > { %v11532_v61 = vpop.permute.xlu1 %11531 }
0x311c   : > { %v17067_v21 = vpop.eup %17066 }
0x311d   : > { %v11116_v22 = vsel %vm3438_vm8, %v17067_v21, 0.0 }
0x311e   : > { %11117 = vadd.xlane.f32.xlu0 %v11116_v22  ;;  %v11699_v30 = vpop.permute.xlu1 %11698 }
0x3122   : > { %v11866_v35 = vpop.permute.xlu1 %11865 }
0x3126   : > { %v12033_v40 = vpop.permute.xlu1 %12032 }
0x3134   : > { %11121 = vrot.lane.b32.xlu0 %v20254_v52, %s21015_s20 }
0x3138   : > { %11366 = vrot.lane.b32.xlu0 %v20254_v52, %s20975_s26 }
0x313c   : > { %11533 = vrot.lane.b32.xlu0 %v20254_v52, %s20976_s22 }
0x3140   : > { %11700 = vrot.lane.b32.xlu0 %v20254_v52, %s20977_s16 }
0x3144   : > { %11867 = vrot.lane.b32.xlu0 %v20254_v52, %s20978_s18 }
0x3148   : > { %12034 = vrot.lane.b32.xlu0 %v20254_v52, %s20979_s1 }
0x31a7   : > { %v11118_v25 = vpop.xlane.xlu0 %11117 }
0x31a8   : > { %17068 = vrcp.f32 %v11118_v25 }
0x31ab   : > { %v11122_v31 = vpop.permute.xlu0 %11121 }
0x31ac   : > { %16286 = vmatpush3.msra.mxu0 %v11122_v31 }
0x31ad   : > { %16290 = vmatprep.subr.mxu0 %v18371_v0 }
0x31af   : > { %v11367_v27 = vpop.permute.xlu0 %11366 }
0x31b0   : > { %16301 = vmatpush3.xpose.msk.msra.mxu1 %vm3361_vm6, %v11367_v27 }
0x31b1   : > { %16310 = vmatprep.subr.mxu1 %v18371_v0 }
0x31b3   : > { %v11534_v28 = vpop.permute.xlu0 %11533  ;;  %16303 = vmatmul.mubr.msk.f32.vlgmr.msra.gmra.mxu1 %vm3361_vm6, %v11365_v26 }
0x31b4   : > { %16311 = vmatpush3.xpose.msk.msra.mxu1 %vm3361_vm6, %v11534_v28  ;;  %16312 = vmatprep.mubr.msk.f32.mxu1 %vm18372_vm0, %v18371_v0 }
0x31b5   : > { %v17069_v29 = vpop.eup %17068  ;;  %16320 = vmatprep.subr.mxu1 %v18371_v0 }
0x31b6   : > { %v11120_v32 = vmul.f32 %v17069_v29, %v17067_v21 }
0x31b7   : > { %v11701_v33 = vpop.permute.xlu0 %11700  ;;  %16313 = vmatmul.mubr.msk.f32.vlgmr.msra.gmra.mxu1 %vm3361_vm6, %v11532_v61 }
0x31b8   : > { %16288 = vmatmul.mubr.msk.f32.vlgmr.msra.gmra.mxu0 %vm3438_vm8, %v11120_v32  ;;  %16321 = vmatpush3.xpose.msk.msra.mxu1 %vm3361_vm6, %v11701_v33 }
0x31b9   : > { %16291 = vmatpush3.xpose.msk.msra.mxu0 %vm3361_vm6, %v11200_v23  ;;  %16322 = vmatprep.mubr.msk.f32.mxu1 %vm18372_vm0, %v18371_v0 }
0x31ba   : > { %16292 = vmatprep.mubr.msk.f32.mxu0 %vm18372_vm0, %v18371_v0  ;;  %16330 = vmatprep.subr.mxu1 %v18371_v0 }
0x31bb   : > { %v11868_v34 = vpop.permute.xlu0 %11867  ;;  %16323 = vmatmul.mubr.msk.f32.vlgmr.msra.gmra.mxu1 %vm3361_vm6, %v11699_v30  ;;  %16295 = vmatprep.subr.mxu0 %v18371_v0 }
0x31bc   : > { %16293 = vmatmul.mubr.msk.f32.vlgmr.msra.gmra.mxu0 %vm3361_vm6, %v11198_v24  ;;  %16331 = vmatpush3.xpose.msk.msra.mxu1 %vm3361_vm6, %v11868_v34 }
0x31bd   : > { %16332 = vmatprep.mubr.msk.f32.mxu1 %vm18372_vm0, %v18371_v0  ;;  %16340 = vmatprep.subr.mxu1 %v18371_v0 }
0x31be   : > { %16297 = vmatprep.mubr.msk.f32.mxu0 %vm18372_vm0, %v18371_v0 }
0x31bf   : > { %v12035_v39 = vpop.permute.xlu0 %12034  ;;  %16333 = vmatmul.mubr.msk.f32.vlgmr.msra.gmra.mxu1 %vm3361_vm6, %v11866_v35 }
0x31c0   : > { %16341 = vmatpush3.xpose.msk.msra.mxu1 %vm3361_vm6, %v12035_v39  ;;  %16342 = vmatprep.mubr.msk.f32.mxu1 %vm18372_vm0, %v18371_v0 }
0x31c1   : > { %16350 = vmatprep.subr.mxu1 %v18371_v0 }
0x31c3   : > { %16343 = vmatmul.mubr.msk.f32.vlgmr.msra.gmra.mxu1 %vm3361_vm6, %v12033_v40 }
0x31c4   : > { %16358 = vmatprep.mubr.msk.f32.mxu1 %vm18372_vm0, %v18371_v0 }
0x3273   : > { %v11438_v43 = vpop.f32.mrf.mxu1 }
0x3274   : > { %v11442_v44 = vmul.f32 0.5, %v11438_v43 }
0x3275   : > { %v16304_v38 = vpop.f32.mrf.mxu1 }
0x3276   : > { %v11443_v42 = vadd.f32 %v11442_v44, %v19285_v41 }
0x3277   : > { %v11605_v45 = vpop.f32.mrf.mxu1 }
0x3278   : > { %v20348_v46 = vpop.f32.mrf.mxu0  ;;  %v11444_v36 = vsel %vm3438_vm8, %v11443_v42, -inf  ;;  %v11609_v53 = vmul.f32 0.5, %v11605_v45 }
0x3279   : > { %11445 = vmax.xlane.f32.xlu1 %v11444_v36  ;;  %v16314_v47 = vpop.f32.mrf.mxu1 }
0x327a   : > { %v16289_v48 = vpop.f32.mrf.mxu0  ;;  %v11610_v9 = vadd.f32 %v11609_v53, %v19285_v41 }
0x327b   : > { %v11772_v50 = vpop.f32.mrf.mxu1 }
0x327c   : > { %v11271_v51 = vpop.f32.mrf.mxu0  ;;  %v11776_v60 = vmul.f32 0.5, %v11772_v50  ;;  %v11611_v11 = vsel %vm3438_vm8, %v11610_v9, -inf }
0x327d   : > { %v11275_v54 = vmul.f32 0.5, %v11271_v51  ;;  %v16324_v55 = vpop.f32.mrf.mxu1 }
0x327e   : > { %v16294_v56 = vpop.f32.mrf.mxu0  ;;  %v11777_v18 = vadd.f32 %v11776_v60, %v19285_v41 }
0x327f   : > { %v11276_v57 = vadd.f32 %v11275_v54, %v19285_v41  ;;  %v11939_v58 = vpop.f32.mrf.mxu1 }
0x3280   : > { %v11943_v59 = vmul.f32 0.5, %v11939_v58  ;;  %v11778_v2 = vsel %vm3438_vm8, %v11777_v18, -inf }
0x3281   : > { %v16334_v62 = vpop.f32.mrf.mxu1  ;;  %v11277_v63 = vsel %vm3438_vm8, %v11276_v57, -inf }
0x3282   : > { %v11944_v6 = vadd.f32 %v11943_v59, %v19285_v41  ;;  %11278 = vmax.xlane.f32.xlu0 %v11277_v63 }
0x3283   : > { %v12106_v4 = vpop.f32.mrf.mxu1 }
0x3284   : > { %v11945_v7 = vsel %vm3438_vm8, %v11944_v6, -inf  ;;  %v12110_v8 = vmul.f32 0.5, %v12106_v4 }
0x3285   : > { %11946 = vmax.xlane.f32.xlu1 %v11945_v7  ;;  %v16344_v10 = vpop.f32.mrf.mxu1 }
0x3286   : > { %11612 = vmax.xlane.f32.xlu0 %v11611_v11  ;;  %v12111_v13 = vadd.f32 %v12110_v8, %v19285_v41 }
0x3288   : > { %v12112_v14 = vsel %vm3438_vm8, %v12111_v13, -inf }
0x328a   : > { %11779 = vmax.xlane.f32.xlu0 %v11778_v2 }
0x328e   : > { %12113 = vmax.xlane.f32.xlu0 %v12112_v14 }
0x3302   : > { %v11446_v16 = vpop.xlane.xlu1 %11445 }
0x3303   : > { %v11447_v15 = vsub.f32 %v11443_v42, %v11446_v16 }
0x3305   : > { %v11448_v17 = vmul.f32 1.442695, %v11447_v15 }
0x3307   : > { %17070 = vpow2.f32 %v11448_v17 }
0x330b   : > { %v11279_v19 = vpop.xlane.xlu0 %11278 }
0x330c   : > { %v11280_v44 = vsub.f32 %v11276_v57, %v11279_v19 }
0x330e   : > { %v11947_v20 = vpop.xlane.xlu1 %11946  ;;  %v11281_v38 = vmul.f32 1.442695, %v11280_v44 }
0x330f   : > { %v11948_v37 = vsub.f32 %v11944_v6, %v11947_v20  ;;  %v11613_v21 = vpop.xlane.xlu0 %11612 }
0x3310   : > { %v11614_v22 = vsub.f32 %v11610_v9, %v11613_v21 }
0x3311   : > { %v11949_v23 = vmul.f32 1.442695, %v11948_v37 }
0x3312   : > { %v11615_v24 = vmul.f32 1.442695, %v11614_v22 }
0x3313   : > { %v11780_v25 = vpop.xlane.xlu0 %11779 }
0x3314   : > { %v17071_v26 = vpop.eup %17070  ;;  %17072 = vpow2.f32 %v11615_v24  ;;  %v11781_v41 = vsub.f32 %v11777_v18, %v11780_v25 }
0x3315   : > { %v11450_v31 = vsel %vm3438_vm8, %v17071_v26, 0.0  ;;  %17074 = vpow2.f32 %v11949_v23 }
0x3316   : > { %v11782_v27 = vmul.f32 1.442695, %v11781_v41  ;;  %11451 = vadd.xlane.f32.xlu0 %v11450_v31 }
0x3317   : > { %v12114_v61 = vpop.xlane.xlu0 %12113 }
0x3318   : > { %17076 = vpow2.f32 %v11782_v27  ;;  %v12115_v28 = vsub.f32 %v12111_v13, %v12114_v61 }
0x331a   : > { %v12116_v29 = vmul.f32 1.442695, %v12115_v28 }
0x331c   : > { %17078 = vpow2.f32 %v12116_v29 }
0x331d   : > { %17080 = vpow2.f32 %v11281_v38  ;;  %v12428_v38 = vld [vmem:[%s21033_s2 + $0x8] sm:$0xff] }
0x3321   : > { %v17073_v30 = vpop.eup %17072 }
0x3322   : > { %v11617_v32 = vsel %vm3438_vm8, %v17073_v30, 0.0  ;;  %v20363_v33 = vpop.eup %17074 }
0x3323   : > { %11618 = vadd.xlane.f32.xlu1 %v11617_v32  ;;  %v11951_v35 = vsel %vm3438_vm8, %v20363_v33, 0.0 }
0x3325   : > { %v17077_v34 = vpop.eup %17076 }
0x3326   : > { %v11784_v39 = vsel %vm3438_vm8, %v17077_v34, 0.0 }
0x3327   : > { %11952 = vadd.xlane.f32.xlu1 %v11951_v35  ;;  %11785 = vadd.xlane.f32.xlu0 %v11784_v39 }
0x3329   : > { %v20368_v40 = vpop.eup %17078 }
0x332a   : > { %v12118_v43 = vsel %vm3438_vm8, %v20368_v40, 0.0  ;;  %v17081_v42 = vpop.eup %17080 }
0x332b   : > { %12119 = vadd.xlane.f32.xlu0 %v12118_v43  ;;  %v11283_v45 = vsel %vm3438_vm8, %v17081_v42, 0.0  ;;  %v12430_v43 = vld [vmem:[%s21033_s2 + $0x18] sm:$0xff] }
0x3338   : > { %11288 = vrot.lane.b32.xlu1 %v20254_v52, %s20987_s11  ;;  %s21034_s11 = sld [smem:[#allocation118_spill]] }
0x3341   : > { %11455 = vrot.lane.b32.xlu0 %v20254_v52, %s20986_s9  ;;  %s21031_s9 = smov 36  }
0x3345   : > { %11956 = vrot.lane.b32.xlu0 %v20254_v52, %s20990_s15 }
0x3349   : > { %12200 = vrot.lane.b32.xlu0 %v20348_v46, %s20992_s19 }
0x335c   : > { %11284 = vadd.xlane.f32.xlu1 %v11283_v45  ;;  %v15295_v45 = vld [vmem:[#allocation28] ss:$0 sm:$0xff] }
0x336d   : > { %11622 = vrot.lane.b32.xlu1 %v20254_v52, %s20988_s13  ;;  %s21032_s13 = sld [smem:[#allocation130_spill]] }
0x3371   : > { %11789 = vrot.lane.b32.xlu1 %v20254_v52, %s21030_s6 }
0x3373   : > { %v10862_v13 = vld [vmem:[%s21032_s13 + $0x18] sm:$0xff]  ;;  %v10861_v2 = vld [vmem:[%s21032_s13 + $0x10] sm:$0xff]  ;;  %v10860_v15 = vld [vmem:[%s21032_s13 + $0x8] sm:$0xff] }
0x3374   : > { %16351 = vmatpush3.msra.mxu1 %v10862_v13  ;;  %v10859_v17 = vld [vmem:[%s21032_s13] sm:$0xff] }
0x3375   : > { %12123 = vrot.lane.b32.xlu1 %v20254_v52, %s21031_s9  ;;  %16352 = vmatprep.subr.mxu1 %v18371_v0 }
0x3376   : > { %16353 = vmatpush3.msra.mxu1 %v10861_v2  ;;  %v15299_v2 = vld [vmem:[#allocation16] ss:$0 sm:$0xff] }
0x3377   : > { %16354 = vmatprep.subr.mxu1 %v18371_v0 }
0x3378   : > { %16355 = vmatpush3.msra.mxu1 %v10860_v15 }
0x3379   : > { %16356 = vmatprep.subr.mxu1 %v18371_v0 }
0x337a   : > { %16357 = vmatpush3.msra.mxu1 %v10859_v17 }
0x337b   : > { %16372 = vmatprep.subr.mxu1 %v18371_v0 }
0x339f   : > { %v11452_v46 = vpop.xlane.xlu0 %11451 }
0x33ac   : > { %v11619_v36 = vpop.xlane.xlu1 %11618 }
0x33b0   : > { %v11953_v47 = vpop.xlane.xlu1 %11952  ;;  %v11786_v51 = vpop.xlane.xlu0 %11785 }
0x33b4   : > { %v11289_v48 = vpop.permute.xlu1 %11288  ;;  %v12120_v53 = vpop.xlane.xlu0 %12119 }
0x33b5   : > { %16296 = vmatpush3.msra.mxu0 %v11289_v48 }
0x33b6   : > { %16305 = vmatprep.subr.mxu0 %v18371_v0 }
0x33b8   : > { %v11456_v57 = vpop.permute.xlu0 %11455 }
0x33bc   : > { %v11957_v4 = vpop.permute.xlu0 %11956 }
0x33c0   : > { %v12201_v41 = vpop.permute.xlu0 %12200 }
0x33c1   : > { %v12227_v28 = vsel %vm3361_vm6, %v20282_v12, %v12201_v41  ;;  %v12429_v12 = vld [vmem:[%s21033_s2 + $0x10] sm:$0xff] }
0x33e5   : > { %v11285_v50 = vpop.xlane.xlu1 %11284 }
0x33e6   : > { %17082 = vrcp.f32 %v11285_v50 }
0x33e7   : > { %17084 = vrcp.f32 %v11452_v46 }
0x33e8   : > { %17086 = vrcp.f32 %v11619_v36 }
0x33e9   : > { %17088 = vrcp.f32 %v11786_v51  ;;  %v11623_v52 = vpop.permute.xlu1 %11622 }
0x33ea   : > { %17090 = vrcp.f32 %v11953_v47 }
0x33eb   : > { %17092 = vrcp.f32 %v12120_v53 }
0x33ed   : > { %v11790_v62 = vpop.permute.xlu1 %11789 }
0x33f1   : > { %v12124_v8 = vpop.permute.xlu1 %12123 }
0x33f3   : > { %v17083_v54 = vpop.eup %17082 }
0x33f4   : > { %v11287_v55 = vmul.f32 %v17083_v54, %v17081_v42  ;;  %v17085_v56 = vpop.eup %17084  ;;  %v12427_v42 = vld [vmem:[%s21033_s2] sm:$0xff] }
0x33f5   : > { %v11454_v58 = vmul.f32 %v17085_v56, %v17071_v26  ;;  %v17087_v59 = vpop.eup %17086 }
0x33f6   : > { %16298 = vmatmul.mubr.msk.f32.vlgmr.msra.gmra.mxu0 %vm3438_vm8, %v11287_v55  ;;  %v11621_v9 = vmul.f32 %v17087_v59, %v17073_v30  ;;  %v17089_v60 = vpop.eup %17088  ;;  %v12345_v59 = vld [vmem:[%s21034_s11 + $0x10] sm:$0xff] }
0x33f7   : > { %16306 = vmatpush3.msra.mxu0 %v11456_v57  ;;  %16307 = vmatprep.mubr.msk.f32.mxu0 %vm18372_vm0, %v18371_v0  ;;  %v11788_v63 = vmul.f32 %v17089_v60, %v17077_v34  ;;  %v17091_v6 = vpop.eup %17090  ;;  %v12343_v60 = vld [vmem:[%s21034_s11] sm:$0xff] }
0x33f8   : > { %16315 = vmatprep.subr.mxu0 %v18371_v0  ;;  %v11955_v7 = vmul.f32 %v17091_v6, %v20363_v33  ;;  %v17093_v18 = vpop.eup %17092 }
0x33f9   : > { %v12122_v10 = vmul.f32 %v17093_v18, %v20368_v40  ;;  %v15297_v18 = vld [vmem:[#allocation21] ss:$0 sm:$0xff] }
0x33fa   : > { %16308 = vmatmul.mubr.msk.f32.vlgmr.msra.gmra.mxu0 %vm3438_vm8, %v11454_v58 }
0x33fb   : > { %16316 = vmatpush3.msra.mxu0 %v11623_v52  ;;  %16317 = vmatprep.mubr.msk.f32.mxu0 %vm18372_vm0, %v18371_v0  ;;  %v15301_v52 = vld [vmem:[#allocation13] ss:$0 sm:$0xff] }
0x33fc   : > { %16325 = vmatprep.subr.mxu0 %v18371_v0 }
0x33fe   : > { %16318 = vmatmul.mubr.msk.f32.vlgmr.msra.gmra.mxu0 %vm3438_vm8, %v11621_v9  ;;  %v12344_v9 = vld [vmem:[%s21034_s11 + $0x8] sm:$0xff] }
0x33ff   : > { %16326 = vmatpush3.msra.mxu0 %v11790_v62  ;;  %16327 = vmatprep.mubr.msk.f32.mxu0 %vm18372_vm0, %v18371_v0 }
0x3400   : > { %16335 = vmatprep.subr.mxu0 %v18371_v0 }
0x3402   : > { %16328 = vmatmul.mubr.msk.f32.vlgmr.msra.gmra.mxu0 %vm3438_vm8, %v11788_v63 }
0x3403   : > { %16336 = vmatpush3.msra.mxu0 %v11957_v4  ;;  %16337 = vmatprep.mubr.msk.f32.mxu0 %vm18372_vm0, %v18371_v0 }
0x3404   : > { %16345 = vmatprep.subr.mxu0 %v18371_v0 }
0x3406   : > { %16338 = vmatmul.mubr.msk.f32.vlgmr.msra.gmra.mxu0 %vm3438_vm8, %v11955_v7 }
0x3407   : > { %16346 = vmatpush3.msra.mxu0 %v12124_v8  ;;  %16347 = vmatprep.mubr.msk.f32.mxu0 %vm18372_vm0, %v18371_v0 }
0x3408   : > { %16361 = vmatprep.subr.mxu0 %v18371_v0 }
0x340a   : > { %16348 = vmatmul.mubr.msk.f32.vlgmr.msra.gmra.mxu0 %vm3438_vm8, %v12122_v10  ;;  %v15298_v10 = vld [vmem:[#allocation19] ss:$0 sm:$0xff] }
0x340b   : > { %16369 = vmatprep.mubr.msk.f32.mxu0 %vm18372_vm0, %v18371_v0 }
0x34b6   : > { %v11360_v11 = vpop.f32.mrf.mxu0 }
0x34b7   : > { %12204 = vrot.lane.b32.xlu1 %v11360_v11, %s20994_s21 }
0x34b8   : > { %v16299_v14 = vpop.f32.mrf.mxu0 }
0x34ba   : > { %v11527_v16 = vpop.f32.mrf.mxu0 }
0x34bb   : > { %12208 = vrot.lane.b32.xlu0 %v11527_v16, %s20995_s24 }
0x34bc   : > { %v16309_v19 = vpop.f32.mrf.mxu0 }
0x34be   : > { %v11694_v20 = vpop.f32.mrf.mxu0 }
0x34bf   : > { %12212 = vrot.lane.b32.xlu1 %v11694_v20, %s20996_s25 }
0x34c0   : > { %v16319_v37 = vpop.f32.mrf.mxu0 }
0x34c2   : > { %v11861_v21 = vpop.f32.mrf.mxu0 }
0x34c3   : > { %12216 = vrot.lane.b32.xlu0 %v11861_v21, %s20997_s27 }
0x34c4   : > { %v16329_v22 = vpop.f32.mrf.mxu0 }
0x34c6   : > { %v12028_v23 = vpop.f32.mrf.mxu0 }
0x34c7   : > { %12220 = vrot.lane.b32.xlu1 %v12028_v23, %s20998_s28 }
0x34c8   : > { %v16339_v24 = vpop.f32.mrf.mxu0 }
0x34ca   : > { %v12195_v25 = vpop.f32.mrf.mxu0 }
0x34cb   : > { %12224 = vrot.lane.b32.xlu0 %v12195_v25, %s21017_s30 }
0x34cc   : > { %v16349_v26 = vpop.f32.mrf.mxu0 }
0x3529   : > { %v12205_v31 = vpop.permute.xlu1 %12204 }
0x352a   : > { %v12228_v29 = vsel %vm3438_vm8, %v12227_v28, %v12205_v31 }
0x352d   : > { %v12209_v27 = vpop.permute.xlu0 %12208 }
0x352e   : > { %v12229_v32 = vsel %vm4725_vm9, %v12228_v29, %v12209_v27 }
0x3531   : > { %v12213_v61 = vpop.permute.xlu1 %12212 }
0x3532   : > { %v12230_v34 = vsel %vm4727_vm10, %v12229_v32, %v12213_v61 }
0x3535   : > { %v12217_v30 = vpop.permute.xlu0 %12216 }
0x3536   : > { %v12231_v35 = vsel %vm4729_vm11, %v12230_v34, %v12217_v30 }
0x3539   : > { %v12221_v33 = vpop.permute.xlu1 %12220 }
0x353a   : > { %v12232_v39 = vsel %vm4731_vm12, %v12231_v35, %v12221_v33 }
0x353d   : > { %v12225_v40 = vpop.permute.xlu0 %12224 }
0x353e   : > { %v12233_v44 = vsel %vm4733_vm13, %v12232_v39, %v12225_v40 }
0x353f   : > { %16359 = vmatmul.mubr.msk.f32.vlgmr.msra.gmra.mxu1 %vm3279_vm5, %v12233_v44 }
0x3540   : > { %16373 = vmatpush3.msra.mxu1 %v12430_v43  ;;  %16380 = vmatprep.mubr.msk.f32.mxu1 %vm18372_vm0, %v18371_v0 }
0x3541   : > { %16374 = vmatprep.subr.mxu1 %v18371_v0 }
0x3542   : > { %16375 = vmatpush3.msra.mxu1 %v12429_v12 }
0x3543   : > { %16376 = vmatprep.subr.mxu1 %v18371_v0 }
0x3544   : > { %16377 = vmatpush3.msra.mxu1 %v12428_v38 }
0x3545   : > { %16378 = vmatprep.subr.mxu1 %v18371_v0 }
0x3546   : > { %16379 = vmatpush3.msra.mxu1 %v12427_v42 }
0x3547   : > { %16381 = vmatmul.mubr.msk.f32.vlgmr.msra.gmra.mxu1 %vm3279_vm5, %v19990_v1  ;;  %16393 = vmatprep.subr.mxu1 %v18371_v0 }
0x3548   : > { %16395 = vmatprep.mubr.msk.f32.mxu1 %vm18372_vm0, %v18371_v0 }
0x35ff   : > { %v12309_v36 = vpop.f32.mrf.mxu1 }
0x3600   : > { %v12310_v47 = vadd.f32 %v15295_v45, %v12309_v36 }
0x3601   : > { %v16360_v48 = vpop.f32.mrf.mxu1 }
0x3602   : > { %v12313_v46 = vadd.f32 %v12310_v47, %v20248_v49  ;;  %v12346_v49 = vld [vmem:[%s21034_s11 + $0x18] sm:$0xff] }
0x3603   : > { %16362 = vmatpush3.msra.mxu0 %v12346_v49 }
0x3604   : > { %v12316_v50 = vsel %vm3279_vm5, %v12313_v46, 0.0  ;;  %16363 = vmatprep.subr.mxu0 %v18371_v0 }
0x3605   : > { %12317 = vadd.xlane.f32.xlu1 %v12316_v50  ;;  %16364 = vmatpush3.msra.mxu0 %v12345_v59 }
0x3606   : > { %16365 = vmatprep.subr.mxu0 %v18371_v0 }
0x3607   : > { %v12504_v51 = vpop.f32.mrf.mxu1  ;;  %16366 = vmatpush3.msra.mxu0 %v12344_v9 }
0x3608   : > { %v20453_v58 = vadd.f32 %v15301_v52, %v12504_v51  ;;  %16367 = vmatprep.subr.mxu0 %v18371_v0 }
0x3609   : > { %v16382_v53 = vpop.f32.mrf.mxu1  ;;  %16368 = vmatpush3.msra.mxu0 %v12343_v60 }
0x360a   : > { %16383 = vmatprep.subr.mxu0 %v18371_v0 }
0x368e   : > { %v12318_v1 = vpop.xlane.xlu1 %12317 }
0x368f   : > { %v12319_v54 = vmul.f32 0.03125, %v12318_v1 }
0x3691   : > { %v12320_v55 = vsub.f32 %v12313_v46, %v12319_v54 }
0x3693   : > { %v12321_v56 = vmul.f32 %v12320_v55, %v12320_v55 }
0x3695   : > { %v12322_v57 = vsel %vm3279_vm5, %v12321_v56, 0.0 }
0x3696   : > { %12323 = vadd.xlane.f32.xlu0 %v12322_v57 }
0x36ac   : > { %12679 = vrot.lane.b32.xlu0 %v20453_v58, %s21013_s29 }
0x371f   : > { %v12324_v62 = vpop.xlane.xlu0 %12323 }
0x3720   : > { %v12325_v63 = vmul.f32 0.03125, %v12324_v62 }
0x3722   : > { %v12326_v6 = vadd.f32 1e-05, %v12325_v63 }
0x3723   : > { %v12680_v4 = vpop.permute.xlu0 %12679 }
0x3724   : > { %17094 = vrsqrt.f32 %v12326_v6  ;;  %16394 = vmatpush3.xpose.msk.msra.mxu1 %vm3361_vm6, %v12680_v4 }
0x3725   : > { %16403 = vmatprep.subr.mxu1 %v18371_v0 }
0x3731   : > { %v17095_v7 = vpop.eup %17094 }
0x3732   : > { %v12328_v8 = vmul.f32 %v17095_v7, %v12320_v55 }
0x3734   : > { %v12335_v11 = vmul.f32 %v15297_v18, %v12328_v8 }
0x3736   : > { %v20467_v13 = vadd.f32 %v15298_v10, %v12335_v11 }
0x3738   : > { %16370 = vmatmul.mubr.msk.f32.vlgmr.msra.gmra.mxu0 %vm3279_vm5, %v20467_v13 }
0x3739   : > { %16384 = vmatpush3.xpose.msk.msra.mxu0 %vm3361_vm6, %v20453_v58  ;;  %16385 = vmatprep.mubr.msk.f32.mxu0 %vm18372_vm0, %v18371_v0 }
0x373a   : > { %16388 = vmatprep.subr.mxu0 %v18371_v0 }
0x37f8   : > { %v12423_v14 = vpop.f32.mrf.mxu0 }
0x37f9   : > { %v12424_v16 = vadd.f32 %v15299_v2, %v12423_v14 }
0x37fa   : > { %v16371_v15 = vpop.f32.mrf.mxu0 }
0x37fb   : > { %12843 = vrot.lane.b32.xlu0 %v12424_v16, %s20974_s23  ;;  %12677 = vrot.lane.b32.xlu1 %v12424_v16, %s21013_s29 }
0x37fc   : > { %16386 = vmatmul.mubr.msk.f32.vlgmr.msra.gmra.mxu0 %vm3361_vm6, %v12424_v16 }
0x37fd   : > { %16390 = vmatprep.mubr.msk.f32.mxu0 %vm18372_vm0, %v18371_v0 }
0x37ff   : > { %13009 = vrot.lane.b32.xlu0 %v12424_v16, %s20981_s3  ;;  %12845 = vrot.lane.b32.xlu1 %v20453_v58, %s20974_s23 }
0x3803   : > { %13175 = vrot.lane.b32.xlu0 %v12424_v16, %s20982_s4  ;;  %13011 = vrot.lane.b32.xlu1 %v20453_v58, %s20981_s3  ;;  %s21038_s3 = sld [smem:[#allocation119_spill]] }
0x3807   : > { %13341 = vrot.lane.b32.xlu0 %v12424_v16, %s20983_s5  ;;  %13177 = vrot.lane.b32.xlu1 %v20453_v58, %s20982_s4  ;;  %s21043_s4 = sld [smem:[#allocation175_spill]] }
0x380b   : > { %13507 = vrot.lane.b32.xlu0 %v12424_v16, %s20984_s7  ;;  %13343 = vrot.lane.b32.xlu1 %v20453_v58, %s20983_s5  ;;  %s21035_s5 = sld [smem:[#allocation116_spill]] }
0x380f   : > { %13673 = vrot.lane.b32.xlu0 %v12424_v16, %s20985_s8  ;;  %13509 = vrot.lane.b32.xlu1 %v20453_v58, %s20984_s7 }
0x3813   : > { %13675 = vrot.lane.b32.xlu1 %v20453_v58, %s20985_s8  ;;  %s21039_s8 = sld [smem:[#allocation134_spill]] }
0x3817   : > { %12601 = vrot.lane.b32.xlu1 %v20453_v58, %s21012_s0 }
0x386d   : > { %v12844_v17 = vpop.permute.xlu0 %12843  ;;  %v12678_v19 = vpop.permute.xlu1 %12677 }
0x386e   : > { %16396 = vmatmul.mubr.msk.f32.vlgmr.msra.gmra.mxu1 %vm3361_vm6, %v12678_v19 }
0x386f   : > { %16405 = vmatprep.mubr.msk.f32.mxu1 %vm18372_vm0, %v18371_v0 }
0x3871   : > { %v13010_v20 = vpop.permute.xlu0 %13009  ;;  %v12846_v37 = vpop.permute.xlu1 %12845 }
0x3872   : > { %16404 = vmatpush3.xpose.msk.msra.mxu1 %vm3361_vm6, %v12846_v37 }
0x3873   : > { %16413 = vmatprep.subr.mxu1 %v18371_v0 }
0x3875   : > { %16406 = vmatmul.mubr.msk.f32.vlgmr.msra.gmra.mxu1 %vm3361_vm6, %v12844_v17  ;;  %v13012_v21 = vpop.permute.xlu1 %13011  ;;  %v13176_v22 = vpop.permute.xlu0 %13175 }
0x3876   : > { %16414 = vmatpush3.xpose.msk.msra.mxu1 %vm3361_vm6, %v13012_v21  ;;  %16415 = vmatprep.mubr.msk.f32.mxu1 %vm18372_vm0, %v18371_v0 }
0x3877   : > { %16423 = vmatprep.subr.mxu1 %v18371_v0 }
0x3879   : > { %16416 = vmatmul.mubr.msk.f32.vlgmr.msra.gmra.mxu1 %vm3361_vm6, %v13010_v20  ;;  %v13178_v23 = vpop.permute.xlu1 %13177  ;;  %v13342_v24 = vpop.permute.xlu0 %13341 }
0x387a   : > { %16424 = vmatpush3.xpose.msk.msra.mxu1 %vm3361_vm6, %v13178_v23  ;;  %16425 = vmatprep.mubr.msk.f32.mxu1 %vm18372_vm0, %v18371_v0 }
0x387b   : > { %16433 = vmatprep.subr.mxu1 %v18371_v0 }
0x387d   : > { %16426 = vmatmul.mubr.msk.f32.vlgmr.msra.gmra.mxu1 %vm3361_vm6, %v13176_v22  ;;  %v13344_v25 = vpop.permute.xlu1 %13343  ;;  %v13508_v41 = vpop.permute.xlu0 %13507 }
0x387e   : > { %16434 = vmatpush3.xpose.msk.msra.mxu1 %vm3361_vm6, %v13344_v25  ;;  %16435 = vmatprep.mubr.msk.f32.mxu1 %vm18372_vm0, %v18371_v0 }
0x387f   : > { %16443 = vmatprep.subr.mxu1 %v18371_v0 }
0x3881   : > { %16436 = vmatmul.mubr.msk.f32.vlgmr.msra.gmra.mxu1 %vm3361_vm6, %v13342_v24  ;;  %v13510_v26 = vpop.permute.xlu1 %13509  ;;  %v13674_v27 = vpop.permute.xlu0 %13673 }
0x3882   : > { %16444 = vmatpush3.xpose.msk.msra.mxu1 %vm3361_vm6, %v13510_v26  ;;  %16445 = vmatprep.mubr.msk.f32.mxu1 %vm18372_vm0, %v18371_v0 }
0x3883   : > { %16453 = vmatprep.subr.mxu1 %v18371_v0 }
0x3885   : > { %16446 = vmatmul.mubr.msk.f32.vlgmr.msra.gmra.mxu1 %vm3361_vm6, %v13508_v41  ;;  %v13676_v31 = vpop.permute.xlu1 %13675 }
0x3886   : > { %16454 = vmatpush3.xpose.msk.msra.mxu1 %vm3361_vm6, %v13676_v31  ;;  %16455 = vmatprep.mubr.msk.f32.mxu1 %vm18372_vm0, %v18371_v0 }
0x3887   : > { %16463 = vmatprep.subr.mxu1 %v18371_v0 }
0x3889   : > { %16456 = vmatmul.mubr.msk.f32.vlgmr.msra.gmra.mxu1 %vm3361_vm6, %v13674_v27  ;;  %v12602_v61 = vpop.permute.xlu1 %12601 }
0x388a   : > { %16389 = vmatpush3.msra.mxu0 %v12602_v61  ;;  %16471 = vmatprep.mubr.msk.f32.mxu1 %vm18372_vm0, %v18371_v0 }
0x388b   : > { %16398 = vmatprep.subr.mxu0 %v18371_v0 }
0x38bc   : > { %v12585_v28 = vpop.f32.mrf.mxu0 }
0x38bd   : > { %v12589_v29 = vmul.f32 0.5, %v12585_v28 }
0x38be   : > { %v16387_v30 = vpop.f32.mrf.mxu0 }
0x38bf   : > { %v12590_v32 = vsel %vm3438_vm8, %v12589_v29, -inf }
0x38c0   : > { %12591 = vmax.xlane.f32.xlu1 %v12590_v32 }
0x392e   : > { %v12751_v33 = vpop.f32.mrf.mxu1 }
0x392f   : > { %v12755_v34 = vmul.f32 0.5, %v12751_v33 }
0x3930   : > { %v16397_v35 = vpop.f32.mrf.mxu1 }
0x3931   : > { %v12756_v39 = vsel %vm3438_vm8, %v12755_v34, -inf }
0x3932   : > { %12757 = vmax.xlane.f32.xlu0 %v12756_v39 }
0x3935   : > { %v12917_v40 = vpop.f32.mrf.mxu1 }
0x3936   : > { %v12921_v43 = vmul.f32 0.5, %v12917_v40 }
0x3937   : > { %v16407_v44 = vpop.f32.mrf.mxu1 }
0x3938   : > { %v12922_v12 = vsel %vm3438_vm8, %v12921_v43, -inf }
0x3939   : > { %12923 = vmax.xlane.f32.xlu0 %v12922_v12  ;;  %v13083_v38 = vpop.f32.mrf.mxu1 }
0x393a   : > { %v13087_v42 = vmul.f32 0.5, %v13083_v38 }
0x393b   : > { %v16417_v45 = vpop.f32.mrf.mxu1 }
0x393c   : > { %v13088_v36 = vsel %vm3438_vm8, %v13087_v42, -inf }
0x393d   : > { %v13249_v47 = vpop.f32.mrf.mxu1  ;;  %13089 = vmax.xlane.f32.xlu1 %v13088_v36 }
0x393e   : > { %v13253_v48 = vmul.f32 0.5, %v13249_v47 }
0x393f   : > { %v16427_v46 = vpop.f32.mrf.mxu1 }
0x3940   : > { %v13254_v50 = vsel %vm3438_vm8, %v13253_v48, -inf }
0x3941   : > { %13255 = vmax.xlane.f32.xlu0 %v13254_v50  ;;  %v13415_v51 = vpop.f32.mrf.mxu1 }
0x3942   : > { %v13419_v53 = vmul.f32 0.5, %v13415_v51 }
0x3943   : > { %v16437_v1 = vpop.f32.mrf.mxu1 }
0x3944   : > { %v13420_v54 = vsel %vm3438_vm8, %v13419_v53, -inf }
0x3945   : > { %v13581_v55 = vpop.f32.mrf.mxu1  ;;  %13421 = vmax.xlane.f32.xlu1 %v13420_v54 }
0x3946   : > { %v13585_v56 = vmul.f32 0.5, %v13581_v55 }
0x3947   : > { %v16447_v57 = vpop.f32.mrf.mxu1 }
0x3948   : > { %v13586_v52 = vsel %vm3438_vm8, %v13585_v56, -inf }
0x3949   : > { %13587 = vmax.xlane.f32.xlu0 %v13586_v52  ;;  %v13747_v49 = vpop.f32.mrf.mxu1  ;;  %v12592_v9 = vpop.xlane.xlu1 %12591 }
0x394a   : > { %v12593_v60 = vsub.f32 %v12589_v29, %v12592_v9  ;;  %v13751_v63 = vmul.f32 0.5, %v13747_v49 }
0x394b   : > { %v16457_v59 = vpop.f32.mrf.mxu1 }
0x394c   : > { %v12594_v62 = vmul.f32 1.442695, %v12593_v60  ;;  %v13752_v6 = vsel %vm3438_vm8, %v13751_v63, -inf }
0x394e   : > { %17096 = vpow2.f32 %v12594_v62 }
0x3956   : > { %12933 = vrot.lane.b32.xlu1 %v20453_v58, %s20980_s10 }
0x395b   : > { %v17097_v4 = vpop.eup %17096 }
0x395c   : > { %v12596_v7 = vsel %vm3438_vm8, %v17097_v4, 0.0 }
0x395f   : > { %12767 = vrot.lane.b32.xlu0 %v20453_v58, %s21011_s12 }
0x397a   : > { %13753 = vmax.xlane.f32.xlu1 %v13752_v6 }
0x397e   : > { %12597 = vadd.xlane.f32.xlu0 %v12596_v7 }
0x398b   : > { %13099 = vrot.lane.b32.xlu1 %v20453_v58, %s20975_s26 }
0x39bb   : > { %v12758_v18 = vpop.xlane.xlu0 %12757 }
0x39bc   : > { %v12759_v8 = vsub.f32 %v12755_v34, %v12758_v18 }
0x39be   : > { %v12760_v10 = vmul.f32 1.442695, %v12759_v8 }
0x39c0   : > { %17098 = vpow2.f32 %v12760_v10 }
0x39c2   : > { %v12924_v11 = vpop.xlane.xlu0 %12923 }
0x39c3   : > { %v12925_v2 = vsub.f32 %v12921_v43, %v12924_v11 }
0x39c5   : > { %v12926_v14 = vmul.f32 1.442695, %v12925_v2 }
0x39c6   : > { %v13090_v20 = vpop.xlane.xlu1 %13089 }
0x39c7   : > { %17100 = vpow2.f32 %v12926_v14  ;;  %v13091_v37 = vsub.f32 %v13087_v42, %v13090_v20 }
0x39c9   : > { %v13092_v22 = vmul.f32 1.442695, %v13091_v37 }
0x39ca   : > { %v13256_v23 = vpop.xlane.xlu0 %13255 }
0x39cb   : > { %v13257_v25 = vsub.f32 %v13253_v48, %v13256_v23  ;;  %17102 = vpow2.f32 %v13092_v22 }
0x39cd   : > { %v17099_v16 = vpop.eup %17098  ;;  %v13258_v31 = vmul.f32 1.442695, %v13257_v25  ;;  %v12509_v25 = vld [vmem:[%s21035_s5 + $0x8] sm:$0xff] }
0x39ce   : > { %v12762_v15 = vsel %vm3438_vm8, %v17099_v16, 0.0  ;;  %v13422_v21 = vpop.xlane.xlu1 %13421 }
0x39cf   : > { %12763 = vadd.xlane.f32.xlu1 %v12762_v15  ;;  %v13423_v24 = vsub.f32 %v13419_v53, %v13422_v21  ;;  %v12511_v21 = vld [vmem:[%s21035_s5 + $0x18] sm:$0xff] }
0x39d0   : > { %16464 = vmatpush3.msra.mxu1 %v12511_v21 }
0x39d1   : > { %v13424_v26 = vmul.f32 1.442695, %v13423_v24  ;;  %16465 = vmatprep.subr.mxu1 %v18371_v0  ;;  %v12510_v24 = vld [vmem:[%s21035_s5 + $0x10] sm:$0xff] }
0x39d2   : > { %v13588_v41 = vpop.xlane.xlu0 %13587  ;;  %v12934_v28 = vpop.permute.xlu1 %12933  ;;  %16466 = vmatpush3.msra.mxu1 %v12510_v24 }
0x39d3   : > { %v13589_v27 = vsub.f32 %v13585_v56, %v13588_v41  ;;  %17104 = vpow2.f32 %v13424_v26  ;;  %16467 = vmatprep.subr.mxu1 %v18371_v0  ;;  %v12508_v41 = vld [vmem:[%s21035_s5] sm:$0xff] }
0x39d4   : > { %v20550_v17 = vpop.eup %17100  ;;  %17106 = vpow2.f32 %v13258_v31  ;;  %16468 = vmatpush3.msra.mxu1 %v12509_v25 }
0x39d5   : > { %v12928_v19 = vsel %vm3438_vm8, %v20550_v17, 0.0  ;;  %v13590_v61 = vmul.f32 1.442695, %v13589_v27  ;;  %16469 = vmatprep.subr.mxu1 %v18371_v0 }
0x39d6   : > { %12929 = vadd.xlane.f32.xlu0 %v12928_v19  ;;  %v12768_v30 = vpop.permute.xlu0 %12767  ;;  %16470 = vmatpush3.msra.mxu1 %v12508_v41 }
0x39d7   : > { %17108 = vpow2.f32 %v13590_v61 }
0x39d8   : > { %v17103_v29 = vpop.eup %17102 }
0x39d9   : > { %v13094_v33 = vsel %vm3438_vm8, %v17103_v29, 0.0 }
0x39e0   : > { %13265 = vrot.lane.b32.xlu1 %v20453_v58, %s20976_s22  ;;  %v20559_v34 = vpop.eup %17104 }
0x39e1   : > { %v17107_v40 = vpop.eup %17106  ;;  %v13426_v44 = vsel %vm3438_vm8, %v20559_v34, 0.0 }
0x39e2   : > { %v13260_v12 = vsel %vm3438_vm8, %v17107_v40, 0.0 }
0x39e4   : > { %v20564_v38 = vpop.eup %17108 }
0x39e5   : > { %v13592_v42 = vsel %vm3438_vm8, %v20564_v38, 0.0 }
0x39ec   : > { %13431 = vrot.lane.b32.xlu0 %v20453_v58, %s20977_s16 }
0x3a03   : > { %v13754_v32 = vpop.xlane.xlu1 %13753 }
0x3a04   : > { %v13755_v35 = vsub.f32 %v13751_v63, %v13754_v32  ;;  %13095 = vadd.xlane.f32.xlu1 %v13094_v33 }
0x3a06   : > { %v13756_v39 = vmul.f32 1.442695, %v13755_v35 }
0x3a07   : > { %v12598_v43 = vpop.xlane.xlu0 %12597  ;;  %v13100_v46 = vpop.permute.xlu1 %13099 }
0x3a08   : > { %17110 = vpow2.f32 %v13756_v39  ;;  %13427 = vadd.xlane.f32.xlu1 %v13426_v44 }
0x3a09   : > { %17112 = vrcp.f32 %v12598_v43 }
0x3a0b   : > { %13261 = vadd.xlane.f32.xlu0 %v13260_v12 }
0x3a0f   : > { %13593 = vadd.xlane.f32.xlu0 %v13592_v42 }
0x3a15   : > { %v20568_v45 = vpop.eup %17110 }
0x3a16   : > { %v17113_v36 = vpop.eup %17112  ;;  %v13758_v47 = vsel %vm3438_vm8, %v20568_v45, 0.0 }
0x3a17   : > { %13759 = vadd.xlane.f32.xlu0 %v13758_v47  ;;  %v12600_v48 = vmul.f32 %v17113_v36, %v17097_v4 }
0x3a19   : > { %16391 = vmatmul.mubr.msk.f32.vlgmr.msra.gmra.mxu0 %vm3438_vm8, %v12600_v48  ;;  %13597 = vrot.lane.b32.xlu1 %v20453_v58, %s20978_s18 }
0x3a1a   : > { %16399 = vmatpush3.msra.mxu0 %v12768_v30  ;;  %16400 = vmatprep.mubr.msk.f32.mxu0 %vm18372_vm0, %v18371_v0 }
0x3a1b   : > { %16408 = vmatprep.subr.mxu0 %v18371_v0 }
0x3a2d   : > { %13763 = vrot.lane.b32.xlu0 %v20453_v58, %s20979_s1 }
0x3a58   : > { %v12764_v50 = vpop.xlane.xlu1 %12763 }
0x3a59   : > { %17114 = vrcp.f32 %v12764_v50 }
0x3a5c   : > { %v13266_v58 = vpop.permute.xlu1 %13265 }
0x3a5f   : > { %v12930_v51 = vpop.xlane.xlu0 %12929 }
0x3a60   : > { %17116 = vrcp.f32 %v12930_v51 }
0x3a63   : > { %v13432_v57 = vpop.permute.xlu0 %13431 }
0x3a66   : > { %v17115_v53 = vpop.eup %17114 }
0x3a67   : > { %v12766_v1 = vmul.f32 %v17115_v53, %v17099_v16 }
0x3a69   : > { %16401 = vmatmul.mubr.msk.f32.vlgmr.msra.gmra.mxu0 %vm3438_vm8, %v12766_v1 }
0x3a6a   : > { %16409 = vmatpush3.msra.mxu0 %v12934_v28  ;;  %16410 = vmatprep.mubr.msk.f32.mxu0 %vm18372_vm0, %v18371_v0 }
0x3a6b   : > { %16418 = vmatprep.subr.mxu0 %v18371_v0 }
0x3a6d   : > { %v17117_v54 = vpop.eup %17116 }
0x3a6e   : > { %v12932_v55 = vmul.f32 %v17117_v54, %v20550_v17 }
0x3a70   : > { %16411 = vmatmul.mubr.msk.f32.vlgmr.msra.gmra.mxu0 %vm3438_vm8, %v12932_v55 }
0x3a71   : > { %16419 = vmatpush3.msra.mxu0 %v13100_v46  ;;  %16420 = vmatprep.mubr.msk.f32.mxu0 %vm18372_vm0, %v18371_v0  ;;  %v15327_v46 = vld [vmem:[#allocation15] ss:$0 sm:$0xff] }
0x3a72   : > { %16428 = vmatprep.subr.mxu0 %v18371_v0 }
0x3a8d   : > { %v13096_v56 = vpop.xlane.xlu1 %13095 }
0x3a8e   : > { %17118 = vrcp.f32 %v13096_v56 }
0x3a91   : > { %v13428_v52 = vpop.xlane.xlu1 %13427 }
0x3a94   : > { %v13262_v49 = vpop.xlane.xlu0 %13261 }
0x3a95   : > { %17120 = vrcp.f32 %v13262_v49  ;;  %v13598_v8 = vpop.permute.xlu1 %13597 }
0x3a96   : > { %17122 = vrcp.f32 %v13428_v52 }
0x3a98   : > { %v13594_v59 = vpop.xlane.xlu0 %13593 }
0x3a99   : > { %17124 = vrcp.f32 %v13594_v59 }
0x3a9b   : > { %v17119_v9 = vpop.eup %17118 }
0x3a9c   : > { %v13098_v60 = vmul.f32 %v17119_v9, %v17103_v29 }
0x3a9e   : > { %16421 = vmatmul.mubr.msk.f32.vlgmr.msra.gmra.mxu0 %vm3438_vm8, %v13098_v60 }
0x3a9f   : > { %16429 = vmatpush3.msra.mxu0 %v13266_v58  ;;  %16430 = vmatprep.mubr.msk.f32.mxu0 %vm18372_vm0, %v18371_v0 }
0x3aa0   : > { %v13760_v62 = vpop.xlane.xlu0 %13759  ;;  %16438 = vmatprep.subr.mxu0 %v18371_v0 }
0x3aa1   : > { %17126 = vrcp.f32 %v13760_v62 }
0x3aa2   : > { %v17121_v63 = vpop.eup %17120 }
0x3aa3   : > { %v13264_v6 = vmul.f32 %v17121_v63, %v17107_v40  ;;  %v17123_v4 = vpop.eup %17122 }
0x3aa4   : > { %v13430_v7 = vmul.f32 %v17123_v4, %v20559_v34  ;;  %v13764_v11 = vpop.permute.xlu0 %13763 }
0x3aa5   : > { %16431 = vmatmul.mubr.msk.f32.vlgmr.msra.gmra.mxu0 %vm3438_vm8, %v13264_v6 }
0x3aa6   : > { %16439 = vmatpush3.msra.mxu0 %v13432_v57  ;;  %16440 = vmatprep.mubr.msk.f32.mxu0 %vm18372_vm0, %v18371_v0  ;;  %v17125_v18 = vpop.eup %17124 }
0x3aa7   : > { %16448 = vmatprep.subr.mxu0 %v18371_v0  ;;  %v13596_v10 = vmul.f32 %v17125_v18, %v20564_v38 }
0x3aa9   : > { %16441 = vmatmul.mubr.msk.f32.vlgmr.msra.gmra.mxu0 %vm3438_vm8, %v13430_v7 }
0x3aaa   : > { %16449 = vmatpush3.msra.mxu0 %v13598_v8  ;;  %16450 = vmatprep.mubr.msk.f32.mxu0 %vm18372_vm0, %v18371_v0 }
0x3aab   : > { %16458 = vmatprep.subr.mxu0 %v18371_v0 }
0x3aad   : > { %16451 = vmatmul.mubr.msk.f32.vlgmr.msra.gmra.mxu0 %vm3438_vm8, %v13596_v10 }
0x3aae   : > { %v17127_v2 = vpop.eup %17126  ;;  %16459 = vmatpush3.msra.mxu0 %v13764_v11  ;;  %16460 = vmatprep.mubr.msk.f32.mxu0 %vm18372_vm0, %v18371_v0 }
0x3aaf   : > { %v13762_v14 = vmul.f32 %v17127_v2, %v20568_v45 }
0x3ab1   : > { %16461 = vmatmul.mubr.msk.f32.vlgmr.msra.gmra.mxu0 %vm3438_vm8, %v13762_v14 }
0x3ab2   : > { %14070 = vmatprep.mubr.f32.mxu0 %v18371_v0 }
0x3ad9   : > { %v12673_v16 = vpop.f32.mrf.mxu0 }
0x3adb   : > { %v16392_v15 = vpop.f32.mrf.mxu0 }
0x3b29   : > { %v12839_v17 = vpop.f32.mrf.mxu0 }
0x3b2a   : > { %13840 = vrot.lane.b32.xlu1 %v12839_v17, %s20992_s19  ;;  %s21040_s19 = sld [smem:[#allocation138_spill]] }
0x3b2b   : > { %v16402_v19 = vpop.f32.mrf.mxu0 }
0x3b30   : > { %v13005_v20 = vpop.f32.mrf.mxu0 }
0x3b31   : > { %13844 = vrot.lane.b32.xlu0 %v13005_v20, %s20994_s21  ;;  %s21036_s21 = sld [smem:[#allocation120_spill]] }
0x3b32   : > { %v16412_v37 = vpop.f32.mrf.mxu0 }
0x3b37   : > { %v13990_v49 = vld [vmem:[%s21036_s21 + $0x38] sm:$0xff]  ;;  %v13988_v59 = vld [vmem:[%s21036_s21 + $0x28] sm:$0xff]  ;;  %v13987_v9 = vld [vmem:[%s21036_s21 + $0x20] sm:$0xff] }
0x3b38   : > { %14030 = vmatprep.subr.mxu0 %v13990_v49  ;;  %v13986_v60 = vld [vmem:[%s21036_s21 + $0x18] sm:$0xff]  ;;  %v13985_v62 = vld [vmem:[%s21036_s21 + $0x10] sm:$0xff]  ;;  %v13984_v63 = vld [vmem:[%s21036_s21 + $0x8] sm:$0xff] }
0x3b39   : > { %v13983_v6 = vld [vmem:[%s21036_s21] sm:$0xff] }
0x3b5e   : > { %v13171_v22 = vpop.f32.mrf.mxu0 }
0x3b5f   : > { %13848 = vrot.lane.b32.xlu1 %v13171_v22, %s20995_s24  ;;  %s21041_s24 = sld [smem:[#allocation177_spill]] }
0x3b60   : > { %v16422_v23 = vpop.f32.mrf.mxu0 }
0x3b65   : > { %v13337_v26 = vpop.f32.mrf.mxu0 }
0x3b66   : > { %13852 = vrot.lane.b32.xlu0 %v13337_v26, %s20996_s25  ;;  %s21037_s25 = sld [smem:[#allocation122_spill]] }
0x3b67   : > { %v16432_v31 = vpop.f32.mrf.mxu0 }
0x3b69   : > { %v13503_v27 = vpop.f32.mrf.mxu0 }
0x3b6a   : > { %13856 = vrot.lane.b32.xlu1 %v13503_v27, %s20997_s27 }
0x3b6b   : > { %v16442_v61 = vpop.f32.mrf.mxu0 }
0x3b6c   : > { %v14110_v4 = vld [vmem:[%s21037_s25 + $0xf8] sm:$0xff]  ;;  %v14109_v18 = vld [vmem:[%s21037_s25 + $0xf0] sm:$0xff]  ;;  %v14108_v10 = vld [vmem:[%s21037_s25 + $0xe8] sm:$0xff] }
0x3b6d   : > { %v13669_v28 = vpop.f32.mrf.mxu0  ;;  %v14094_v7 = vld [vmem:[%s21037_s25 + $0x78] sm:$0xff]  ;;  %15736 = vmatprep.subr.mxu1 %v14110_v4  ;;  %v14093_v8 = vld [vmem:[%s21037_s25 + $0x70] sm:$0xff]  ;;  %v14092_v11 = vld [vmem:[%s21037_s25 + $0x68] sm:$0xff] }
0x3b6e   : > { %13860 = vrot.lane.b32.xlu0 %v13669_v28, %s20998_s28  ;;  %v14107_v2 = vld [vmem:[%s21037_s25 + $0xe0] sm:$0xff]  ;;  %v14090_v15 = vld [vmem:[%s21037_s25 + $0x58] sm:$0xff]  ;;  %v14105_v17 = vld [vmem:[%s21037_s25 + $0xd0] sm:$0xff]  ;;  %s3092_s28 = scalar_lea.vmem %s21043_s4, %s21041_s24 }
0x3b6f   : > { %v16452_v29 = vpop.f32.mrf.mxu0  ;;  %v14091_v14 = vld [vmem:[%s21037_s25 + $0x60] sm:$0xff]  ;;  %v14089_v19 = vld [vmem:[%s21037_s25 + $0x50] sm:$0xff]  ;;  %v14104_v20 = vld [vmem:[%s21037_s25 + $0xc8] sm:$0xff] }
0x3b70   : > { %v14088_v37 = vld [vmem:[%s21037_s25 + $0x48] sm:$0xff]  ;;  %v14103_v21 = vld [vmem:[%s21037_s25 + $0xc0] sm:$0xff]  ;;  %v14102_v23 = vld [vmem:[%s21037_s25 + $0xb8] sm:$0xff] }
0x3b71   : > { %v13835_v30 = vpop.f32.mrf.mxu0  ;;  %v14087_v22 = vld [vmem:[%s21037_s25 + $0x40] sm:$0xff]  ;;  %v14086_v24 = vld [vmem:[%s21037_s25 + $0x38] sm:$0xff]  ;;  %v14101_v25 = vld [vmem:[%s21037_s25 + $0xb0] sm:$0xff] }
0x3b72   : > { %13864 = vrot.lane.b32.xlu1 %v13835_v30, %s21017_s30  ;;  %v14085_v26 = vld [vmem:[%s21037_s25 + $0x30] sm:$0xff]  ;;  %v14100_v41 = vld [vmem:[%s21037_s25 + $0xa8] sm:$0xff]  ;;  %v14099_v27 = vld [vmem:[%s21037_s25 + $0xa0] sm:$0xff]  ;;  %s21042_s30 = sld [smem:[#allocation174_spill]] }
0x3b73   : > { %v16462_v32 = vpop.f32.mrf.mxu0  ;;  %v14084_v31 = vld [vmem:[%s21037_s25 + $0x28] sm:$0xff]  ;;  %v14083_v61 = vld [vmem:[%s21037_s25 + $0x20] sm:$0xff] }
0x3b78   : > { %s3088_s27 = scalar_lea.vmem %s21042_s30, %s21041_s24 }
0x3b9c   : > { %v13841_v33 = vpop.permute.xlu1 %13840 }
0x3b9d   : > { %v13867_v40 = vsel %vm3361_vm6, %v12673_v16, %v13841_v33  ;;  %v14106_v16 = vld [vmem:[%s21037_s25 + $0xd8] sm:$0xff] }
0x3b9e   : > { %v15329_v33 = vld [vmem:[#allocation24] ss:$0 sm:$0xff] }
0x3ba3   : > { %v13845_v34 = vpop.permute.xlu0 %13844 }
0x3ba4   : > { %v13868_v43 = vsel %vm3438_vm8, %v13867_v40, %v13845_v34 }
0x3bd1   : > { %v13849_v35 = vpop.permute.xlu1 %13848 }
0x3bd2   : > { %v13869_v12 = vsel %vm4725_vm9, %v13868_v43, %v13849_v35  ;;  %v15330_v35 = vld [vmem:[#allocation22] ss:$0 sm:$0xff] }
0x3bd3   : > { %v14098_v43 = vld [vmem:[%s21037_s25 + $0x98] sm:$0xff] }
0x3bd8   : > { %v13853_v39 = vpop.permute.xlu0 %13852 }
0x3bd9   : > { %v13870_v42 = vsel %vm4727_vm10, %v13869_v12, %v13853_v39  ;;  %v14097_v12 = vld [vmem:[%s21037_s25 + $0x90] sm:$0xff] }
0x3bdc   : > { %v13857_v44 = vpop.permute.xlu1 %13856 }
0x3bdd   : > { %v13871_v45 = vsel %vm4729_vm11, %v13870_v42, %v13857_v44  ;;  %v14082_v44 = vld [vmem:[%s21037_s25 + $0x18] sm:$0xff]  ;;  %v14096_v42 = vld [vmem:[%s21037_s25 + $0x88] sm:$0xff] }
0x3be0   : > { %v13861_v38 = vpop.permute.xlu0 %13860 }
0x3be1   : > { %v13872_v36 = vsel %vm4731_vm12, %v13871_v45, %v13861_v38  ;;  %v14081_v38 = vld [vmem:[%s21037_s25 + $0x10] sm:$0xff]  ;;  %v14080_v45 = vld [vmem:[%s21037_s25 + $0x8] sm:$0xff] }
0x3be4   : > { %v13865_v47 = vpop.permute.xlu1 %13864 }
0x3be5   : > { %v13873_v48 = vsel %vm4733_vm13, %v13872_v36, %v13865_v47  ;;  %v14095_v36 = vld [vmem:[%s21037_s25 + $0x80] sm:$0xff] }
0x3be6   : > { %16472 = vmatmul.mubr.msk.f32.vlgmr.msra.gmra.mxu1 %vm3279_vm5, %v13873_v48  ;;  %v14079_v47 = vld [vmem:[%s21037_s25] sm:$0xff] }
0x3be7   : > { %15737 = vmatpush3.msra.mxu1 %v14094_v7  ;;  %v13991_v48 = vld [vmem:[%s21038_s3] sm:$0x3] }
0x3be8   : > { %15738 = vmatprep.subr.mxu1 %v14109_v18 }
0x3be9   : > { %15739 = vmatpush3.msra.mxu1 %v14093_v8  ;;  %v15333_v8 = vld [vmem:[#allocation27] ss:$0 sm:$0xff] }
0x3bea   : > { %15740 = vmatprep.subr.mxu1 %v14108_v10 }
0x3beb   : > { %15741 = vmatpush3.msra.mxu1 %v14092_v11  ;;  %v15334_v11 = vld [vmem:[#allocation25] ss:$0 sm:$0xff] }
0x3bec   : > { %15742 = vmatprep.subr.mxu1 %v14107_v2 }
0x3bed   : > { %15743 = vmatpush3.msra.mxu1 %v14091_v14 }
0x3bee   : > { %15744 = vmatprep.subr.mxu1 %v14106_v16 }
0x3bef   : > { %15745 = vmatpush3.msra.mxu1 %v14090_v15 }
0x3bf0   : > { %15746 = vmatprep.subr.mxu1 %v14105_v17 }
0x3bf1   : > { %15747 = vmatpush3.msra.mxu1 %v14089_v19 }
0x3bf2   : > { %15748 = vmatprep.subr.mxu1 %v14104_v20 }
0x3bf3   : > { %15749 = vmatpush3.msra.mxu1 %v14088_v37 }
0x3bf4   : > { %15750 = vmatprep.subr.mxu1 %v14103_v21  ;;  %v14250_v21 = vld [vmem:[%s21039_s8 + $0x18] sm:$0xff] }
0x3bf5   : > { %15751 = vmatpush3.msra.mxu1 %v14087_v22  ;;  %v14249_v22 = vld [vmem:[%s21039_s8 + $0x10] sm:$0xff] }
0x3bf6   : > { %15752 = vmatprep.subr.mxu1 %v14102_v23  ;;  %v14248_v23 = vld [vmem:[%s21039_s8 + $0x8] sm:$0xff] }
0x3bf7   : > { %15753 = vmatpush3.msra.mxu1 %v14086_v24  ;;  %v14247_v24 = vld [vmem:[%s21039_s8] sm:$0xff] }
0x3bf8   : > { %15754 = vmatprep.subr.mxu1 %v14101_v25 }
0x3bf9   : > { %15755 = vmatpush3.msra.mxu1 %v14085_v26 }
0x3bfa   : > { %15756 = vmatprep.subr.mxu1 %v14100_v41 }
0x3bfb   : > { %15757 = vmatpush3.msra.mxu1 %v14084_v31 }
0x3bfc   : > { %15758 = vmatprep.subr.mxu1 %v14099_v27  ;;  %v15335_v27 = vld [vmem:[#allocation34] ss:$0 sm:$0xff] }
0x3bfd   : > { %15759 = vmatpush3.msra.mxu1 %v14083_v61 }
0x3bfe   : > { %15760 = vmatprep.subr.mxu1 %v14098_v43 }
0x3bff   : > { %15761 = vmatpush3.msra.mxu1 %v14082_v44 }
0x3c00   : > { %15762 = vmatprep.subr.mxu1 %v14097_v12  ;;  %v15339_v12 = vld [vmem:[#allocation36] ss:$0 sm:$0xff] }
0x3c01   : > { %15763 = vmatpush3.msra.mxu1 %v14081_v38 }
0x3c02   : > { %15764 = vmatprep.subr.mxu1 %v14096_v42 }
0x3c03   : > { %15765 = vmatpush3.msra.mxu1 %v14080_v45 }
0x3c04   : > { %15766 = vmatprep.subr.mxu1 %v14095_v36 }
0x3c05   : > { %15767 = vmatpush3.msra.mxu1 %v14079_v47 }
0x3ca6   : > { %v13949_v50 = vpop.f32.mrf.mxu1 }
0x3ca7   : > { %v13950_v51 = vadd.f32 %v15327_v46, %v13949_v50  ;;  %v13996_v46 = vrot.slane %v13991_v48, %v19458_v3  ;;  %v14000_v50 = vrot.slane %v13991_v48, %v19462_v5 }
0x3ca8   : > { %v16473_v53 = vpop.f32.mrf.mxu1 }
0x3ca9   : > { %v13953_v1 = vadd.f32 %v13950_v51, %v20467_v13  ;;  %v13989_v13 = vld [vmem:[%s21036_s21 + $0x30] sm:$0xff] }
0x3caa   : > { %14031 = vmatpush1.msra.mxu0 %v13989_v13 }
0x3cab   : > { %v13956_v54 = vsel %vm3279_vm5, %v13953_v1, 0.0  ;;  %14032 = vmatprep.subr.mxu0 %v13988_v59 }
0x3cac   : > { %13957 = vadd.xlane.f32.xlu0 %v13956_v54  ;;  %14033 = vmatpush1.msra.mxu0 %v13987_v9 }
0x3cad   : > { %14034 = vmatprep.subr.mxu0 %v13986_v60 }
0x3cae   : > { %14035 = vmatpush1.msra.mxu0 %v13985_v62 }
0x3caf   : > { %14036 = vmatprep.subr.mxu0 %v13984_v63 }
0x3cb0   : > { %14037 = vmatpush1.msra.mxu0 %v13983_v6 }
0x3cb1   : > { %16474 = vmatprep.subr.mxu0 %v18371_v0 }
0x3d35   : > { %v13958_v55 = vpop.xlane.xlu0 %13957 }
0x3d36   : > { %v13959_v58 = vmul.f32 0.03125, %v13958_v55 }
0x3d38   : > { %v20633_v56 = vsub.f32 %v13953_v1, %v13959_v58 }
0x3d3a   : > { %v13961_v57 = vmul.f32 %v20633_v56, %v20633_v56 }
0x3d3c   : > { %v13962_v52 = vsel %vm3279_vm5, %v13961_v57, 0.0  ;;  %v15332_v57 = vld [vmem:[#allocation18] ss:$0 sm:$0xff] }
0x3d3d   : > { %13963 = vadd.xlane.f32.xlu1 %v13962_v52 }
0x3dc6   : > { %v13964_v28 = vpop.xlane.xlu1 %13963 }
0x3dc7   : > { %v13965_v29 = vmul.f32 0.03125, %v13964_v28  ;;  %v15336_v28 = vld [vmem:[#allocation33] ss:$0 sm:$0xff] }
0x3dc9   : > { %v13966_v30 = vadd.f32 1e-05, %v13965_v29 }
0x3dcb   : > { %17128 = vrsqrt.f32 %v13966_v30 }
0x3dd8   : > { %v17129_v32 = vpop.eup %17128 }
0x3dd9   : > { %v13968_v34 = vmul.f32 %v17129_v32, %v20633_v56  ;;  %v14334_v32 = vld [vmem:[%s21040_s19 + $0x18] sm:$0xff] }
0x3ddb   : > { %v13975_v39 = vmul.f32 %v15329_v33, %v13968_v34  ;;  %v14333_v33 = vld [vmem:[%s21040_s19 + $0x10] sm:$0xff]  ;;  %v14332_v34 = vld [vmem:[%s21040_s19 + $0x8] sm:$0xff] }
0x3ddd   : > { %v13982_v40 = vadd.f32 %v15330_v35, %v13975_v39  ;;  %v14331_v35 = vld [vmem:[%s21040_s19] sm:$0xff] }
0x3dde   : > { %v15337_v39 = vld [vmem:[#allocation31] ss:$0 sm:$0xff] }
0x3ddf   : > { %15331 = vmatmul.mubr.msk.f32.vlgmr.msra.gmra.mxu0 %vm3279_vm5, %v13982_v40 }
0x3de0   : > { %16482 = vmatprep.mubr.msk.f32.mxu0 %vm18372_vm0, %v18371_v0  ;;  %16475 = vmatpush3.msra.mxu0 %v14250_v21 }
0x3de1   : > { %16476 = vmatprep.subr.mxu0 %v18371_v0 }
0x3de2   : > { %16477 = vmatpush3.msra.mxu0 %v14249_v22 }
0x3de3   : > { %16478 = vmatprep.subr.mxu0 %v18371_v0 }
0x3de4   : > { %16479 = vmatpush3.msra.mxu0 %v14248_v23 }
0x3de5   : > { %16480 = vmatprep.subr.mxu0 %v18371_v0 }
0x3de6   : > { %16481 = vmatpush3.msra.mxu0 %v14247_v24 }
0x3de7   : > { %16485 = vmatprep.subr.mxu0 %v18371_v0 }
0x3e9f   : > { %v14072_v51 = vpop.f32.mrf.mxu0 }
0x3ea0   : > { %v14073_v53 = vadd.f32 %v14072_v51, %v13996_v46 }
0x3ea1   : > { %v14074_v1 = vpop.f32.mrf.mxu0 }
0x3ea2   : > { %v14075_v54 = vadd.f32 %v14074_v1, %v14000_v50  ;;  %v14077_v58 = vmax.f32 %v14073_v53, 0.0 }
0x3ea4   : > { %v14078_v55 = vmax.f32 %v14075_v54, 0.0 }
0x3ea6   : > { %14182 = vmatprep.mubr.f32.mxu1 %v14078_v55 }
0x3ea7   : > { %14183 = vmatmul.mubr.f32.vlgmr.msra.gmra.mxu1 %v14077_v58 }
0x3f67   : > { %v15768_v56 = vpop.f32.mrf.mxu1 }
0x3f69   : > { %v15769_v52 = vpop.f32.mrf.mxu1 }
0x3f6a   : > { %v15770_v49 = vadd.f32 %v15769_v52, %v15768_v56 }
0x3f6c   : > { %v14185_v13 = vadd.f32 %v15770_v49, %v15332_v57 }
0x3f6e   : > { %v14188_v59 = vadd.f32 %v14185_v13, %v13982_v40 }
0x3f70   : > { %v14191_v9 = vsel %vm3279_vm5, %v14188_v59, 0.0 }
0x3f71   : > { %14192 = vadd.xlane.f32.xlu0 %v14191_v9 }
0x3ffa   : > { %v14193_v3 = vpop.xlane.xlu0 %14192 }
0x3ffb   : > { %v14194_v60 = vmul.f32 0.03125, %v14193_v3 }
0x3ffd   : > { %v14195_v5 = vsub.f32 %v14188_v59, %v14194_v60 }
0x3fff   : > { %v14196_v62 = vmul.f32 %v14195_v5, %v14195_v5 }
0x4001   : > { %v14197_v63 = vsel %vm3279_vm5, %v14196_v62, 0.0 }
0x4002   : > { %14198 = vadd.xlane.f32.xlu0 %v14197_v63 }
0x408b   : > { %v14199_v6 = vpop.xlane.xlu0 %14198 }
0x408c   : > { %v14200_v4 = vmul.f32 0.03125, %v14199_v6 }
0x408e   : > { %v14201_v7 = vadd.f32 1e-05, %v14200_v4 }
0x4090   : > { %17130 = vrsqrt.f32 %v14201_v7 }
0x409d   : > { %v17131_v18 = vpop.eup %17130 }
0x409e   : > { %v14203_v10 = vmul.f32 %v17131_v18, %v14195_v5 }
0x40a0   : > { %v14210_v2 = vmul.f32 %v15333_v8, %v14203_v10 }
0x40a2   : > { %v14217_v14 = vadd.f32 %v15334_v11, %v14210_v2 }
0x40a4   : > { %v14220_v16 = vsel %vm3279_vm5, %v14217_v14, 0.0 }
0x40a5   : > { %14221 = vadd.xlane.f32.xlu1 %v14220_v16 }
0x412e   : > { %v14222_v15 = vpop.xlane.xlu1 %14221 }
0x412f   : > { %v14223_v17 = vmul.f32 0.03125, %v14222_v15 }
0x4131   : > { %v14224_v19 = vsub.f32 %v14217_v14, %v14223_v17 }
0x4133   : > { %v14225_v20 = vmul.f32 %v14224_v19, %v14224_v19 }
0x4135   : > { %v14226_v37 = vsel %vm3279_vm5, %v14225_v20, 0.0 }
0x4136   : > { %14227 = vadd.xlane.f32.xlu0 %v14226_v37 }
0x41bf   : > { %v14228_v25 = vpop.xlane.xlu0 %14227 }
0x41c0   : > { %v14229_v26 = vmul.f32 0.03125, %v14228_v25 }
0x41c2   : > { %v14230_v41 = vadd.f32 1e-05, %v14229_v26 }
0x41c4   : > { %17132 = vrsqrt.f32 %v14230_v41 }
0x41d1   : > { %v17133_v31 = vpop.eup %17132 }
0x41d2   : > { %v14232_v61 = vmul.f32 %v17133_v31, %v14224_v19 }
0x41d4   : > { %v14239_v29 = vmul.f32 %v15335_v27, %v14232_v61 }
0x41d6   : > { %v14246_v30 = vadd.f32 %v15336_v28, %v14239_v29 }
0x41d8   : > { %16483 = vmatmul.mubr.msk.f32.vlgmr.msra.gmra.mxu0 %vm3279_vm5, %v14246_v30 }
0x41d9   : > { %16486 = vmatpush3.msra.mxu0 %v14334_v32  ;;  %16493 = vmatprep.mubr.msk.f32.mxu0 %vm18372_vm0, %v18371_v0 }
0x41da   : > { %16487 = vmatprep.subr.mxu0 %v18371_v0 }
0x41db   : > { %16488 = vmatpush3.msra.mxu0 %v14333_v33 }
0x41dc   : > { %16489 = vmatprep.subr.mxu0 %v18371_v0 }
0x41dd   : > { %16490 = vmatpush3.msra.mxu0 %v14332_v34 }
0x41de   : > { %16491 = vmatprep.subr.mxu0 %v18371_v0 }
0x41df   : > { %16492 = vmatpush3.msra.mxu0 %v14331_v35 }
0x41e0   : > { %16494 = vmatmul.mubr.msk.f32.vlgmr.msra.gmra.mxu0 %vm3279_vm5, %v14246_v30 }
0x4298   : > { %v14327_v40 = vpop.f32.mrf.mxu0 }
0x4299   : > { %v14328_v43 = vadd.f32 %v15337_v39, %v14327_v40 }
0x429a   : > { %v16484_v44 = vpop.f32.mrf.mxu0 }
0x429b   : > { %14428 = vst.msk [vmem:[%s3088_s27] sm:$0xff] %vm3098_vm3, %v14328_v43 }
0x42a0   : > { %v14408_v38 = vpop.f32.mrf.mxu0 }
0x42a1   : > { %v14409_v42 = vadd.f32 %v15339_v12, %v14408_v38 }
0x42a2   : > { %v16495_v45 = vpop.f32.mrf.mxu0 }
0x42a3   : > { %v14413_v36 = vmin.f32 %v14409_v42, 20.0  ;;  %vm14412_vm15 = vcmp.gt.f32.partialorder %v14409_v42, 20.0 }
0x42a5   : > { %v14414_v47 = vmul.f32 1.442695, %v14413_v36 }
0x42a7   : > { %17134 = vpow2.f32 %v14414_v47 }
0x42b4   : > { %v17135_v0 = vpop.eup %17134 }
0x42b5   : > { %v14416_v48 = vadd.f32 1.0, %v17135_v0  ;;  %v14419_v46 = vmul.f32 -0.5, %v17135_v0  ;;  %v14422_v51 = vand.u32 2147483647, %v17135_v0 }
0x42b7   : > { %17136 = vlog2.f32 %v14416_v48  ;;  %v14420_v50 = vadd.f32 1.0, %v14419_v46  ;;  %vm14423_vm14 = vcmp.lt.f32.partialorder %v14422_v51, 0.0004427343 }
0x42b9   : > { %v14421_v54 = vmul.f32 %v17135_v0, %v14420_v50 }
0x42c4   : > { %v17137_v53 = vpop.eup %17136 }
0x42c5   : > { %v14418_v1 = vmul.f32 0.6931472, %v17137_v53 }
0x42c7   : > { %v14424_v55 = vsel %vm14423_vm14, %v14421_v54, %v14418_v1 }
0x42c8   : > { %v14425_v58 = vsel %vm14412_vm15, %v14409_v42, %v14424_v55 }
0x42c9   : > { %v14426_v56 = vmul.f32 0.99, %v14425_v58 }
0x42cb   : > { %v14427_v57 = vadd.f32 0.01, %v14426_v56 }
0x42cd   : > { %14429 = vst.msk [vmem:[%s3092_s28] sm:$0xff] %vm3098_vm3, %v14427_v57 }
0x42ce PF: > { %s21044_s22 = sld [smem:[#allocation176_spill]] }
0x42d4   : > { %s208_s0 = sadd.s32 1, %s21044_s22  }
0x42d5   : > { %p205_p3 = scmp.ge.s32.totalorder %s208_s0, 4  }
0x42d7   :  { %207 = sbr.rel (!%p205_p3) target bundleno = 201 (0xc9), region = 668 }
0x42dc   :  { %14463 = vsyncpa [#allocation3], 1 }
0x42dd   :  { %14465 = vsyncpa [#allocation3 + $0x1], 1 }
0x42de   :  { %14466 = vsyncpa [#allocation5], 1 }
0x42df   :  { %14467 = vsyncpa [#allocation8], 1 }
0x42e0   :  { %14468 = vsyncpa [#allocation11], 1 }
0x42e1   :  { %14469 = vsyncpa [#allocation14], 1 }
0x42e2   :  { %14470 = vsyncpa [#allocation17], 1 }
0x42e3   :  { %14471 = vsyncpa [#allocation20], 1 }
0x42e4   :  { %14472 = vsyncpa [#allocation23], 1 }
0x42e5   :  { %14473 = vsyncpa [#allocation26], 1 }
0x42e6   :  { %14474 = vsyncpa [#allocation29], 1 }
0x42e7   :  { %14475 = vsyncpa [#allocation32], 1 }
0x42e8   :  { %14476 = vsyncpa [#allocation35], 1 }
0x42e9   :  { %14477 = vsyncpa [#allocation38], 1 }
0x42ea   :  { %14478 = vsyncpa [#allocation41], 1 }
0x42eb   :  { %14479 = vsyncpa [#allocation44], 1 }
0x42ec   :  { %14480 = vsyncpa [#allocation47], 1 }
0x42ed   :  { %14481 = vsyncpa [#allocation50], 1 }
0x42ee   :  { %14482 = vsyncpa [#allocation53], 1 }
0x42ef   :  { %14483 = vsyncpa [#allocation56], 1 }
0x42f0   :  { %14484 = vsyncpa [#allocation59], 1 }
0x42f1   :  { %14485 = vsyncpa [#allocation62], 1 }
0x42f2   :  { %14486 = vsyncpa [#allocation65], 1 }

</bundles_post_ra>
